<compile_context>
chip_gen: v6e
topology: v6e:2x2x1
jax: 0.10.0
libtpu: 0.0.40
codegen_flags: <defaults>
</compile_context>

<pallas_src>
import numpy as np
import jax
import jax.numpy as jnp
from jax import lax
from jax.experimental import pallas as pl
from jax.experimental.pallas import tpu as pltpu

# Small shapes consistent with the module (original uses 100x100; 16x16 keeps
# _to_linear = 64 * (IMG//8)^2 exact after the three 2x2 pools).
IMG_HEIGHT = 16
IMG_WIDTH = 16
INPUTS = 3
OUTPUTS = 1
DROPOUT = 0.1          # identity at inference
H1 = 500               # fc1 hidden size
H1_PAD = 512           # padded to a multiple of 128 for clean lane/sublane tiling


# ------------------------------ fused kernel ------------------------------- #

def _shift_lanes(a, delta):
    """out[:, l] = a[:, l + delta] for 0 <= l + delta < L, else 0 (static delta)."""
    if delta == 0:
        return a
    c, l = a.shape
    fill = jnp.zeros((c, abs(delta)), a.dtype)
    if delta > 0:
        return jnp.concatenate([a[:, delta:], fill], axis=1)
    return jnp.concatenate([fill, a[:, :l + delta]], axis=1)


def _make_fused_kernel(N, H, W):
    H2, W2 = H // 2, W // 2          # after pool1
    H3, W3 = H // 4, W // 4          # conv3 feature map (after pool2)
    Hp, Wp = H // 8, W // 8          # after pool3 (flattened into fc1)
    n_pos = Hp * Wp                  # pooled spatial positions per image

    def conv3x3_relu(a, w9_ref, mask_ref, b_col, wc):
        """a: (c_in, L) with L = N*hc*wc.  w9_ref: (9, c_out, c_in) ref.
        mask_ref: (9, L) 0/1 border masks.  Returns relu(conv(a) + b)."""
        c_out, c_in = w9_ref.shape[1], w9_ref.shape[2]
        L = a.shape[1]
        acc = jnp.zeros((c_out, L), jnp.float32)
        k = 0
        for dh in (-1, 0, 1):
            for dw in (-1, 0, 1):
                tap = _shift_lanes(a, dh * wc + dw) * mask_ref[k:k + 1, :]
                wk = w9_ref[k]                              # (c_out, c_in)
                if c_in == 1:
                    acc = acc + wk * tap                    # (c_out,1)*(1,L) bcast
                else:
                    acc = acc + jnp.dot(wk, tap,
                                        preferred_element_type=jnp.float32)
                k += 1
        return jnp.maximum(acc + b_col, 0.0)

    def window_max2x2(z, wc):
        # 4-way max over the 2x2 window anchored at every flat position; only
        # even-(h, w) anchors are consumed downstream, and for those all three
        # shifted reads stay inside the same image, so no masking is needed.
        return jnp.maximum(jnp.maximum(z, _shift_lanes(z, 1)),
                           jnp.maximum(_shift_lanes(z, wc),
                                       _shift_lanes(z, wc + 1)))

    def kernel(x_ref, w1_ref, b1_ref, w2_ref, b2_ref, w3_ref, b3_ref,
               m1_ref, m2_ref, m3_ref, sel1_ref, sel2_ref,
               wf1x_ref, wf1y_ref, bf1_ref, wf2_ref, bf2_ref, yt_ref, o_ref):
        f32 = jnp.float32

        # conv1 + relu + pool : (1, N*H*W) -> (16, N*H2*W2)
        a = conv3x3_relu(x_ref[...], w1_ref, m1_ref, b1_ref[...], W)
        a = jnp.dot(window_max2x2(a, W), sel1_ref[...], preferred_element_type=f32)

        # conv2 + relu + pool : (16, N*H2*W2) -> (32, N*H3*W3)
        a = conv3x3_relu(a, w2_ref, m2_ref, b2_ref[...], W2)
        a = jnp.dot(window_max2x2(a, W2), sel2_ref[...], preferred_element_type=f32)

        # conv3 + relu (+ window max); the final 2x2 pool is folded into the
        # fc1 contraction below by reading only the window-anchor columns.
        a = conv3x3_relu(a, w3_ref, m3_ref, b3_ref[...], W3)
        a = window_max2x2(a, W3)                            # (64, N*H3*W3)

        # fc1: cat((x_flat, y), 1) @ fc1_w.T + fc1_b as a split contraction.
        h = jnp.dot(wf1y_ref[...], yt_ref[...], preferred_element_type=f32)
        hw3 = H3 * W3
        for p in range(n_pos):
            ho, wo = divmod(p, Wp)
            base = (2 * ho) * W3 + 2 * wo                   # pool-window anchor
            a_p = jnp.concatenate(
                [a[:, n * hw3 + base: n * hw3 + base + 1] for n in range(N)],
                axis=1)                                     # (64, N)
            h = h + jnp.dot(wf1x_ref[p], a_p, preferred_element_type=f32)
        h = h + bf1_ref[...]                                # (H1_PAD, N)

        # TODO(synk): nn.Dropout(p=0.1) is identity in inference mode; the
        # training-mode stochastic mask is not implemented here.

        # fc2
        out = jnp.dot(wf2_ref[...], h, preferred_element_type=f32) + bf2_ref[...]
        o_ref[...] = out.astype(o_ref.dtype)                # (OUTPUTS, N)

    return kernel


# ------------------------- parameter / constant prep ------------------------ #

def _pool_selection_matrix(N, H, W):
    """(N*H*W, N*(H//2)*(W//2)) 0/1 matrix: right-multiplying the 4-way window
    max by it gathers the even-(h, w) anchors, i.e. performs the 2x2 pool."""
    Hh, Wh = H // 2, W // 2
    sel = np.zeros((N * H * W, N * Hh * Wh), np.float32)
    for n in range(N):
        for ho in range(Hh):
            for wo in range(Wh):
                sel[n * H * W + (2 * ho) * W + 2 * wo,
                    n * Hh * Wh + ho * Wh + wo] = 1.0
    return jnp.asarray(sel)


def _conv_tap_masks(N, H, W):
    """(9, N*H*W) 0/1 masks: mask[k, l] == 1 iff tap k=(dh,dw) at flat position
    l stays inside its own image (zero-padding semantics of Conv2d(pad=1))."""
    lane = np.arange(N * H * W)
    w_idx = lane % W
    h_idx = (lane // W) % H
    rows = []
    for dh in (-1, 0, 1):
        for dw in (-1, 0, 1):
            rows.append(((w_idx + dw >= 0) & (w_idx + dw < W) &
                         (h_idx + dh >= 0) & (h_idx + dh < H)).astype(np.float32))
    return jnp.asarray(np.stack(rows, axis=0))


def prepare_kernel_params(params, N):
    """One-time (outside the jitted forward) re-layout of the PyTorch-style
    parameters into the kernel's VMEM-resident layout."""
    H, W = IMG_HEIGHT, IMG_WIDTH
    to_linear = 64 * (H // 8) * (W // 8)
    n_pos = (H // 8) * (W // 8)

    def conv_w9(w):      # (C_out, C_in, 3, 3) -> (9, C_out, C_in), k = kh*3+kw
        co, ci = w.shape[0], w.shape[1]
        return jnp.transpose(w, (2, 3, 0, 1)).reshape(9, co, ci)

    h1 = params["fc1_w"].shape[0]
    pad = H1_PAD - h1
    w1x = params["fc1_w"][:, :to_linear].reshape(h1, 64, n_pos)
    w1x = jnp.transpose(jnp.pad(w1x, ((0, pad), (0, 0), (0, 0))), (2, 0, 1))

    return dict(
        w1=conv_w9(params["conv1_w"]), b1=params["conv1_b"].reshape(-1, 1),
        w2=conv_w9(params["conv2_w"]), b2=params["conv2_b"].reshape(-1, 1),
        w3=conv_w9(params["conv3_w"]), b3=params["conv3_b"].reshape(-1, 1),
        mask1=_conv_tap_masks(N, H, W),
        mask2=_conv_tap_masks(N, H // 2, W // 2),
        mask3=_conv_tap_masks(N, H // 4, W // 4),
        sel1=_pool_selection_matrix(N, H, W),
        sel2=_pool_selection_matrix(N, H // 2, W // 2),
        fc1_wx=w1x,                                                   # (n_pos, 512, 64)
        fc1_wy=jnp.pad(params["fc1_w"][:, to_linear:], ((0, pad), (0, 0))),  # (512, 3)
        fc1_b=jnp.pad(params["fc1_b"], (0, pad)).reshape(H1_PAD, 1),  # (512, 1)
        fc2_w=jnp.pad(params["fc2_w"], ((0, 0), (0, pad))),           # (1, 512)
        fc2_b=params["fc2_b"].reshape(OUTPUTS, 1),                    # (1, 1)
    )


# --------------------------------- forward ---------------------------------- #

def cnn_forward(kparams, x, y):
    """Fused forward: x (N, 1, H, W), y (N, INPUTS) -> (N, OUTPUTS)."""
    N, _, H, W = x.shape
    out = pl.pallas_call(
        _make_fused_kernel(N, H, W),
        out_shape=jax.ShapeDtypeStruct((OUTPUTS, N), jnp.float32),
        compiler_params=pltpu.CompilerParams(vmem_limit_bytes=32 * 1024 * 1024),
    )(x.reshape(1, N * H * W),            # conv1 input: (C_in=1, batch*spatial)
      kparams["w1"], kparams["b1"], kparams["w2"], kparams["b2"],
      kparams["w3"], kparams["b3"],
      kparams["mask1"], kparams["mask2"], kparams["mask3"],
      kparams["sel1"], kparams["sel2"],
      kparams["fc1_wx"], kparams["fc1_wy"], kparams["fc1_b"],
      kparams["fc2_w"], kparams["fc2_b"],
      y.T)                                # (INPUTS, N) -- tiny
    return out.T                          # (N, OUTPUTS)


# ------------------------------ params & check ------------------------------ #

def init_params(key):
    ks = jax.random.split(key, 10)
    to_linear = 64 * (IMG_WIDTH // 8) * (IMG_HEIGHT // 8)

    def u(k, shape, fan_in):
        bound = 1.0 / float(np.sqrt(fan_in))
        return jax.random.uniform(k, shape, jnp.float32, -bound, bound)

    return dict(
        conv1_w=u(ks[0], (16, 1, 3, 3), 1 * 9),    conv1_b=u(ks[1], (16,), 1 * 9),
        conv2_w=u(ks[2], (32, 16, 3, 3), 16 * 9),  conv2_b=u(ks[3], (32,), 16 * 9),
        conv3_w=u(ks[4], (64, 32, 3, 3), 32 * 9),  conv3_b=u(ks[5], (64,), 32 * 9),
        fc1_w=u(ks[6], (H1, to_linear + INPUTS), to_linear + INPUTS),
        fc1_b=u(ks[7], (H1,), to_linear + INPUTS),
        fc2_w=u(ks[8], (OUTPUTS, H1), H1),
        fc2_b=u(ks[9], (OUTPUTS,), H1),
    )


def ref_forward(params, x, y):
    """Pure-JAX reference (no Pallas) for correctness check."""
    def conv(h, w, b):
        out = lax.conv_general_dilated(h, w, (1, 1), ((1, 1), (1, 1)),
                                       dimension_numbers=("NCHW", "OIHW", "NCHW"))
        return jax.nn.relu(out + b.reshape(1, -1, 1, 1))

    def pool(h):
        return lax.reduce_window(h, -jnp.inf, lax.max,
                                 (1, 1, 2, 2), (1, 1, 2, 2), "VALID")

    h = pool(conv(x, params["conv1_w"], params["conv1_b"]))
    h = pool(conv(h, params["conv2_w"], params["conv2_b"]))
    h = pool(conv(h, params["conv3_w"], params["conv3_b"]))
    h = h.reshape(h.shape[0], -1)
    h = jnp.concatenate([h, y], axis=1)
    h = h @ params["fc1_w"].T + params["fc1_b"]
    h = h @ params["fc2_w"].T + params["fc2_b"]
    return h


if __name__ == "__main__":
    key = jax.random.PRNGKey(0)
    pk, xk, yk = jax.random.split(key, 3)
    params = init_params(pk)

    N = 2
    x = jax.random.normal(xk, (N, 1, IMG_HEIGHT, IMG_WIDTH), jnp.float32)
    y = jax.random.normal(yk, (N, INPUTS), jnp.float32)

    kparams = prepare_kernel_params(params, N)    # one-time re-layout, outside jit
    out = jax.block_until_ready(jax.jit(cnn_forward)(kparams, x, y))

    assert out.shape == (N, OUTPUTS), out.shape
    ref = ref_forward(params, x, y)
    np.testing.assert_allclose(np.asarray(out), np.asarray(ref),
                               rtol=1e-3, atol=1e-3)
    print("KERNEL_OK")
</pallas_src>

<mosaic_0001>
module attributes {stable_mosaic.version = 11 : i64} {
  func.func @kernel(%arg0: memref<1x512xf32, #tpu.memory_space<vmem>>, %arg1: memref<9x16x1xf32, #tpu.memory_space<vmem>>, %arg2: memref<16x1xf32, #tpu.memory_space<vmem>>, %arg3: memref<9x32x16xf32, #tpu.memory_space<vmem>>, %arg4: memref<32x1xf32, #tpu.memory_space<vmem>>, %arg5: memref<9x64x32xf32, #tpu.memory_space<vmem>>, %arg6: memref<64x1xf32, #tpu.memory_space<vmem>>, %arg7: memref<9x512xf32, #tpu.memory_space<vmem>>, %arg8: memref<9x128xf32, #tpu.memory_space<vmem>>, %arg9: memref<9x32xf32, #tpu.memory_space<vmem>>, %arg10: memref<512x128xf32, #tpu.memory_space<vmem>>, %arg11: memref<128x32xf32, #tpu.memory_space<vmem>>, %arg12: memref<4x512x64xf32, #tpu.memory_space<vmem>>, %arg13: memref<512x3xf32, #tpu.memory_space<vmem>>, %arg14: memref<512x1xf32, #tpu.memory_space<vmem>>, %arg15: memref<1x512xf32, #tpu.memory_space<vmem>>, %arg16: memref<1x1xf32, #tpu.memory_space<vmem>>, %arg17: memref<3x2xf32, #tpu.memory_space<vmem>>, %arg18: memref<1x2xf32, #tpu.memory_space<vmem>>) attributes {dimension_semantics = [], scalar_prefetch = 0 : i64, scratch_operands = 0 : i64, tpu.core_type = #tpu.core_type<tc>} {
    %c0 = arith.constant 0 : index
    %c0_0 = arith.constant 0 : index
    %0 = vector.load %arg0[%c0, %c0_0] : memref<1x512xf32, #tpu.memory_space<vmem>>, vector<1x512xf32>
    %c0_1 = arith.constant 0 : index
    %c0_2 = arith.constant 0 : index
    %1 = vector.load %arg2[%c0_1, %c0_2] : memref<16x1xf32, #tpu.memory_space<vmem>>, vector<16x1xf32>
    %cst = arith.constant 0.000000e+00 : f32
    %2 = vector.broadcast %cst : f32 to vector<16x512xf32>
    %cst_3 = arith.constant 0.000000e+00 : f32
    %3 = vector.broadcast %cst_3 : f32 to vector<1x17xf32>
    %4 = vector.extract_strided_slice %0 {offsets = [0, 0], sizes = [1, 495], strides = [1, 1]} : vector<1x512xf32> to vector<1x495xf32>
    %5 = tpu.concatenate %3, %4 in 1 : vector<1x17xf32>, vector<1x495xf32> -> vector<1x512xf32>
    %c0_4 = arith.constant 0 : index
    %c0_5 = arith.constant 0 : index
    %6 = vector.load %arg7[%c0_4, %c0_5] : memref<9x512xf32, #tpu.memory_space<vmem>>, vector<1x512xf32>
    %7 = arith.mulf %5, %6 : vector<1x512xf32>
    %c0_6 = arith.constant 0 : index
    %c0_7 = arith.constant 0 : index
    %c0_8 = arith.constant 0 : index
    %8 = vector.load %arg1[%c0_6, %c0_7, %c0_8] : memref<9x16x1xf32, #tpu.memory_space<vmem>>, vector<1x16x1xf32>
    %9 = vector.shape_cast %8 : vector<1x16x1xf32> to vector<16x1xf32>
    %10 = vector.broadcast %9 : vector<16x1xf32> to vector<16x512xf32>
    %11 = vector.broadcast %7 : vector<1x512xf32> to vector<16x512xf32>
    %12 = arith.mulf %10, %11 : vector<16x512xf32>
    %13 = arith.addf %2, %12 : vector<16x512xf32>
    %cst_9 = arith.constant 0.000000e+00 : f32
    %14 = vector.broadcast %cst_9 : f32 to vector<1x16xf32>
    %15 = vector.extract_strided_slice %0 {offsets = [0, 0], sizes = [1, 496], strides = [1, 1]} : vector<1x512xf32> to vector<1x496xf32>
    %16 = tpu.concatenate %14, %15 in 1 : vector<1x16xf32>, vector<1x496xf32> -> vector<1x512xf32>
    %c1 = arith.constant 1 : index
    %c0_10 = arith.constant 0 : index
    %17 = vector.load %arg7[%c1, %c0_10] : memref<9x512xf32, #tpu.memory_space<vmem>>, vector<1x512xf32>
    %18 = arith.mulf %16, %17 : vector<1x512xf32>
    %c1_11 = arith.constant 1 : index
    %c0_12 = arith.constant 0 : index
    %c0_13 = arith.constant 0 : index
    %19 = vector.load %arg1[%c1_11, %c0_12, %c0_13] : memref<9x16x1xf32, #tpu.memory_space<vmem>>, vector<1x16x1xf32>
    %20 = vector.shape_cast %19 : vector<1x16x1xf32> to vector<16x1xf32>
    %21 = vector.broadcast %20 : vector<16x1xf32> to vector<16x512xf32>
    %22 = vector.broadcast %18 : vector<1x512xf32> to vector<16x512xf32>
    %23 = arith.mulf %21, %22 : vector<16x512xf32>
    %24 = arith.addf %13, %23 : vector<16x512xf32>
    %cst_14 = arith.constant 0.000000e+00 : f32
    %25 = vector.broadcast %cst_14 : f32 to vector<1x15xf32>
    %26 = vector.extract_strided_slice %0 {offsets = [0, 0], sizes = [1, 497], strides = [1, 1]} : vector<1x512xf32> to vector<1x497xf32>
    %27 = tpu.concatenate %25, %26 in 1 : vector<1x15xf32>, vector<1x497xf32> -> vector<1x512xf32>
    %c2 = arith.constant 2 : index
    %c0_15 = arith.constant 0 : index
    %28 = vector.load %arg7[%c2, %c0_15] : memref<9x512xf32, #tpu.memory_space<vmem>>, vector<1x512xf32>
    %29 = arith.mulf %27, %28 : vector<1x512xf32>
    %c2_16 = arith.constant 2 : index
    %c0_17 = arith.constant 0 : index
    %c0_18 = arith.constant 0 : index
    %30 = vector.load %arg1[%c2_16, %c0_17, %c0_18] : memref<9x16x1xf32, #tpu.memory_space<vmem>>, vector<1x16x1xf32>
    %31 = vector.shape_cast %30 : vector<1x16x1xf32> to vector<16x1xf32>
    %32 = vector.broadcast %31 : vector<16x1xf32> to vector<16x512xf32>
    %33 = vector.broadcast %29 : vector<1x512xf32> to vector<16x512xf32>
    %34 = arith.mulf %32, %33 : vector<16x512xf32>
    %35 = arith.addf %24, %34 : vector<16x512xf32>
    %cst_19 = arith.constant 0.000000e+00 : f32
    %36 = vector.broadcast %cst_19 : f32 to vector<1x1xf32>
    %37 = vector.extract_strided_slice %0 {offsets = [0, 0], sizes = [1, 511], strides = [1, 1]} : vector<1x512xf32> to vector<1x511xf32>
    %38 = tpu.concatenate %36, %37 in 1 : vector<1x1xf32>, vector<1x511xf32> -> vector<1x512xf32>
    %c3 = arith.constant 3 : index
    %c0_20 = arith.constant 0 : index
    %39 = vector.load %arg7[%c3, %c0_20] : memref<9x512xf32, #tpu.memory_space<vmem>>, vector<1x512xf32>
    %40 = arith.mulf %38, %39 : vector<1x512xf32>
    %c3_21 = arith.constant 3 : index
    %c0_22 = arith.constant 0 : index
    %c0_23 = arith.constant 0 : index
    %41 = vector.load %arg1[%c3_21, %c0_22, %c0_23] : memref<9x16x1xf32, #tpu.memory_space<vmem>>, vector<1x16x1xf32>
    %42 = vector.shape_cast %41 : vector<1x16x1xf32> to vector<16x1xf32>
    %43 = vector.broadcast %42 : vector<16x1xf32> to vector<16x512xf32>
    %44 = vector.broadcast %40 : vector<1x512xf32> to vector<16x512xf32>
    %45 = arith.mulf %43, %44 : vector<16x512xf32>
    %46 = arith.addf %35, %45 : vector<16x512xf32>
    %c4 = arith.constant 4 : index
    %c0_24 = arith.constant 0 : index
    %47 = vector.load %arg7[%c4, %c0_24] : memref<9x512xf32, #tpu.memory_space<vmem>>, vector<1x512xf32>
    %48 = arith.mulf %0, %47 : vector<1x512xf32>
    %c4_25 = arith.constant 4 : index
    %c0_26 = arith.constant 0 : index
    %c0_27 = arith.constant 0 : index
    %49 = vector.load %arg1[%c4_25, %c0_26, %c0_27] : memref<9x16x1xf32, #tpu.memory_space<vmem>>, vector<1x16x1xf32>
    %50 = vector.shape_cast %49 : vector<1x16x1xf32> to vector<16x1xf32>
    %51 = vector.broadcast %50 : vector<16x1xf32> to vector<16x512xf32>
    %52 = vector.broadcast %48 : vector<1x512xf32> to vector<16x512xf32>
    %53 = arith.mulf %51, %52 : vector<16x512xf32>
    %54 = arith.addf %46, %53 : vector<16x512xf32>
    %cst_28 = arith.constant 0.000000e+00 : f32
    %55 = vector.broadcast %cst_28 : f32 to vector<1x1xf32>
    %56 = vector.extract_strided_slice %0 {offsets = [0, 1], sizes = [1, 511], strides = [1, 1]} : vector<1x512xf32> to vector<1x511xf32>
    %57 = tpu.concatenate %56, %55 in 1 : vector<1x511xf32>, vector<1x1xf32> -> vector<1x512xf32>
    %c5 = arith.constant 5 : index
    %c0_29 = arith.constant 0 : index
    %58 = vector.load %arg7[%c5, %c0_29] : memref<9x512xf32, #tpu.memory_space<vmem>>, vector<1x512xf32>
    %59 = arith.mulf %57, %58 : vector<1x512xf32>
    %c5_30 = arith.constant 5 : index
    %c0_31 = arith.constant 0 : index
    %c0_32 = arith.constant 0 : index
    %60 = vector.load %arg1[%c5_30, %c0_31, %c0_32] : memref<9x16x1xf32, #tpu.memory_space<vmem>>, vector<1x16x1xf32>
    %61 = vector.shape_cast %60 : vector<1x16x1xf32> to vector<16x1xf32>
    %62 = vector.broadcast %61 : vector<16x1xf32> to vector<16x512xf32>
    %63 = vector.broadcast %59 : vector<1x512xf32> to vector<16x512xf32>
    %64 = arith.mulf %62, %63 : vector<16x512xf32>
    %65 = arith.addf %54, %64 : vector<16x512xf32>
    %cst_33 = arith.constant 0.000000e+00 : f32
    %66 = vector.broadcast %cst_33 : f32 to vector<1x15xf32>
    %67 = vector.extract_strided_slice %0 {offsets = [0, 15], sizes = [1, 497], strides = [1, 1]} : vector<1x512xf32> to vector<1x497xf32>
    %68 = tpu.concatenate %67, %66 in 1 : vector<1x497xf32>, vector<1x15xf32> -> vector<1x512xf32>
    %c6 = arith.constant 6 : index
    %c0_34 = arith.constant 0 : index
    %69 = vector.load %arg7[%c6, %c0_34] : memref<9x512xf32, #tpu.memory_space<vmem>>, vector<1x512xf32>
    %70 = arith.mulf %68, %69 : vector<1x512xf32>
    %c6_35 = arith.constant 6 : index
    %c0_36 = arith.constant 0 : index
    %c0_37 = arith.constant 0 : index
    %71 = vector.load %arg1[%c6_35, %c0_36, %c0_37] : memref<9x16x1xf32, #tpu.memory_space<vmem>>, vector<1x16x1xf32>
    %72 = vector.shape_cast %71 : vector<1x16x1xf32> to vector<16x1xf32>
    %73 = vector.broadcast %72 : vector<16x1xf32> to vector<16x512xf32>
    %74 = vector.broadcast %70 : vector<1x512xf32> to vector<16x512xf32>
    %75 = arith.mulf %73, %74 : vector<16x512xf32>
    %76 = arith.addf %65, %75 : vector<16x512xf32>
    %cst_38 = arith.constant 0.000000e+00 : f32
    %77 = vector.broadcast %cst_38 : f32 to vector<1x16xf32>
    %78 = vector.extract_strided_slice %0 {offsets = [0, 16], sizes = [1, 496], strides = [1, 1]} : vector<1x512xf32> to vector<1x496xf32>
    %79 = tpu.concatenate %78, %77 in 1 : vector<1x496xf32>, vector<1x16xf32> -> vector<1x512xf32>
    %c7 = arith.constant 7 : index
    %c0_39 = arith.constant 0 : index
    %80 = vector.load %arg7[%c7, %c0_39] : memref<9x512xf32, #tpu.memory_space<vmem>>, vector<1x512xf32>
    %81 = arith.mulf %79, %80 : vector<1x512xf32>
    %c7_40 = arith.constant 7 : index
    %c0_41 = arith.constant 0 : index
    %c0_42 = arith.constant 0 : index
    %82 = vector.load %arg1[%c7_40, %c0_41, %c0_42] : memref<9x16x1xf32, #tpu.memory_space<vmem>>, vector<1x16x1xf32>
    %83 = vector.shape_cast %82 : vector<1x16x1xf32> to vector<16x1xf32>
    %84 = vector.broadcast %83 : vector<16x1xf32> to vector<16x512xf32>
    %85 = vector.broadcast %81 : vector<1x512xf32> to vector<16x512xf32>
    %86 = arith.mulf %84, %85 : vector<16x512xf32>
    %87 = arith.addf %76, %86 : vector<16x512xf32>
    %cst_43 = arith.constant 0.000000e+00 : f32
    %88 = vector.broadcast %cst_43 : f32 to vector<1x17xf32>
    %89 = vector.extract_strided_slice %0 {offsets = [0, 17], sizes = [1, 495], strides = [1, 1]} : vector<1x512xf32> to vector<1x495xf32>
    %90 = tpu.concatenate %89, %88 in 1 : vector<1x495xf32>, vector<1x17xf32> -> vector<1x512xf32>
    %c8 = arith.constant 8 : index
    %c0_44 = arith.constant 0 : index
    %91 = vector.load %arg7[%c8, %c0_44] : memref<9x512xf32, #tpu.memory_space<vmem>>, vector<1x512xf32>
    %92 = arith.mulf %90, %91 : vector<1x512xf32>
    %c8_45 = arith.constant 8 : index
    %c0_46 = arith.constant 0 : index
    %c0_47 = arith.constant 0 : index
    %93 = vector.load %arg1[%c8_45, %c0_46, %c0_47] : memref<9x16x1xf32, #tpu.memory_space<vmem>>, vector<1x16x1xf32>
    %94 = vector.shape_cast %93 : vector<1x16x1xf32> to vector<16x1xf32>
    %95 = vector.broadcast %94 : vector<16x1xf32> to vector<16x512xf32>
    %96 = vector.broadcast %92 : vector<1x512xf32> to vector<16x512xf32>
    %97 = arith.mulf %95, %96 : vector<16x512xf32>
    %98 = arith.addf %87, %97 : vector<16x512xf32>
    %99 = vector.broadcast %1 : vector<16x1xf32> to vector<16x512xf32>
    %100 = arith.addf %98, %99 : vector<16x512xf32>
    %cst_48 = arith.constant 0.000000e+00 : f32
    %101 = vector.broadcast %cst_48 : f32 to vector<16x512xf32>
    %102 = arith.maximumf %100, %101 : vector<16x512xf32>
    %cst_49 = arith.constant 0.000000e+00 : f32
    %103 = vector.broadcast %cst_49 : f32 to vector<16x1xf32>
    %104 = vector.extract_strided_slice %102 {offsets = [0, 1], sizes = [16, 511], strides = [1, 1]} : vector<16x512xf32> to vector<16x511xf32>
    %105 = tpu.concatenate %104, %103 in 1 : vector<16x511xf32>, vector<16x1xf32> -> vector<16x512xf32>
    %106 = arith.maximumf %102, %105 : vector<16x512xf32>
    %cst_50 = arith.constant 0.000000e+00 : f32
    %107 = vector.broadcast %cst_50 : f32 to vector<16x16xf32>
    %108 = vector.extract_strided_slice %102 {offsets = [0, 16], sizes = [16, 496], strides = [1, 1]} : vector<16x512xf32> to vector<16x496xf32>
    %109 = tpu.concatenate %108, %107 in 1 : vector<16x496xf32>, vector<16x16xf32> -> vector<16x512xf32>
    %cst_51 = arith.constant 0.000000e+00 : f32
    %110 = vector.broadcast %cst_51 : f32 to vector<16x17xf32>
    %111 = vector.extract_strided_slice %102 {offsets = [0, 17], sizes = [16, 495], strides = [1, 1]} : vector<16x512xf32> to vector<16x495xf32>
    %112 = tpu.concatenate %111, %110 in 1 : vector<16x495xf32>, vector<16x17xf32> -> vector<16x512xf32>
    %113 = arith.maximumf %109, %112 : vector<16x512xf32>
    %114 = arith.maximumf %106, %113 : vector<16x512xf32>
    %c0_52 = arith.constant 0 : index
    %c0_53 = arith.constant 0 : index
    %115 = vector.load %arg10[%c0_52, %c0_53] : memref<512x128xf32, #tpu.memory_space<vmem>>, vector<512x128xf32>
    %cst_54 = arith.constant dense<0.000000e+00> : vector<16x128xf32>
    %116 = tpu.matmul %114, %115, %cst_54 {dimension_numbers = #tpu.dot_dimension_numbers<[1], [0], [0], [1], [0, 0, 1, 1], [], []>} : vector<16x512xf32>, vector<512x128xf32>, vector<16x128xf32> -> vector<16x128xf32>
    %c0_55 = arith.constant 0 : index
    %c0_56 = arith.constant 0 : index
    %117 = vector.load %arg4[%c0_55, %c0_56] : memref<32x1xf32, #tpu.memory_space<vmem>>, vector<32x1xf32>
    %cst_57 = arith.constant 0.000000e+00 : f32
    %118 = vector.broadcast %cst_57 : f32 to vector<32x128xf32>
    %cst_58 = arith.constant 0.000000e+00 : f32
    %119 = vector.broadcast %cst_58 : f32 to vector<16x9xf32>
    %120 = vector.extract_strided_slice %116 {offsets = [0, 0], sizes = [16, 119], strides = [1, 1]} : vector<16x128xf32> to vector<16x119xf32>
    %121 = tpu.concatenate %119, %120 in 1 : vector<16x9xf32>, vector<16x119xf32> -> vector<16x128xf32>
    %c0_59 = arith.constant 0 : index
    %c0_60 = arith.constant 0 : index
    %122 = vector.load %arg8[%c0_59, %c0_60] : memref<9x128xf32, #tpu.memory_space<vmem>>, vector<1x128xf32>
    %123 = vector.broadcast %122 : vector<1x128xf32> to vector<16x128xf32>
    %124 = arith.mulf %121, %123 : vector<16x128xf32>
    %c0_61 = arith.constant 0 : index
    %c0_62 = arith.constant 0 : index
    %c0_63 = arith.constant 0 : index
    %125 = vector.load %arg3[%c0_61, %c0_62, %c0_63] : memref<9x32x16xf32, #tpu.memory_space<vmem>>, vector<1x32x16xf32>
    %126 = vector.shape_cast %125 : vector<1x32x16xf32> to vector<32x16xf32>
    %cst_64 = arith.constant dense<0.000000e+00> : vector<32x128xf32>
    %127 = tpu.matmul %126, %124, %cst_64 {dimension_numbers = #tpu.dot_dimension_numbers<[1], [0], [0], [1], [0, 0, 1, 1], [], []>} : vector<32x16xf32>, vector<16x128xf32>, vector<32x128xf32> -> vector<32x128xf32>
    %128 = arith.addf %118, %127 : vector<32x128xf32>
    %cst_65 = arith.constant 0.000000e+00 : f32
    %129 = vector.broadcast %cst_65 : f32 to vector<16x8xf32>
    %130 = vector.extract_strided_slice %116 {offsets = [0, 0], sizes = [16, 120], strides = [1, 1]} : vector<16x128xf32> to vector<16x120xf32>
    %131 = tpu.concatenate %129, %130 in 1 : vector<16x8xf32>, vector<16x120xf32> -> vector<16x128xf32>
    %c1_66 = arith.constant 1 : index
    %c0_67 = arith.constant 0 : index
    %132 = vector.load %arg8[%c1_66, %c0_67] : memref<9x128xf32, #tpu.memory_space<vmem>>, vector<1x128xf32>
    %133 = vector.broadcast %132 : vector<1x128xf32> to vector<16x128xf32>
    %134 = arith.mulf %131, %133 : vector<16x128xf32>
    %c1_68 = arith.constant 1 : index
    %c0_69 = arith.constant 0 : index
    %c0_70 = arith.constant 0 : index
    %135 = vector.load %arg3[%c1_68, %c0_69, %c0_70] : memref<9x32x16xf32, #tpu.memory_space<vmem>>, vector<1x32x16xf32>
    %136 = vector.shape_cast %135 : vector<1x32x16xf32> to vector<32x16xf32>
    %cst_71 = arith.constant dense<0.000000e+00> : vector<32x128xf32>
    %137 = tpu.matmul %136, %134, %cst_71 {dimension_numbers = #tpu.dot_dimension_numbers<[1], [0], [0], [1], [0, 0, 1, 1], [], []>} : vector<32x16xf32>, vector<16x128xf32>, vector<32x128xf32> -> vector<32x128xf32>
    %138 = arith.addf %128, %137 : vector<32x128xf32>
    %cst_72 = arith.constant 0.000000e+00 : f32
    %139 = vector.broadcast %cst_72 : f32 to vector<16x7xf32>
    %140 = vector.extract_strided_slice %116 {offsets = [0, 0], sizes = [16, 121], strides = [1, 1]} : vector<16x128xf32> to vector<16x121xf32>
    %141 = tpu.concatenate %139, %140 in 1 : vector<16x7xf32>, vector<16x121xf32> -> vector<16x128xf32>
    %c2_73 = arith.constant 2 : index
    %c0_74 = arith.constant 0 : index
    %142 = vector.load %arg8[%c2_73, %c0_74] : memref<9x128xf32, #tpu.memory_space<vmem>>, vector<1x128xf32>
    %143 = vector.broadcast %142 : vector<1x128xf32> to vector<16x128xf32>
    %144 = arith.mulf %141, %143 : vector<16x128xf32>
    %c2_75 = arith.constant 2 : index
    %c0_76 = arith.constant 0 : index
    %c0_77 = arith.constant 0 : index
    %145 = vector.load %arg3[%c2_75, %c0_76, %c0_77] : memref<9x32x16xf32, #tpu.memory_space<vmem>>, vector<1x32x16xf32>
    %146 = vector.shape_cast %145 : vector<1x32x16xf32> to vector<32x16xf32>
    %cst_78 = arith.constant dense<0.000000e+00> : vector<32x128xf32>
    %147 = tpu.matmul %146, %144, %cst_78 {dimension_numbers = #tpu.dot_dimension_numbers<[1], [0], [0], [1], [0, 0, 1, 1], [], []>} : vector<32x16xf32>, vector<16x128xf32>, vector<32x128xf32> -> vector<32x128xf32>
    %148 = arith.addf %138, %147 : vector<32x128xf32>
    %cst_79 = arith.constant 0.000000e+00 : f32
    %149 = vector.broadcast %cst_79 : f32 to vector<16x1xf32>
    %150 = vector.extract_strided_slice %116 {offsets = [0, 0], sizes = [16, 127], strides = [1, 1]} : vector<16x128xf32> to vector<16x127xf32>
    %151 = tpu.concatenate %149, %150 in 1 : vector<16x1xf32>, vector<16x127xf32> -> vector<16x128xf32>
    %c3_80 = arith.constant 3 : index
    %c0_81 = arith.constant 0 : index
    %152 = vector.load %arg8[%c3_80, %c0_81] : memref<9x128xf32, #tpu.memory_space<vmem>>, vector<1x128xf32>
    %153 = vector.broadcast %152 : vector<1x128xf32> to vector<16x128xf32>
    %154 = arith.mulf %151, %153 : vector<16x128xf32>
    %c3_82 = arith.constant 3 : index
    %c0_83 = arith.constant 0 : index
    %c0_84 = arith.constant 0 : index
    %155 = vector.load %arg3[%c3_82, %c0_83, %c0_84] : memref<9x32x16xf32, #tpu.memory_space<vmem>>, vector<1x32x16xf32>
    %156 = vector.shape_cast %155 : vector<1x32x16xf32> to vector<32x16xf32>
    %cst_85 = arith.constant dense<0.000000e+00> : vector<32x128xf32>
    %157 = tpu.matmul %156, %154, %cst_85 {dimension_numbers = #tpu.dot_dimension_numbers<[1], [0], [0], [1], [0, 0, 1, 1], [], []>} : vector<32x16xf32>, vector<16x128xf32>, vector<32x128xf32> -> vector<32x128xf32>
    %158 = arith.addf %148, %157 : vector<32x128xf32>
    %c4_86 = arith.constant 4 : index
    %c0_87 = arith.constant 0 : index
    %159 = vector.load %arg8[%c4_86, %c0_87] : memref<9x128xf32, #tpu.memory_space<vmem>>, vector<1x128xf32>
    %160 = vector.broadcast %159 : vector<1x128xf32> to vector<16x128xf32>
    %161 = arith.mulf %116, %160 : vector<16x128xf32>
    %c4_88 = arith.constant 4 : index
    %c0_89 = arith.constant 0 : index
    %c0_90 = arith.constant 0 : index
    %162 = vector.load %arg3[%c4_88, %c0_89, %c0_90] : memref<9x32x16xf32, #tpu.memory_space<vmem>>, vector<1x32x16xf32>
    %163 = vector.shape_cast %162 : vector<1x32x16xf32> to vector<32x16xf32>
    %cst_91 = arith.constant dense<0.000000e+00> : vector<32x128xf32>
    %164 = tpu.matmul %163, %161, %cst_91 {dimension_numbers = #tpu.dot_dimension_numbers<[1], [0], [0], [1], [0, 0, 1, 1], [], []>} : vector<32x16xf32>, vector<16x128xf32>, vector<32x128xf32> -> vector<32x128xf32>
    %165 = arith.addf %158, %164 : vector<32x128xf32>
    %cst_92 = arith.constant 0.000000e+00 : f32
    %166 = vector.broadcast %cst_92 : f32 to vector<16x1xf32>
    %167 = vector.extract_strided_slice %116 {offsets = [0, 1], sizes = [16, 127], strides = [1, 1]} : vector<16x128xf32> to vector<16x127xf32>
    %168 = tpu.concatenate %167, %166 in 1 : vector<16x127xf32>, vector<16x1xf32> -> vector<16x128xf32>
    %c5_93 = arith.constant 5 : index
    %c0_94 = arith.constant 0 : index
    %169 = vector.load %arg8[%c5_93, %c0_94] : memref<9x128xf32, #tpu.memory_space<vmem>>, vector<1x128xf32>
    %170 = vector.broadcast %169 : vector<1x128xf32> to vector<16x128xf32>
    %171 = arith.mulf %168, %170 : vector<16x128xf32>
    %c5_95 = arith.constant 5 : index
    %c0_96 = arith.constant 0 : index
    %c0_97 = arith.constant 0 : index
    %172 = vector.load %arg3[%c5_95, %c0_96, %c0_97] : memref<9x32x16xf32, #tpu.memory_space<vmem>>, vector<1x32x16xf32>
    %173 = vector.shape_cast %172 : vector<1x32x16xf32> to vector<32x16xf32>
    %cst_98 = arith.constant dense<0.000000e+00> : vector<32x128xf32>
    %174 = tpu.matmul %173, %171, %cst_98 {dimension_numbers = #tpu.dot_dimension_numbers<[1], [0], [0], [1], [0, 0, 1, 1], [], []>} : vector<32x16xf32>, vector<16x128xf32>, vector<32x128xf32> -> vector<32x128xf32>
    %175 = arith.addf %165, %174 : vector<32x128xf32>
    %cst_99 = arith.constant 0.000000e+00 : f32
    %176 = vector.broadcast %cst_99 : f32 to vector<16x7xf32>
    %177 = vector.extract_strided_slice %116 {offsets = [0, 7], sizes = [16, 121], strides = [1, 1]} : vector<16x128xf32> to vector<16x121xf32>
    %178 = tpu.concatenate %177, %176 in 1 : vector<16x121xf32>, vector<16x7xf32> -> vector<16x128xf32>
    %c6_100 = arith.constant 6 : index
    %c0_101 = arith.constant 0 : index
    %179 = vector.load %arg8[%c6_100, %c0_101] : memref<9x128xf32, #tpu.memory_space<vmem>>, vector<1x128xf32>
    %180 = vector.broadcast %179 : vector<1x128xf32> to vector<16x128xf32>
    %181 = arith.mulf %178, %180 : vector<16x128xf32>
    %c6_102 = arith.constant 6 : index
    %c0_103 = arith.constant 0 : index
    %c0_104 = arith.constant 0 : index
    %182 = vector.load %arg3[%c6_102, %c0_103, %c0_104] : memref<9x32x16xf32, #tpu.memory_space<vmem>>, vector<1x32x16xf32>
    %183 = vector.shape_cast %182 : vector<1x32x16xf32> to vector<32x16xf32>
    %cst_105 = arith.constant dense<0.000000e+00> : vector<32x128xf32>
    %184 = tpu.matmul %183, %181, %cst_105 {dimension_numbers = #tpu.dot_dimension_numbers<[1], [0], [0], [1], [0, 0, 1, 1], [], []>} : vector<32x16xf32>, vector<16x128xf32>, vector<32x128xf32> -> vector<32x128xf32>
    %185 = arith.addf %175, %184 : vector<32x128xf32>
    %cst_106 = arith.constant 0.000000e+00 : f32
    %186 = vector.broadcast %cst_106 : f32 to vector<16x8xf32>
    %187 = vector.extract_strided_slice %116 {offsets = [0, 8], sizes = [16, 120], strides = [1, 1]} : vector<16x128xf32> to vector<16x120xf32>
    %188 = tpu.concatenate %187, %186 in 1 : vector<16x120xf32>, vector<16x8xf32> -> vector<16x128xf32>
    %c7_107 = arith.constant 7 : index
    %c0_108 = arith.constant 0 : index
    %189 = vector.load %arg8[%c7_107, %c0_108] : memref<9x128xf32, #tpu.memory_space<vmem>>, vector<1x128xf32>
    %190 = vector.broadcast %189 : vector<1x128xf32> to vector<16x128xf32>
    %191 = arith.mulf %188, %190 : vector<16x128xf32>
    %c7_109 = arith.constant 7 : index
    %c0_110 = arith.constant 0 : index
    %c0_111 = arith.constant 0 : index
    %192 = vector.load %arg3[%c7_109, %c0_110, %c0_111] : memref<9x32x16xf32, #tpu.memory_space<vmem>>, vector<1x32x16xf32>
    %193 = vector.shape_cast %192 : vector<1x32x16xf32> to vector<32x16xf32>
    %cst_112 = arith.constant dense<0.000000e+00> : vector<32x128xf32>
    %194 = tpu.matmul %193, %191, %cst_112 {dimension_numbers = #tpu.dot_dimension_numbers<[1], [0], [0], [1], [0, 0, 1, 1], [], []>} : vector<32x16xf32>, vector<16x128xf32>, vector<32x128xf32> -> vector<32x128xf32>
    %195 = arith.addf %185, %194 : vector<32x128xf32>
    %cst_113 = arith.constant 0.000000e+00 : f32
    %196 = vector.broadcast %cst_113 : f32 to vector<16x9xf32>
    %197 = vector.extract_strided_slice %116 {offsets = [0, 9], sizes = [16, 119], strides = [1, 1]} : vector<16x128xf32> to vector<16x119xf32>
    %198 = tpu.concatenate %197, %196 in 1 : vector<16x119xf32>, vector<16x9xf32> -> vector<16x128xf32>
    %c8_114 = arith.constant 8 : index
    %c0_115 = arith.constant 0 : index
    %199 = vector.load %arg8[%c8_114, %c0_115] : memref<9x128xf32, #tpu.memory_space<vmem>>, vector<1x128xf32>
    %200 = vector.broadcast %199 : vector<1x128xf32> to vector<16x128xf32>
    %201 = arith.mulf %198, %200 : vector<16x128xf32>
    %c8_116 = arith.constant 8 : index
    %c0_117 = arith.constant 0 : index
    %c0_118 = arith.constant 0 : index
    %202 = vector.load %arg3[%c8_116, %c0_117, %c0_118] : memref<9x32x16xf32, #tpu.memory_space<vmem>>, vector<1x32x16xf32>
    %203 = vector.shape_cast %202 : vector<1x32x16xf32> to vector<32x16xf32>
    %cst_119 = arith.constant dense<0.000000e+00> : vector<32x128xf32>
    %204 = tpu.matmul %203, %201, %cst_119 {dimension_numbers = #tpu.dot_dimension_numbers<[1], [0], [0], [1], [0, 0, 1, 1], [], []>} : vector<32x16xf32>, vector<16x128xf32>, vector<32x128xf32> -> vector<32x128xf32>
    %205 = arith.addf %195, %204 : vector<32x128xf32>
    %206 = vector.broadcast %117 : vector<32x1xf32> to vector<32x128xf32>
    %207 = arith.addf %205, %206 : vector<32x128xf32>
    %cst_120 = arith.constant 0.000000e+00 : f32
    %208 = vector.broadcast %cst_120 : f32 to vector<32x128xf32>
    %209 = arith.maximumf %207, %208 : vector<32x128xf32>
    %cst_121 = arith.constant 0.000000e+00 : f32
    %210 = vector.broadcast %cst_121 : f32 to vector<32x1xf32>
    %211 = vector.extract_strided_slice %209 {offsets = [0, 1], sizes = [32, 127], strides = [1, 1]} : vector<32x128xf32> to vector<32x127xf32>
    %212 = tpu.concatenate %211, %210 in 1 : vector<32x127xf32>, vector<32x1xf32> -> vector<32x128xf32>
    %213 = arith.maximumf %209, %212 : vector<32x128xf32>
    %cst_122 = arith.constant 0.000000e+00 : f32
    %214 = vector.broadcast %cst_122 : f32 to vector<32x8xf32>
    %215 = vector.extract_strided_slice %209 {offsets = [0, 8], sizes = [32, 120], strides = [1, 1]} : vector<32x128xf32> to vector<32x120xf32>
    %216 = tpu.concatenate %215, %214 in 1 : vector<32x120xf32>, vector<32x8xf32> -> vector<32x128xf32>
    %cst_123 = arith.constant 0.000000e+00 : f32
    %217 = vector.broadcast %cst_123 : f32 to vector<32x9xf32>
    %218 = vector.extract_strided_slice %209 {offsets = [0, 9], sizes = [32, 119], strides = [1, 1]} : vector<32x128xf32> to vector<32x119xf32>
    %219 = tpu.concatenate %218, %217 in 1 : vector<32x119xf32>, vector<32x9xf32> -> vector<32x128xf32>
    %220 = arith.maximumf %216, %219 : vector<32x128xf32>
    %221 = arith.maximumf %213, %220 : vector<32x128xf32>
    %c0_124 = arith.constant 0 : index
    %c0_125 = arith.constant 0 : index
    %222 = vector.load %arg11[%c0_124, %c0_125] : memref<128x32xf32, #tpu.memory_space<vmem>>, vector<128x32xf32>
    %cst_126 = arith.constant dense<0.000000e+00> : vector<32x32xf32>
    %223 = tpu.matmul %221, %222, %cst_126 {dimension_numbers = #tpu.dot_dimension_numbers<[1], [0], [0], [1], [0, 0, 1, 1], [], []>} : vector<32x128xf32>, vector<128x32xf32>, vector<32x32xf32> -> vector<32x32xf32>
    %c0_127 = arith.constant 0 : index
    %c0_128 = arith.constant 0 : index
    %224 = vector.load %arg6[%c0_127, %c0_128] : memref<64x1xf32, #tpu.memory_space<vmem>>, vector<64x1xf32>
    %cst_129 = arith.constant 0.000000e+00 : f32
    %225 = vector.broadcast %cst_129 : f32 to vector<64x32xf32>
    %cst_130 = arith.constant 0.000000e+00 : f32
    %226 = vector.broadcast %cst_130 : f32 to vector<32x5xf32>
    %227 = vector.extract_strided_slice %223 {offsets = [0, 0], sizes = [32, 27], strides = [1, 1]} : vector<32x32xf32> to vector<32x27xf32>
    %228 = tpu.concatenate %226, %227 in 1 : vector<32x5xf32>, vector<32x27xf32> -> vector<32x32xf32>
    %c0_131 = arith.constant 0 : index
    %c0_132 = arith.constant 0 : index
    %229 = vector.load %arg9[%c0_131, %c0_132] : memref<9x32xf32, #tpu.memory_space<vmem>>, vector<1x32xf32>
    %230 = vector.broadcast %229 : vector<1x32xf32> to vector<32x32xf32>
    %231 = arith.mulf %228, %230 : vector<32x32xf32>
    %c0_133 = arith.constant 0 : index
    %c0_134 = arith.constant 0 : index
    %c0_135 = arith.constant 0 : index
    %232 = vector.load %arg5[%c0_133, %c0_134, %c0_135] : memref<9x64x32xf32, #tpu.memory_space<vmem>>, vector<1x64x32xf32>
    %233 = vector.shape_cast %232 : vector<1x64x32xf32> to vector<64x32xf32>
    %cst_136 = arith.constant dense<0.000000e+00> : vector<64x32xf32>
    %234 = tpu.matmul %233, %231, %cst_136 {dimension_numbers = #tpu.dot_dimension_numbers<[1], [0], [0], [1], [0, 0, 1, 1], [], []>} : vector<64x32xf32>, vector<32x32xf32>, vector<64x32xf32> -> vector<64x32xf32>
    %235 = arith.addf %225, %234 : vector<64x32xf32>
    %cst_137 = arith.constant 0.000000e+00 : f32
    %236 = vector.broadcast %cst_137 : f32 to vector<32x4xf32>
    %237 = vector.extract_strided_slice %223 {offsets = [0, 0], sizes = [32, 28], strides = [1, 1]} : vector<32x32xf32> to vector<32x28xf32>
    %238 = tpu.concatenate %236, %237 in 1 : vector<32x4xf32>, vector<32x28xf32> -> vector<32x32xf32>
    %c1_138 = arith.constant 1 : index
    %c0_139 = arith.constant 0 : index
    %239 = vector.load %arg9[%c1_138, %c0_139] : memref<9x32xf32, #tpu.memory_space<vmem>>, vector<1x32xf32>
    %240 = vector.broadcast %239 : vector<1x32xf32> to vector<32x32xf32>
    %241 = arith.mulf %238, %240 : vector<32x32xf32>
    %c1_140 = arith.constant 1 : index
    %c0_141 = arith.constant 0 : index
    %c0_142 = arith.constant 0 : index
    %242 = vector.load %arg5[%c1_140, %c0_141, %c0_142] : memref<9x64x32xf32, #tpu.memory_space<vmem>>, vector<1x64x32xf32>
    %243 = vector.shape_cast %242 : vector<1x64x32xf32> to vector<64x32xf32>
    %cst_143 = arith.constant dense<0.000000e+00> : vector<64x32xf32>
    %244 = tpu.matmul %243, %241, %cst_143 {dimension_numbers = #tpu.dot_dimension_numbers<[1], [0], [0], [1], [0, 0, 1, 1], [], []>} : vector<64x32xf32>, vector<32x32xf32>, vector<64x32xf32> -> vector<64x32xf32>
    %245 = arith.addf %235, %244 : vector<64x32xf32>
    %cst_144 = arith.constant 0.000000e+00 : f32
    %246 = vector.broadcast %cst_144 : f32 to vector<32x3xf32>
    %247 = vector.extract_strided_slice %223 {offsets = [0, 0], sizes = [32, 29], strides = [1, 1]} : vector<32x32xf32> to vector<32x29xf32>
    %248 = tpu.concatenate %246, %247 in 1 : vector<32x3xf32>, vector<32x29xf32> -> vector<32x32xf32>
    %c2_145 = arith.constant 2 : index
    %c0_146 = arith.constant 0 : index
    %249 = vector.load %arg9[%c2_145, %c0_146] : memref<9x32xf32, #tpu.memory_space<vmem>>, vector<1x32xf32>
    %250 = vector.broadcast %249 : vector<1x32xf32> to vector<32x32xf32>
    %251 = arith.mulf %248, %250 : vector<32x32xf32>
    %c2_147 = arith.constant 2 : index
    %c0_148 = arith.constant 0 : index
    %c0_149 = arith.constant 0 : index
    %252 = vector.load %arg5[%c2_147, %c0_148, %c0_149] : memref<9x64x32xf32, #tpu.memory_space<vmem>>, vector<1x64x32xf32>
    %253 = vector.shape_cast %252 : vector<1x64x32xf32> to vector<64x32xf32>
    %cst_150 = arith.constant dense<0.000000e+00> : vector<64x32xf32>
    %254 = tpu.matmul %253, %251, %cst_150 {dimension_numbers = #tpu.dot_dimension_numbers<[1], [0], [0], [1], [0, 0, 1, 1], [], []>} : vector<64x32xf32>, vector<32x32xf32>, vector<64x32xf32> -> vector<64x32xf32>
    %255 = arith.addf %245, %254 : vector<64x32xf32>
    %cst_151 = arith.constant 0.000000e+00 : f32
    %256 = vector.broadcast %cst_151 : f32 to vector<32x1xf32>
    %257 = vector.extract_strided_slice %223 {offsets = [0, 0], sizes = [32, 31], strides = [1, 1]} : vector<32x32xf32> to vector<32x31xf32>
    %258 = tpu.concatenate %256, %257 in 1 : vector<32x1xf32>, vector<32x31xf32> -> vector<32x32xf32>
    %c3_152 = arith.constant 3 : index
    %c0_153 = arith.constant 0 : index
    %259 = vector.load %arg9[%c3_152, %c0_153] : memref<9x32xf32, #tpu.memory_space<vmem>>, vector<1x32xf32>
    %260 = vector.broadcast %259 : vector<1x32xf32> to vector<32x32xf32>
    %261 = arith.mulf %258, %260 : vector<32x32xf32>
    %c3_154 = arith.constant 3 : index
    %c0_155 = arith.constant 0 : index
    %c0_156 = arith.constant 0 : index
    %262 = vector.load %arg5[%c3_154, %c0_155, %c0_156] : memref<9x64x32xf32, #tpu.memory_space<vmem>>, vector<1x64x32xf32>
    %263 = vector.shape_cast %262 : vector<1x64x32xf32> to vector<64x32xf32>
    %cst_157 = arith.constant dense<0.000000e+00> : vector<64x32xf32>
    %264 = tpu.matmul %263, %261, %cst_157 {dimension_numbers = #tpu.dot_dimension_numbers<[1], [0], [0], [1], [0, 0, 1, 1], [], []>} : vector<64x32xf32>, vector<32x32xf32>, vector<64x32xf32> -> vector<64x32xf32>
    %265 = arith.addf %255, %264 : vector<64x32xf32>
    %c4_158 = arith.constant 4 : index
    %c0_159 = arith.constant 0 : index
    %266 = vector.load %arg9[%c4_158, %c0_159] : memref<9x32xf32, #tpu.memory_space<vmem>>, vector<1x32xf32>
    %267 = vector.broadcast %266 : vector<1x32xf32> to vector<32x32xf32>
    %268 = arith.mulf %223, %267 : vector<32x32xf32>
    %c4_160 = arith.constant 4 : index
    %c0_161 = arith.constant 0 : index
    %c0_162 = arith.constant 0 : index
    %269 = vector.load %arg5[%c4_160, %c0_161, %c0_162] : memref<9x64x32xf32, #tpu.memory_space<vmem>>, vector<1x64x32xf32>
    %270 = vector.shape_cast %269 : vector<1x64x32xf32> to vector<64x32xf32>
    %cst_163 = arith.constant dense<0.000000e+00> : vector<64x32xf32>
    %271 = tpu.matmul %270, %268, %cst_163 {dimension_numbers = #tpu.dot_dimension_numbers<[1], [0], [0], [1], [0, 0, 1, 1], [], []>} : vector<64x32xf32>, vector<32x32xf32>, vector<64x32xf32> -> vector<64x32xf32>
    %272 = arith.addf %265, %271 : vector<64x32xf32>
    %cst_164 = arith.constant 0.000000e+00 : f32
    %273 = vector.broadcast %cst_164 : f32 to vector<32x1xf32>
    %274 = vector.extract_strided_slice %223 {offsets = [0, 1], sizes = [32, 31], strides = [1, 1]} : vector<32x32xf32> to vector<32x31xf32>
    %275 = tpu.concatenate %274, %273 in 1 : vector<32x31xf32>, vector<32x1xf32> -> vector<32x32xf32>
    %c5_165 = arith.constant 5 : index
    %c0_166 = arith.constant 0 : index
    %276 = vector.load %arg9[%c5_165, %c0_166] : memref<9x32xf32, #tpu.memory_space<vmem>>, vector<1x32xf32>
    %277 = vector.broadcast %276 : vector<1x32xf32> to vector<32x32xf32>
    %278 = arith.mulf %275, %277 : vector<32x32xf32>
    %c5_167 = arith.constant 5 : index
    %c0_168 = arith.constant 0 : index
    %c0_169 = arith.constant 0 : index
    %279 = vector.load %arg5[%c5_167, %c0_168, %c0_169] : memref<9x64x32xf32, #tpu.memory_space<vmem>>, vector<1x64x32xf32>
    %280 = vector.shape_cast %279 : vector<1x64x32xf32> to vector<64x32xf32>
    %cst_170 = arith.constant dense<0.000000e+00> : vector<64x32xf32>
    %281 = tpu.matmul %280, %278, %cst_170 {dimension_numbers = #tpu.dot_dimension_numbers<[1], [0], [0], [1], [0, 0, 1, 1], [], []>} : vector<64x32xf32>, vector<32x32xf32>, vector<64x32xf32> -> vector<64x32xf32>
    %282 = arith.addf %272, %281 : vector<64x32xf32>
    %cst_171 = arith.constant 0.000000e+00 : f32
    %283 = vector.broadcast %cst_171 : f32 to vector<32x3xf32>
    %284 = vector.extract_strided_slice %223 {offsets = [0, 3], sizes = [32, 29], strides = [1, 1]} : vector<32x32xf32> to vector<32x29xf32>
    %285 = tpu.concatenate %284, %283 in 1 : vector<32x29xf32>, vector<32x3xf32> -> vector<32x32xf32>
    %c6_172 = arith.constant 6 : index
    %c0_173 = arith.constant 0 : index
    %286 = vector.load %arg9[%c6_172, %c0_173] : memref<9x32xf32, #tpu.memory_space<vmem>>, vector<1x32xf32>
    %287 = vector.broadcast %286 : vector<1x32xf32> to vector<32x32xf32>
    %288 = arith.mulf %285, %287 : vector<32x32xf32>
    %c6_174 = arith.constant 6 : index
    %c0_175 = arith.constant 0 : index
    %c0_176 = arith.constant 0 : index
    %289 = vector.load %arg5[%c6_174, %c0_175, %c0_176] : memref<9x64x32xf32, #tpu.memory_space<vmem>>, vector<1x64x32xf32>
    %290 = vector.shape_cast %289 : vector<1x64x32xf32> to vector<64x32xf32>
    %cst_177 = arith.constant dense<0.000000e+00> : vector<64x32xf32>
    %291 = tpu.matmul %290, %288, %cst_177 {dimension_numbers = #tpu.dot_dimension_numbers<[1], [0], [0], [1], [0, 0, 1, 1], [], []>} : vector<64x32xf32>, vector<32x32xf32>, vector<64x32xf32> -> vector<64x32xf32>
    %292 = arith.addf %282, %291 : vector<64x32xf32>
    %cst_178 = arith.constant 0.000000e+00 : f32
    %293 = vector.broadcast %cst_178 : f32 to vector<32x4xf32>
    %294 = vector.extract_strided_slice %223 {offsets = [0, 4], sizes = [32, 28], strides = [1, 1]} : vector<32x32xf32> to vector<32x28xf32>
    %295 = tpu.concatenate %294, %293 in 1 : vector<32x28xf32>, vector<32x4xf32> -> vector<32x32xf32>
    %c7_179 = arith.constant 7 : index
    %c0_180 = arith.constant 0 : index
    %296 = vector.load %arg9[%c7_179, %c0_180] : memref<9x32xf32, #tpu.memory_space<vmem>>, vector<1x32xf32>
    %297 = vector.broadcast %296 : vector<1x32xf32> to vector<32x32xf32>
    %298 = arith.mulf %295, %297 : vector<32x32xf32>
    %c7_181 = arith.constant 7 : index
    %c0_182 = arith.constant 0 : index
    %c0_183 = arith.constant 0 : index
    %299 = vector.load %arg5[%c7_181, %c0_182, %c0_183] : memref<9x64x32xf32, #tpu.memory_space<vmem>>, vector<1x64x32xf32>
    %300 = vector.shape_cast %299 : vector<1x64x32xf32> to vector<64x32xf32>
    %cst_184 = arith.constant dense<0.000000e+00> : vector<64x32xf32>
    %301 = tpu.matmul %300, %298, %cst_184 {dimension_numbers = #tpu.dot_dimension_numbers<[1], [0], [0], [1], [0, 0, 1, 1], [], []>} : vector<64x32xf32>, vector<32x32xf32>, vector<64x32xf32> -> vector<64x32xf32>
    %302 = arith.addf %292, %301 : vector<64x32xf32>
    %cst_185 = arith.constant 0.000000e+00 : f32
    %303 = vector.broadcast %cst_185 : f32 to vector<32x5xf32>
    %304 = vector.extract_strided_slice %223 {offsets = [0, 5], sizes = [32, 27], strides = [1, 1]} : vector<32x32xf32> to vector<32x27xf32>
    %305 = tpu.concatenate %304, %303 in 1 : vector<32x27xf32>, vector<32x5xf32> -> vector<32x32xf32>
    %c8_186 = arith.constant 8 : index
    %c0_187 = arith.constant 0 : index
    %306 = vector.load %arg9[%c8_186, %c0_187] : memref<9x32xf32, #tpu.memory_space<vmem>>, vector<1x32xf32>
    %307 = vector.broadcast %306 : vector<1x32xf32> to vector<32x32xf32>
    %308 = arith.mulf %305, %307 : vector<32x32xf32>
    %c8_188 = arith.constant 8 : index
    %c0_189 = arith.constant 0 : index
    %c0_190 = arith.constant 0 : index
    %309 = vector.load %arg5[%c8_188, %c0_189, %c0_190] : memref<9x64x32xf32, #tpu.memory_space<vmem>>, vector<1x64x32xf32>
    %310 = vector.shape_cast %309 : vector<1x64x32xf32> to vector<64x32xf32>
    %cst_191 = arith.constant dense<0.000000e+00> : vector<64x32xf32>
    %311 = tpu.matmul %310, %308, %cst_191 {dimension_numbers = #tpu.dot_dimension_numbers<[1], [0], [0], [1], [0, 0, 1, 1], [], []>} : vector<64x32xf32>, vector<32x32xf32>, vector<64x32xf32> -> vector<64x32xf32>
    %312 = arith.addf %302, %311 : vector<64x32xf32>
    %313 = vector.broadcast %224 : vector<64x1xf32> to vector<64x32xf32>
    %314 = arith.addf %312, %313 : vector<64x32xf32>
    %cst_192 = arith.constant 0.000000e+00 : f32
    %315 = vector.broadcast %cst_192 : f32 to vector<64x32xf32>
    %316 = arith.maximumf %314, %315 : vector<64x32xf32>
    %cst_193 = arith.constant 0.000000e+00 : f32
    %317 = vector.broadcast %cst_193 : f32 to vector<64x1xf32>
    %318 = vector.extract_strided_slice %316 {offsets = [0, 1], sizes = [64, 31], strides = [1, 1]} : vector<64x32xf32> to vector<64x31xf32>
    %319 = tpu.concatenate %318, %317 in 1 : vector<64x31xf32>, vector<64x1xf32> -> vector<64x32xf32>
    %320 = arith.maximumf %316, %319 : vector<64x32xf32>
    %cst_194 = arith.constant 0.000000e+00 : f32
    %321 = vector.broadcast %cst_194 : f32 to vector<64x4xf32>
    %322 = vector.extract_strided_slice %316 {offsets = [0, 4], sizes = [64, 28], strides = [1, 1]} : vector<64x32xf32> to vector<64x28xf32>
    %323 = tpu.concatenate %322, %321 in 1 : vector<64x28xf32>, vector<64x4xf32> -> vector<64x32xf32>
    %cst_195 = arith.constant 0.000000e+00 : f32
    %324 = vector.broadcast %cst_195 : f32 to vector<64x5xf32>
    %325 = vector.extract_strided_slice %316 {offsets = [0, 5], sizes = [64, 27], strides = [1, 1]} : vector<64x32xf32> to vector<64x27xf32>
    %326 = tpu.concatenate %325, %324 in 1 : vector<64x27xf32>, vector<64x5xf32> -> vector<64x32xf32>
    %327 = arith.maximumf %323, %326 : vector<64x32xf32>
    %328 = arith.maximumf %320, %327 : vector<64x32xf32>
    %c0_196 = arith.constant 0 : index
    %c0_197 = arith.constant 0 : index
    %329 = vector.load %arg13[%c0_196, %c0_197] : memref<512x3xf32, #tpu.memory_space<vmem>>, vector<512x3xf32>
    %c0_198 = arith.constant 0 : index
    %c0_199 = arith.constant 0 : index
    %330 = vector.load %arg17[%c0_198, %c0_199] : memref<3x2xf32, #tpu.memory_space<vmem>>, vector<3x2xf32>
    %cst_200 = arith.constant dense<0.000000e+00> : vector<512x2xf32>
    %331 = tpu.matmul %329, %330, %cst_200 {dimension_numbers = #tpu.dot_dimension_numbers<[1], [0], [0], [1], [0, 0, 1, 1], [], []>} : vector<512x3xf32>, vector<3x2xf32>, vector<512x2xf32> -> vector<512x2xf32>
    %332 = vector.extract_strided_slice %328 {offsets = [0, 0], sizes = [64, 1], strides = [1, 1]} : vector<64x32xf32> to vector<64x1xf32>
    %333 = vector.extract_strided_slice %328 {offsets = [0, 16], sizes = [64, 1], strides = [1, 1]} : vector<64x32xf32> to vector<64x1xf32>
    %334 = tpu.concatenate %332, %333 in 1 : vector<64x1xf32>, vector<64x1xf32> -> vector<64x2xf32>
    %c0_201 = arith.constant 0 : index
    %c0_202 = arith.constant 0 : index
    %c0_203 = arith.constant 0 : index
    %335 = vector.load %arg12[%c0_201, %c0_202, %c0_203] : memref<4x512x64xf32, #tpu.memory_space<vmem>>, vector<1x512x64xf32>
    %336 = vector.shape_cast %335 : vector<1x512x64xf32> to vector<512x64xf32>
    %cst_204 = arith.constant dense<0.000000e+00> : vector<512x2xf32>
    %337 = tpu.matmul %336, %334, %cst_204 {dimension_numbers = #tpu.dot_dimension_numbers<[1], [0], [0], [1], [0, 0, 1, 1], [], []>} : vector<512x64xf32>, vector<64x2xf32>, vector<512x2xf32> -> vector<512x2xf32>
    %338 = arith.addf %331, %337 : vector<512x2xf32>
    %339 = vector.extract_strided_slice %328 {offsets = [0, 2], sizes = [64, 1], strides = [1, 1]} : vector<64x32xf32> to vector<64x1xf32>
    %340 = vector.extract_strided_slice %328 {offsets = [0, 18], sizes = [64, 1], strides = [1, 1]} : vector<64x32xf32> to vector<64x1xf32>
    %341 = tpu.concatenate %339, %340 in 1 : vector<64x1xf32>, vector<64x1xf32> -> vector<64x2xf32>
    %c1_205 = arith.constant 1 : index
    %c0_206 = arith.constant 0 : index
    %c0_207 = arith.constant 0 : index
    %342 = vector.load %arg12[%c1_205, %c0_206, %c0_207] : memref<4x512x64xf32, #tpu.memory_space<vmem>>, vector<1x512x64xf32>
    %343 = vector.shape_cast %342 : vector<1x512x64xf32> to vector<512x64xf32>
    %cst_208 = arith.constant dense<0.000000e+00> : vector<512x2xf32>
    %344 = tpu.matmul %343, %341, %cst_208 {dimension_numbers = #tpu.dot_dimension_numbers<[1], [0], [0], [1], [0, 0, 1, 1], [], []>} : vector<512x64xf32>, vector<64x2xf32>, vector<512x2xf32> -> vector<512x2xf32>
    %345 = arith.addf %338, %344 : vector<512x2xf32>
    %346 = vector.extract_strided_slice %328 {offsets = [0, 8], sizes = [64, 1], strides = [1, 1]} : vector<64x32xf32> to vector<64x1xf32>
    %347 = vector.extract_strided_slice %328 {offsets = [0, 24], sizes = [64, 1], strides = [1, 1]} : vector<64x32xf32> to vector<64x1xf32>
    %348 = tpu.concatenate %346, %347 in 1 : vector<64x1xf32>, vector<64x1xf32> -> vector<64x2xf32>
    %c2_209 = arith.constant 2 : index
    %c0_210 = arith.constant 0 : index
    %c0_211 = arith.constant 0 : index
    %349 = vector.load %arg12[%c2_209, %c0_210, %c0_211] : memref<4x512x64xf32, #tpu.memory_space<vmem>>, vector<1x512x64xf32>
    %350 = vector.shape_cast %349 : vector<1x512x64xf32> to vector<512x64xf32>
    %cst_212 = arith.constant dense<0.000000e+00> : vector<512x2xf32>
    %351 = tpu.matmul %350, %348, %cst_212 {dimension_numbers = #tpu.dot_dimension_numbers<[1], [0], [0], [1], [0, 0, 1, 1], [], []>} : vector<512x64xf32>, vector<64x2xf32>, vector<512x2xf32> -> vector<512x2xf32>
    %352 = arith.addf %345, %351 : vector<512x2xf32>
    %353 = vector.extract_strided_slice %328 {offsets = [0, 10], sizes = [64, 1], strides = [1, 1]} : vector<64x32xf32> to vector<64x1xf32>
    %354 = vector.extract_strided_slice %328 {offsets = [0, 26], sizes = [64, 1], strides = [1, 1]} : vector<64x32xf32> to vector<64x1xf32>
    %355 = tpu.concatenate %353, %354 in 1 : vector<64x1xf32>, vector<64x1xf32> -> vector<64x2xf32>
    %c3_213 = arith.constant 3 : index
    %c0_214 = arith.constant 0 : index
    %c0_215 = arith.constant 0 : index
    %356 = vector.load %arg12[%c3_213, %c0_214, %c0_215] : memref<4x512x64xf32, #tpu.memory_space<vmem>>, vector<1x512x64xf32>
    %357 = vector.shape_cast %356 : vector<1x512x64xf32> to vector<512x64xf32>
    %cst_216 = arith.constant dense<0.000000e+00> : vector<512x2xf32>
    %358 = tpu.matmul %357, %355, %cst_216 {dimension_numbers = #tpu.dot_dimension_numbers<[1], [0], [0], [1], [0, 0, 1, 1], [], []>} : vector<512x64xf32>, vector<64x2xf32>, vector<512x2xf32> -> vector<512x2xf32>
    %359 = arith.addf %352, %358 : vector<512x2xf32>
    %c0_217 = arith.constant 0 : index
    %c0_218 = arith.constant 0 : index
    %360 = vector.load %arg14[%c0_217, %c0_218] : memref<512x1xf32, #tpu.memory_space<vmem>>, vector<512x1xf32>
    %361 = vector.broadcast %360 : vector<512x1xf32> to vector<512x2xf32>
    %362 = arith.addf %359, %361 : vector<512x2xf32>
    %c0_219 = arith.constant 0 : index
    %c0_220 = arith.constant 0 : index
    %363 = vector.load %arg15[%c0_219, %c0_220] : memref<1x512xf32, #tpu.memory_space<vmem>>, vector<1x512xf32>
    %cst_221 = arith.constant dense<0.000000e+00> : vector<1x2xf32>
    %364 = tpu.matmul %363, %362, %cst_221 {dimension_numbers = #tpu.dot_dimension_numbers<[1], [0], [0], [1], [0, 0, 1, 1], [], []>} : vector<1x512xf32>, vector<512x2xf32>, vector<1x2xf32> -> vector<1x2xf32>
    %c0_222 = arith.constant 0 : index
    %c0_223 = arith.constant 0 : index
    %365 = vector.load %arg16[%c0_222, %c0_223] : memref<1x1xf32, #tpu.memory_space<vmem>>, vector<1x1xf32>
    %366 = vector.broadcast %365 : vector<1x1xf32> to vector<1x2xf32>
    %367 = arith.addf %364, %366 : vector<1x2xf32>
    %c0_224 = arith.constant 0 : index
    %c0_225 = arith.constant 0 : index
    %368 = vector.load %arg18[%c0_224, %c0_225] : memref<1x2xf32, #tpu.memory_space<vmem>>, vector<1x2xf32>
    tpu.vector_store %arg18[%c0_224, %c0_225], %367 {strides = array<i32>} : memref<1x2xf32, #tpu.memory_space<vmem>>, vector<1x2xf32>,
    return
  }
}

</mosaic_0001>

<bundles_post_ra>
// kernel: cnn_forward.1
= control target key start
LH: loop header
LB: loop body
LE: loop exit
PB: predicated region body
PF: predicated region fallthrough
CT: control target
= control target key end

     0   :  { %s15592_s0 = inlined_call_operand.vmem [shape: f32[1,512], index: 0, kind: input, shape index: {}]   ;;  %s15593_s1 = inlined_call_operand.vmem [shape: f32[9,16,1], index: 1, kind: input, shape index: {}]   ;;  %s15594_s2 = inlined_call_operand.vmem [shape: f32[16,1], index: 2, kind: input, shape index: {}]   ;;  %s15595_s3 = inlined_call_operand.vmem [shape: f32[9,32,16], index: 3, kind: input, shape index: {}]   ;;  %s15596_s4 = inlined_call_operand.vmem [shape: f32[32,1], index: 4, kind: input, shape index: {}]   ;;  %s15597_s5 = inlined_call_operand.vmem [shape: f32[9,64,32], index: 5, kind: input, shape index: {}]   ;;  %s15598_s6 = inlined_call_operand.vmem [shape: f32[64,1], index: 6, kind: input, shape index: {}]   ;;  %s15599_s7 = inlined_call_operand.vmem [shape: f32[9,512], index: 7, kind: input, shape index: {}]   ;;  %s15600_s8 = inlined_call_operand.vmem [shape: f32[9,128], index: 8, kind: input, shape index: {}]   ;;  %s15601_s9 = inlined_call_operand.vmem [shape: f32[9,32], index: 9, kind: input, shape index: {}]   ;;  %s15602_s10 = inlined_call_operand.vmem [shape: f32[512,128], index: 10, kind: input, shape index: {}]   ;;  %s15603_s11 = inlined_call_operand.vmem [shape: f32[128,32], index: 11, kind: input, shape index: {}]   ;;  %s15604_s12 = inlined_call_operand.vmem [shape: f32[4,512,64], index: 12, kind: input, shape index: {}]   ;;  %s15605_s13 = inlined_call_operand.vmem [shape: f32[512,3], index: 13, kind: input, shape index: {}]   ;;  %s15606_s14 = inlined_call_operand.vmem [shape: f32[512,1], index: 14, kind: input, shape index: {}]   ;;  %s15607_s15 = inlined_call_operand.vmem [shape: f32[1,512], index: 15, kind: input, shape index: {}]   ;;  %s15608_s16 = inlined_call_operand.<no memory space> [shape: f32[1,1], index: 16, kind: input, shape index: {}]   ;;  %s15609_s17 = inlined_call_operand.vmem [shape: f32[3,2], index: 17, kind: input, shape index: {}]   ;;  %s15610_s18 = inlined_call_operand.hbm [shape: f32[1,2], index: 18, kind: output, shape index: {}]  }
   0x1   :  { %15620 = sst [smem:[#allocation107_spill]] %s15592_s0  ;;  %v23_v0 = vstv %s15608_s16 }
   0x2   :  { %15621 = sst [smem:[#allocation108_spill]] %s15593_s1  ;;  %24 = vst [vmem:[#allocation2] sm:$0x1] %v23_v0 }
   0x3   :  { %15622 = sst [smem:[#allocation109_spill]] %s15594_s2 }
   0x4   :  { %v66_v1 = vlaneseq  ;;  %v10900_v2 = vmov 0   ;;  %s15623_s0 = sld [smem:[#allocation107_spill]]  ;;  %s10901_s16 = smov 17  }
   0x5   :  { %10786 = vset.pattern.permute.xlu0 %v10900_v2  ;;  %10787 = vset.pattern.permute.xlu1 %v10900_v2 }
   0x6   :  { %v67_v3 = vshrl.u32 %v66_v1, 7 }
   0x8   :  { %v11029_v5 = vsub.s32 0, %v67_v3  ;;  %v11031_v6 = vsub.s32 2, %v67_v3  ;;  %v11033_v7 = vsub.s32 3, %v67_v3  ;;  %v11035_v8 = vsub.s32 1, %v67_v3 }
   0xa   :  { %v11027_v4 = vld [vmem:[%s15623_s0] sm:$0xf]  ;;  %15624 = vst [vmem:[#allocation6_spill] sm:$0xff] %v11029_v5  ;;  %15625 = vst [vmem:[#allocation7_spill] sm:$0xff] %v11031_v6 }
   0xb   :  { %15626 = vst [vmem:[#allocation8_spill] sm:$0xff] %v11033_v7  ;;  %v11039_v9 = vrot.slane %v11027_v4, %v11031_v6  ;;  %v11043_v10 = vrot.slane %v11027_v4, %v11029_v5  ;;  %v11049_v11 = vrot.slane %v11027_v4, %v11033_v7  ;;  %v11053_v12 = vrot.slane %v11027_v4, %v11035_v8 }
   0xd   :  { %86 = vrot.lane.b32.xlu1 %v11039_v9, %s10901_s16  ;;  %82 = vrot.lane.b32.xlu0 %v11043_v10, %s10901_s16 }
   0xe   :  { %25 = vsyncpa [#allocation4], 0  ;;  %s15627_s20 = sld [smem:[#allocation108_spill]]  ;;  %s10902_s21 = smov 16   ;;  %v1030_v37 = vld [vmem:[%s15602_s10 + $0xf8] sm:$0xff]  ;;  %v1029_v40 = vld [vmem:[%s15602_s10 + $0xf0] sm:$0xff] }
   0xf   :  { %s10903_s23 = smov 15   ;;  %s10904_s30 = smov 1   ;;  %v1014_v38 = vld [vmem:[%s15602_s10 + $0x78] sm:$0xff]  ;;  %9209 = vmatprep.subr.mxu0 %v1030_v37  ;;  %v1013_v42 = vld [vmem:[%s15602_s10 + $0x70] sm:$0xff]  ;;  %v1028_v44 = vld [vmem:[%s15602_s10 + $0xe8] sm:$0xff]  ;;  %vm90_vm0 = vcmask 138240  }
  0x10   :  { %s10905_s24 = smov 127   ;;  %s10906_s29 = smov 113   ;;  %v1062_v39 = vld [vmem:[%s15602_s10 + $0x1f8] sm:$0xff]  ;;  %9210 = vmatpush3.msra.mxu0 %v1014_v38  ;;  %v1061_v43 = vld [vmem:[%s15602_s10 + $0x1f0] sm:$0xff]  ;;  %v1012_v46 = vld [vmem:[%s15602_s10 + $0x68] sm:$0xff]  ;;  %vm177_vm1 = vcmask 130048  }
  0x11   :  { %88 = vrot.lane.b32.xlu1 %v11049_v11, %s10901_s16  ;;  %84 = vrot.lane.b32.xlu0 %v11053_v12, %s10901_s16  ;;  %s10908_s26 = smov 111   ;;  %v1046_v41 = vld [vmem:[%s15602_s10 + $0x178] sm:$0xff]  ;;  %v1045_v45 = vld [vmem:[%s15602_s10 + $0x170] sm:$0xff]  ;;  %vm266_vm2 = vcmask 121856   ;;  %vm355_vm3 = vcmask 7168   ;;  %vm497_vm4 = vcmask 1039360  }
  0x12   :  { %9247 = vmatprep.subr.mxu1 %v1062_v39  ;;  %9211 = vmatprep.subr.mxu0 %v1029_v40  ;;  %v1060_v47 = vld [vmem:[%s15602_s10 + $0x1e8] sm:$0xff]  ;;  %v1027_v49 = vld [vmem:[%s15602_s10 + $0xe0] sm:$0xff]  ;;  %v1026_v55 = vld [vmem:[%s15602_s10 + $0xd8] sm:$0xff]  ;;  %vm586_vm5 = vcmask 924672   ;;  %vm675_vm6 = vcmask 916480   ;;  %vm764_vm7 = vcmask 908288  }
  0x13   :  { %9248 = vmatpush3.msra.mxu1 %v1046_v41  ;;  %9212 = vmatpush3.msra.mxu0 %v1013_v42  ;;  %v1044_v50 = vld [vmem:[%s15602_s10 + $0x168] sm:$0xff]  ;;  %v1059_v51 = vld [vmem:[%s15602_s10 + $0x1e0] sm:$0xff]  ;;  %v1010_v56 = vld [vmem:[%s15602_s10 + $0x58] sm:$0xff]  ;;  %s10911_s27 = smov 7   ;;  %s10912_s0 = smov 121   ;;  %vm1245_vm8 = vcmask 64512  }
  0x14   :  { %v125_v13 = vld [vmem:[%s15627_s20] sm:$0xff]  ;;  %v8451_v14 = vld [vmem:[%s15627_s20 + $0x10] sm:$0xff]  ;;  %v126_v16 = vld [vmem:[%s15627_s20 + $0x8] sm:$0xff]  ;;  %9249 = vmatprep.subr.mxu1 %v1061_v43  ;;  %9213 = vmatprep.subr.mxu0 %v1028_v44  ;;  %s10914_s16 = smov 119   ;;  %vm1225_vm9 = vcmask 72704   ;;  %vm1460_vm10 = vcmask 56320  }
  0x15   :  { %169 = vrot.lane.b32.xlu1 %v11043_v10, %s10902_s21  ;;  %129 = vperm.xlu0 %10786, %v125_v13   ;;  %v8454_v15 = vld [vmem:[%s15627_s20 + $0x20] sm:$0xff]  ;;  %v8452_v17 = vld [vmem:[%s15627_s20 + $0x18] sm:$0xff]  ;;  %v8457_v18 = vld [vmem:[%s15627_s20 + $0x30] sm:$0xff]  ;;  %vm1937_vm11 = vcmask 990208   ;;  %vm2059_vm12 = vcmask 982016   ;;  %vm2181_vm13 = vcmask 973824  }
  0x16   :  { %v8455_v19 = vld [vmem:[%s15627_s20 + $0x28] sm:$0xff]  ;;  %v8460_v20 = vld [vmem:[%s15627_s20 + $0x40] sm:$0xff]  ;;  %v8458_v21 = vld [vmem:[%s15627_s20 + $0x38] sm:$0xff]  ;;  %9250 = vmatpush3.msra.mxu1 %v1045_v45  ;;  %9214 = vmatpush3.msra.mxu0 %v1012_v46  ;;  %vm2571_vm14 = vcmask 261120   ;;  %s10915_s2 = smov 4   ;;  %s10920_s25 = smov 123  }
  0x17   :  { %v8463_v22 = vld [vmem:[%s15627_s20 + $0x50] sm:$0xff]  ;;  %v8461_v23 = vld [vmem:[%s15627_s20 + $0x48] sm:$0xff]  ;;  %v8466_v24 = vld [vmem:[%s15627_s20 + $0x60] sm:$0xff]  ;;  %9251 = vmatprep.subr.mxu1 %v1060_v47  ;;  %9215 = vmatprep.subr.mxu0 %v1027_v49  ;;  %vm2548_vm15 = vcmask 31744  }
  0x18   :  { %v8464_v25 = vld [vmem:[%s15627_s20 + $0x58] sm:$0xff]  ;;  %v8469_v26 = vld [vmem:[%s15627_s20 + $0x70] sm:$0xff]  ;;  %v8467_v27 = vld [vmem:[%s15627_s20 + $0x68] sm:$0xff]  ;;  %9252 = vmatpush3.msra.mxu1 %v1044_v50 }
  0x19   :  { %171 = vrot.lane.b32.xlu1 %v11053_v12, %s10902_s21  ;;  %173 = vrot.lane.b32.xlu0 %v11039_v9, %s10902_s21  ;;  %v8472_v28 = vld [vmem:[%s15627_s20 + $0x80] sm:$0xff]  ;;  %v8470_v29 = vld [vmem:[%s15627_s20 + $0x78] sm:$0xff] }
  0x1a   :  { %v8473_v30 = vld [vmem:[%s15627_s20 + $0x88] sm:$0xff]  ;;  %v1011_v52 = vld [vmem:[%s15602_s10 + $0x60] sm:$0xff]  ;;  %9253 = vmatprep.subr.mxu1 %v1059_v51  ;;  %v1058_v57 = vld [vmem:[%s15602_s10 + $0x1d8] sm:$0xff]  ;;  %s10923_s20 = smov 105  }
  0x1b   :  { %v1043_v53 = vld [vmem:[%s15602_s10 + $0x160] sm:$0xff]  ;;  %9216 = vmatpush3.msra.mxu0 %v1011_v52  ;;  %v1025_v59 = vld [vmem:[%s15602_s10 + $0xd0] sm:$0xff]  ;;  %v1042_v60 = vld [vmem:[%s15602_s10 + $0x158] sm:$0xff] }
  0x1c   :  { %9254 = vmatpush3.msra.mxu1 %v1043_v53  ;;  %9217 = vmatprep.subr.mxu0 %v1026_v55  ;;  %v1009_v61 = vld [vmem:[%s15602_s10 + $0x50] sm:$0xff]  ;;  %v1024_v63 = vld [vmem:[%s15602_s10 + $0xc8] sm:$0xff]  ;;  %v1055_v13 = vld [vmem:[%s15602_s10 + $0x1c0] sm:$0xff] }
  0x1d   :  { %175 = vrot.lane.b32.xlu1 %v11049_v11, %s10902_s21  ;;  %218 = vperm.xlu0 %10786, %v8451_v14   ;;  %s10907_s21 = smov 112   ;;  %v1057_v62 = vld [vmem:[%s15602_s10 + $0x1d0] sm:$0xff]  ;;  %v1008_v1 = vld [vmem:[%s15602_s10 + $0x48] sm:$0xff] }
  0x1e   :  { %9218 = vmatpush3.msra.mxu0 %v1010_v56  ;;  %9255 = vmatprep.subr.mxu1 %v1058_v57  ;;  %v1041_v0 = vld [vmem:[%s15602_s10 + $0x150] sm:$0xff]  ;;  %v1056_v2 = vld [vmem:[%s15602_s10 + $0x1c8] sm:$0xff] }
  0x1f   :  { %9219 = vmatprep.subr.mxu0 %v1025_v59  ;;  %9256 = vmatpush3.msra.mxu1 %v1042_v60  ;;  %v11349_v46 = vld [vmem:[%s15599_s7 + $0x5] ss:$8 sm:$0xf]  ;;  %v11362_v52 = vld [vmem:[%s15599_s7 + $0x6] ss:$8 sm:$0xf] }
  0x20   :  { %9220 = vmatpush3.msra.mxu0 %v1009_v61  ;;  %9257 = vmatprep.subr.mxu1 %v1057_v62 }
  0x21   :  { %258 = vrot.lane.b32.xlu1 %v11043_v10, %s10903_s23  ;;  %260 = vrot.lane.b32.xlu0 %v11053_v12, %s10903_s23 }
  0x22   :  { %9221 = vmatprep.subr.mxu0 %v1024_v63  ;;  %9258 = vmatpush3.msra.mxu1 %v1041_v0 }
  0x23   :  { %9222 = vmatpush3.msra.mxu0 %v1008_v1  ;;  %9259 = vmatprep.subr.mxu1 %v1056_v2  ;;  %v11391_v1 = vld [vmem:[%s15599_s7 + $0x7] ss:$8 sm:$0xf]  ;;  %v11428_v2 = vld [vmem:[%s15599_s7 + $0x20] ss:$8 sm:$0xf] }
  0x25   :  { %262 = vrot.lane.b32.xlu1 %v11039_v9, %s10903_s23  ;;  %264 = vrot.lane.b32.xlu0 %v11049_v11, %s10903_s23  ;;  %s15628_s23 = sld [smem:[#allocation109_spill]] }
  0x29   :  { %307 = vperm.xlu1 %10787, %v8454_v15   ;;  %134 = vperm.xlu0 %10786, %v126_v16  }
  0x2b   :  { %v63_v31 = vld [vmem:[%s15628_s23] sm:$0xff]  ;;  %v64_v32 = vld [vmem:[%s15628_s23 + $0x8] sm:$0xff] }
  0x2d   :  { %223 = vperm.xlu1 %10787, %v8452_v17   ;;  %347 = vrot.lane.b32.xlu0 %v11043_v10, %s10904_s30 }
  0x31   :  { %349 = vrot.lane.b32.xlu1 %v11053_v12, %s10904_s30  ;;  %351 = vrot.lane.b32.xlu0 %v11039_v9, %s10904_s30 }
  0x35   :  { %353 = vrot.lane.b32.xlu1 %v11049_v11, %s10904_s30  ;;  %396 = vperm.xlu0 %10786, %v8457_v18  }
  0x39   :  { %312 = vperm.xlu1 %10787, %v8455_v19   ;;  %444 = vperm.xlu0 %10786, %v8460_v20  }
  0x3d   :  { %401 = vperm.xlu1 %10787, %v8458_v21   ;;  %491 = vrot.lane.b32.xlu0 %v11053_v12, %s10905_s24  ;;  %v11293_v21 = vld [vmem:[%s15599_s7] ss:$8 sm:$0xf] }
  0x41   :  { %493 = vrot.lane.b32.xlu1 %v11039_v9, %s10905_s24  ;;  %495 = vrot.lane.b32.xlu0 %v11049_v11, %s10905_s24 }
  0x45   :  { %538 = vperm.xlu1 %10787, %v8463_v22   ;;  %489 = vrot.lane.b32.xlu0 %v11043_v10, %s10905_s24 }
  0x49   :  { %449 = vperm.xlu1 %10787, %v8461_v23   ;;  %580 = vrot.lane.b32.xlu0 %v11053_v12, %s10906_s29 }
  0x4d   :  { %582 = vrot.lane.b32.xlu1 %v11039_v9, %s10906_s29  ;;  %584 = vrot.lane.b32.xlu0 %v11049_v11, %s10906_s29 }
  0x51   :  { %627 = vperm.xlu1 %10787, %v8466_v24   ;;  %578 = vrot.lane.b32.xlu0 %v11043_v10, %s10906_s29  ;;  %v11302_v24 = vld [vmem:[%s15599_s7 + $0x1] ss:$8 sm:$0xf] }
  0x52   :  { %v196_v40 = vrot.slane %v11302_v24, %v11035_v8  ;;  %v200_v42 = vrot.slane %v11302_v24, %v11031_v6  ;;  %v204_v43 = vrot.slane %v11302_v24, %v11033_v7 }
  0x55   :  { %543 = vperm.xlu1 %10787, %v8464_v25   ;;  %669 = vrot.lane.b32.xlu0 %v11053_v12, %s10907_s21  ;;  %v8459_v25 = vld [vmem:[%s15599_s7 + $0x4] ss:$8 sm:$0xf] }
  0x56   :  { %v438_v39 = vmul.f32 %v8459_v25, %v11027_v4 }
  0x58   :  { %v11369_v56 = vrot.slane %v438_v39, %v11029_v5  ;;  %v11372_v57 = vrot.slane %v438_v39, %v11035_v8  ;;  %v11375_v59 = vrot.slane %v438_v39, %v11031_v6  ;;  %v11378_v60 = vrot.slane %v438_v39, %v11033_v7 }
  0x59   :  { %671 = vrot.lane.b32.xlu1 %v11039_v9, %s10907_s21  ;;  %673 = vrot.lane.b32.xlu0 %v11049_v11, %s10907_s21 }
  0x5d   :  { %716 = vperm.xlu1 %10787, %v8469_v26   ;;  %667 = vrot.lane.b32.xlu0 %v11043_v10, %s10907_s21  ;;  %v11310_v26 = vld [vmem:[%s15599_s7 + $0x2] ss:$8 sm:$0xf] }
  0x5e   :  { %v281_v41 = vrot.slane %v11310_v26, %v11029_v5  ;;  %v285_v44 = vrot.slane %v11310_v26, %v11035_v8  ;;  %v289_v45 = vrot.slane %v11310_v26, %v11031_v6  ;;  %v293_v4 = vrot.slane %v11310_v26, %v11033_v7 }
  0x61   :  { %632 = vperm.xlu1 %10787, %v8467_v27   ;;  %758 = vrot.lane.b32.xlu0 %v11053_v12, %s10908_s26  ;;  %v1007_v12 = vld [vmem:[%s15602_s10 + $0x40] sm:$0xff]  ;;  %v104_v27 = vrot.slane %v11293_v21, %v11029_v5 }
  0x65   :  { %760 = vrot.lane.b32.xlu1 %v11039_v9, %s10908_s26  ;;  %762 = vrot.lane.b32.xlu0 %v11049_v11, %s10908_s26  ;;  %v1040_v11 = vld [vmem:[%s15602_s10 + $0x148] sm:$0xff] }
  0x66   :  { %9260 = vmatpush3.msra.mxu1 %v1040_v11 }
  0x67   :  { %9261 = vmatprep.subr.mxu1 %v1055_v13 }
  0x69   :  { %805 = vperm.xlu1 %10787, %v8472_v28   ;;  %756 = vrot.lane.b32.xlu0 %v11043_v10, %s10908_s26  ;;  %v1023_v10 = vld [vmem:[%s15602_s10 + $0xc0] sm:$0xff]  ;;  %v116_v28 = vrot.slane %v11293_v21, %v11033_v7 }
  0x6a   :  { %9223 = vmatprep.subr.mxu0 %v1023_v10 }
  0x6b   :  { %9224 = vmatpush3.msra.mxu0 %v1007_v12 }
  0x6d   :  { %721 = vperm.xlu1 %10787, %v8470_v29   ;;  %810 = vperm.xlu0 %10786, %v8473_v30   ;;  %v108_v29 = vrot.slane %v11293_v21, %v11035_v8  ;;  %v112_v30 = vrot.slane %v11293_v21, %v11031_v6 }
  0x71   :  { %847 = vperm.xlu1 %10787, %v63_v31   ;;  %852 = vperm.xlu0 %10786, %v64_v32   ;;  %v192_v31 = vrot.slane %v11302_v24, %v11029_v5  ;;  %v11325_v32 = vld [vmem:[%s15599_s7 + $0x3] ss:$8 sm:$0xf]  ;;  %s10913_s7 = smov 120  }
  0x72   :  { %v374_v49 = vrot.slane %v11325_v32, %v11035_v8 }
  0x7f   :  { %v11165_v33 = vpop.permute.xlu1 %86  ;;  %v11169_v35 = vpop.permute.xlu0 %82 }
  0x80   :  { %v98_v13 = vsel %vm90_vm0, 0.0, %v11169_v35 }
  0x83   :  { %v11167_v34 = vpop.permute.xlu1 %88  ;;  %v11206_v48 = vpop.permute.xlu0 %84 }
  0x84   :  { %v93_v21 = vsel %vm90_vm0, %v11165_v33, %v11167_v34  ;;  %v91_v24 = vsel %vm90_vm0, %v11169_v35, %v11206_v48  ;;  %v92_v0 = vsel %vm90_vm0, %v11206_v48, %v11165_v33  ;;  %v690_v34 = vrot.slane %v11391_v1, %v11029_v5 }
  0x85   :  { %v121_v35 = vmul.f32 %v104_v27, %v98_v13  ;;  %v124_v63 = vmul.f32 %v116_v28, %v93_v21  ;;  %v122_v62 = vmul.f32 %v108_v29, %v91_v24  ;;  %v123_v48 = vmul.f32 %v112_v30, %v92_v0 }
  0x86   :  { %vm2514_vm0 = vcmask 39936  }
  0x87   :  { %v11171_v36 = vpop.permute.xlu1 %169  ;;  %v144_v0 = vrot.slane %v122_v62, %v11029_v5  ;;  %v148_v21 = vrot.slane %v123_v48, %v11029_v5 }
  0x88   :  { %v185_v25 = vsel %vm177_vm1, 0.0, %v11171_v36 }
  0x89   :  { %v209_v61 = vmul.f32 %v192_v31, %v185_v25 }
  0x8b   :  { %v11223_v54 = vpop.permute.xlu1 %171 }
  0x8f   :  { %v11260_v3 = vpop.permute.xlu1 %175 }
  0x90   :  { %v11234_v58 = vpop.permute.xlu0 %129 }
  0x91   :  { %v154_v25 = vmul.f32 %v144_v0, %v11234_v58  ;;  %v155_v26 = vmul.f32 %v148_v21, %v11234_v58 }
  0x93   :  { %v11278_v15 = vpop.permute.xlu1 %258 }
  0x94   :  { %v11262_v9 = vpop.permute.xlu0 %173 }
  0x95   :  { %v179_v39 = vsel %vm177_vm1, %v11223_v54, %v11262_v9  ;;  %v180_v12 = vsel %vm177_vm1, %v11262_v9, %v11260_v3  ;;  %v178_v3 = vsel %vm177_vm1, %v11171_v36, %v11223_v54  ;;  %v702_v9 = vrot.slane %v11391_v1, %v11033_v7 }
  0x96   :  { %v211_v51 = vmul.f32 %v200_v42, %v179_v39  ;;  %v212_v47 = vmul.f32 %v204_v43, %v180_v12  ;;  %v210_v36 = vmul.f32 %v196_v40, %v178_v3  ;;  %v274_v54 = vsel %vm266_vm2, 0.0, %v11278_v15 }
  0x97   :  { %v11282_v17 = vpop.permute.xlu1 %262  ;;  %v152_v43 = vrot.slane %v124_v63, %v11029_v5  ;;  %v229_v12 = vrot.slane %v209_v61, %v11029_v5 }
  0x98   :  { %v11276_v14 = vpop.permute.xlu0 %218  ;;  %v233_v63 = vrot.slane %v210_v36, %v11029_v5 }
  0x9c   :  { %v11280_v16 = vpop.permute.xlu0 %260 }
  0x9d   :  { %v267_v31 = vsel %vm266_vm2, %v11278_v15, %v11280_v16  ;;  %v268_v30 = vsel %vm266_vm2, %v11280_v16, %v11282_v17  ;;  %v298_v15 = vmul.f32 %v281_v41, %v274_v54  ;;  %v237_v16 = vrot.slane %v211_v51, %v11029_v5 }
  0x9e   :  { %v299_v61 = vmul.f32 %v285_v44, %v267_v31  ;;  %v300_v41 = vmul.f32 %v289_v45, %v268_v30  ;;  %v243_v45 = vmul.f32 %v233_v63, %v11276_v14  ;;  %v15629_v31 = vrot.slane %v11325_v32, %v11031_v6 }
  0x9f   :  { %v244_v3 = vmul.f32 %v237_v16, %v11276_v14 }
  0xa0   :  { %v11284_v18 = vpop.permute.xlu0 %264  ;;  %v322_v54 = vrot.slane %v299_v61, %v11029_v5 }
  0xa1   :  { %v269_v27 = vsel %vm266_vm2, %v11282_v17, %v11284_v18  ;;  %v140_v18 = vrot.slane %v121_v35, %v11029_v5  ;;  %v241_v17 = vrot.slane %v212_v47, %v11029_v5  ;;  %v318_v35 = vrot.slane %v298_v15, %v11029_v5 }
  0xa2   :  { %v301_v13 = vmul.f32 %v293_v4, %v269_v27  ;;  %v242_v4 = vmul.f32 %v229_v12, %v11276_v14  ;;  %v252_v40 = vadd.f32 %v244_v3, %v155_v26  ;;  %vm3340_vm2 = vcmask 252928  }
  0xa3   :  { %v153_v47 = vmul.f32 %v140_v18, %v11234_v58  ;;  %v245_v48 = vmul.f32 %v241_v17, %v11276_v14  ;;  %v156_v14 = vmul.f32 %v152_v43, %v11234_v58 }
  0xa4   :  { %v11286_v19 = vpop.permute.xlu1 %307  ;;  %v11288_v20 = vpop.permute.xlu0 %134  ;;  %v330_v36 = vrot.slane %v301_v13, %v11029_v5  ;;  %v15630_v13 = vrot.slane %v11325_v32, %v11029_v5 }
  0xa5   :  { %v250_v42 = vadd.f32 %v242_v4, %v153_v47  ;;  %v253_v33 = vadd.f32 %v245_v48, %v156_v14  ;;  %v157_v47 = vmul.f32 %v140_v18, %v11288_v20  ;;  %v158_v4 = vmul.f32 %v144_v0, %v11288_v20 }
  0xa6   :  { %v334_v58 = vmul.f32 %v330_v36, %v11286_v19  ;;  %v159_v26 = vmul.f32 %v148_v21, %v11288_v20 }
  0xa8   :  { %v11295_v22 = vpop.permute.xlu1 %223  ;;  %v11297_v23 = vpop.permute.xlu0 %347 }
  0xa9   :  { %v363_v39 = vsel %vm355_vm3, 0.0, %v11297_v23  ;;  %v247_v18 = vmul.f32 %v233_v63, %v11295_v22  ;;  %v249_v14 = vmul.f32 %v241_v17, %v11295_v22 }
  0xaa   :  { %v387_v61 = vmul.f32 %v15630_v13, %v363_v39 }
  0xac   :  { %v11327_v37 = vpop.permute.xlu1 %349  ;;  %v11329_v38 = vpop.permute.xlu0 %351  ;;  %v407_v0 = vrot.slane %v387_v61, %v11029_v5 }
  0xad   :  { %v356_v24 = vsel %vm355_vm3, %v11297_v23, %v11327_v37  ;;  %v357_v44 = vsel %vm355_vm3, %v11327_v37, %v11329_v38  ;;  %v326_v37 = vrot.slane %v300_v41, %v11029_v5 }
  0xae   :  { %v388_v27 = vmul.f32 %v374_v49, %v356_v24  ;;  %v389_v23 = vmul.f32 %v15629_v31, %v357_v44  ;;  %v251_v49 = vadd.f32 %v243_v45, %v154_v25  ;;  %v331_v24 = vmul.f32 %v318_v35, %v11286_v19 }
  0xaf   :  { %v332_v44 = vmul.f32 %v322_v54, %v11286_v19  ;;  %v333_v31 = vmul.f32 %v326_v37, %v11286_v19  ;;  %v246_v19 = vmul.f32 %v229_v12, %v11295_v22 }
  0xb0   :  { %v11364_v53 = vpop.permute.xlu1 %353  ;;  %v11366_v55 = vpop.permute.xlu0 %396  ;;  %v411_v39 = vrot.slane %v388_v27, %v11029_v5  ;;  %v415_v13 = vrot.slane %v389_v23, %v11029_v5  ;;  %v339_v3 = vadd.f32 %v331_v24, %v250_v42  ;;  %v160_v23 = vmul.f32 %v152_v43, %v11288_v20 }
  0xb1   :  { %v358_v41 = vsel %vm355_vm3, %v11329_v38, %v11364_v53  ;;  %v15631_v38 = vrot.slane %v11325_v32, %v11033_v7  ;;  %v340_v48 = vadd.f32 %v332_v44, %v251_v49  ;;  %v341_v27 = vadd.f32 %v333_v31, %v252_v40 }
  0xb2   :  { %v248_v32 = vmul.f32 %v237_v16, %v11295_v22  ;;  %v421_v63 = vmul.f32 %v411_v39, %v11366_v55  ;;  %v422_v61 = vmul.f32 %v415_v13, %v11366_v55  ;;  %v342_v43 = vadd.f32 %v334_v58, %v253_v33 }
  0xb3   :  { %v390_v53 = vmul.f32 %v15631_v38, %v358_v41  ;;  %v420_v41 = vmul.f32 %v407_v0, %v11366_v55  ;;  %v254_v16 = vadd.f32 %v246_v19, %v157_v47  ;;  %v255_v49 = vadd.f32 %v247_v18, %v158_v4 }
  0xb4   :  { %v11417_v11 = vpop.permute.xlu1 %312  ;;  %v11419_v10 = vpop.permute.xlu0 %444  ;;  %v15632_v44 = vrot.slane %v11349_v46, %v11035_v8  ;;  %v15633_v33 = vrot.slane %v11349_v46, %v11031_v6  ;;  %v430_v47 = vadd.f32 %v422_v61, %v341_v27 }
  0xb5   :  { %v419_v12 = vrot.slane %v390_v53, %v11029_v5  ;;  %v335_v22 = vmul.f32 %v318_v35, %v11417_v11  ;;  %v336_v17 = vmul.f32 %v322_v54, %v11417_v11  ;;  %v337_v24 = vmul.f32 %v326_v37, %v11417_v11 }
  0xb6   :  { %v256_v53 = vadd.f32 %v248_v32, %v159_v26  ;;  %v428_v50 = vadd.f32 %v420_v41, %v339_v3  ;;  %v429_v54 = vadd.f32 %v421_v63, %v340_v48  ;;  %v338_v37 = vmul.f32 %v330_v36, %v11417_v11 }
  0xb7   :  { %v423_v35 = vmul.f32 %v419_v12, %v11366_v55  ;;  %v474_v26 = vmul.f32 %v11372_v57, %v11419_v10  ;;  %v475_v18 = vmul.f32 %v11375_v59, %v11419_v10  ;;  %v15634_v3 = vrot.slane %v11349_v46, %v11033_v7 }
  0xb8   :  { %v11449_v28 = vpop.permute.xlu1 %401  ;;  %v11451_v29 = vpop.permute.xlu0 %491  ;;  %v343_v48 = vadd.f32 %v335_v22, %v254_v16  ;;  %v344_v27 = vadd.f32 %v336_v17, %v255_v49  ;;  %v476_v61 = vmul.f32 %v11378_v60, %v11419_v10 }
  0xb9   :  { %v425_v22 = vmul.f32 %v411_v39, %v11449_v28  ;;  %v426_v17 = vmul.f32 %v415_v13, %v11449_v28  ;;  %v482_v39 = vadd.f32 %v474_v26, %v429_v54  ;;  %v427_v13 = vmul.f32 %v419_v12, %v11449_v28 }
  0xbc   :  { %v494_v51 = vpop.permute.xlu1 %493  ;;  %v11483_v62 = vpop.permute.xlu0 %495 }
  0xbd   :  { %v499_v21 = vsel %vm497_vm4, %v11451_v29, %v494_v51  ;;  %v500_v40 = vsel %vm497_vm4, %v494_v51, %v11483_v62  ;;  %v505_v38 = vsel %vm497_vm4, %v11483_v62, 0.0  ;;  %v257_v51 = vadd.f32 %v249_v14, %v160_v23 }
  0xbe   :  { %v530_v31 = vmul.f32 %v15632_v44, %v499_v21  ;;  %v531_v58 = vmul.f32 %v15633_v33, %v500_v40  ;;  %v473_v62 = vmul.f32 %v11369_v56, %v11419_v10  ;;  %v532_v55 = vmul.f32 %v15634_v3, %v505_v38 }
  0xbf   :  { %v345_v23 = vadd.f32 %v337_v24, %v256_v53  ;;  %v431_v21 = vadd.f32 %v423_v35, %v342_v43  ;;  %v346_v63 = vadd.f32 %v338_v37, %v257_v51  ;;  %v424_v40 = vmul.f32 %v407_v0, %v11449_v28 }
  0xc0   :  { %v11510_v30 = vpop.permute.xlu1 %538  ;;  %v11512_v15 = vpop.permute.xlu0 %489  ;;  %v11576_v11 = vrot.slane %v530_v31, %v11029_v5  ;;  %v11579_v36 = vrot.slane %v531_v58, %v11029_v5  ;;  %v481_v24 = vadd.f32 %v473_v62, %v428_v50  ;;  %v15636_v10 = vrot.slane %v11362_v52, %v11035_v8 }
  0xc1   :  { %v498_v32 = vsel %vm497_vm4, %v11512_v15, %v11451_v29  ;;  %v561_v29 = vrot.slane %v532_v55, %v11029_v5  ;;  %v15637_v44 = vrot.slane %v11362_v52, %v11031_v6  ;;  %v432_v53 = vadd.f32 %v424_v40, %v343_v48 }
  0xc2   :  { %v563_v38 = vmul.f32 %v11576_v11, %v11510_v30  ;;  %v564_v50 = vmul.f32 %v11579_v36, %v11510_v30  ;;  %v15638_v51 = vrot.slane %v11362_v52, %v11033_v7  ;;  %v433_v37 = vadd.f32 %v425_v22, %v344_v27 }
  0xc3   :  { %v434_v62 = vadd.f32 %v426_v17, %v345_v23  ;;  %v565_v54 = vmul.f32 %v561_v29, %v11510_v30  ;;  %v435_v3 = vadd.f32 %v427_v13, %v346_v63  ;;  %v15640_v40 = vrot.slane %v11391_v1, %v11035_v8 }
  0xc4   :  { %v11532_v25 = vpop.permute.xlu1 %449  ;;  %v11534_v45 = vpop.permute.xlu0 %580  ;;  %v571_v55 = vadd.f32 %v563_v38, %v482_v39 }
  0xc5   :  { %v477_v27 = vmul.f32 %v11369_v56, %v11532_v25  ;;  %v478_v63 = vmul.f32 %v11372_v57, %v11532_v25  ;;  %v480_v56 = vmul.f32 %v11378_v60, %v11532_v25 }
  0xc7   :  { %v485_v57 = vadd.f32 %v477_v27, %v432_v53  ;;  %v486_v13 = vadd.f32 %v478_v63, %v433_v37 }
  0xc8   :  { %v583_v42 = vpop.permute.xlu1 %582  ;;  %v585_v20 = vpop.permute.xlu0 %584 }
  0xc9   :  { %v588_v14 = vsel %vm586_vm5, %v11534_v45, %v583_v42  ;;  %v589_v41 = vsel %vm586_vm5, %v583_v42, %v585_v20  ;;  %v594_v15 = vsel %vm586_vm5, %v585_v20, 0.0  ;;  %v15635_v42 = vrot.slane %v11349_v46, %v11029_v5 }
  0xca   :  { %v619_v0 = vmul.f32 %v15636_v10, %v588_v14  ;;  %v620_v31 = vmul.f32 %v15637_v44, %v589_v41  ;;  %v483_v20 = vadd.f32 %v475_v18, %v430_v47  ;;  %v484_v46 = vadd.f32 %v476_v61, %v431_v21 }
  0xcb   :  { %v529_v43 = vmul.f32 %v15635_v42, %v498_v32  ;;  %v621_v33 = vmul.f32 %v15638_v51, %v594_v15  ;;  %v479_v61 = vmul.f32 %v11375_v59, %v11532_v25  ;;  %v15641_v59 = vrot.slane %v11391_v1, %v11031_v6 }
  0xcc   :  { %v11564_v4 = vpop.permute.xlu1 %627  ;;  %v579_v19 = vpop.permute.xlu0 %578  ;;  %v11618_v26 = vrot.slane %v619_v0, %v11029_v5  ;;  %v11621_v47 = vrot.slane %v620_v31, %v11029_v5  ;;  %v572_v48 = vadd.f32 %v564_v50, %v483_v20  ;;  %v573_v22 = vadd.f32 %v565_v54, %v484_v46 }
  0xcd   :  { %v587_v28 = vsel %vm586_vm5, %v579_v19, %v11534_v45  ;;  %v549_v12 = vrot.slane %v529_v43, %v11029_v5  ;;  %v11627_v23 = vrot.slane %v621_v33, %v11029_v5  ;;  %v15639_v45 = vrot.slane %v11362_v52, %v11029_v5 }
  0xce   :  { %v652_v15 = vmul.f32 %v11618_v26, %v11564_v4  ;;  %v653_v42 = vmul.f32 %v11621_v47, %v11564_v4  ;;  %v487_v38 = vadd.f32 %v479_v61, %v434_v62  ;;  %v488_v50 = vadd.f32 %v480_v56, %v435_v3 }
  0xcf   :  { %v618_v19 = vmul.f32 %v15639_v45, %v587_v28  ;;  %v562_v17 = vmul.f32 %v549_v12, %v11510_v30  ;;  %v654_v30 = vmul.f32 %v11627_v23, %v11564_v4  ;;  %vm3684_vm5 = vcmask 228352  }
  0xd0   :  { %v11590_v16 = vpop.permute.xlu1 %543  ;;  %v670_v49 = vpop.permute.xlu0 %669  ;;  %v660_v46 = vadd.f32 %v652_v15, %v571_v55  ;;  %v15644_v55 = vrot.slane %v11428_v2, %v11033_v7 }
  0xd1   :  { %v638_v10 = vrot.slane %v618_v19, %v11029_v5  ;;  %v566_v0 = vmul.f32 %v549_v12, %v11590_v16  ;;  %v567_v44 = vmul.f32 %v11576_v11, %v11590_v16  ;;  %v568_v51 = vmul.f32 %v11579_v36, %v11590_v16 }
  0xd2   :  { %v569_v33 = vmul.f32 %v561_v29, %v11590_v16  ;;  %v15642_v29 = vrot.slane %v11428_v2, %v11035_v8 }
  0xd3   :  { %v651_v37 = vmul.f32 %v638_v10, %v11564_v4  ;;  %v574_v62 = vadd.f32 %v566_v0, %v485_v57  ;;  %v15643_v4 = vrot.slane %v11428_v2, %v11031_v6  ;;  %v576_v27 = vadd.f32 %v568_v51, %v487_v38  ;;  %v1038_v38 = vld [vmem:[%s15602_s10 + $0x138] sm:$0xff] }
  0xd4   :  { %v672_v58 = vpop.permute.xlu1 %671  ;;  %v674_v35 = vpop.permute.xlu0 %673  ;;  %v577_v45 = vadd.f32 %v569_v33, %v488_v50  ;;  %v1053_v33 = vld [vmem:[%s15602_s10 + $0x1b0] sm:$0xff] }
  0xd5   :  { %v677_v18 = vsel %vm675_vm6, %v670_v49, %v672_v58  ;;  %v678_v32 = vsel %vm675_vm6, %v672_v58, %v674_v35  ;;  %v683_v14 = vsel %vm675_vm6, %v674_v35, 0.0  ;;  %v662_v35 = vadd.f32 %v654_v30, %v573_v22 }
  0xd6   :  { %v708_v52 = vmul.f32 %v15640_v40, %v677_v18  ;;  %v709_v43 = vmul.f32 %v15641_v59, %v678_v32  ;;  %v710_v60 = vmul.f32 %v702_v9, %v683_v14  ;;  %v570_v9 = vadd.f32 %v562_v17, %v481_v24 }
  0xd7   :  { %v575_v24 = vadd.f32 %v567_v44, %v486_v13 }
  0xd8   :  { %v717_v41 = vpop.permute.xlu1 %716  ;;  %v668_v21 = vpop.permute.xlu0 %667  ;;  %v731_v20 = vrot.slane %v708_v52, %v11029_v5  ;;  %v735_v11 = vrot.slane %v709_v43, %v11029_v5  ;;  %v739_v58 = vrot.slane %v710_v60, %v11029_v5  ;;  %v659_v52 = vadd.f32 %v651_v37, %v570_v9 }
  0xd9   :  { %v676_v25 = vsel %vm675_vm6, %v668_v21, %v670_v49  ;;  %v661_v49 = vadd.f32 %v653_v42, %v572_v48  ;;  %v15645_v43 = vrot.slane %v11428_v2, %v11029_v5  ;;  %v1006_v2 = vld [vmem:[%s15602_s10 + $0x38] sm:$0xff] }
  0xda   :  { %v707_v53 = vmul.f32 %v690_v34, %v676_v25  ;;  %v741_v12 = vmul.f32 %v731_v20, %v717_v41  ;;  %v742_v19 = vmul.f32 %v735_v11, %v717_v41  ;;  %v743_v32 = vmul.f32 %v739_v58, %v717_v41  ;;  %v1022_v25 = vld [vmem:[%s15602_s10 + $0xb8] sm:$0xff] }
  0xdb   :  { %9225 = vmatprep.subr.mxu0 %v1022_v25 }
  0xdc   :  { %v633_v31 = vpop.permute.xlu1 %632  ;;  %v759_v39 = vpop.permute.xlu0 %758  ;;  %v727_v16 = vrot.slane %v707_v53, %v11029_v5  ;;  %v749_v42 = vadd.f32 %v741_v12, %v660_v46  ;;  %v750_v0 = vadd.f32 %v742_v19, %v661_v49  ;;  %v751_v44 = vadd.f32 %v743_v32, %v662_v35  ;;  %9226 = vmatpush3.msra.mxu0 %v1006_v2  ;;  %v1005_v49 = vld [vmem:[%s15602_s10 + $0x30] sm:$0xff] }
  0xdd   :  { %v655_v14 = vmul.f32 %v638_v10, %v633_v31  ;;  %v656_v22 = vmul.f32 %v11618_v26, %v633_v31  ;;  %v657_v17 = vmul.f32 %v11621_v47, %v633_v31  ;;  %v658_v59 = vmul.f32 %v11627_v23, %v633_v31  ;;  %v1039_v26 = vld [vmem:[%s15602_s10 + $0x140] sm:$0xff]  ;;  %v1054_v23 = vld [vmem:[%s15602_s10 + $0x1b8] sm:$0xff]  ;;  %v1021_v10 = vld [vmem:[%s15602_s10 + $0xb0] sm:$0xff] }
  0xde   :  { %v740_v57 = vmul.f32 %v727_v16, %v717_v41  ;;  %9262 = vmatpush3.msra.mxu1 %v1039_v26  ;;  %9227 = vmatprep.subr.mxu0 %v1021_v10  ;;  %v1017_v2 = vld [vmem:[%s15602_s10 + $0x90] sm:$0xff] }
  0xdf   :  { %v663_v31 = vadd.f32 %v655_v14, %v574_v62  ;;  %v664_v50 = vadd.f32 %v656_v22, %v575_v24  ;;  %v665_v9 = vadd.f32 %v657_v17, %v576_v27  ;;  %9263 = vmatprep.subr.mxu1 %v1054_v23  ;;  %9228 = vmatpush3.msra.mxu0 %v1005_v49  ;;  %v1019_v27 = vld [vmem:[%s15602_s10 + $0xa0] sm:$0xff]  ;;  %v1034_v23 = vld [vmem:[%s15602_s10 + $0x118] sm:$0xff]  ;;  %v1001_v10 = vld [vmem:[%s15602_s10 + $0x10] sm:$0xff] }
  0xe0   :  { %v761_v54 = vpop.permute.xlu1 %760  ;;  %v763_v28 = vpop.permute.xlu0 %762  ;;  %v748_v35 = vadd.f32 %v740_v57, %v659_v52  ;;  %9264 = vmatpush3.msra.mxu1 %v1038_v38  ;;  %v1051_v52 = vld [vmem:[%s15602_s10 + $0x1a0] sm:$0xff]  ;;  %v1032_v49 = vld [vmem:[%s15602_s10 + $0x108] sm:$0xff] }
  0xe1   :  { %v766_v1 = vsel %vm764_vm7, %v759_v39, %v761_v54  ;;  %v767_v34 = vsel %vm764_vm7, %v761_v54, %v763_v28  ;;  %v772_v36 = vsel %vm764_vm7, %v763_v28, 0.0  ;;  %9265 = vmatprep.subr.mxu1 %v1053_v33  ;;  %v1035_v57 = vld [vmem:[%s15602_s10 + $0x120] sm:$0xff] }
  0xe2   :  { %v797_v18 = vmul.f32 %v15642_v29, %v766_v1  ;;  %v798_v3 = vmul.f32 %v15643_v4, %v767_v34  ;;  %v799_v48 = vmul.f32 %v15644_v55, %v772_v36  ;;  %v1037_v1 = vld [vmem:[%s15602_s10 + $0x130] sm:$0xff] }
  0xe3   :  { %9266 = vmatpush3.msra.mxu1 %v1037_v1 }
  0xe4   :  { %v11685_v21 = vrot.slane %v797_v18, %v11029_v5  ;;  %v11688_v63 = vrot.slane %v798_v3, %v11029_v5  ;;  %v11691_v61 = vrot.slane %v799_v48, %v11029_v5  ;;  %v806_v56 = vpop.permute.xlu1 %805  ;;  %v757_v40 = vpop.permute.xlu0 %756 }
  0xe5   :  { %v765_v15 = vsel %vm764_vm7, %v757_v40, %v759_v39  ;;  %v1003_v40 = vld [vmem:[%s15602_s10 + $0x20] sm:$0xff] }
  0xe6   :  { %v796_v60 = vmul.f32 %v15645_v43, %v765_v15  ;;  %v830_v47 = vmul.f32 %v11685_v21, %v806_v56  ;;  %v831_v30 = vmul.f32 %v11688_v63, %v806_v56  ;;  %v832_v41 = vmul.f32 %v11691_v61, %v806_v56  ;;  %v1002_v43 = vld [vmem:[%s15602_s10 + $0x18] sm:$0xff] }
  0xe8   :  { %v816_v39 = vrot.slane %v796_v60, %v11029_v5  ;;  %v722_v13 = vpop.permute.xlu1 %721  ;;  %v811_v51 = vpop.permute.xlu0 %810  ;;  %v838_v24 = vadd.f32 %v830_v47, %v749_v42  ;;  %v839_v28 = vadd.f32 %v831_v30, %v750_v0  ;;  %v840_v12 = vadd.f32 %v832_v41, %v751_v44  ;;  %v1050_v41 = vld [vmem:[%s15602_s10 + $0x198] sm:$0xff]  ;;  %v1049_v44 = vld [vmem:[%s15602_s10 + $0x190] sm:$0xff] }
  0xe9   :  { %v745_v46 = vmul.f32 %v731_v20, %v722_v13  ;;  %v746_v53 = vmul.f32 %v735_v11, %v722_v13  ;;  %v744_v62 = vmul.f32 %v727_v16, %v722_v13  ;;  %v747_v54 = vmul.f32 %v739_v58, %v722_v13  ;;  %v1020_v20 = vld [vmem:[%s15602_s10 + $0xa8] sm:$0xff] }
  0xea   :  { %v829_v37 = vmul.f32 %v816_v39, %v806_v56  ;;  %v666_v11 = vadd.f32 %v658_v59, %v577_v45  ;;  %v833_v29 = vmul.f32 %v816_v39, %v811_v51  ;;  %v1004_v58 = vld [vmem:[%s15602_s10 + $0x28] sm:$0xff]  ;;  %9229 = vmatprep.subr.mxu0 %v1020_v20  ;;  %v834_v14 = vmul.f32 %v11685_v21, %v811_v51  ;;  %v1018_v21 = vld [vmem:[%s15602_s10 + $0x98] sm:$0xff]  ;;  %v1047_v20 = vld [vmem:[%s15602_s10 + $0x180] sm:$0xff] }
  0xeb   :  { %v753_v36 = vadd.f32 %v745_v46, %v664_v50  ;;  %v1052_v16 = vld [vmem:[%s15602_s10 + $0x1a8] sm:$0xff]  ;;  %v754_v4 = vadd.f32 %v746_v53, %v665_v9  ;;  %v752_v19 = vadd.f32 %v744_v62, %v663_v31  ;;  %v835_v22 = vmul.f32 %v11688_v63, %v811_v51  ;;  %9230 = vmatpush3.msra.mxu0 %v1004_v58  ;;  %v1033_v9 = vld [vmem:[%s15602_s10 + $0x110] sm:$0xff] }
  0xec   :  { %v837_v34 = vadd.f32 %v829_v37, %v748_v35  ;;  %v848_v18 = vpop.permute.xlu1 %847  ;;  %v1036_v45 = vld [vmem:[%s15602_s10 + $0x128] sm:$0xff]  ;;  %v755_v32 = vadd.f32 %v747_v54, %v666_v11  ;;  %9267 = vmatprep.subr.mxu1 %v1052_v16  ;;  %v836_v59 = vmul.f32 %v11691_v61, %v811_v51  ;;  %9231 = vmatprep.subr.mxu0 %v1019_v27  ;;  %v853_v0 = vpop.permute.xlu0 %852  ;;  %v1015_v51 = vld [vmem:[%s15602_s10 + $0x80] sm:$0xff] }
  0xed   :  { %v11740_v3 = vadd.f32 %v848_v18, %v838_v24  ;;  %v11742_v55 = vadd.f32 %v848_v18, %v839_v28  ;;  %v11744_v48 = vadd.f32 %v848_v18, %v840_v12  ;;  %9268 = vmatpush3.msra.mxu1 %v1036_v45  ;;  %v842_v60 = vadd.f32 %v834_v14, %v753_v36  ;;  %v1016_v13 = vld [vmem:[%s15602_s10 + $0x88] sm:$0xff]  ;;  %v999_v37 = vld [vmem:[%s15602_s10] sm:$0xff] }
  0xee   :  { %v11753_v56 = vadd.f32 %v848_v18, %v837_v34  ;;  %v843_v25 = vadd.f32 %v835_v22, %v754_v4  ;;  %9232 = vmatpush3.msra.mxu0 %v1003_v40  ;;  %9269 = vmatprep.subr.mxu1 %v1051_v52  ;;  %v841_v47 = vadd.f32 %v833_v29, %v752_v19  ;;  %v1000_v46 = vld [vmem:[%s15602_s10 + $0x8] sm:$0xff]  ;;  %v1031_v11 = vld [vmem:[%s15602_s10 + $0x100] sm:$0xff] }
  0xef   :  { %v864_v17 = vmax.f32 %v11740_v3, 0.0  ;;  %v865_v15 = vmax.f32 %v11742_v55, 0.0  ;;  %v866_v42 = vmax.f32 %v11744_v48, 0.0  ;;  %v844_v30 = vadd.f32 %v836_v59, %v755_v32  ;;  %9233 = vmatprep.subr.mxu0 %v1018_v21  ;;  %9270 = vmatpush3.msra.mxu1 %v1035_v57  ;;  %v1048_v53 = vld [vmem:[%s15602_s10 + $0x188] sm:$0xff]  ;;  %s10909_s10 = smov 8  }
  0xf0   :  { %v863_v63 = vmax.f32 %v11753_v56, 0.0  ;;  %9234 = vmatpush3.msra.mxu0 %v1002_v43  ;;  %v11801_v31 = vadd.f32 %v853_v0, %v842_v60  ;;  %v11803_v39 = vadd.f32 %v853_v0, %v843_v25  ;;  %9271 = vmatprep.subr.mxu1 %v1050_v41  ;;  %v11808_v38 = vadd.f32 %v853_v0, %v841_v47 }
  0xf1   :  { %v10788_v26 = vpack.i.bf16 %v865_v15, %v864_v17  ;;  %9235 = vmatprep.subr.mxu0 %v1017_v2  ;;  %v11810_v50 = vadd.f32 %v853_v0, %v844_v30  ;;  %9272 = vmatpush3.msra.mxu1 %v1034_v23 }
  0xf2   :  { %v10793_v61 = vpack.i.bf16 %v863_v63, %v866_v42  ;;  %9236 = vmatpush3.msra.mxu0 %v1001_v10  ;;  %9273 = vmatprep.subr.mxu1 %v1049_v44  ;;  %v868_v33 = vmax.f32 %v11801_v31, 0.0  ;;  %v869_v35 = vmax.f32 %v11803_v39, 0.0  ;;  %v867_v62 = vmax.f32 %v11808_v38, 0.0 }
  0xf3   :  { %10789 = vrot.lane.b32.xlu1 %v10788_v26, %s10905_s24  ;;  %9237 = vmatprep.subr.mxu0 %v1016_v13  ;;  %v870_v54 = vmax.f32 %v11810_v50, 0.0 }
  0xf4   :  { %10794 = vrot.lane.b32.xlu0 %v10793_v61, %s10905_s24  ;;  %9274 = vmatpush3.msra.mxu1 %v1033_v9  ;;  %v10818_v24 = vpack.i.bf16 %v869_v35, %v868_v33 }
  0xf5   :  { %9238 = vmatpush3.msra.mxu0 %v1000_v46  ;;  %9275 = vmatprep.subr.mxu1 %v1048_v53  ;;  %v10823_v28 = vpack.i.bf16 %v867_v62, %v870_v54 }
  0xf6   :  { %9239 = vmatprep.subr.mxu0 %v1015_v51  ;;  %9276 = vmatpush3.msra.mxu1 %v1032_v49 }
  0xf7   :  { %10799 = vrot.lane.b32.xlu1 %v10788_v26, %s10907_s21  ;;  %9240 = vmatpush3.msra.mxu0 %v999_v37 }
  0xf8   :  { %10804 = vrot.lane.b32.xlu0 %v10793_v61, %s10907_s21  ;;  %9277 = vmatprep.subr.mxu1 %v1047_v20 }
  0xf9   :  { %9278 = vmatpush3.msra.mxu1 %v1031_v11 }
  0xfb   :  { %10809 = vrot.lane.b32.xlu1 %v10788_v26, %s10908_s26 }
  0xfc   :  { %10814 = vrot.lane.b32.xlu0 %v10793_v61, %s10908_s26 }
  0xff   :  { %10819 = vrot.lane.b32.xlu1 %v10818_v24, %s10905_s24 }
 0x100   :  { %10824 = vrot.lane.b32.xlu0 %v10823_v28, %s10905_s24 }
 0x103   :  { %10829 = vrot.lane.b32.xlu1 %v10818_v24, %s10907_s21 }
 0x104   :  { %10834 = vrot.lane.b32.xlu0 %v10823_v28, %s10907_s21  ;;  %s10910_s21 = smov 9  }
 0x107   :  { %10839 = vrot.lane.b32.xlu1 %v10818_v24, %s10908_s26 }
 0x108   :  { %10844 = vrot.lane.b32.xlu0 %v10823_v28, %s10908_s26 }
 0x165   :  { %v10790_v12 = vpop.permute.xlu1 %10789 }
 0x166   :  { %v10792_v1 = vunpack.i.h.bf16 %v10790_v12  ;;  %v10791_v34 = vunpack.i.l.bf16 %v10790_v12  ;;  %v10795_v36 = vpop.permute.xlu0 %10794 }
 0x167   :  { %v10797_v29 = vunpack.i.h.bf16 %v10795_v36  ;;  %v10796_v18 = vunpack.i.l.bf16 %v10795_v36 }
 0x168   :  { %v896_v4 = vsel %vm497_vm4, %v10791_v34, %v10792_v1 }
 0x169   :  { %v10800_v58 = vpop.permute.xlu1 %10799  ;;  %v895_v19 = vsel %vm497_vm4, %v10797_v29, %v10791_v34  ;;  %v909_v32 = vsel %vm497_vm4, %v10796_v18, 0.0  ;;  %v897_v52 = vsel %vm497_vm4, %v10792_v1, %v10796_v18  ;;  %v912_v21 = vmax.f32 %v864_v17, %v896_v4 }
 0x16a   :  { %v10805_v16 = vpop.permute.xlu0 %10804  ;;  %v10802_v27 = vunpack.i.h.bf16 %v10800_v58  ;;  %v10801_v45 = vunpack.i.l.bf16 %v10800_v58  ;;  %v911_v60 = vmax.f32 %v863_v63, %v895_v19  ;;  %v914_v25 = vmax.f32 %v866_v42, %v909_v32 }
 0x16b   :  { %v10807_v14 = vunpack.i.h.bf16 %v10805_v16  ;;  %v10806_v40 = vunpack.i.l.bf16 %v10805_v16  ;;  %v913_v61 = vmax.f32 %v865_v15, %v897_v52 }
 0x16c   :  { %v936_v30 = vsel %vm675_vm6, %v10801_v45, %v10802_v27 }
 0x16d   :  { %v10810_v22 = vpop.permute.xlu1 %10809  ;;  %v935_v3 = vsel %vm675_vm6, %v10807_v14, %v10801_v45  ;;  %v949_v17 = vsel %vm675_vm6, %v10806_v40, 0.0  ;;  %v937_v2 = vsel %vm675_vm6, %v10802_v27, %v10806_v40 }
 0x16e   :  { %v10812_v57 = vunpack.i.h.bf16 %v10810_v22  ;;  %v10811_v59 = vunpack.i.l.bf16 %v10810_v22  ;;  %v10815_v43 = vpop.permute.xlu0 %10814 }
 0x16f   :  { %v10817_v26 = vunpack.i.h.bf16 %v10815_v43  ;;  %v10816_v47 = vunpack.i.l.bf16 %v10815_v43 }
 0x170   :  { %v968_v41 = vsel %vm764_vm7, %v10811_v59, %v10812_v57 }
 0x171   :  { %v10820_v56 = vpop.permute.xlu1 %10819  ;;  %v984_v63 = vmax.f32 %v936_v30, %v968_v41  ;;  %v967_v48 = vsel %vm764_vm7, %v10817_v26, %v10811_v59  ;;  %v981_v42 = vsel %vm764_vm7, %v10816_v47, 0.0  ;;  %v969_v23 = vsel %vm764_vm7, %v10812_v57, %v10816_v47 }
 0x172   :  { %v10822_v10 = vunpack.i.h.bf16 %v10820_v56  ;;  %v10821_v0 = vunpack.i.l.bf16 %v10820_v56  ;;  %v10825_v55 = vpop.permute.xlu0 %10824  ;;  %v983_v15 = vmax.f32 %v935_v3, %v967_v48  ;;  %v986_v44 = vmax.f32 %v949_v17, %v981_v42  ;;  %v8476_v48 = vld [vmem:[%s15595_s3 + $0x20] sm:$0xff] }
 0x173   :  { %v10827_v13 = vunpack.i.h.bf16 %v10825_v55  ;;  %v10826_v9 = vunpack.i.l.bf16 %v10825_v55  ;;  %v992_v46 = vmax.f32 %v912_v21, %v984_v63  ;;  %v985_v53 = vmax.f32 %v937_v2, %v969_v23  ;;  %v1235_v55 = vld [vmem:[%s15595_s3] sm:$0xff] }
 0x174   :  { %v991_v51 = vmax.f32 %v911_v60, %v983_v15  ;;  %v994_v49 = vmax.f32 %v914_v25, %v986_v44  ;;  %v899_v24 = vsel %vm497_vm4, %v10821_v0, %v10822_v10  ;;  %v1214_v44 = vld [vmem:[%s15596_s4 + $0x8] sm:$0xff] }
 0x175   :  { %1127 = vmatprep.mubr.f32.mxu0 %v992_v46  ;;  %v10830_v37 = vpop.permute.xlu1 %10829  ;;  %v993_v20 = vmax.f32 %v913_v61, %v985_v53  ;;  %v910_v28 = vsel %vm497_vm4, %v10826_v9, 0.0  ;;  %v898_v34 = vsel %vm497_vm4, %v10827_v13, %v10821_v0  ;;  %v916_v58 = vmax.f32 %v868_v33, %v899_v24  ;;  %v1216_v13 = vld [vmem:[%s15596_s4 + $0x18] sm:$0xff]  ;;  %v1215_v46 = vld [vmem:[%s15596_s4 + $0x10] sm:$0xff] }
 0x176   :  { %v10835_v11 = vpop.permute.xlu0 %10834  ;;  %1128 = vmatmul.mubr.f32.vlgmr.msra.gmra.mxu0 %v991_v51  ;;  %1202 = vmatprep.mubr.f32.mxu1 %v994_v49  ;;  %v10832_v12 = vunpack.i.h.bf16 %v10830_v37  ;;  %v10831_v1 = vunpack.i.l.bf16 %v10830_v37  ;;  %v915_v45 = vmax.f32 %v867_v62, %v898_v34  ;;  %v918_v19 = vmax.f32 %v870_v54, %v910_v28  ;;  %v8474_v34 = vld [vmem:[%s15600_s8] ss:$0 sm:$0xff] }
 0x177   :  { %1203 = vmatmul.mubr.f32.vlgmr.msra.gmra.mxu1 %v993_v20  ;;  %v10837_v36 = vunpack.i.h.bf16 %v10835_v11  ;;  %v10836_v29 = vunpack.i.l.bf16 %v10835_v11  ;;  %v900_v52 = vsel %vm497_vm4, %v10822_v10, %v10826_v9  ;;  %v1213_v9 = vld [vmem:[%s15596_s4] sm:$0xff] }
 0x178   :  { %v939_v40 = vsel %vm675_vm6, %v10831_v1, %v10832_v12  ;;  %v917_v43 = vmax.f32 %v869_v35, %v900_v52  ;;  %v8475_v20 = vld [vmem:[%s15600_s8 + $0x1] ss:$0 sm:$0xff] }
 0x179   :  { %v10840_v18 = vpop.permute.xlu1 %10839  ;;  %v950_v22 = vsel %vm675_vm6, %v10836_v29, 0.0  ;;  %v938_v33 = vsel %vm675_vm6, %v10837_v36, %v10831_v1  ;;  %v940_v21 = vsel %vm675_vm6, %v10832_v12, %v10836_v29  ;;  %vm3856_vm6 = vcmask 220160  }
 0x17a   :  { %v10842_v16 = vunpack.i.h.bf16 %v10840_v18  ;;  %v10841_v4 = vunpack.i.l.bf16 %v10840_v18  ;;  %v10845_v27 = vpop.permute.xlu0 %10844 }
 0x17b   :  { %v10847_v32 = vunpack.i.h.bf16 %v10845_v27  ;;  %v10846_v14 = vunpack.i.l.bf16 %v10845_v27 }
 0x17c   :  { %v971_v31 = vsel %vm764_vm7, %v10841_v4, %v10842_v16 }
 0x17d   :  { %v982_v38 = vsel %vm764_vm7, %v10846_v14, 0.0  ;;  %v988_v62 = vmax.f32 %v939_v40, %v971_v31  ;;  %v970_v50 = vsel %vm764_vm7, %v10847_v32, %v10841_v4  ;;  %v972_v54 = vsel %vm764_vm7, %v10842_v16, %v10846_v14  ;;  %v8478_v4 = vld [vmem:[%s15595_s3 + $0x30] sm:$0xff]  ;;  %v8479_v14 = vld [vmem:[%s15595_s3 + $0x38] sm:$0xff]  ;;  %v1236_v40 = vld [vmem:[%s15595_s3 + $0x8] sm:$0xff] }
 0x17e   :  { %v987_v57 = vmax.f32 %v938_v33, %v970_v50  ;;  %v990_v59 = vmax.f32 %v950_v22, %v982_v38  ;;  %v989_v60 = vmax.f32 %v940_v21, %v972_v54  ;;  %v1237_v31 = vld [vmem:[%s15595_s3 + $0x10] sm:$0xff]  ;;  %v8489_v21 = vld [vmem:[%s15595_s3 + $0x40] sm:$0xff]  ;;  %vm4369_vm7 = vcmask 523264  }
 0x17f   :  { %v996_v25 = vmax.f32 %v916_v58, %v988_v62  ;;  %v8477_v58 = vld [vmem:[%s15595_s3 + $0x28] sm:$0xff]  ;;  %v8497_v50 = vld [vmem:[%s15600_s8 + $0x3] ss:$0 sm:$0xff] }
 0x180   :  { %v995_v26 = vmax.f32 %v915_v45, %v987_v57  ;;  %v998_v47 = vmax.f32 %v918_v19, %v990_v59  ;;  %v997_v30 = vmax.f32 %v917_v43, %v989_v60  ;;  %v8488_v19 = vld [vmem:[%s15600_s8 + $0x2] ss:$0 sm:$0xff]  ;;  %v1238_v57 = vld [vmem:[%s15595_s3 + $0x18] sm:$0xff]  ;;  %v8490_v60 = vld [vmem:[%s15595_s3 + $0x48] sm:$0xff] }
 0x181   :  { %1132 = vmatprep.mubr.f32.mxu0 %v996_v25  ;;  %v8506_v25 = vld [vmem:[%s15600_s8 + $0x4] ss:$0 sm:$0xff] }
 0x182   :  { %1133 = vmatmul.mubr.f32.gmra.mxu0 %v995_v26  ;;  %1207 = vmatprep.mubr.f32.mxu1 %v998_v47 }
 0x183   :  { %1208 = vmatmul.mubr.f32.gmra.mxu1 %v997_v30  ;;  %9894 = vmatprep.mubr.msk.f32.mxu0 %vm177_vm1, %v8476_v48 }
 0x184   :  { %9904 = vmatprep.mubr.msk.f32.mxu1 %vm177_vm1, %v1235_v55 }
 0x236   :  { %v9241_v61 = vpop.f32.mrf.mxu0 }
 0x237   :  { %v9279_v41 = vpop.f32.mrf.mxu1 }
 0x238   :  { %v9242_v3 = vpop.f32.mrf.mxu0 }
 0x239   :  { %v9243_v17 = vadd.f32 %v9242_v3, %v9241_v61  ;;  %v9280_v2 = vpop.f32.mrf.mxu1  ;;  %v8491_v3 = vld [vmem:[%s15595_s3 + $0x50] sm:$0xff] }
 0x23a   :  { %v9281_v56 = vadd.f32 %v9280_v2, %v9279_v41 }
 0x23c   :  { %v11898_v63 = vadd.f32 %v9281_v56, %v9243_v17  ;;  %v8515_v17 = vld [vmem:[%s15600_s8 + $0x5] ss:$0 sm:$0xff] }
 0x23d   :  { %v8498_v56 = vld [vmem:[%s15595_s3 + $0x60] sm:$0xff] }
 0x23e   :  { %1239 = vrot.lane.b32.xlu0 %v11898_v63, %s10909_s10  ;;  %v1702_v2 = vmul.f32 %v8506_v25, %v11898_v63 }
 0x242   :  { %v9244_v39 = vpop.f32.mrf.mxu0  ;;  %1219 = vrot.lane.b32.xlu0 %v11898_v63, %s10910_s21 }
 0x243   :  { %v9282_v35 = vpop.f32.mrf.mxu1 }
 0x244   :  { %v9245_v42 = vpop.f32.mrf.mxu0 }
 0x245   :  { %v9246_v23 = vadd.f32 %v9245_v42, %v9244_v39  ;;  %v9283_v10 = vpop.f32.mrf.mxu1 }
 0x246   :  { %v9284_v0 = vadd.f32 %v9283_v10, %v9282_v35  ;;  %1454 = vrot.lane.b32.xlu0 %v11898_v63, %s10911_s27  ;;  %v8499_v35 = vld [vmem:[%s15595_s3 + $0x68] sm:$0xff] }
 0x248   :  { %v11910_v15 = vadd.f32 %v9284_v0, %v9246_v23  ;;  %v8524_v23 = vld [vmem:[%s15600_s8 + $0x6] ss:$0 sm:$0xff]  ;;  %v8500_v0 = vld [vmem:[%s15595_s3 + $0x70] sm:$0xff] }
 0x24a   :  { %1241 = vrot.lane.b32.xlu1 %v11910_v15, %s10909_s10  ;;  %1576 = vrot.lane.b32.xlu0 %v11898_v63, %s10904_s30  ;;  %v1703_v47 = vmul.f32 %v8506_v25, %v11910_v15  ;;  %v2401_v25 = vld [vmem:[%s15603_s11 + $0x60] sm:$0xff]  ;;  %s10916_s10 = smov 5  }
 0x24e   :  { %1221 = vrot.lane.b32.xlu1 %v11910_v15, %s10910_s21  ;;  %1810 = vrot.lane.b32.xlu0 %v11898_v63, %s10905_s24 }
 0x252   :  { %1456 = vrot.lane.b32.xlu1 %v11910_v15, %s10911_s27  ;;  %1931 = vrot.lane.b32.xlu0 %v11898_v63, %s10912_s0  ;;  %s10921_s27 = smov 126  }
 0x256   :  { %1578 = vrot.lane.b32.xlu1 %v11910_v15, %s10904_s30  ;;  %2053 = vrot.lane.b32.xlu0 %v11898_v63, %s10913_s7 }
 0x25a   :  { %1812 = vrot.lane.b32.xlu1 %v11910_v15, %s10905_s24  ;;  %2175 = vrot.lane.b32.xlu0 %v11898_v63, %s10914_s16  ;;  %v8492_v63 = vld [vmem:[%s15595_s3 + $0x58] sm:$0xff] }
 0x25e   :  { %1933 = vrot.lane.b32.xlu1 %v11910_v15, %s10912_s0  ;;  %2304 = vperm.xlu0 %10786, %v1214_v44  }
 0x262   :  { %2055 = vrot.lane.b32.xlu1 %v11910_v15, %s10913_s7  ;;  %2314 = vperm.xlu0 %10786, %v1216_v13  }
 0x266   :  { %2177 = vrot.lane.b32.xlu1 %v11910_v15, %s10914_s16  ;;  %v8507_v15 = vld [vmem:[%s15595_s3 + $0x80] sm:$0xff] }
 0x26a   :  { %2299 = vperm.xlu1 %10787, %v1213_v9  }
 0x26e   :  { %2309 = vperm.xlu1 %10787, %v1215_v46  }
 0x2b0   :  { %v1240_v53 = vpop.permute.xlu0 %1239 }
 0x2b1   :  { %v1246_v11 = vsel %vm1245_vm8, 0.0, %v1240_v53  ;;  %v8501_v53 = vld [vmem:[%s15595_s3 + $0x78] sm:$0xff] }
 0x2b2   :  { %v1253_v12 = vmul.f32 %v8475_v20, %v1246_v11 }
 0x2b4   :  { %v1220_v51 = vpop.permute.xlu0 %1219 }
 0x2b5   :  { %v1226_v36 = vsel %vm1225_vm9, 0.0, %v1220_v51  ;;  %v8508_v51 = vld [vmem:[%s15595_s3 + $0x88] sm:$0xff] }
 0x2b6   :  { %v1233_v27 = vmul.f32 %v8474_v34, %v1226_v36  ;;  %v8517_v36 = vld [vmem:[%s15595_s3 + $0xa8] sm:$0xff] }
 0x2b8   :  { %v1455_v49 = vpop.permute.xlu0 %1454 }
 0x2b9   :  { %v1461_v52 = vsel %vm1460_vm10, 0.0, %v1455_v49  ;;  %v8533_v49 = vld [vmem:[%s15600_s8 + $0x7] ss:$0 sm:$0xff] }
 0x2ba   :  { %v1468_v62 = vmul.f32 %v8488_v19, %v1461_v52  ;;  %v8534_v52 = vld [vmem:[%s15595_s3 + $0xe0] sm:$0xff] }
 0x2bc   :  { %v1242_v37 = vpop.permute.xlu1 %1241  ;;  %v1577_v29 = vpop.permute.xlu0 %1576 }
 0x2bd   :  { %v1247_v24 = vsel %vm1245_vm8, 0.0, %v1242_v37  ;;  %v1582_v59 = vsel %vm355_vm3, 0.0, %v1577_v29  ;;  %v8542_v29 = vld [vmem:[%s15600_s8 + $0x8] ss:$0 sm:$0xff]  ;;  %s10917_s8 = smov 3   ;;  %vm5139_vm8 = vcmask 1042432  }
 0x2be   :  { %v1254_v28 = vmul.f32 %v8475_v20, %v1247_v24  ;;  %v1589_v30 = vmul.f32 %v8497_v50, %v1582_v59  ;;  %v8509_v20 = vld [vmem:[%s15595_s3 + $0x90] sm:$0xff]  ;;  %v8516_v24 = vld [vmem:[%s15595_s3 + $0xa0] sm:$0xff]  ;;  %v2404_v59 = vld [vmem:[%s15603_s11 + $0x78] sm:$0xff] }
 0x2c0   :  { %9890 = vmatprep.subr.mxu0 %v1254_v28  ;;  %v1222_v1 = vpop.permute.xlu1 %1221  ;;  %v1811_v33 = vpop.permute.xlu0 %1810 }
 0x2c1   :  { %v1227_v18 = vsel %vm1225_vm9, 0.0, %v1222_v1  ;;  %9891 = vmatpush3.msra.mxu0 %v1254_v28  ;;  %v1816_v48 = vsel %vm497_vm4, %v1811_v33, 0.0  ;;  %v8535_v33 = vld [vmem:[%s15595_s3 + $0xe8] sm:$0xff] }
 0x2c2   :  { %v1234_v16 = vmul.f32 %v8474_v34, %v1227_v18  ;;  %9892 = vmatprep.subr.mxu0 %v1253_v12  ;;  %v1823_v44 = vmul.f32 %v8515_v17, %v1816_v48  ;;  %v8510_v34 = vld [vmem:[%s15595_s3 + $0x98] sm:$0xff] }
 0x2c3   :  { %9893 = vmatpush3.msra.mxu0 %v1253_v12 }
 0x2c4   :  { %9900 = vmatprep.subr.mxu1 %v1234_v16  ;;  %v1457_v45 = vpop.permute.xlu1 %1456  ;;  %9895 = vmatmul.mubr.msk.f32.vlgmr.msra.gmra.mxu0 %vm177_vm1, %v8477_v58  ;;  %v1932_v61 = vpop.permute.xlu0 %1931 }
 0x2c5   :  { %v1462_v32 = vsel %vm1460_vm10, 0.0, %v1457_v45  ;;  %9901 = vmatpush3.msra.mxu1 %v1234_v16  ;;  %9897 = vmatprep.mubr.msk.f32.mxu0 %vm177_vm1, %v8478_v4  ;;  %v1938_v9 = vsel %vm1937_vm11, %v1932_v61, 0.0  ;;  %v8518_v16 = vld [vmem:[%s15595_s3 + $0xb0] sm:$0xff]  ;;  %v2397_v61 = vld [vmem:[%s15603_s11 + $0x40] sm:$0xff] }
 0x2c6   :  { %v1469_v22 = vmul.f32 %v8488_v19, %v1462_v32  ;;  %9902 = vmatprep.subr.mxu1 %v1233_v27  ;;  %v1945_v28 = vmul.f32 %v8524_v23, %v1938_v9  ;;  %v8519_v32 = vld [vmem:[%s15595_s3 + $0xb8] sm:$0xff] }
 0x2c7   :  { %9903 = vmatpush3.msra.mxu1 %v1233_v27  ;;  %v8525_v27 = vld [vmem:[%s15595_s3 + $0xc0] sm:$0xff] }
 0x2c8   :  { %v1579_v38 = vpop.permute.xlu1 %1578  ;;  %9898 = vmatmul.mubr.msk.f32.gmra.mxu0 %vm177_vm1, %v8479_v14  ;;  %9905 = vmatmul.mubr.msk.f32.vlgmr.msra.gmra.mxu1 %vm177_vm1, %v1236_v40  ;;  %v2054_v13 = vpop.permute.xlu0 %2053  ;;  %v8526_v14 = vld [vmem:[%s15595_s3 + $0xc8] sm:$0xff]  ;;  %v8527_v40 = vld [vmem:[%s15595_s3 + $0xd0] sm:$0xff] }
 0x2c9   :  { %v1583_v54 = vsel %vm355_vm3, 0.0, %v1579_v38  ;;  %9910 = vmatprep.subr.mxu0 %v1469_v22  ;;  %9907 = vmatprep.mubr.msk.f32.mxu1 %vm177_vm1, %v1237_v31  ;;  %v2060_v12 = vsel %vm2059_vm12, %v2054_v13, 0.0  ;;  %v8528_v31 = vld [vmem:[%s15595_s3 + $0xd8] sm:$0xff]  ;;  %v8543_v38 = vld [vmem:[%s15595_s3 + $0x100] sm:$0xff] }
 0x2ca   :  { %v1590_v43 = vmul.f32 %v8497_v50, %v1583_v54  ;;  %9911 = vmatpush3.msra.mxu0 %v1469_v22  ;;  %9914 = vmatprep.mubr.msk.f32.mxu0 %vm177_vm1, %v8489_v21  ;;  %v2067_v45 = vmul.f32 %v8533_v49, %v2060_v12  ;;  %v8536_v21 = vld [vmem:[%s15595_s3 + $0xf0] sm:$0xff]  ;;  %v8544_v50 = vld [vmem:[%s15595_s3 + $0x108] sm:$0xff] }
 0x2cb   :  { %9912 = vmatprep.subr.mxu0 %v1468_v62  ;;  %v8545_v54 = vld [vmem:[%s15595_s3 + $0x110] sm:$0xff] }
 0x2cc   :  { %9913 = vmatpush3.msra.mxu0 %v1468_v62  ;;  %v1813_v26 = vpop.permute.xlu1 %1812  ;;  %9908 = vmatmul.mubr.msk.f32.gmra.mxu1 %vm177_vm1, %v1238_v57  ;;  %v2176_v18 = vpop.permute.xlu0 %2175  ;;  %v8537_v62 = vld [vmem:[%s15595_s3 + $0xf8] sm:$0xff] }
 0x2cd   :  { %v1817_v41 = vsel %vm497_vm4, %v1813_v26, 0.0  ;;  %9915 = vmatmul.mubr.msk.f32.vlgmr.msra.gmra.mxu0 %vm177_vm1, %v8490_v60  ;;  %9920 = vmatprep.subr.mxu1 %v1590_v43  ;;  %v2182_v19 = vsel %vm2181_vm13, %v2176_v18, 0.0  ;;  %v8546_v57 = vld [vmem:[%s15595_s3 + $0x118] sm:$0xff]  ;;  %v2402_v60 = vld [vmem:[%s15603_s11 + $0x68] sm:$0xff]  ;;  %s10918_s3 = smov 125  }
 0x2ce   :  { %9930 = vmatprep.subr.mxu0 %v1703_v47  ;;  %9921 = vmatpush3.msra.mxu1 %v1590_v43  ;;  %v1824_v39 = vmul.f32 %v8515_v17, %v1817_v41  ;;  %v2189_v22 = vmul.f32 %v8542_v29, %v2182_v19  ;;  %v2403_v43 = vld [vmem:[%s15603_s11 + $0x70] sm:$0xff]  ;;  %v2400_v26 = vld [vmem:[%s15603_s11 + $0x58] sm:$0xff] }
 0x2cf   :  { %9931 = vmatpush3.msra.mxu0 %v1703_v47  ;;  %9922 = vmatprep.subr.mxu1 %v1589_v30  ;;  %v2399_v47 = vld [vmem:[%s15603_s11 + $0x50] sm:$0xff]  ;;  %v2396_v41 = vld [vmem:[%s15603_s11 + $0x38] sm:$0xff] }
 0x2d0   :  { %9932 = vmatprep.subr.mxu0 %v1702_v2  ;;  %9917 = vmatprep.mubr.msk.f32.mxu0 %vm177_vm1, %v8491_v3  ;;  %v1934_v42 = vpop.permute.xlu1 %1933  ;;  %v2395_v3 = vld [vmem:[%s15603_s11 + $0x30] sm:$0xff] }
 0x2d1   :  { %9923 = vmatpush3.msra.mxu1 %v1589_v30  ;;  %9924 = vmatprep.mubr.msk.f32.mxu1 %vm177_vm1, %v8498_v56  ;;  %v1939_v10 = vsel %vm1937_vm11, %v1934_v42, 0.0  ;;  %v2398_v30 = vld [vmem:[%s15603_s11 + $0x48] sm:$0xff] }
 0x2d2   :  { %9933 = vmatpush3.msra.mxu0 %v1702_v2  ;;  %v1946_v55 = vmul.f32 %v8524_v23, %v1939_v10  ;;  %9925 = vmatmul.mubr.msk.f32.vlgmr.msra.gmra.mxu1 %vm177_vm1, %v8499_v35 }
 0x2d3   :  { %9918 = vmatmul.mubr.msk.f32.gmra.mxu0 %vm177_vm1, %v8492_v63  ;;  %9940 = vmatprep.subr.mxu1 %v1824_v39 }
 0x2d4   :  { %9941 = vmatpush3.msra.mxu1 %v1824_v39  ;;  %9927 = vmatprep.mubr.msk.f32.mxu1 %vm177_vm1, %v8500_v0  ;;  %v2056_v46 = vpop.permute.xlu1 %2055 }
 0x2d5   :  { %9942 = vmatprep.subr.mxu1 %v1823_v44  ;;  %9934 = vmatprep.mubr.msk.f32.mxu0 %vm177_vm1, %v8507_v15  ;;  %v2061_v37 = vsel %vm2059_vm12, %v2056_v46, 0.0 }
 0x2d6   :  { %9943 = vmatpush3.msra.mxu1 %v1823_v44  ;;  %v2068_v11 = vmul.f32 %v8533_v49, %v2061_v37  ;;  %9950 = vmatprep.subr.mxu0 %v1946_v55 }
 0x2d7   :  { %9928 = vmatmul.mubr.msk.f32.gmra.mxu1 %vm177_vm1, %v8501_v53  ;;  %9935 = vmatmul.mubr.msk.f32.vlgmr.msra.gmra.mxu0 %vm177_vm1, %v8508_v51 }
 0x2d8   :  { %9951 = vmatpush3.msra.mxu0 %v1946_v55  ;;  %9937 = vmatprep.mubr.msk.f32.mxu0 %vm177_vm1, %v8509_v20  ;;  %v2178_v1 = vpop.permute.xlu1 %2177 }
 0x2d9   :  { %9952 = vmatprep.subr.mxu0 %v1945_v28  ;;  %9944 = vmatprep.mubr.msk.f32.mxu1 %vm177_vm1, %v8516_v24  ;;  %v2183_v58 = vsel %vm2181_vm13, %v2178_v1, 0.0 }
 0x2da   :  { %9953 = vmatpush3.msra.mxu0 %v1945_v28  ;;  %v2190_v4 = vmul.f32 %v8542_v29, %v2183_v58  ;;  %9960 = vmatprep.subr.mxu1 %v2068_v11 }
 0x2db   :  { %9938 = vmatmul.mubr.msk.f32.gmra.mxu0 %vm177_vm1, %v8510_v34  ;;  %9945 = vmatmul.mubr.msk.f32.vlgmr.msra.gmra.mxu1 %vm177_vm1, %v8517_v36 }
 0x2dc   :  { %9961 = vmatpush3.msra.mxu1 %v2068_v11  ;;  %9947 = vmatprep.mubr.msk.f32.mxu1 %vm177_vm1, %v8518_v16 }
 0x2dd   :  { %9962 = vmatprep.subr.mxu1 %v2067_v45  ;;  %9954 = vmatprep.mubr.msk.f32.mxu0 %vm177_vm1, %v8525_v27 }
 0x2de   :  { %9963 = vmatpush3.msra.mxu1 %v2067_v45  ;;  %9970 = vmatprep.subr.mxu0 %v2190_v4 }
 0x2df   :  { %9948 = vmatmul.mubr.msk.f32.gmra.mxu1 %vm177_vm1, %v8519_v32  ;;  %9955 = vmatmul.mubr.msk.f32.vlgmr.msra.gmra.mxu0 %vm177_vm1, %v8526_v14 }
 0x2e0   :  { %9971 = vmatpush3.msra.mxu0 %v2190_v4  ;;  %9957 = vmatprep.mubr.msk.f32.mxu0 %vm177_vm1, %v8527_v40 }
 0x2e1   :  { %9972 = vmatprep.subr.mxu0 %v2189_v22  ;;  %9964 = vmatprep.mubr.msk.f32.mxu1 %vm177_vm1, %v8534_v52 }
 0x2e2   :  { %9973 = vmatpush3.msra.mxu0 %v2189_v22  ;;  %9980 = vmatprep.subr.mxu1 %v2404_v59 }
 0x2e3   :  { %9958 = vmatmul.mubr.msk.f32.gmra.mxu0 %vm177_vm1, %v8528_v31  ;;  %9965 = vmatmul.mubr.msk.f32.vlgmr.msra.gmra.mxu1 %vm177_vm1, %v8535_v33 }
 0x2e4   :  { %9967 = vmatprep.mubr.msk.f32.mxu1 %vm177_vm1, %v8536_v21  ;;  %9974 = vmatprep.mubr.msk.f32.mxu0 %vm177_vm1, %v8543_v38 }
 0x2e5   :  { %9981 = vmatpush3.msra.mxu1 %v2404_v59 }
 0x2e6   :  { %9982 = vmatprep.subr.mxu1 %v2403_v43 }
 0x2e7   :  { %9968 = vmatmul.mubr.msk.f32.gmra.mxu1 %vm177_vm1, %v8537_v62  ;;  %9975 = vmatmul.mubr.msk.f32.vlgmr.msra.gmra.mxu0 %vm177_vm1, %v8544_v50 }
 0x2e8   :  { %9977 = vmatprep.mubr.msk.f32.mxu0 %vm177_vm1, %v8545_v54  ;;  %9983 = vmatpush3.msra.mxu1 %v2403_v43  ;;  %v2394_v54 = vld [vmem:[%s15603_s11 + $0x28] sm:$0xff] }
 0x2e9   :  { %9984 = vmatprep.subr.mxu1 %v2402_v60 }
 0x2ea   :  { %9985 = vmatpush3.msra.mxu1 %v2402_v60 }
 0x2eb   :  { %9978 = vmatmul.mubr.msk.f32.gmra.mxu0 %vm177_vm1, %v8546_v57  ;;  %9986 = vmatprep.subr.mxu1 %v2401_v25  ;;  %v2305_v57 = vpop.permute.xlu0 %2304  ;;  %vm2842_vm1 = vcmask 23552  }
 0x2ec   :  { %9987 = vmatpush3.msra.mxu1 %v2401_v25 }
 0x2ed   :  { %9988 = vmatprep.subr.mxu1 %v2400_v26 }
 0x2ee   :  { %9989 = vmatpush3.msra.mxu1 %v2400_v26 }
 0x2ef   :  { %9990 = vmatprep.subr.mxu1 %v2399_v47 }
 0x2f0   :  { %9991 = vmatpush3.msra.mxu1 %v2399_v47 }
 0x2f1   :  { %9992 = vmatprep.subr.mxu1 %v2398_v30 }
 0x2f2   :  { %9993 = vmatpush3.msra.mxu1 %v2398_v30  ;;  %v2393_v30 = vld [vmem:[%s15603_s11 + $0x20] sm:$0xff] }
 0x2f3   :  { %9994 = vmatprep.subr.mxu1 %v2397_v61 }
 0x2f4   :  { %9995 = vmatpush3.msra.mxu1 %v2397_v61  ;;  %v2300_v61 = vpop.permute.xlu1 %2299 }
 0x2f5   :  { %9996 = vmatprep.subr.mxu1 %v2396_v41 }
 0x2f6   :  { %9997 = vmatpush3.msra.mxu1 %v2396_v41 }
 0x2f7   :  { %9998 = vmatprep.subr.mxu1 %v2395_v3 }
 0x2f8   :  { %9999 = vmatpush3.msra.mxu1 %v2395_v3 }
 0x2f9   :  { %10000 = vmatprep.subr.mxu1 %v2394_v54 }
 0x2fa   :  { %10001 = vmatpush3.msra.mxu1 %v2394_v54 }
 0x2fb   :  { %10002 = vmatprep.subr.mxu1 %v2393_v30 }
 0x2fc   :  { %10003 = vmatpush3.msra.mxu1 %v2393_v30 }
 0x384   :  { %v9896_v17 = vpop.f32.mrf.mxu0 }
 0x386   :  { %v1338_v2 = vpop.f32.mrf.mxu0 }
 0x388   :  { %v9899_v56 = vpop.f32.mrf.mxu0  ;;  %v9906_v39 = vpop.f32.mrf.mxu1 }
 0x389   :  { %v1441_v51 = vadd.f32 %v9906_v39, %v9896_v17 }
 0x38a   :  { %v1348_v35 = vpop.f32.mrf.mxu0  ;;  %v1435_v48 = vpop.f32.mrf.mxu1 }
 0x38b   :  { %v1436_v20 = vadd.f32 %v1435_v48, %v1338_v2 }
 0x38c   :  { %v9909_v42 = vpop.f32.mrf.mxu1 }
 0x38d   :  { %v9916_v63 = vpop.f32.mrf.mxu0  ;;  %v1451_v12 = vadd.f32 %v9909_v42, %v9899_v56 }
 0x38e   :  { %v1445_v23 = vpop.f32.mrf.mxu1  ;;  %v1573_v11 = vadd.f32 %v9916_v63, %v1441_v51 }
 0x38f   :  { %v1553_v10 = vpop.f32.mrf.mxu0  ;;  %v1446_v18 = vadd.f32 %v1445_v23, %v1348_v35  ;;  %v2392_v35 = vld [vmem:[%s15603_s11 + $0x18] sm:$0xff] }
 0x390   :  { %v1572_v1 = vadd.f32 %v1553_v10, %v1436_v20  ;;  %10004 = vmatprep.subr.mxu1 %v2392_v35  ;;  %v2310_v20 = vpop.permute.xlu1 %2309 }
 0x391   :  { %10005 = vmatpush3.msra.mxu1 %v2392_v35 }
 0x392   :  { %v9926_v0 = vpop.f32.mrf.mxu1 }
 0x393   :  { %v9919_v55 = vpop.f32.mrf.mxu0  ;;  %v1694_v34 = vadd.f32 %v9926_v0, %v1573_v11  ;;  %v2391_v0 = vld [vmem:[%s15603_s11 + $0x10] sm:$0xff]  ;;  %v2389_v11 = vld [vmem:[%s15603_s11] sm:$0xff] }
 0x394   :  { %v1674_v15 = vpop.f32.mrf.mxu1  ;;  %v1575_v58 = vadd.f32 %v9919_v55, %v1451_v12  ;;  %10006 = vmatprep.subr.mxu1 %v2391_v0 }
 0x395   :  { %v1563_v44 = vpop.f32.mrf.mxu0  ;;  %v1693_v16 = vadd.f32 %v1674_v15, %v1572_v1  ;;  %10007 = vmatpush3.msra.mxu1 %v2391_v0 }
 0x396   :  { %v1574_v19 = vadd.f32 %v1563_v44, %v1446_v18 }
 0x397   :  { %v9929_v13 = vpop.f32.mrf.mxu1  ;;  %v9936_v9 = vpop.f32.mrf.mxu0 }
 0x398   :  { %v1807_v4 = vadd.f32 %v9936_v9, %v1694_v34  ;;  %v1696_v32 = vadd.f32 %v9929_v13, %v1575_v58  ;;  %v2315_v13 = vpop.permute.xlu0 %2314 }
 0x399   :  { %v1684_v46 = vpop.f32.mrf.mxu1  ;;  %v1787_v53 = vpop.f32.mrf.mxu0 }
 0x39a   :  { %v1806_v14 = vadd.f32 %v1787_v53, %v1693_v16  ;;  %v1695_v31 = vadd.f32 %v1684_v46, %v1574_v19  ;;  %v2390_v46 = vld [vmem:[%s15603_s11 + $0x8] sm:$0xff] }
 0x39b   :  { %v9939_v49 = vpop.f32.mrf.mxu0  ;;  %v9946_v37 = vpop.f32.mrf.mxu1  ;;  %10008 = vmatprep.subr.mxu1 %v2390_v46 }
 0x39c   :  { %v1928_v40 = vadd.f32 %v9946_v37, %v1807_v4  ;;  %v1809_v33 = vadd.f32 %v9939_v49, %v1696_v32  ;;  %10009 = vmatpush3.msra.mxu1 %v2390_v46  ;;  %v2497_v46 = vld [vmem:[%s15598_s6 + $0x38] sm:$0xff] }
 0x39d   :  { %v1797_v24 = vpop.f32.mrf.mxu0  ;;  %v1908_v28 = vpop.f32.mrf.mxu1  ;;  %10010 = vmatprep.subr.mxu1 %v2389_v11 }
 0x39e   :  { %v1927_v21 = vadd.f32 %v1908_v28, %v1806_v14  ;;  %v1808_v59 = vadd.f32 %v1797_v24, %v1695_v31  ;;  %10011 = vmatpush3.msra.mxu1 %v2389_v11  ;;  %v2491_v11 = vld [vmem:[%s15598_s6 + $0x8] sm:$0xff] }
 0x39f   :  { %v9949_v36 = vpop.f32.mrf.mxu1  ;;  %v9956_v29 = vpop.f32.mrf.mxu0 }
 0x3a0   :  { %v2050_v38 = vadd.f32 %v9956_v29, %v1928_v40  ;;  %v1930_v43 = vadd.f32 %v9949_v36, %v1809_v33 }
 0x3a1   :  { %v1918_v27 = vpop.f32.mrf.mxu1  ;;  %v2030_v45 = vpop.f32.mrf.mxu0 }
 0x3a2   :  { %v2049_v60 = vadd.f32 %v2030_v45, %v1927_v21  ;;  %v1929_v41 = vadd.f32 %v1918_v27, %v1808_v59 }
 0x3a3   :  { %v9959_v52 = vpop.f32.mrf.mxu0  ;;  %v9966_v22 = vpop.f32.mrf.mxu1 }
 0x3a4   :  { %v2172_v25 = vadd.f32 %v9966_v22, %v2050_v38  ;;  %v2052_v3 = vadd.f32 %v9959_v52, %v1930_v43 }
 0x3a5   :  { %v2040_v62 = vpop.f32.mrf.mxu0  ;;  %v2152_v50 = vpop.f32.mrf.mxu1 }
 0x3a6   :  { %v2171_v17 = vadd.f32 %v2152_v50, %v2049_v60  ;;  %v2051_v48 = vadd.f32 %v2040_v62, %v1929_v41 }
 0x3a7   :  { %v9969_v26 = vpop.f32.mrf.mxu1  ;;  %v9976_v47 = vpop.f32.mrf.mxu0 }
 0x3a8   :  { %v2294_v2 = vadd.f32 %v9976_v47, %v2172_v25  ;;  %v2174_v42 = vadd.f32 %v9969_v26, %v2052_v3 }
 0x3a9   :  { %v2162_v56 = vpop.f32.mrf.mxu1  ;;  %v2274_v39 = vpop.f32.mrf.mxu0 }
 0x3aa   :  { %v2318_v63 = vadd.f32 %v2305_v57, %v2294_v2  ;;  %v2293_v23 = vadd.f32 %v2274_v39, %v2171_v17  ;;  %v2173_v55 = vadd.f32 %v2162_v56, %v2051_v48 }
 0x3ab   :  { %v9979_v10 = vpop.f32.mrf.mxu0 }
 0x3ac   :  { %v2317_v15 = vadd.f32 %v2300_v61, %v2293_v23  ;;  %v2296_v44 = vadd.f32 %v9979_v10, %v2174_v42  ;;  %v2322_v53 = vmax.f32 %v2318_v63, 0.0 }
 0x3ad   :  { %v2284_v9 = vpop.f32.mrf.mxu0 }
 0x3ae   :  { %v2321_v51 = vmax.f32 %v2317_v15, 0.0  ;;  %v2320_v49 = vadd.f32 %v2315_v13, %v2296_v44  ;;  %v2295_v37 = vadd.f32 %v2284_v9, %v2173_v55  ;;  %v8553_v15 = vld [vmem:[%s15597_s5 + $0x40] sm:$0xff] }
 0x3af   :  { %10026 = vmatprep.mubr.msk.f32.mxu0 %vm2571_vm14, %v8553_v15  ;;  %v8578_v9 = vld [vmem:[%s15597_s5 + $0x80] sm:$0xff] }
 0x3b0   :  { %v2319_v24 = vadd.f32 %v2310_v20, %v2295_v37  ;;  %v10853_v28 = vpack.i.bf16 %v2322_v53, %v2321_v51  ;;  %v2324_v12 = vmax.f32 %v2320_v49, 0.0  ;;  %v2494_v49 = vld [vmem:[%s15598_s6 + $0x20] sm:$0xff]  ;;  %v2493_v37 = vld [vmem:[%s15598_s6 + $0x18] sm:$0xff]  ;;  %v2492_v20 = vld [vmem:[%s15598_s6 + $0x10] sm:$0xff] }
 0x3b1   :  { %v2528_v15 = vld [vmem:[%s15597_s5] sm:$0xff] }
 0x3b2   :  { %v2323_v1 = vmax.f32 %v2319_v24, 0.0  ;;  %10854 = vrot.lane.b32.xlu0 %v10853_v28, %s10913_s7  ;;  %10849 = vrot.lane.b32.xlu1 %v10853_v28, %s10905_s24  ;;  %v2490_v24 = vld [vmem:[%s15598_s6] sm:$0xff] }
 0x3b4   :  { %v10863_v34 = vpack.i.bf16 %v2324_v12, %v2323_v1 }
 0x3b6   :  { %10859 = vrot.lane.b32.xlu1 %v10853_v28, %s10914_s16  ;;  %10864 = vrot.lane.b32.xlu0 %v10863_v34, %s10905_s24  ;;  %v8552_v28 = vld [vmem:[%s15601_s9 + $0x1] ss:$0 sm:$0xff] }
 0x3ba   :  { %10869 = vrot.lane.b32.xlu1 %v10863_v34, %s10913_s7  ;;  %10874 = vrot.lane.b32.xlu0 %v10863_v34, %s10914_s16 }
 0x424   :  { %v10855_v36 = vpop.permute.xlu0 %10854  ;;  %v10850_v29 = vpop.permute.xlu1 %10849 }
 0x425   :  { %v10852_v18 = vunpack.i.h.bf16 %v10850_v29  ;;  %v10851_v58 = vunpack.i.l.bf16 %v10850_v29  ;;  %v10857_v16 = vunpack.i.h.bf16 %v10855_v36  ;;  %v10856_v4 = vunpack.i.l.bf16 %v10855_v36 }
 0x427   :  { %v2342_v27 = vsel %vm497_vm4, %v10852_v18, 0.0  ;;  %v2341_v45 = vsel %vm497_vm4, %v10851_v58, 0.0  ;;  %v2362_v31 = vsel %vm2059_vm12, %v10857_v16, 0.0  ;;  %v2361_v33 = vsel %vm2059_vm12, %v10856_v4, 0.0 }
 0x428   :  { %v10860_v19 = vpop.permute.xlu1 %10859  ;;  %v10865_v32 = vpop.permute.xlu0 %10864  ;;  %v2346_v21 = vmax.f32 %v2322_v53, %v2342_v27  ;;  %v2345_v50 = vmax.f32 %v2321_v51, %v2341_v45  ;;  %v2496_v53 = vld [vmem:[%s15598_s6 + $0x30] sm:$0xff]  ;;  %v2495_v51 = vld [vmem:[%s15598_s6 + $0x28] sm:$0xff]  ;;  %s10924_s6 = smov 103  }
 0x429   :  { %v10862_v14 = vunpack.i.h.bf16 %v10860_v19  ;;  %v10861_v40 = vunpack.i.l.bf16 %v10860_v19  ;;  %v10867_v52 = vunpack.i.h.bf16 %v10865_v32  ;;  %v10866_v22 = vunpack.i.l.bf16 %v10865_v32  ;;  %v8551_v19 = vld [vmem:[%s15601_s9] ss:$0 sm:$0xff] }
 0x42b   :  { %v2378_v38 = vsel %vm2181_vm13, %v10862_v14, 0.0  ;;  %v2377_v62 = vsel %vm2181_vm13, %v10861_v40, 0.0  ;;  %v2344_v57 = vsel %vm497_vm4, %v10867_v52, 0.0  ;;  %v2343_v59 = vsel %vm497_vm4, %v10866_v22, 0.0  ;;  %v8554_v52 = vld [vmem:[%s15597_s5 + $0x48] sm:$0xff] }
 0x42c   :  { %v2382_v54 = vmax.f32 %v2362_v31, %v2378_v38  ;;  %v10870_v43 = vpop.permute.xlu1 %10869  ;;  %v10875_v60 = vpop.permute.xlu0 %10874  ;;  %v2381_v25 = vmax.f32 %v2361_v33, %v2377_v62  ;;  %v2347_v35 = vmax.f32 %v2323_v1, %v2343_v59  ;;  %v2348_v42 = vmax.f32 %v2324_v12, %v2344_v57  ;;  %v8555_v33 = vld [vmem:[%s15597_s5 + $0x50] sm:$0xff]  ;;  %v8557_v59 = vld [vmem:[%s15597_s5 + $0x60] sm:$0xff] }
 0x42d   :  { %v10872_v26 = vunpack.i.h.bf16 %v10870_v43  ;;  %v10871_v47 = vunpack.i.l.bf16 %v10870_v43  ;;  %v10877_v30 = vunpack.i.h.bf16 %v10875_v60  ;;  %v10876_v61 = vunpack.i.l.bf16 %v10875_v60 }
 0x42e   :  { %v2386_v41 = vmax.f32 %v2346_v21, %v2382_v54  ;;  %v2385_v3 = vmax.f32 %v2345_v50, %v2381_v25  ;;  %v8577_v21 = vld [vmem:[%s15601_s9 + $0x2] ss:$0 sm:$0xff]  ;;  %v8556_v50 = vld [vmem:[%s15597_s5 + $0x58] sm:$0xff]  ;;  %vm3512_vm4 = vcmask 236544  }
 0x42f   :  { %v2364_v17 = vsel %vm2059_vm12, %v10872_v26, 0.0  ;;  %v2363_v2 = vsel %vm2059_vm12, %v10871_v47, 0.0  ;;  %v2380_v56 = vsel %vm2181_vm13, %v10877_v30, 0.0  ;;  %v2379_v39 = vsel %vm2181_vm13, %v10876_v61, 0.0  ;;  %v8558_v30 = vld [vmem:[%s15597_s5 + $0x68] sm:$0xff] }
 0x430   :  { %10012 = vmatprep.mubr.f32.mxu1 %v2385_v3  ;;  %v2383_v48 = vmax.f32 %v2363_v2, %v2379_v39  ;;  %v2384_v63 = vmax.f32 %v2364_v17, %v2380_v56  ;;  %v8559_v2 = vld [vmem:[%s15597_s5 + $0x70] sm:$0xff] }
 0x431   :  { %10013 = vmatmul.mubr.f32.vlgmr.msra.gmra.mxu1 %v2386_v41 }
 0x432   :  { %v2387_v23 = vmax.f32 %v2347_v35, %v2383_v48  ;;  %v2388_v10 = vmax.f32 %v2348_v42, %v2384_v63  ;;  %v8560_v63 = vld [vmem:[%s15597_s5 + $0x78] sm:$0xff] }
 0x434   :  { %10015 = vmatprep.mubr.f32.mxu1 %v2387_v23 }
 0x435   :  { %10016 = vmatmul.mubr.f32.gmra.mxu1 %v2388_v10  ;;  %v8594_v10 = vld [vmem:[%s15601_s9 + $0x3] ss:$0 sm:$0xff] }
 0x436   :  { %10066 = vmatprep.mubr.msk.f32.mxu1 %vm2571_vm14, %v8578_v9 }
 0x4f1   :  { %v12187_v0 = vpop.f32.mrf.mxu1 }
 0x4f3   :  { %v12189_v55 = vpop.f32.mrf.mxu1 }
 0x4f5   :  { %v12195_v44 = vpop.f32.mrf.mxu1 }
 0x4f6   :  { %2542 = vrot.lane.b32.xlu1 %v12195_v44, %s10915_s2 }
 0x4f7   :  { %v12198_v13 = vpop.f32.mrf.mxu1 }
 0x4f8   :  { %2540 = vrot.lane.b32.xlu0 %v12198_v13, %s10915_s2 }
 0x4fa   :  { %2538 = vrot.lane.b32.xlu1 %v12187_v0, %s10915_s2 }
 0x4fc   :  { %2536 = vrot.lane.b32.xlu0 %v12189_v55, %s10915_s2 }
 0x4fe   :  { %2508 = vrot.lane.b32.xlu1 %v12195_v44, %s10916_s10 }
 0x500   :  { %2504 = vrot.lane.b32.xlu0 %v12187_v0, %s10916_s10 }
 0x502   :  { %2836 = vrot.lane.b32.xlu1 %v12195_v44, %s10917_s8 }
 0x504   :  { %2506 = vrot.lane.b32.xlu0 %v12198_v13, %s10916_s10 }
 0x506   :  { %2834 = vrot.lane.b32.xlu1 %v12198_v13, %s10917_s8 }
 0x508   :  { %2502 = vrot.lane.b32.xlu0 %v12189_v55, %s10916_s10 }
 0x50a   :  { %2832 = vrot.lane.b32.xlu1 %v12187_v0, %s10917_s8 }
 0x50c   :  { %2830 = vrot.lane.b32.xlu0 %v12189_v55, %s10917_s8 }
 0x50e   :  { %3008 = vrot.lane.b32.xlu1 %v12195_v44, %s10904_s30 }
 0x510   :  { %3006 = vrot.lane.b32.xlu0 %v12198_v13, %s10904_s30 }
 0x512   :  { %3004 = vrot.lane.b32.xlu1 %v12187_v0, %s10904_s30 }
 0x514   :  { %3002 = vrot.lane.b32.xlu0 %v12189_v55, %s10904_s30  ;;  %s10919_s30 = smov 124  }
 0x516   :  { %3334 = vrot.lane.b32.xlu1 %v12195_v44, %s10905_s24 }
 0x518   :  { %3330 = vrot.lane.b32.xlu0 %v12187_v0, %s10905_s24 }
 0x51a   :  { %3506 = vrot.lane.b32.xlu1 %v12195_v44, %s10918_s3 }
 0x51c   :  { %3332 = vrot.lane.b32.xlu0 %v12198_v13, %s10905_s24 }
 0x51e   :  { %3504 = vrot.lane.b32.xlu1 %v12198_v13, %s10918_s3 }
 0x520   :  { %3328 = vrot.lane.b32.xlu0 %v12189_v55, %s10905_s24 }
 0x522   :  { %3502 = vrot.lane.b32.xlu1 %v12187_v0, %s10918_s3 }
 0x524   :  { %3500 = vrot.lane.b32.xlu0 %v12189_v55, %s10918_s3 }
 0x526   :  { %3678 = vrot.lane.b32.xlu1 %v12195_v44, %s10919_s30 }
 0x528   :  { %3674 = vrot.lane.b32.xlu0 %v12187_v0, %s10919_s30 }
 0x52a   :  { %3850 = vrot.lane.b32.xlu1 %v12195_v44, %s10920_s25 }
 0x52c   :  { %3676 = vrot.lane.b32.xlu0 %v12198_v13, %s10919_s30 }
 0x52e   :  { %3848 = vrot.lane.b32.xlu1 %v12198_v13, %s10920_s25 }
 0x530   :  { %3672 = vrot.lane.b32.xlu0 %v12189_v55, %s10919_s30 }
 0x532   :  { %3846 = vrot.lane.b32.xlu1 %v12187_v0, %s10920_s25 }
 0x534   :  { %3844 = vrot.lane.b32.xlu0 %v12189_v55, %s10920_s25 }
 0x536   :  { %4053 = vperm.xlu1 %10787, %v2497_v46  }
 0x538   :  { %4048 = vperm.xlu0 %10786, %v2496_v53  }
 0x53a   :  { %4043 = vperm.xlu1 %10787, %v2495_v51   ;;  %v8579_v51 = vld [vmem:[%s15597_s5 + $0x88] sm:$0xff] }
 0x53c   :  { %4038 = vperm.xlu0 %10786, %v2494_v49  }
 0x53e   :  { %4033 = vperm.xlu1 %10787, %v2493_v37  }
 0x540   :  { %4028 = vperm.xlu0 %10786, %v2492_v20   ;;  %v2529_v20 = vld [vmem:[%s15597_s5 + $0x8] sm:$0xff] }
 0x542   :  { %4023 = vperm.xlu1 %10787, %v2491_v11   ;;  %v8611_v11 = vld [vmem:[%s15601_s9 + $0x4] ss:$0 sm:$0xff] }
 0x544   :  { %4018 = vperm.xlu0 %10786, %v2490_v24  }
 0x568   :  { %v2543_v12 = vpop.permute.xlu1 %2542 }
 0x569   :  { %v2552_v1 = vsel %vm2548_vm15, 0.0, %v2543_v12 }
 0x56a   :  { %v2561_v34 = vmul.f32 %v8552_v28, %v2552_v1  ;;  %v2541_v36 = vpop.permute.xlu0 %2540 }
 0x56b   :  { %v2551_v29 = vsel %vm2548_vm15, 0.0, %v2541_v36  ;;  %v3180_v36 = vmul.f32 %v8611_v11, %v12198_v13  ;;  %v2531_v13 = vld [vmem:[%s15597_s5 + $0x18] sm:$0xff] }
 0x56c   :  { %v2560_v18 = vmul.f32 %v8552_v28, %v2551_v29  ;;  %10018 = vmatprep.subr.mxu0 %v2561_v34  ;;  %v2539_v58 = vpop.permute.xlu1 %2538  ;;  %v2530_v29 = vld [vmem:[%s15597_s5 + $0x10] sm:$0xff] }
 0x56d   :  { %v2550_v16 = vsel %vm2548_vm15, 0.0, %v2539_v58  ;;  %10019 = vmatpush3.msra.mxu0 %v2561_v34 }
 0x56e   :  { %v2559_v4 = vmul.f32 %v8552_v28, %v2550_v16  ;;  %10020 = vmatprep.subr.mxu0 %v2560_v18  ;;  %v2537_v27 = vpop.permute.xlu0 %2536 }
 0x56f   :  { %v2549_v45 = vsel %vm2548_vm15, 0.0, %v2537_v27  ;;  %10021 = vmatpush3.msra.mxu0 %v2560_v18 }
 0x570   :  { %v2558_v32 = vmul.f32 %v8552_v28, %v2549_v45  ;;  %v2509_v14 = vpop.permute.xlu1 %2508  ;;  %10022 = vmatprep.subr.mxu0 %v2559_v4  ;;  %v3181_v28 = vmul.f32 %v12195_v44, %v8611_v11  ;;  %v8580_v44 = vld [vmem:[%s15597_s5 + $0x90] sm:$0xff] }
 0x571   :  { %v2518_v40 = vsel %vm2514_vm0, 0.0, %v2509_v14  ;;  %10023 = vmatpush3.msra.mxu0 %v2559_v4  ;;  %v8581_v4 = vld [vmem:[%s15597_s5 + $0x98] sm:$0xff] }
 0x572   :  { %v2527_v22 = vmul.f32 %v8551_v19, %v2518_v40  ;;  %10024 = vmatprep.subr.mxu0 %v2558_v32  ;;  %v2505_v31 = vpop.permute.xlu0 %2504 }
 0x573   :  { %10025 = vmatpush3.msra.mxu0 %v2558_v32  ;;  %v2516_v60 = vsel %vm2514_vm0, 0.0, %v2505_v31  ;;  %v12366_v32 = vld [vmem:[%s15601_s9 + $0x5] ss:$0 sm:$0xff]  ;;  %v12381_v31 = vld [vmem:[%s15601_s9 + $0x6] ss:$0 sm:$0xff] }
 0x574   :  { %v2837_v38 = vpop.permute.xlu1 %2836  ;;  %10027 = vmatmul.mubr.msk.f32.vlgmr.msra.gmra.mxu0 %vm2571_vm14, %v8554_v52  ;;  %10038 = vmatprep.subr.mxu0 %v2527_v22  ;;  %v2525_v3 = vmul.f32 %v8551_v19, %v2516_v60  ;;  %v3178_v52 = vmul.f32 %v8611_v11, %v12189_v55  ;;  %v2535_v60 = vld [vmem:[%s15597_s5 + $0x38] sm:$0xff] }
 0x575   :  { %v2846_v62 = vsel %vm2842_vm1, 0.0, %v2837_v38  ;;  %10039 = vmatpush3.msra.mxu0 %v2527_v22  ;;  %10029 = vmatprep.mubr.msk.f32.mxu0 %vm2571_vm14, %v8555_v33  ;;  %v8582_v22 = vld [vmem:[%s15597_s5 + $0xa0] sm:$0xff]  ;;  %v2533_v38 = vld [vmem:[%s15597_s5 + $0x28] sm:$0xff] }
 0x576   :  { %v2855_v54 = vmul.f32 %v8577_v21, %v2846_v62  ;;  %v2507_v57 = vpop.permute.xlu0 %2506  ;;  %v8583_v62 = vld [vmem:[%s15597_s5 + $0xa8] sm:$0xff] }
 0x577   :  { %v2517_v43 = vsel %vm2514_vm0, 0.0, %v2507_v57  ;;  %v2534_v57 = vld [vmem:[%s15597_s5 + $0x30] sm:$0xff] }
 0x578   :  { %v2526_v25 = vmul.f32 %v8551_v19, %v2517_v43  ;;  %10058 = vmatprep.subr.mxu1 %v2855_v54  ;;  %v2835_v26 = vpop.permute.xlu1 %2834  ;;  %10030 = vmatmul.mubr.msk.f32.gmra.mxu0 %vm2571_vm14, %v8556_v50 }
 0x579   :  { %v2845_v47 = vsel %vm2842_vm1, 0.0, %v2835_v26  ;;  %10059 = vmatpush3.msra.mxu1 %v2855_v54  ;;  %10032 = vmatprep.mubr.msk.f32.mxu0 %vm2571_vm14, %v8557_v59  ;;  %v8584_v59 = vld [vmem:[%s15597_s5 + $0xb0] sm:$0xff] }
 0x57a   :  { %v2854_v61 = vmul.f32 %v8577_v21, %v2845_v47  ;;  %10040 = vmatprep.subr.mxu0 %v2526_v25  ;;  %v2503_v41 = vpop.permute.xlu0 %2502  ;;  %v8595_v47 = vld [vmem:[%s15597_s5 + $0xc0] sm:$0xff] }
 0x57b   :  { %v2515_v17 = vsel %vm2514_vm0, 0.0, %v2503_v41  ;;  %10041 = vmatpush3.msra.mxu0 %v2526_v25  ;;  %v8585_v25 = vld [vmem:[%s15597_s5 + $0xb8] sm:$0xff] }
 0x57c   :  { %v2524_v56 = vmul.f32 %v8551_v19, %v2515_v17  ;;  %10060 = vmatprep.subr.mxu1 %v2854_v61  ;;  %v2833_v39 = vpop.permute.xlu1 %2832  ;;  %10033 = vmatmul.mubr.msk.f32.gmra.mxu0 %vm2571_vm14, %v8558_v30  ;;  %v3179_v19 = vmul.f32 %v12187_v0, %v8611_v11  ;;  %v2532_v0 = vld [vmem:[%s15597_s5 + $0x20] sm:$0xff]  ;;  %v8596_v17 = vld [vmem:[%s15597_s5 + $0xc8] sm:$0xff] }
 0x57d   :  { %v2844_v35 = vsel %vm2842_vm1, 0.0, %v2833_v39  ;;  %10042 = vmatprep.subr.mxu0 %v2525_v3  ;;  %10061 = vmatpush3.msra.mxu1 %v2854_v61  ;;  %v8612_v30 = vld [vmem:[%s15597_s5 + $0x100] sm:$0xff] }
 0x57e   :  { %v2853_v48 = vmul.f32 %v8577_v21, %v2844_v35  ;;  %10043 = vmatpush3.msra.mxu0 %v2525_v3  ;;  %v2831_v42 = vpop.permute.xlu0 %2830  ;;  %10035 = vmatprep.mubr.msk.f32.mxu0 %vm2571_vm14, %v8559_v2  ;;  %v8613_v2 = vld [vmem:[%s15597_s5 + $0x108] sm:$0xff] }
 0x57f   :  { %10044 = vmatprep.subr.mxu0 %v2524_v56  ;;  %v2843_v23 = vsel %vm2842_vm1, 0.0, %v2831_v42 }
 0x580   :  { %v2852_v9 = vmul.f32 %v8577_v21, %v2843_v23  ;;  %10045 = vmatpush3.msra.mxu0 %v2524_v56  ;;  %10062 = vmatprep.subr.mxu1 %v2853_v48  ;;  %v3009_v46 = vpop.permute.xlu1 %3008  ;;  %v8597_v23 = vld [vmem:[%s15597_s5 + $0xd0] sm:$0xff] }
 0x581   :  { %v3017_v53 = vsel %vm355_vm3, 0.0, %v3009_v46  ;;  %10036 = vmatmul.mubr.msk.f32.gmra.mxu0 %vm2571_vm14, %v8560_v63  ;;  %10063 = vmatpush3.msra.mxu1 %v2853_v48  ;;  %v8598_v46 = vld [vmem:[%s15597_s5 + $0xd8] sm:$0xff] }
 0x582   :  { %v3026_v49 = vmul.f32 %v8594_v10, %v3017_v53  ;;  %10064 = vmatprep.subr.mxu1 %v2852_v9  ;;  %v3007_v37 = vpop.permute.xlu0 %3006  ;;  %10046 = vmatprep.mubr.msk.f32.mxu0 %vm2571_vm14, %v2528_v15 }
 0x583   :  { %v3016_v24 = vsel %vm355_vm3, 0.0, %v3007_v37  ;;  %10065 = vmatpush3.msra.mxu1 %v2852_v9  ;;  %v8615_v37 = vld [vmem:[%s15597_s5 + $0x118] sm:$0xff] }
 0x584   :  { %v3025_v12 = vmul.f32 %v8594_v10, %v3016_v24  ;;  %v3005_v1 = vpop.permute.xlu1 %3004  ;;  %10067 = vmatmul.mubr.msk.f32.vlgmr.msra.gmra.mxu1 %vm2571_vm14, %v8579_v51  ;;  %10078 = vmatprep.subr.mxu0 %v3026_v49 }
 0x585   :  { %v3015_v34 = vsel %vm355_vm3, 0.0, %v3005_v1  ;;  %10047 = vmatmul.mubr.msk.f32.vlgmr.msra.gmra.mxu0 %vm2571_vm14, %v2529_v20  ;;  %10098 = vmatprep.subr.mxu1 %v3181_v28  ;;  %v8599_v1 = vld [vmem:[%s15597_s5 + $0xe0] sm:$0xff] }
 0x586   :  { %10079 = vmatpush3.msra.mxu0 %v3026_v49  ;;  %10099 = vmatpush3.msra.mxu1 %v3181_v28  ;;  %v3003_v18 = vpop.permute.xlu0 %3002  ;;  %v3024_v58 = vmul.f32 %v8594_v10, %v3015_v34  ;;  %v12457_v28 = vld [vmem:[%s15601_s9 + $0x7] ss:$0 sm:$0xff]  ;;  %v12468_v34 = vld [vmem:[%s15601_s9 + $0x8] ss:$0 sm:$0xff] }
 0x587   :  { %10080 = vmatprep.subr.mxu0 %v3025_v12  ;;  %v3014_v16 = vsel %vm355_vm3, 0.0, %v3003_v18  ;;  %10100 = vmatprep.subr.mxu1 %v3180_v36 }
 0x588   :  { %10049 = vmatprep.mubr.msk.f32.mxu0 %vm2571_vm14, %v2530_v29  ;;  %10069 = vmatprep.mubr.msk.f32.mxu1 %vm2571_vm14, %v8580_v44  ;;  %v3335_v27 = vpop.permute.xlu1 %3334  ;;  %v3023_v45 = vmul.f32 %v8594_v10, %v3014_v16  ;;  %v8614_v10 = vld [vmem:[%s15597_s5 + $0x110] sm:$0xff]  ;;  %v8616_v44 = vld [vmem:[%s15597_s5 + $0x120] sm:$0xff]  ;;  %v8617_v16 = vld [vmem:[%s15597_s5 + $0x128] sm:$0xff] }
 0x589   :  { %10081 = vmatpush3.msra.mxu0 %v3025_v12  ;;  %10101 = vmatpush3.msra.mxu1 %v3180_v36  ;;  %v3344_v14 = vsel %vm3340_vm2, %v3335_v27, 0.0  ;;  %v8618_v27 = vld [vmem:[%s15597_s5 + $0x130] sm:$0xff] }
 0x58a   :  { %10050 = vmatmul.mubr.msk.f32.gmra.mxu0 %vm2571_vm14, %v2531_v13  ;;  %10070 = vmatmul.mubr.msk.f32.gmra.mxu1 %vm2571_vm14, %v8581_v4  ;;  %v3331_v40 = vpop.permute.xlu0 %3330  ;;  %v3353_v21 = vmul.f32 %v12366_v32, %v3344_v14  ;;  %v8601_v4 = vld [vmem:[%s15597_s5 + $0xf0] sm:$0xff] }
 0x58b   :  { %10082 = vmatprep.subr.mxu0 %v3024_v58  ;;  %10102 = vmatprep.subr.mxu1 %v3179_v19  ;;  %v3342_v35 = vsel %vm3340_vm2, %v3331_v40, 0.0  ;;  %v8629_v40 = vld [vmem:[%s15597_s5 + $0x140] sm:$0xff] }
 0x58c   :  { %10083 = vmatpush3.msra.mxu0 %v3024_v58  ;;  %10103 = vmatpush3.msra.mxu1 %v3179_v19  ;;  %v3507_v33 = vpop.permute.xlu1 %3506  ;;  %v3351_v51 = vmul.f32 %v12366_v32, %v3342_v35  ;;  %v8600_v58 = vld [vmem:[%s15597_s5 + $0xe8] sm:$0xff]  ;;  %v8602_v19 = vld [vmem:[%s15597_s5 + $0xf8] sm:$0xff]  ;;  %v8652_v35 = vld [vmem:[%s15597_s5 + $0x1b0] sm:$0xff] }
 0x58d   :  { %10084 = vmatprep.subr.mxu0 %v3023_v45  ;;  %10104 = vmatprep.subr.mxu1 %v3178_v52  ;;  %v3516_v55 = vsel %vm3512_vm4, %v3507_v33, 0.0  ;;  %v8630_v33 = vld [vmem:[%s15597_s5 + $0x148] sm:$0xff] }
 0x58e   :  { %10052 = vmatprep.mubr.msk.f32.mxu0 %vm2571_vm14, %v2532_v0  ;;  %10072 = vmatprep.mubr.msk.f32.mxu1 %vm2571_vm14, %v8582_v22  ;;  %v3525_v50 = vmul.f32 %v12381_v31, %v3516_v55  ;;  %v3333_v54 = vpop.permute.xlu0 %3332 }
 0x58f   :  { %10085 = vmatpush3.msra.mxu0 %v3023_v45  ;;  %10105 = vmatpush3.msra.mxu1 %v3178_v52  ;;  %v3343_v3 = vsel %vm3340_vm2, %v3333_v54, 0.0  ;;  %v8646_v52 = vld [vmem:[%s15597_s5 + $0x180] sm:$0xff] }
 0x590   :  { %10053 = vmatmul.mubr.msk.f32.gmra.mxu0 %vm2571_vm14, %v2533_v38  ;;  %10073 = vmatmul.mubr.msk.f32.gmra.mxu1 %vm2571_vm14, %v8583_v62  ;;  %v3505_v43 = vpop.permute.xlu1 %3504  ;;  %v3352_v48 = vmul.f32 %v12366_v32, %v3343_v3  ;;  %v8633_v3 = vld [vmem:[%s15597_s5 + $0x160] sm:$0xff] }
 0x591   :  { %10118 = vmatprep.subr.mxu0 %v3353_v21  ;;  %10055 = vmatprep.mubr.msk.f32.mxu0 %vm2571_vm14, %v2534_v57  ;;  %v3515_v61 = vsel %vm3512_vm4, %v3505_v43, 0.0  ;;  %v8631_v57 = vld [vmem:[%s15597_s5 + $0x150] sm:$0xff] }
 0x592   :  { %10075 = vmatprep.mubr.msk.f32.mxu1 %vm2571_vm14, %v8584_v59  ;;  %10138 = vmatprep.subr.mxu1 %v3525_v50  ;;  %v3329_v26 = vpop.permute.xlu0 %3328  ;;  %v3524_v56 = vmul.f32 %v12381_v31, %v3515_v61  ;;  %v8648_v59 = vld [vmem:[%s15597_s5 + $0x190] sm:$0xff] }
 0x593   :  { %v3341_v15 = vsel %vm3340_vm2, %v3329_v26, 0.0 }
 0x594   :  { %10056 = vmatmul.mubr.msk.f32.gmra.mxu0 %vm2571_vm14, %v2535_v60  ;;  %10076 = vmatmul.mubr.msk.f32.gmra.mxu1 %vm2571_vm14, %v8585_v25  ;;  %v3503_v41 = vpop.permute.xlu1 %3502  ;;  %v3350_v11 = vmul.f32 %v12366_v32, %v3341_v15  ;;  %v8619_v32 = vld [vmem:[%s15597_s5 + $0x138] sm:$0xff]  ;;  %v8681_v15 = vld [vmem:[%s15597_s5 + $0x208] sm:$0xff] }
 0x595   :  { %10086 = vmatprep.mubr.msk.f32.mxu0 %vm2571_vm14, %v8595_v47  ;;  %10106 = vmatprep.mubr.msk.f32.mxu1 %vm2571_vm14, %v8612_v30  ;;  %v3514_v42 = vsel %vm3512_vm4, %v3503_v41, 0.0  ;;  %v8632_v25 = vld [vmem:[%s15597_s5 + $0x158] sm:$0xff] }
 0x596   :  { %v3501_v39 = vpop.permute.xlu0 %3500  ;;  %v3523_v49 = vmul.f32 %v12381_v31, %v3514_v42  ;;  %v8649_v30 = vld [vmem:[%s15597_s5 + $0x198] sm:$0xff] }
 0x597   :  { %v3513_v9 = vsel %vm3512_vm4, %v3501_v39, 0.0  ;;  %v8635_v39 = vld [vmem:[%s15597_s5 + $0x170] sm:$0xff]  ;;  %v8653_v42 = vld [vmem:[%s15597_s5 + $0x1b8] sm:$0xff] }
 0x598   :  { %10087 = vmatmul.mubr.msk.f32.vlgmr.msra.gmra.mxu0 %vm2571_vm14, %v8596_v17  ;;  %10107 = vmatmul.mubr.msk.f32.vlgmr.msra.gmra.mxu1 %vm2571_vm14, %v8613_v2  ;;  %v3679_v63 = vpop.permute.xlu1 %3678  ;;  %v3522_v24 = vmul.f32 %v12381_v31, %v3513_v9  ;;  %v8650_v17 = vld [vmem:[%s15597_s5 + $0x1a0] sm:$0xff]  ;;  %v8634_v2 = vld [vmem:[%s15597_s5 + $0x168] sm:$0xff]  ;;  %v8665_v9 = vld [vmem:[%s15597_s5 + $0x1d0] sm:$0xff] }
 0x599   :  { %10119 = vmatpush3.msra.mxu0 %v3353_v21  ;;  %10139 = vmatpush3.msra.mxu1 %v3525_v50  ;;  %v3688_v12 = vsel %vm3684_vm5, %v3679_v63, 0.0  ;;  %v8647_v21 = vld [vmem:[%s15597_s5 + $0x188] sm:$0xff]  ;;  %v8663_v63 = vld [vmem:[%s15597_s5 + $0x1c0] sm:$0xff] }
 0x59a   :  { %10120 = vmatprep.subr.mxu0 %v3352_v48  ;;  %10140 = vmatprep.subr.mxu1 %v3524_v56  ;;  %v3675_v53 = vpop.permute.xlu0 %3674  ;;  %v3697_v18 = vmul.f32 %v12457_v28, %v3688_v12  ;;  %v8670_v12 = vld [vmem:[%s15597_s5 + $0x1f8] sm:$0xff] }
 0x59b   :  { %10121 = vmatpush3.msra.mxu0 %v3352_v48  ;;  %10141 = vmatpush3.msra.mxu1 %v3524_v56  ;;  %v3686_v62 = vsel %vm3684_vm5, %v3675_v53, 0.0  ;;  %v8651_v56 = vld [vmem:[%s15597_s5 + $0x1a8] sm:$0xff]  ;;  %v8636_v48 = vld [vmem:[%s15597_s5 + $0x178] sm:$0xff] }
 0x59c   :  { %10089 = vmatprep.mubr.msk.f32.mxu0 %vm2571_vm14, %v8597_v23  ;;  %10109 = vmatprep.mubr.msk.f32.mxu1 %vm2571_vm14, %v8614_v10  ;;  %v3851_v20 = vpop.permute.xlu1 %3850  ;;  %v3695_v26 = vmul.f32 %v12457_v28, %v3686_v62  ;;  %v8680_v23 = vld [vmem:[%s15597_s5 + $0x200] sm:$0xff]  ;;  %v8664_v10 = vld [vmem:[%s15597_s5 + $0x1c8] sm:$0xff]  ;;  %v8666_v53 = vld [vmem:[%s15597_s5 + $0x1d8] sm:$0xff] }
 0x59d   :  { %10122 = vmatprep.subr.mxu0 %v3351_v51  ;;  %10090 = vmatmul.mubr.msk.f32.gmra.mxu0 %vm2571_vm14, %v8598_v46  ;;  %v3860_v36 = vsel %vm3856_vm6, %v3851_v20, 0.0  ;;  %v8682_v46 = vld [vmem:[%s15597_s5 + $0x210] sm:$0xff]  ;;  %v8668_v20 = vld [vmem:[%s15597_s5 + $0x1e8] sm:$0xff] }
 0x59e   :  { %10110 = vmatmul.mubr.msk.f32.gmra.mxu1 %vm2571_vm14, %v8615_v37  ;;  %10123 = vmatpush3.msra.mxu0 %v3351_v51  ;;  %v3677_v29 = vpop.permute.xlu0 %3676  ;;  %v3869_v13 = vmul.f32 %v12468_v34, %v3860_v36  ;;  %v8683_v51 = vld [vmem:[%s15597_s5 + $0x218] sm:$0xff]  ;;  %v8684_v37 = vld [vmem:[%s15597_s5 + $0x220] sm:$0xff] }
 0x59f   :  { %10142 = vmatprep.subr.mxu1 %v3523_v49  ;;  %10124 = vmatprep.subr.mxu0 %v3350_v11  ;;  %v3687_v22 = vsel %vm3684_vm5, %v3677_v29, 0.0 }
 0x5a0   :  { %10143 = vmatpush3.msra.mxu1 %v3523_v49  ;;  %10125 = vmatpush3.msra.mxu0 %v3350_v11  ;;  %v3849_v45 = vpop.permute.xlu1 %3848  ;;  %v3696_v50 = vmul.f32 %v12457_v28, %v3687_v22  ;;  %v8667_v49 = vld [vmem:[%s15597_s5 + $0x1e0] sm:$0xff]  ;;  %v8685_v11 = vld [vmem:[%s15597_s5 + $0x228] sm:$0xff] }
 0x5a1   :  { %10144 = vmatprep.subr.mxu1 %v3522_v24  ;;  %10092 = vmatprep.mubr.msk.f32.mxu0 %vm2571_vm14, %v8599_v1  ;;  %v3859_v0 = vsel %vm3856_vm6, %v3849_v45, 0.0  ;;  %v8687_v1 = vld [vmem:[%s15597_s5 + $0x238] sm:$0xff] }
 0x5a2   :  { %10112 = vmatprep.mubr.msk.f32.mxu1 %vm2571_vm14, %v8616_v44  ;;  %10145 = vmatpush3.msra.mxu1 %v3522_v24  ;;  %v3673_v14 = vpop.permute.xlu0 %3672  ;;  %v3868_v55 = vmul.f32 %v12468_v34, %v3859_v0  ;;  %v8669_v24 = vld [vmem:[%s15597_s5 + $0x1f0] sm:$0xff] }
 0x5a3   :  { %10093 = vmatmul.mubr.msk.f32.gmra.mxu0 %vm2571_vm14, %v8600_v58  ;;  %10113 = vmatmul.mubr.msk.f32.gmra.mxu1 %vm2571_vm14, %v8617_v16  ;;  %v3685_v43 = vsel %vm3684_vm5, %v3673_v14, 0.0 }
 0x5a4   :  { %10158 = vmatprep.subr.mxu0 %v3697_v18  ;;  %10095 = vmatprep.mubr.msk.f32.mxu0 %vm2571_vm14, %v8601_v4  ;;  %v3847_v31 = vpop.permute.xlu1 %3846  ;;  %v3694_v61 = vmul.f32 %v12457_v28, %v3685_v43  ;;  %v8686_v28 = vld [vmem:[%s15597_s5 + $0x230] sm:$0xff] }
 0x5a5   :  { %10115 = vmatprep.mubr.msk.f32.mxu1 %vm2571_vm14, %v8618_v27  ;;  %10178 = vmatprep.subr.mxu1 %v3869_v13  ;;  %v3858_v54 = vsel %vm3856_vm6, %v3847_v31, 0.0 }
 0x5a6   :  { %v3845_v38 = vpop.permute.xlu0 %3844  ;;  %v3867_v47 = vmul.f32 %v12468_v34, %v3858_v54 }
 0x5a7   :  { %10096 = vmatmul.mubr.msk.f32.gmra.mxu0 %vm2571_vm14, %v8602_v19  ;;  %10116 = vmatmul.mubr.msk.f32.gmra.mxu1 %vm2571_vm14, %v8619_v32  ;;  %v3857_v60 = vsel %vm3856_vm6, %v3845_v38, 0.0 }
 0x5a8   :  { %10126 = vmatprep.mubr.msk.f32.mxu0 %vm2571_vm14, %v8629_v40  ;;  %10146 = vmatprep.mubr.msk.f32.mxu1 %vm2571_vm14, %v8646_v52  ;;  %v3866_v41 = vmul.f32 %v12468_v34, %v3857_v60 }
 0x5ab   :  { %10127 = vmatmul.mubr.msk.f32.vlgmr.msra.gmra.mxu0 %vm2571_vm14, %v8630_v33  ;;  %10147 = vmatmul.mubr.msk.f32.vlgmr.msra.gmra.mxu1 %vm2571_vm14, %v8647_v21 }
 0x5ac   :  { %10159 = vmatpush3.msra.mxu0 %v3697_v18  ;;  %10179 = vmatpush3.msra.mxu1 %v3869_v13 }
 0x5ad   :  { %10160 = vmatprep.subr.mxu0 %v3696_v50  ;;  %10180 = vmatprep.subr.mxu1 %v3868_v55 }
 0x5ae   :  { %10161 = vmatpush3.msra.mxu0 %v3696_v50  ;;  %10181 = vmatpush3.msra.mxu1 %v3868_v55 }
 0x5af   :  { %10129 = vmatprep.mubr.msk.f32.mxu0 %vm2571_vm14, %v8631_v57  ;;  %10149 = vmatprep.mubr.msk.f32.mxu1 %vm2571_vm14, %v8648_v59 }
 0x5b0   :  { %10162 = vmatprep.subr.mxu0 %v3695_v26  ;;  %10130 = vmatmul.mubr.msk.f32.gmra.mxu0 %vm2571_vm14, %v8632_v25 }
 0x5b1   :  { %10150 = vmatmul.mubr.msk.f32.gmra.mxu1 %vm2571_vm14, %v8649_v30  ;;  %10163 = vmatpush3.msra.mxu0 %v3695_v26 }
 0x5b2   :  { %10182 = vmatprep.subr.mxu1 %v3867_v47  ;;  %10164 = vmatprep.subr.mxu0 %v3694_v61 }
 0x5b3   :  { %10183 = vmatpush3.msra.mxu1 %v3867_v47  ;;  %10165 = vmatpush3.msra.mxu0 %v3694_v61 }
 0x5b4   :  { %10184 = vmatprep.subr.mxu1 %v3866_v41  ;;  %10132 = vmatprep.mubr.msk.f32.mxu0 %vm2571_vm14, %v8633_v3 }
 0x5b5   :  { %10152 = vmatprep.mubr.msk.f32.mxu1 %vm2571_vm14, %v8650_v17  ;;  %10185 = vmatpush3.msra.mxu1 %v3866_v41 }
 0x5b6   :  { %10133 = vmatmul.mubr.msk.f32.gmra.mxu0 %vm2571_vm14, %v8634_v2  ;;  %10153 = vmatmul.mubr.msk.f32.gmra.mxu1 %vm2571_vm14, %v8651_v56 }
 0x5b7   :  { %10135 = vmatprep.mubr.msk.f32.mxu0 %vm2571_vm14, %v8635_v39  ;;  %10155 = vmatprep.mubr.msk.f32.mxu1 %vm2571_vm14, %v8652_v35 }
 0x5ba   :  { %10136 = vmatmul.mubr.msk.f32.gmra.mxu0 %vm2571_vm14, %v8636_v48  ;;  %10156 = vmatmul.mubr.msk.f32.gmra.mxu1 %vm2571_vm14, %v8653_v42 }
 0x5bb   :  { %10166 = vmatprep.mubr.msk.f32.mxu0 %vm2571_vm14, %v8663_v63  ;;  %10186 = vmatprep.mubr.msk.f32.mxu1 %vm2571_vm14, %v8680_v23 }
 0x5be   :  { %10167 = vmatmul.mubr.msk.f32.vlgmr.msra.gmra.mxu0 %vm2571_vm14, %v8664_v10  ;;  %10187 = vmatmul.mubr.msk.f32.vlgmr.msra.gmra.mxu1 %vm2571_vm14, %v8681_v15 }
 0x5bf   :  { %10169 = vmatprep.mubr.msk.f32.mxu0 %vm2571_vm14, %v8665_v9  ;;  %10189 = vmatprep.mubr.msk.f32.mxu1 %vm2571_vm14, %v8682_v46 }
 0x5c2   :  { %10170 = vmatmul.mubr.msk.f32.gmra.mxu0 %vm2571_vm14, %v8666_v53  ;;  %10190 = vmatmul.mubr.msk.f32.gmra.mxu1 %vm2571_vm14, %v8683_v51 }
 0x5c3   :  { %10172 = vmatprep.mubr.msk.f32.mxu0 %vm2571_vm14, %v8667_v49  ;;  %10192 = vmatprep.mubr.msk.f32.mxu1 %vm2571_vm14, %v8684_v37 }
 0x5c6   :  { %10173 = vmatmul.mubr.msk.f32.gmra.mxu0 %vm2571_vm14, %v8668_v20  ;;  %10193 = vmatmul.mubr.msk.f32.gmra.mxu1 %vm2571_vm14, %v8685_v11 }
 0x5c7   :  { %10175 = vmatprep.mubr.msk.f32.mxu0 %vm2571_vm14, %v8669_v24  ;;  %10195 = vmatprep.mubr.msk.f32.mxu1 %vm2571_vm14, %v8686_v28 }
 0x5ca   :  { %10176 = vmatmul.mubr.msk.f32.gmra.mxu0 %vm2571_vm14, %v8670_v12  ;;  %10196 = vmatmul.mubr.msk.f32.gmra.mxu1 %vm2571_vm14, %v8687_v1 }
 0x634   :  { %v10028_v34 = vpop.f32.mrf.mxu0 }
 0x636   :  { %v12642_v36 = vpop.f32.mrf.mxu0 }
 0x638   :  { %v10031_v29 = vpop.f32.mrf.mxu0 }
 0x63a   :  { %v2672_v44 = vpop.f32.mrf.mxu0 }
 0x63c   :  { %v10034_v18 = vpop.f32.mrf.mxu0 }
 0x63e   :  { %v12644_v58 = vpop.f32.mrf.mxu0 }
 0x641   :  { %v12646_v16 = vpop.f32.mrf.mxu0 }
 0x643   :  { %v12648_v13 = vpop.f32.mrf.mxu0 }
 0x644   :  { %v10068_v4 = vpop.f32.mrf.mxu1 }
 0x645   :  { %v10048_v27 = vpop.f32.mrf.mxu0 }
 0x646   :  { %v2797_v45 = vadd.f32 %v10048_v27, %v10028_v34  ;;  %v12650_v19 = vpop.f32.mrf.mxu1  ;;  %v12684_v27 = vpop.permute.xlu1 %4053 }
 0x647   :  { %v12652_v32 = vpop.f32.mrf.mxu0 }
 0x648   :  { %v2995_v14 = vadd.f32 %v10068_v4, %v2797_v45 }
 0x64a   :  { %v10051_v40 = vpop.f32.mrf.mxu0  ;;  %v10071_v52 = vpop.f32.mrf.mxu1 }
 0x64b   :  { %v2807_v46 = vadd.f32 %v10051_v40, %v10031_v29 }
 0x64c   :  { %v2801_v0 = vpop.f32.mrf.mxu0  ;;  %v2965_v22 = vpop.f32.mrf.mxu1 }
 0x64d   :  { %v2802_v49 = vadd.f32 %v2801_v0, %v2672_v44  ;;  %v2997_v20 = vadd.f32 %v10071_v52, %v2807_v46 }
 0x64f   :  { %v2996_v28 = vadd.f32 %v2965_v22, %v2802_v49 }
 0x650   :  { %v10054_v31 = vpop.f32.mrf.mxu0  ;;  %v10074_v33 = vpop.f32.mrf.mxu1 }
 0x651   :  { %v2817_v12 = vadd.f32 %v10054_v31, %v10034_v18 }
 0x652   :  { %v2811_v21 = vpop.f32.mrf.mxu0  ;;  %v2975_v55 = vpop.f32.mrf.mxu1 }
 0x653   :  { %v2999_v29 = vadd.f32 %v10074_v33, %v2817_v12  ;;  %v2812_v44 = vadd.f32 %v2811_v21, %v12644_v58 }
 0x654   :  { %v12654_v38 = vpop.f32.mrf.mxu0  ;;  %v12656_v62 = vpop.f32.mrf.mxu1 }
 0x655   :  { %v2998_v46 = vadd.f32 %v2975_v55, %v2812_v44 }
 0x656   :  { %v12658_v50 = vpop.f32.mrf.mxu0  ;;  %v12660_v54 = vpop.f32.mrf.mxu1 }
 0x658   :  { %v10088_v57 = vpop.f32.mrf.mxu0  ;;  %v10108_v59 = vpop.f32.mrf.mxu1 }
 0x659   :  { %v3166_v43 = vadd.f32 %v10088_v57, %v2995_v14 }
 0x65a   :  { %v12662_v60 = vpop.f32.mrf.mxu0  ;;  %v12664_v25 = vpop.f32.mrf.mxu1 }
 0x65b   :  { %v12666_v26 = vadd.f32 %v10108_v59, %v3166_v43  ;;  %v12688_v59 = vpop.permute.xlu0 %4048 }
 0x65d   :  { %v10091_v47 = vpop.f32.mrf.mxu0 }
 0x65e   :  { %v10111_v30 = vpop.f32.mrf.mxu1  ;;  %v3168_v1 = vadd.f32 %v10091_v47, %v2997_v20 }
 0x65f   :  { %v3136_v61 = vpop.f32.mrf.mxu0  ;;  %v4039_v33 = vpop.permute.xlu0 %4038 }
 0x660   :  { %v3291_v41 = vpop.f32.mrf.mxu1  ;;  %v3167_v45 = vadd.f32 %v3136_v61, %v2996_v28  ;;  %v3323_v40 = vadd.f32 %v10111_v30, %v3168_v1  ;;  %v4044_v61 = vpop.permute.xlu1 %4043 }
 0x662   :  { %v3322_v22 = vadd.f32 %v3291_v41, %v3167_v45  ;;  %v2827_v41 = vadd.f32 %v12654_v38, %v12646_v16 }
 0x663   :  { %v10094_v3 = vpop.f32.mrf.mxu0  ;;  %v10114_v17 = vpop.f32.mrf.mxu1 }
 0x664   :  { %v3170_v18 = vadd.f32 %v10094_v3, %v2999_v29 }
 0x665   :  { %v3146_v2 = vpop.f32.mrf.mxu0  ;;  %v3301_v56 = vpop.f32.mrf.mxu1 }
 0x666   :  { %v3325_v58 = vadd.f32 %v10114_v17, %v3170_v18  ;;  %v3169_v21 = vadd.f32 %v3146_v2, %v2998_v46  ;;  %v2822_v17 = vadd.f32 %v12658_v50, %v12648_v13  ;;  %v4029_v46 = vpop.permute.xlu0 %4028 }
 0x667   :  { %v12668_v39 = vpop.f32.mrf.mxu0  ;;  %v12670_v35 = vpop.f32.mrf.mxu1 }
 0x668   :  { %v3324_v55 = vadd.f32 %v3301_v56, %v3169_v21 }
 0x669   :  { %v12672_v48 = vpop.f32.mrf.mxu0  ;;  %v12674_v42 = vpop.f32.mrf.mxu1 }
 0x66b   :  { %v12676_v63 = vpop.f32.mrf.mxu0  ;;  %v12678_v23 = vpop.f32.mrf.mxu1 }
 0x66d   :  { %v12680_v10 = vpop.f32.mrf.mxu0  ;;  %v12682_v15 = vpop.f32.mrf.mxu1 }
 0x670   :  { %v10131_v9 = vpop.f32.mrf.mxu0 }
 0x671   :  { %v10151_v53 = vpop.f32.mrf.mxu1  ;;  %v3495_v31 = vadd.f32 %v10131_v9, %v3323_v40  ;;  %v4034_v40 = vpop.permute.xlu1 %4033 }
 0x672   :  { %v3463_v51 = vpop.f32.mrf.mxu0 }
 0x673   :  { %v3635_v37 = vpop.f32.mrf.mxu1  ;;  %v3494_v49 = vadd.f32 %v3463_v51, %v3322_v22  ;;  %v3667_v30 = vadd.f32 %v10151_v53, %v3495_v31  ;;  %v3001_v22 = vadd.f32 %v12656_v62, %v2827_v41  ;;  %v3000_v62 = vadd.f32 %v12660_v54, %v2822_v17 }
 0x675   :  { %v3666_v12 = vadd.f32 %v3635_v37, %v3494_v49  ;;  %v3172_v37 = vadd.f32 %v12668_v39, %v3001_v22  ;;  %v3171_v50 = vadd.f32 %v12672_v48, %v3000_v62 }
 0x676   :  { %v10134_v11 = vpop.f32.mrf.mxu0  ;;  %v10154_v24 = vpop.f32.mrf.mxu1 }
 0x677   :  { %v3497_v1 = vadd.f32 %v10134_v11, %v3325_v58  ;;  %v3327_v13 = vadd.f32 %v12670_v35, %v3172_v37  ;;  %v3326_v54 = vadd.f32 %v12674_v42, %v3171_v50  ;;  %v2792_v35 = vadd.f32 %v12652_v32, %v12642_v36 }
 0x678   :  { %v3473_v34 = vpop.f32.mrf.mxu0  ;;  %v3645_v4 = vpop.f32.mrf.mxu1 }
 0x679   :  { %v3669_v18 = vadd.f32 %v10154_v24, %v3497_v1  ;;  %v3496_v31 = vadd.f32 %v3473_v34, %v3324_v55 }
 0x67a   :  { %v10137_v14 = vpop.f32.mrf.mxu0  ;;  %v12686_v57 = vpop.f32.mrf.mxu1 }
 0x67c   :  { %v3483_v52 = vpop.f32.mrf.mxu0  ;;  %v12691_v0 = vpop.f32.mrf.mxu1 }
 0x67d   :  { %v3498_v1 = vadd.f32 %v3483_v52, %v3326_v54 }
 0x67e   :  { %v12693_v43 = vpop.f32.mrf.mxu0  ;;  %v12695_v47 = vpop.f32.mrf.mxu1 }
 0x67f   :  { %v3670_v55 = vadd.f32 %v12691_v0, %v3498_v1 }
 0x680   :  { %v12697_v20 = vpop.f32.mrf.mxu0  ;;  %v12699_v28 = vpop.f32.mrf.mxu1 }
 0x682   :  { %v10171_v3 = vpop.f32.mrf.mxu0  ;;  %v10191_v9 = vpop.f32.mrf.mxu1 }
 0x683   :  { %v3839_v45 = vadd.f32 %v10171_v3, %v3667_v30  ;;  %v3668_v30 = vadd.f32 %v3645_v4, %v3496_v31  ;;  %v3499_v3 = vadd.f32 %v10137_v14, %v3327_v13 }
 0x684   :  { %v3807_v29 = vpop.f32.mrf.mxu0  ;;  %v3979_v2 = vpop.f32.mrf.mxu1 }
 0x685   :  { %v4011_v51 = vadd.f32 %v10191_v9, %v3839_v45  ;;  %v3838_v44 = vadd.f32 %v3807_v29, %v3666_v12  ;;  %v3671_v48 = vadd.f32 %v12686_v57, %v3499_v3 }
 0x686   :  { %v10174_v53 = vpop.f32.mrf.mxu0  ;;  %v10194_v21 = vpop.f32.mrf.mxu1 }
 0x687   :  { %v4059_v16 = vadd.f32 %v4034_v40, %v4011_v51  ;;  %v4010_v38 = vadd.f32 %v3979_v2, %v3838_v44  ;;  %v3841_v56 = vadd.f32 %v10174_v53, %v3669_v18  ;;  %v2994_v40 = vadd.f32 %v12650_v19, %v2792_v35 }
 0x688   :  { %v3817_v58 = vpop.f32.mrf.mxu0  ;;  %v3989_v41 = vpop.f32.mrf.mxu1 }
 0x689   :  { %v12707_v11 = vmax.f32 %v4059_v16, 0.0  ;;  %v4058_v49 = vadd.f32 %v4029_v46, %v4010_v38  ;;  %v3840_v24 = vadd.f32 %v3817_v58, %v3668_v30  ;;  %v4013_v34 = vadd.f32 %v10194_v21, %v3841_v56 }
 0x68a   :  { %v10177_v12 = vpop.f32.mrf.mxu0  ;;  %v3165_v36 = vadd.f32 %v12662_v60, %v2994_v40 }
 0x68b   :  { %4126 = vrot.lane.b32.xlu0 %v12707_v11, %s10919_s30  ;;  %4086 = vrot.lane.b32.xlu1 %v12707_v11, %s10905_s24  ;;  %v12716_v39 = vmax.f32 %v4058_v49, 0.0  ;;  %v4061_v4 = vadd.f32 %v4044_v61, %v4013_v34  ;;  %v4012_v9 = vadd.f32 %v3989_v41, %v3840_v24  ;;  %v3843_v45 = vadd.f32 %v10177_v12, %v3671_v48  ;;  %v10197_v61 = vpop.f32.mrf.mxu1 }
 0x68c   :  { %v3827_v42 = vpop.f32.mrf.mxu0  ;;  %v3320_v19 = vadd.f32 %v12664_v25, %v3165_v36 }
 0x68d   :  { %v12730_v14 = vmax.f32 %v4061_v4, 0.0  ;;  %v4060_v29 = vadd.f32 %v4039_v33, %v4012_v9  ;;  %v3842_v57 = vadd.f32 %v3827_v42, %v3670_v55  ;;  %v4015_v52 = vadd.f32 %v10197_v61, %v3843_v45  ;;  %v3999_v51 = vpop.f32.mrf.mxu1 }
 0x68e   :  { %v3493_v33 = vadd.f32 %v12676_v63, %v12666_v26  ;;  %v3492_v22 = vadd.f32 %v12680_v10, %v3320_v19 }
 0x68f   :  { %4158 = vrot.lane.b32.xlu1 %v12707_v11, %s10920_s25  ;;  %4084 = vrot.lane.b32.xlu0 %v12716_v39, %s10905_s24  ;;  %v12739_v32 = vmax.f32 %v4060_v29, 0.0  ;;  %v4063_v0 = vadd.f32 %v12684_v27, %v4015_v52  ;;  %v4014_v44 = vadd.f32 %v3999_v51, %v3842_v57 }
 0x690   :  { %v3665_v60 = vadd.f32 %v12678_v23, %v3493_v33  ;;  %v3664_v25 = vadd.f32 %v12682_v15, %v3492_v22  ;;  %v4019_v15 = vpop.permute.xlu0 %4018 }
 0x691   :  { %v4071_v63 = vmax.f32 %v4063_v0, 0.0  ;;  %v4062_v17 = vadd.f32 %v12688_v59, %v4014_v44 }
 0x692   :  { %v3837_v26 = vadd.f32 %v12693_v43, %v3665_v60  ;;  %v3836_v10 = vadd.f32 %v12697_v20, %v3664_v25  ;;  %v4024_v43 = vpop.permute.xlu1 %4023 }
 0x693   :  { %4124 = vrot.lane.b32.xlu1 %v12716_v39, %s10919_s30  ;;  %4156 = vrot.lane.b32.xlu0 %v12716_v39, %s10920_s25  ;;  %v12762_v27 = vmax.f32 %v4062_v17, 0.0 }
 0x694   :  { %v4009_v23 = vadd.f32 %v12695_v47, %v3837_v26  ;;  %v4008_v59 = vadd.f32 %v12699_v28, %v3836_v10 }
 0x696   :  { %v4057_v2 = vadd.f32 %v4024_v43, %v4009_v23  ;;  %v4056_v20 = vadd.f32 %v4019_v15, %v4008_v59 }
 0x697   :  { %4130 = vrot.lane.b32.xlu0 %v12730_v14, %s10919_s30  ;;  %4090 = vrot.lane.b32.xlu1 %v12730_v14, %s10905_s24 }
 0x698   :  { %v12772_v47 = vmax.f32 %v4057_v2, 0.0  ;;  %v12778_v53 = vmax.f32 %v4056_v20, 0.0 }
 0x69b   :  { %4162 = vrot.lane.b32.xlu1 %v12730_v14, %s10920_s25  ;;  %4088 = vrot.lane.b32.xlu0 %v12739_v32, %s10905_s24 }
 0x69f   :  { %4128 = vrot.lane.b32.xlu1 %v12739_v32, %s10919_s30  ;;  %4160 = vrot.lane.b32.xlu0 %v12739_v32, %s10920_s25 }
 0x6a3   :  { %4134 = vrot.lane.b32.xlu0 %v4071_v63, %s10919_s30  ;;  %4094 = vrot.lane.b32.xlu1 %v4071_v63, %s10905_s24 }
 0x6a7   :  { %4166 = vrot.lane.b32.xlu1 %v4071_v63, %s10920_s25  ;;  %4092 = vrot.lane.b32.xlu0 %v12762_v27, %s10905_s24 }
 0x6ab   :  { %4132 = vrot.lane.b32.xlu1 %v12762_v27, %s10919_s30  ;;  %4164 = vrot.lane.b32.xlu0 %v12762_v27, %s10920_s25 }
 0x6af   :  { %4082 = vrot.lane.b32.xlu1 %v12772_v47, %s10905_s24  ;;  %4122 = vrot.lane.b32.xlu0 %v12772_v47, %s10919_s30 }
 0x6b3   :  { %4154 = vrot.lane.b32.xlu1 %v12772_v47, %s10920_s25  ;;  %4080 = vrot.lane.b32.xlu0 %v12778_v53, %s10905_s24 }
 0x6b7   :  { %4120 = vrot.lane.b32.xlu1 %v12778_v53, %s10919_s30  ;;  %4152 = vrot.lane.b32.xlu0 %v12778_v53, %s10920_s25 }
 0x6fd   :  { %v4127_v28 = vpop.permute.xlu0 %4126  ;;  %v4087_v18 = vpop.permute.xlu1 %4086 }
 0x6fe   :  { %v4147_v19 = vsel %vm3684_vm5, %v4127_v28, 0.0  ;;  %v4107_v0 = vsel %vm3340_vm2, %v4087_v18, 0.0 }
 0x6ff   :  { %v4115_v10 = vmax.f32 %v12707_v11, %v4107_v0 }
 0x701   :  { %v4159_v31 = vpop.permute.xlu1 %4158  ;;  %v4085_v16 = vpop.permute.xlu0 %4084 }
 0x702   :  { %v4179_v1 = vsel %vm3856_vm6, %v4159_v31, 0.0  ;;  %v4106_v43 = vsel %vm3340_vm2, %v4085_v16, 0.0  ;;  %v4305_v16 = vld [vmem:[%s15604_s12] sm:$0xff] }
 0x703   :  { %v4187_v60 = vmax.f32 %v4147_v19, %v4179_v1  ;;  %v4114_v31 = vmax.f32 %v12716_v39, %v4106_v43  ;;  %10214 = vmatprep.mubr.msk.f32.mxu0 %vm4369_vm7, %v4305_v16  ;;  %v4351_v43 = vld [vmem:[%s15604_s12 + $0x170] sm:$0xff]  ;;  %v4310_v16 = vld [vmem:[%s15604_s12 + $0x28] sm:$0xff] }
 0x705   :  { %v4125_v38 = vpop.permute.xlu1 %4124  ;;  %v4157_v46 = vpop.permute.xlu0 %4156  ;;  %v12823_v59 = vmax.f32 %v4115_v10, %v4187_v60  ;;  %v7825_v60 = vld [vmem:[%s15606_s14 + $0x58] sm:$0xff] }
 0x706   :  { %v4146_v25 = vsel %vm3684_vm5, %v4125_v38, 0.0  ;;  %v4178_v23 = vsel %vm3856_vm6, %v4157_v46, 0.0 }
 0x707   :  { %v4186_v15 = vmax.f32 %v4146_v25, %v4178_v23  ;;  %v7839_v25 = vld [vmem:[%s15606_s14 + $0xc8] sm:$0xff]  ;;  %v7824_v23 = vld [vmem:[%s15606_s14 + $0x50] sm:$0xff] }
 0x709   :  { %v4131_v37 = vpop.permute.xlu0 %4130  ;;  %v4091_v49 = vpop.permute.xlu1 %4090 }
 0x70a   :  { %v4149_v12 = vsel %vm3684_vm5, %v4131_v37, 0.0  ;;  %v4109_v35 = vsel %vm3340_vm2, %v4091_v49, 0.0  ;;  %v4349_v37 = vld [vmem:[%s15604_s12 + $0x160] sm:$0xff] }
 0x70b   :  { %v4117_v52 = vmax.f32 %v12730_v14, %v4109_v35  ;;  %10280 = vmatprep.mubr.msk.f32.mxu1 %vm4369_vm7, %v4349_v37  ;;  %v4354_v37 = vld [vmem:[%s15604_s12 + $0x188] sm:$0xff] }
 0x70d   :  { %v4163_v56 = vpop.permute.xlu1 %4162  ;;  %v4089_v58 = vpop.permute.xlu0 %4088 }
 0x70e   :  { %v4181_v41 = vsel %vm3856_vm6, %v4163_v56, 0.0  ;;  %v4108_v44 = vsel %vm3340_vm2, %v4089_v58, 0.0 }
 0x70f   :  { %v4189_v45 = vmax.f32 %v4149_v12, %v4181_v41  ;;  %v7829_v41 = vld [vmem:[%s15606_s14 + $0x78] sm:$0xff]  ;;  %v7828_v12 = vld [vmem:[%s15606_s14 + $0x70] sm:$0xff] }
 0x711   :  { %v4129_v21 = vpop.permute.xlu1 %4128  ;;  %v4161_v62 = vpop.permute.xlu0 %4160  ;;  %v12809_v22 = vmax.f32 %v4117_v52, %v4189_v45  ;;  %v7826_v52 = vld [vmem:[%s15606_s14 + $0x60] sm:$0xff] }
 0x712   :  { %v4148_v40 = vsel %vm3684_vm5, %v4129_v21, 0.0  ;;  %v4180_v55 = vsel %vm3856_vm6, %v4161_v62, 0.0 }
 0x713   :  { %v4188_v26 = vmax.f32 %v4148_v40, %v4180_v55 }
 0x715   :  { %v4135_v30 = vpop.permute.xlu0 %4134  ;;  %v4095_v13 = vpop.permute.xlu1 %4094 }
 0x716   :  { %v4111_v50 = vsel %vm3340_vm2, %v4095_v13, 0.0  ;;  %v4151_v3 = vsel %vm3684_vm5, %v4135_v30, 0.0 }
 0x717   :  { %v4119_v4 = vmax.f32 %v4071_v63, %v4111_v50 }
 0x719   :  { %v4167_v24 = vpop.permute.xlu1 %4166  ;;  %v4093_v34 = vpop.permute.xlu0 %4092 }
 0x71a   :  { %v4183_v54 = vsel %vm3856_vm6, %v4167_v24, 0.0  ;;  %v4110_v48 = vsel %vm3340_vm2, %v4093_v34, 0.0  ;;  %v7844_v34 = vld [vmem:[%s15606_s14 + $0xf0] sm:$0xff] }
 0x71b   :  { %v4191_v9 = vmax.f32 %v4151_v3, %v4183_v54  ;;  %v4118_v51 = vmax.f32 %v12762_v27, %v4110_v48  ;;  %v4116_v27 = vmax.f32 %v12739_v32, %v4108_v44  ;;  %v7840_v44 = vld [vmem:[%s15606_s14 + $0xd0] sm:$0xff] }
 0x71d   :  { %v12796_v29 = vmax.f32 %v4119_v4, %v4191_v9  ;;  %v4133_v42 = vpop.permute.xlu1 %4132  ;;  %v4165_v61 = vpop.permute.xlu0 %4164  ;;  %v12825_v20 = vmax.f32 %v4116_v27, %v4188_v26  ;;  %v7843_v9 = vld [vmem:[%s15606_s14 + $0xe8] sm:$0xff]  ;;  %v4307_v27 = vld [vmem:[%s15604_s12 + $0x10] sm:$0xff] }
 0x71e   :  { %v4150_v36 = vsel %vm3684_vm5, %v4133_v42, 0.0  ;;  %v4182_v57 = vsel %vm3856_vm6, %v4165_v61, 0.0  ;;  %v7827_v42 = vld [vmem:[%s15606_s14 + $0x68] sm:$0xff] }
 0x71f   :  { %v4190_v33 = vmax.f32 %v4150_v36, %v4182_v57  ;;  %4287 = vrot.lane.b32.xlu1 %v12796_v29, %s10906_s29  ;;  %v7841_v57 = vld [vmem:[%s15606_s14 + $0xd8] sm:$0xff] }
 0x721   :  { %v12811_v63 = vmax.f32 %v4118_v51, %v4190_v33  ;;  %v4083_v17 = vpop.permute.xlu1 %4082  ;;  %v4123_v14 = vpop.permute.xlu0 %4122 }
 0x722   :  { %v4105_v2 = vsel %vm3340_vm2, %v4083_v17, 0.0  ;;  %v4145_v11 = vsel %vm3684_vm5, %v4123_v14, 0.0  ;;  %v4306_v17 = vld [vmem:[%s15604_s12 + $0x8] sm:$0xff] }
 0x723   :  { %4283 = vrot.lane.b32.xlu1 %v12809_v22, %s10906_s29  ;;  %4285 = vrot.lane.b32.xlu0 %v12811_v63, %s10906_s29  ;;  %v4113_v38 = vmax.f32 %v12772_v47, %v4105_v2  ;;  %v12844_v47 = vmax.f32 %v4114_v31, %v4186_v15  ;;  %v4350_v14 = vld [vmem:[%s15604_s12 + $0x168] sm:$0xff]  ;;  %v4308_v15 = vld [vmem:[%s15604_s12 + $0x18] sm:$0xff] }
 0x725   :  { %v4155_v28 = vpop.permute.xlu1 %4154  ;;  %v4081_v18 = vpop.permute.xlu0 %4080 }
 0x726   :  { %v4177_v32 = vsel %vm3856_vm6, %v4155_v28, 0.0  ;;  %v4104_v39 = vsel %vm3340_vm2, %v4081_v18, 0.0  ;;  %v7838_v28 = vld [vmem:[%s15606_s14 + $0xc0] sm:$0xff]  ;;  %v7823_v18 = vld [vmem:[%s15606_s14 + $0x48] sm:$0xff] }
 0x727   :  { %v4185_v46 = vmax.f32 %v4145_v11, %v4177_v32  ;;  %4279 = vrot.lane.b32.xlu1 %v12823_v59, %s10906_s29  ;;  %4281 = vrot.lane.b32.xlu0 %v12825_v20, %s10906_s29  ;;  %v4112_v30 = vmax.f32 %v12778_v53, %v4104_v39  ;;  %v7845_v53 = vld [vmem:[%s15606_s14 + $0xf8] sm:$0xff]  ;;  %v4309_v11 = vld [vmem:[%s15604_s12 + $0x20] sm:$0xff] }
 0x728   :  { %v4353_v32 = vld [vmem:[%s15604_s12 + $0x180] sm:$0xff]  ;;  %v7837_v39 = vld [vmem:[%s15606_s14 + $0xb8] sm:$0xff] }
 0x729   :  { %v12846_v49 = vmax.f32 %v4113_v38, %v4185_v46  ;;  %v4121_v56 = vpop.permute.xlu1 %4120  ;;  %v4153_v58 = vpop.permute.xlu0 %4152  ;;  %v4264_v46 = vld [vmem:[%s15609_s17] sm:$0x7] }
 0x72a   :  { %v4144_v21 = vsel %vm3684_vm5, %v4121_v56, 0.0  ;;  %v4176_v62 = vsel %vm3856_vm6, %v4153_v58, 0.0  ;;  %v4355_v56 = vld [vmem:[%s15604_s12 + $0x190] sm:$0xff] }
 0x72b   :  { %v4184_v13 = vmax.f32 %v4144_v21, %v4176_v62  ;;  %4277 = vrot.lane.b32.xlu0 %v12844_v47, %s10906_s29  ;;  %4275 = vrot.lane.b32.xlu1 %v12846_v49, %s10906_s29  ;;  %v4312_v62 = vld [vmem:[%s15604_s12 + $0x38] sm:$0xff] }
 0x72d   :  { %v12855_v50 = vmax.f32 %v4112_v30, %v4184_v13  ;;  %v4356_v30 = vld [vmem:[%s15604_s12 + $0x198] sm:$0xff]  ;;  %v7836_v13 = vld [vmem:[%s15606_s14 + $0xb0] sm:$0xff] }
 0x72f   :  { %5542 = vrot.lane.b32.xlu1 %v12796_v29, %s10921_s27  ;;  %4273 = vrot.lane.b32.xlu0 %v12855_v50, %s10906_s29  ;;  %s10922_s29 = smov 118  }
 0x733   :  { %5538 = vrot.lane.b32.xlu1 %v12809_v22, %s10921_s27  ;;  %5566 = vrot.lane.b32.xlu0 %v12796_v29, %s10908_s26 }
 0x737   :  { %5536 = vrot.lane.b32.xlu1 %v12825_v20, %s10921_s27  ;;  %5562 = vrot.lane.b32.xlu0 %v12809_v22, %s10908_s26 }
 0x73b   :  { %5534 = vrot.lane.b32.xlu1 %v12823_v59, %s10921_s27  ;;  %5560 = vrot.lane.b32.xlu0 %v12825_v20, %s10908_s26 }
 0x73f   :  { %5540 = vrot.lane.b32.xlu1 %v12811_v63, %s10921_s27  ;;  %5558 = vrot.lane.b32.xlu0 %v12823_v59, %s10908_s26 }
 0x743   :  { %5532 = vrot.lane.b32.xlu1 %v12844_v47, %s10921_s27  ;;  %5564 = vrot.lane.b32.xlu0 %v12811_v63, %s10908_s26 }
 0x747   :  { %5530 = vrot.lane.b32.xlu1 %v12846_v49, %s10921_s27  ;;  %5556 = vrot.lane.b32.xlu0 %v12844_v47, %s10908_s26 }
 0x74b   :  { %5528 = vrot.lane.b32.xlu1 %v12855_v50, %s10921_s27  ;;  %5554 = vrot.lane.b32.xlu0 %v12846_v49, %s10908_s26 }
 0x74f   :  { %6304 = vrot.lane.b32.xlu1 %v12796_v29, %s10913_s7  ;;  %5552 = vrot.lane.b32.xlu0 %v12855_v50, %s10908_s26 }
 0x753   :  { %7066 = vrot.lane.b32.xlu1 %v12796_v29, %s10922_s29  ;;  %6328 = vrot.lane.b32.xlu0 %v12796_v29, %s10923_s20 }
 0x757   :  { %6300 = vrot.lane.b32.xlu1 %v12809_v22, %s10913_s7  ;;  %7090 = vrot.lane.b32.xlu0 %v12796_v29, %s10924_s6 }
 0x75b   :  { %6298 = vrot.lane.b32.xlu1 %v12825_v20, %s10913_s7  ;;  %6324 = vrot.lane.b32.xlu0 %v12809_v22, %s10923_s20 }
 0x75f   :  { %7062 = vrot.lane.b32.xlu1 %v12809_v22, %s10922_s29  ;;  %6322 = vrot.lane.b32.xlu0 %v12825_v20, %s10923_s20 }
 0x763   :  { %6296 = vrot.lane.b32.xlu1 %v12823_v59, %s10913_s7  ;;  %7086 = vrot.lane.b32.xlu0 %v12809_v22, %s10924_s6 }
 0x767   :  { %7060 = vrot.lane.b32.xlu1 %v12825_v20, %s10922_s29  ;;  %6320 = vrot.lane.b32.xlu0 %v12823_v59, %s10923_s20 }
 0x76b   :  { %6294 = vrot.lane.b32.xlu1 %v12844_v47, %s10913_s7  ;;  %7084 = vrot.lane.b32.xlu0 %v12825_v20, %s10924_s6 }
 0x76f   :  { %7058 = vrot.lane.b32.xlu1 %v12823_v59, %s10922_s29  ;;  %6318 = vrot.lane.b32.xlu0 %v12844_v47, %s10923_s20 }
 0x773   :  { %6292 = vrot.lane.b32.xlu1 %v12846_v49, %s10913_s7  ;;  %7082 = vrot.lane.b32.xlu0 %v12823_v59, %s10924_s6 }
 0x777   :  { %7056 = vrot.lane.b32.xlu1 %v12844_v47, %s10922_s29  ;;  %6316 = vrot.lane.b32.xlu0 %v12846_v49, %s10923_s20 }
 0x77b   :  { %6302 = vrot.lane.b32.xlu1 %v12811_v63, %s10913_s7  ;;  %7080 = vrot.lane.b32.xlu0 %v12844_v47, %s10924_s6 }
 0x77f   :  { %7064 = vrot.lane.b32.xlu1 %v12811_v63, %s10922_s29  ;;  %6326 = vrot.lane.b32.xlu0 %v12811_v63, %s10923_s20 }
 0x783   :  { %6290 = vrot.lane.b32.xlu1 %v12855_v50, %s10913_s7  ;;  %7088 = vrot.lane.b32.xlu0 %v12811_v63, %s10924_s6 }
 0x787   :  { %7054 = vrot.lane.b32.xlu1 %v12846_v49, %s10922_s29  ;;  %6314 = vrot.lane.b32.xlu0 %v12855_v50, %s10923_s20 }
 0x78b   :  { %7052 = vrot.lane.b32.xlu1 %v12855_v50, %s10922_s29  ;;  %7078 = vrot.lane.b32.xlu0 %v12846_v49, %s10924_s6 }
 0x78f   :  { %8035 = vperm.xlu1 %10787, %v7845_v53   ;;  %7076 = vrot.lane.b32.xlu0 %v12855_v50, %s10924_s6  ;;  %v4313_v53 = vld [vmem:[%s15604_s12 + $0x40] sm:$0xff] }
 0x791   :  { %v4288_v24 = vpop.permute.xlu1 %4287 }
 0x792   :  { %v4304_v3 = vsel %vm355_vm3, %v12796_v29, %v4288_v24  ;;  %v7842_v29 = vld [vmem:[%s15606_s14 + $0xe0] sm:$0xff] }
 0x793   :  { %10198 = vmatprep.subr.mxu0 %v4304_v3  ;;  %10744 = vmatprep.subr.mxu1 %v4304_v3  ;;  %v4357_v24 = vld [vmem:[%s15604_s12 + $0x1a0] sm:$0xff] }
 0x794   :  { %8030 = vperm.xlu1 %10787, %v7844_v34   ;;  %7955 = vperm.xlu0 %10786, %v7829_v41  }
 0x795   :  { %10199 = vmatpush3.msra.mxu0 %v4304_v3  ;;  %10752 = vmatpush3.msra.mxu1 %v4304_v3  ;;  %v4284_v54 = vpop.permute.xlu1 %4283  ;;  %v4286_v4 = vpop.permute.xlu0 %4285  ;;  %v4314_v3 = vld [vmem:[%s15604_s12 + $0x48] sm:$0xff] }
 0x796   :  { %v4303_v35 = vsel %vm355_vm3, %v12811_v63, %v4286_v4  ;;  %v4302_v48 = vsel %vm355_vm3, %v12809_v22, %v4284_v54  ;;  %v4358_v54 = vld [vmem:[%s15604_s12 + $0x1a8] sm:$0xff] }
 0x797   :  { %10200 = vmatprep.subr.mxu0 %v4303_v35  ;;  %10745 = vmatprep.subr.mxu1 %v4303_v35 }
 0x798   :  { %8025 = vperm.xlu1 %10787, %v7843_v9   ;;  %7950 = vperm.xlu0 %10786, %v7828_v12   ;;  %v7835_v9 = vld [vmem:[%s15606_s14 + $0xa8] sm:$0xff]  ;;  %v7820_v12 = vld [vmem:[%s15606_s14 + $0x30] sm:$0xff] }
 0x799   :  { %10201 = vmatpush3.msra.mxu0 %v4303_v35  ;;  %10753 = vmatpush3.msra.mxu1 %v4303_v35  ;;  %v4280_v1 = vpop.permute.xlu1 %4279  ;;  %v4282_v45 = vpop.permute.xlu0 %4281  ;;  %v4315_v35 = vld [vmem:[%s15604_s12 + $0x50] sm:$0xff] }
 0x79a   :  { %10202 = vmatprep.subr.mxu0 %v4302_v48  ;;  %10746 = vmatprep.subr.mxu1 %v4302_v48  ;;  %v4301_v61 = vsel %vm355_vm3, %v12825_v20, %v4282_v45  ;;  %v4300_v36 = vsel %vm355_vm3, %v12823_v59, %v4280_v1  ;;  %v4352_v20 = vld [vmem:[%s15604_s12 + $0x178] sm:$0xff] }
 0x79b   :  { %10203 = vmatpush3.msra.mxu0 %v4302_v48  ;;  %10754 = vmatpush3.msra.mxu1 %v4302_v48  ;;  %v4359_v48 = vld [vmem:[%s15604_s12 + $0x1b0] sm:$0xff] }
 0x79c   :  { %8020 = vperm.xlu1 %10787, %v7842_v29   ;;  %7945 = vperm.xlu0 %10786, %v7827_v42   ;;  %v4316_v29 = vld [vmem:[%s15604_s12 + $0x58] sm:$0xff] }
 0x79d   :  { %10204 = vmatprep.subr.mxu0 %v4301_v61  ;;  %10747 = vmatprep.subr.mxu1 %v4301_v61  ;;  %v4276_v40 = vpop.permute.xlu1 %4275  ;;  %v4278_v55 = vpop.permute.xlu0 %4277  ;;  %v4360_v42 = vld [vmem:[%s15604_s12 + $0x1b8] sm:$0xff] }
 0x79e   :  { %10205 = vmatpush3.msra.mxu0 %v4301_v61  ;;  %10755 = vmatpush3.msra.mxu1 %v4301_v61  ;;  %v4299_v51 = vsel %vm355_vm3, %v12844_v47, %v4278_v55  ;;  %v4298_v0 = vsel %vm355_vm3, %v12846_v49, %v4276_v40  ;;  %v7822_v47 = vld [vmem:[%s15606_s14 + $0x40] sm:$0xff]  ;;  %v4311_v49 = vld [vmem:[%s15604_s12 + $0x30] sm:$0xff]  ;;  %v7819_v40 = vld [vmem:[%s15606_s14 + $0x28] sm:$0xff] }
 0x79f   :  { %10206 = vmatprep.subr.mxu0 %v4300_v36  ;;  %10748 = vmatprep.subr.mxu1 %v4300_v36  ;;  %v7834_v61 = vld [vmem:[%s15606_s14 + $0xa0] sm:$0xff] }
 0x7a0   :  { %10207 = vmatpush3.msra.mxu0 %v4300_v36  ;;  %10756 = vmatpush3.msra.mxu1 %v4300_v36  ;;  %v4317_v36 = vld [vmem:[%s15604_s12 + $0x60] sm:$0xff] }
 0x7a1   :  { %8015 = vperm.xlu1 %10787, %v7841_v57   ;;  %7940 = vperm.xlu0 %10786, %v7826_v52   ;;  %v5543_v33 = vpop.permute.xlu1 %5542  ;;  %v4274_v19 = vpop.permute.xlu0 %4273 }
 0x7a2   :  { %10208 = vmatprep.subr.mxu0 %v4299_v51  ;;  %10749 = vmatprep.subr.mxu1 %v4299_v51  ;;  %v4297_v22 = vsel %vm355_vm3, %v12855_v50, %v4274_v19  ;;  %v7821_v50 = vld [vmem:[%s15606_s14 + $0x38] sm:$0xff]  ;;  %v4318_v19 = vld [vmem:[%s15604_s12 + $0x68] sm:$0xff] }
 0x7a3   :  { %10209 = vmatpush3.msra.mxu0 %v4299_v51  ;;  %10757 = vmatpush3.msra.mxu1 %v4299_v51  ;;  %v4361_v51 = vld [vmem:[%s15604_s12 + $0x1c0] sm:$0xff] }
 0x7a4   :  { %10210 = vmatprep.subr.mxu0 %v4298_v0  ;;  %10750 = vmatprep.subr.mxu1 %v4298_v0 }
 0x7a5   :  { %10211 = vmatpush3.msra.mxu0 %v4298_v0  ;;  %10758 = vmatpush3.msra.mxu1 %v4298_v0  ;;  %v12980_v26 = vpop.permute.xlu1 %5538  ;;  %v5567_v63 = vpop.permute.xlu0 %5566  ;;  %v4362_v0 = vld [vmem:[%s15604_s12 + $0x1c8] sm:$0xff] }
 0x7a6   :  { %8010 = vperm.xlu1 %10787, %v7840_v44   ;;  %7935 = vperm.xlu0 %10786, %v7825_v60   ;;  %v5583_v10 = vsel %vm355_vm3, %v5543_v33, %v5567_v63  ;;  %v7833_v44 = vld [vmem:[%s15606_s14 + $0x98] sm:$0xff]  ;;  %v7818_v60 = vld [vmem:[%s15606_s14 + $0x20] sm:$0xff] }
 0x7a7   :  { %10212 = vmatprep.subr.mxu0 %v4297_v22  ;;  %10751 = vmatprep.subr.mxu1 %v4297_v22 }
 0x7a8   :  { %10213 = vmatpush3.msra.mxu0 %v4297_v22  ;;  %10759 = vmatpush3.msra.mxu1 %v4297_v22 }
 0x7a9   :  { %10215 = vmatmul.mubr.msk.f32.vlgmr.msra.gmra.mxu0 %vm4369_vm7, %v4306_v17  ;;  %10281 = vmatmul.mubr.msk.f32.vlgmr.msra.gmra.mxu1 %vm4369_vm7, %v4350_v14  ;;  %v13003_v2 = vpop.permute.xlu1 %5536  ;;  %v13005_v59 = vpop.permute.xlu0 %5562  ;;  %v4319_v17 = vld [vmem:[%s15604_s12 + $0x70] sm:$0xff] }
 0x7aa   :  { %8005 = vperm.xlu1 %10787, %v7839_v25   ;;  %7930 = vperm.xlu0 %10786, %v7824_v23   ;;  %v5581_v55 = vsel %vm355_vm3, %v12980_v26, %v13005_v59  ;;  %v4363_v14 = vld [vmem:[%s15604_s12 + $0x1d0] sm:$0xff]  ;;  %v4320_v23 = vld [vmem:[%s15604_s12 + $0x78] sm:$0xff] }
 0x7ab   :  { %10408 = vmatprep.subr.mxu0 %v5583_v10  ;;  %10217 = vmatprep.mubr.msk.f32.mxu0 %vm4369_vm7, %v4307_v27  ;;  %v7832_v27 = vld [vmem:[%s15606_s14 + $0x90] sm:$0xff]  ;;  %v7817_v59 = vld [vmem:[%s15606_s14 + $0x18] sm:$0xff] }
 0x7ac   :  { %10283 = vmatprep.mubr.msk.f32.mxu1 %vm4369_vm7, %v4351_v43  ;;  %10409 = vmatpush3.msra.mxu0 %v5583_v10  ;;  %v4364_v10 = vld [vmem:[%s15604_s12 + $0x1d8] sm:$0xff] }
 0x7ad   :  { %10218 = vmatmul.mubr.msk.f32.gmra.mxu0 %vm4369_vm7, %v4308_v15  ;;  %10284 = vmatmul.mubr.msk.f32.gmra.mxu1 %vm4369_vm7, %v4352_v20  ;;  %v13029_v31 = vpop.permute.xlu1 %5534  ;;  %v13031_v38 = vpop.permute.xlu0 %5560 }
 0x7ae   :  { %8000 = vperm.xlu1 %10787, %v7838_v28   ;;  %7925 = vperm.xlu0 %10786, %v7823_v18   ;;  %v5580_v33 = vsel %vm355_vm3, %v13003_v2, %v13031_v38  ;;  %v4321_v28 = vld [vmem:[%s15604_s12 + $0x80] sm:$0xff] }
 0x7af   :  { %10220 = vmatprep.mubr.msk.f32.mxu0 %vm4369_vm7, %v4309_v11  ;;  %10286 = vmatprep.mubr.msk.f32.mxu1 %vm4369_vm7, %v4353_v32  ;;  %v4365_v18 = vld [vmem:[%s15604_s12 + $0x1e0] sm:$0xff]  ;;  %v4322_v11 = vld [vmem:[%s15604_s12 + $0x88] sm:$0xff] }
 0x7b0   :  { %10310 = vmatprep.subr.msk.mxu1 %vm5139_vm8, %v4264_v46  ;;  %v4366_v32 = vld [vmem:[%s15604_s12 + $0x1e8] sm:$0xff] }
 0x7b1   :  { %10221 = vmatmul.mubr.msk.f32.gmra.mxu0 %vm4369_vm7, %v4310_v16  ;;  %10287 = vmatmul.mubr.msk.f32.gmra.mxu1 %vm4369_vm7, %v4354_v37  ;;  %v5541_v58 = vpop.permute.xlu1 %5540  ;;  %v13059_v21 = vpop.permute.xlu0 %5558  ;;  %v7816_v16 = vld [vmem:[%s15606_s14 + $0x10] sm:$0xff] }
 0x7b2   :  { %7995 = vperm.xlu1 %10787, %v7837_v39   ;;  %7920 = vperm.xlu0 %10786, %v7822_v47   ;;  %v5579_v63 = vsel %vm355_vm3, %v13029_v31, %v13059_v21  ;;  %v4323_v39 = vld [vmem:[%s15604_s12 + $0x90] sm:$0xff] }
 0x7b3   :  { %10223 = vmatprep.mubr.msk.f32.mxu0 %vm4369_vm7, %v4311_v49  ;;  %10289 = vmatprep.mubr.msk.f32.mxu1 %vm4369_vm7, %v4355_v56  ;;  %v4367_v47 = vld [vmem:[%s15604_s12 + $0x1f0] sm:$0xff]  ;;  %v4324_v56 = vld [vmem:[%s15604_s12 + $0x98] sm:$0xff] }
 0x7b4   :  { %10311 = vmatpush3.msk.msra.mxu1 %vm5139_vm8, %v4264_v46  ;;  %v7831_v46 = vld [vmem:[%s15606_s14 + $0x88] sm:$0xff] }
 0x7b5   :  { %10224 = vmatmul.mubr.msk.f32.gmra.mxu0 %vm4369_vm7, %v4312_v62  ;;  %10290 = vmatmul.mubr.msk.f32.gmra.mxu1 %vm4369_vm7, %v4356_v30  ;;  %v5533_v34 = vpop.permute.xlu1 %5532  ;;  %v5565_v41 = vpop.permute.xlu0 %5564  ;;  %v7830_v30 = vld [vmem:[%s15606_s14 + $0x80] sm:$0xff] }
 0x7b6   :  { %7990 = vperm.xlu1 %10787, %v7836_v13   ;;  %7915 = vperm.xlu0 %10786, %v7821_v50   ;;  %v5582_v4 = vsel %vm355_vm3, %v5541_v58, %v5565_v41  ;;  %v4368_v58 = vld [vmem:[%s15604_s12 + $0x1f8] sm:$0xff]  ;;  %v7815_v13 = vld [vmem:[%s15606_s14 + $0x8] sm:$0xff]  ;;  %v4325_v50 = vld [vmem:[%s15604_s12 + $0xa0] sm:$0xff] }
 0x7b7   :  { %10226 = vmatprep.mubr.msk.f32.mxu0 %vm4369_vm7, %v4313_v53  ;;  %10292 = vmatprep.mubr.msk.f32.mxu1 %vm4369_vm7, %v4357_v24  ;;  %v4200_v53 = vld [vmem:[%s15605_s13] sm:$0xff]  ;;  %v4326_v24 = vld [vmem:[%s15604_s12 + $0xa8] sm:$0xff] }
 0x7b8   :  { %10410 = vmatprep.subr.mxu0 %v5582_v4 }
 0x7b9   :  { %10227 = vmatmul.mubr.msk.f32.gmra.mxu0 %vm4369_vm7, %v4314_v3  ;;  %10293 = vmatmul.mubr.msk.f32.gmra.mxu1 %vm4369_vm7, %v4358_v54  ;;  %v5531_v1 = vpop.permute.xlu1 %5530  ;;  %v5557_v45 = vpop.permute.xlu0 %5556  ;;  %v7877_v54 = vld [vmem:[%s15606_s14 + $0x1f8] sm:$0xff] }
 0x7ba   :  { %7985 = vperm.xlu1 %10787, %v7835_v9   ;;  %7910 = vperm.xlu0 %10786, %v7820_v12   ;;  %v5578_v25 = vsel %vm355_vm3, %v5533_v34, %v5557_v45  ;;  %v4201_v34 = vld [vmem:[%s15605_s13 + $0x8] sm:$0xff]  ;;  %v4327_v9 = vld [vmem:[%s15604_s12 + $0xb0] sm:$0xff] }
 0x7bb   :  { %10229 = vmatprep.mubr.msk.f32.mxu0 %vm4369_vm7, %v4315_v35  ;;  %10295 = vmatprep.mubr.msk.f32.mxu1 %vm4369_vm7, %v4359_v48  ;;  %v4202_v12 = vld [vmem:[%s15605_s13 + $0x10] sm:$0xff]  ;;  %v4328_v35 = vld [vmem:[%s15604_s12 + $0xb8] sm:$0xff] }
 0x7bc   :  { %10411 = vmatpush3.msra.mxu0 %v5582_v4  ;;  %v7814_v4 = vld [vmem:[%s15606_s14] sm:$0xff]  ;;  %v4203_v48 = vld [vmem:[%s15605_s13 + $0x18] sm:$0xff] }
 0x7bd   :  { %10230 = vmatmul.mubr.msk.f32.gmra.mxu0 %vm4369_vm7, %v4316_v29  ;;  %10296 = vmatmul.mubr.msk.f32.gmra.mxu1 %vm4369_vm7, %v4360_v42  ;;  %v5529_v57 = vpop.permute.xlu1 %5528  ;;  %v5555_v52 = vpop.permute.xlu0 %5554  ;;  %v7876_v29 = vld [vmem:[%s15606_s14 + $0x1f0] sm:$0xff]  ;;  %v4329_v42 = vld [vmem:[%s15604_s12 + $0xc0] sm:$0xff] }
 0x7be   :  { %10412 = vmatprep.subr.mxu0 %v5581_v55  ;;  %7980 = vperm.xlu1 %10787, %v7834_v61   ;;  %v5577_v15 = vsel %vm355_vm3, %v5531_v1, %v5555_v52  ;;  %v7861_v61 = vld [vmem:[%s15606_s14 + $0x178] sm:$0xff] }
 0x7bf   :  { %10413 = vmatpush3.msra.mxu0 %v5581_v55  ;;  %7905 = vperm.xlu0 %10786, %v7819_v40   ;;  %v4204_v40 = vld [vmem:[%s15605_s13 + $0x20] sm:$0xff]  ;;  %v4330_v55 = vld [vmem:[%s15604_s12 + $0xc8] sm:$0xff] }
 0x7c0   :  { %10414 = vmatprep.subr.mxu0 %v5580_v33  ;;  %10232 = vmatprep.mubr.msk.f32.mxu0 %vm4369_vm7, %v4317_v36  ;;  %v4205_v36 = vld [vmem:[%s15605_s13 + $0x28] sm:$0xff] }
 0x7c1   :  { %10298 = vmatprep.mubr.msk.f32.mxu1 %vm4369_vm7, %v4361_v51  ;;  %10415 = vmatpush3.msra.mxu0 %v5580_v33  ;;  %v6305_v22 = vpop.permute.xlu1 %6304  ;;  %v5553_v26 = vpop.permute.xlu0 %5552  ;;  %v7875_v51 = vld [vmem:[%s15606_s14 + $0x1e8] sm:$0xff]  ;;  %v4331_v33 = vld [vmem:[%s15604_s12 + $0xd0] sm:$0xff] }
 0x7c2   :  { %10233 = vmatmul.mubr.msk.f32.gmra.mxu0 %vm4369_vm7, %v4318_v19  ;;  %10299 = vmatmul.mubr.msk.f32.gmra.mxu1 %vm4369_vm7, %v4362_v0  ;;  %v5576_v20 = vsel %vm355_vm3, %v5529_v57, %v5553_v26  ;;  %v7860_v19 = vld [vmem:[%s15606_s14 + $0x170] sm:$0xff] }
 0x7c3   :  { %10416 = vmatprep.subr.mxu0 %v5579_v63  ;;  %7975 = vperm.xlu1 %10787, %v7833_v44   ;;  %v4206_v0 = vld [vmem:[%s15605_s13 + $0x30] sm:$0xff]  ;;  %v4332_v44 = vld [vmem:[%s15604_s12 + $0xd8] sm:$0xff] }
 0x7c4   :  { %10417 = vmatpush3.msra.mxu0 %v5579_v63  ;;  %7900 = vperm.xlu0 %10786, %v7818_v60   ;;  %v4207_v60 = vld [vmem:[%s15605_s13 + $0x38] sm:$0xff]  ;;  %v7874_v63 = vld [vmem:[%s15606_s14 + $0x1e0] sm:$0xff] }
 0x7c5   :  { %10418 = vmatprep.subr.mxu0 %v5578_v25  ;;  %10235 = vmatprep.mubr.msk.f32.mxu0 %vm4369_vm7, %v4319_v17  ;;  %v7067_v43 = vpop.permute.xlu1 %7066  ;;  %v6329_v2 = vpop.permute.xlu0 %6328  ;;  %v4333_v17 = vld [vmem:[%s15604_s12 + $0xe0] sm:$0xff] }
 0x7c6   :  { %10301 = vmatprep.mubr.msk.f32.mxu1 %vm4369_vm7, %v4363_v14  ;;  %10419 = vmatpush3.msra.mxu0 %v5578_v25  ;;  %v6345_v37 = vsel %vm355_vm3, %v6305_v22, %v6329_v2  ;;  %v7859_v14 = vld [vmem:[%s15606_s14 + $0x168] sm:$0xff]  ;;  %v4208_v25 = vld [vmem:[%s15605_s13 + $0x40] sm:$0xff]  ;;  %v7873_v2 = vld [vmem:[%s15606_s14 + $0x1d8] sm:$0xff] }
 0x7c7   :  { %10236 = vmatmul.mubr.msk.f32.gmra.mxu0 %vm4369_vm7, %v4320_v23  ;;  %10302 = vmatmul.mubr.msk.f32.gmra.mxu1 %vm4369_vm7, %v4364_v10  ;;  %v4334_v23 = vld [vmem:[%s15604_s12 + $0xe8] sm:$0xff] }
 0x7c8   :  { %10420 = vmatprep.subr.mxu0 %v5577_v15  ;;  %7970 = vperm.xlu1 %10787, %v7832_v27   ;;  %v4209_v10 = vld [vmem:[%s15605_s13 + $0x48] sm:$0xff] }
 0x7c9   :  { %10421 = vmatpush3.msra.mxu0 %v5577_v15  ;;  %7895 = vperm.xlu0 %10786, %v7817_v59   ;;  %v13191_v31 = vpop.permute.xlu1 %6300  ;;  %v7091_v38 = vpop.permute.xlu0 %7090  ;;  %v4335_v59 = vld [vmem:[%s15604_s12 + $0xf0] sm:$0xff]  ;;  %v7858_v15 = vld [vmem:[%s15606_s14 + $0x160] sm:$0xff] }
 0x7ca   :  { %10422 = vmatprep.subr.mxu0 %v5576_v20  ;;  %10238 = vmatprep.mubr.msk.f32.mxu0 %vm4369_vm7, %v4321_v28  ;;  %v13211_v49 = vsel %vm355_vm3, %v7067_v43, %v7091_v38  ;;  %v4336_v28 = vld [vmem:[%s15604_s12 + $0xf8] sm:$0xff]  ;;  %v7872_v38 = vld [vmem:[%s15606_s14 + $0x1d0] sm:$0xff] }
 0x7cb   :  { %10304 = vmatprep.mubr.msk.f32.mxu1 %vm4369_vm7, %v4365_v18  ;;  %10423 = vmatpush3.msra.mxu0 %v5576_v20  ;;  %v4210_v20 = vld [vmem:[%s15605_s13 + $0x50] sm:$0xff]  ;;  %v4211_v18 = vld [vmem:[%s15605_s13 + $0x58] sm:$0xff] }
 0x7cc   :  { %10239 = vmatmul.mubr.msk.f32.gmra.mxu0 %vm4369_vm7, %v4322_v11  ;;  %10305 = vmatmul.mubr.msk.f32.gmra.mxu1 %vm4369_vm7, %v4366_v32 }
 0x7cd   :  { %7965 = vperm.xlu1 %10787, %v7831_v46   ;;  %7890 = vperm.xlu0 %10786, %v7816_v16   ;;  %v13219_v21 = vpop.permute.xlu1 %6298  ;;  %v13221_v62 = vpop.permute.xlu0 %6324  ;;  %v4337_v46 = vld [vmem:[%s15604_s12 + $0x100] sm:$0xff]  ;;  %v7857_v16 = vld [vmem:[%s15606_s14 + $0x158] sm:$0xff] }
 0x7ce   :  { %10520 = vmatprep.subr.mxu1 %v6345_v37  ;;  %10241 = vmatprep.mubr.msk.f32.mxu0 %vm4369_vm7, %v4323_v39  ;;  %v4338_v39 = vld [vmem:[%s15604_s12 + $0x108] sm:$0xff] }
 0x7cf   :  { %10307 = vmatprep.mubr.msk.f32.mxu1 %vm4369_vm7, %v4367_v47  ;;  %10632 = vmatprep.subr.mxu0 %v13211_v49  ;;  %v4213_v47 = vld [vmem:[%s15605_s13 + $0x68] sm:$0xff] }
 0x7d0   :  { %10242 = vmatmul.mubr.msk.f32.gmra.mxu0 %vm4369_vm7, %v4324_v56  ;;  %10308 = vmatmul.mubr.msk.f32.gmra.mxu1 %vm4369_vm7, %v4368_v58  ;;  %v7871_v58 = vld [vmem:[%s15606_s14 + $0x1c8] sm:$0xff] }
 0x7d1   :  { %7960 = vperm.xlu1 %10787, %v7830_v30   ;;  %7885 = vperm.xlu0 %10786, %v7815_v13   ;;  %v13246_v41 = vpop.permute.xlu1 %7062  ;;  %v13248_v3 = vpop.permute.xlu0 %6322  ;;  %v4339_v30 = vld [vmem:[%s15604_s12 + $0x110] sm:$0xff] }
 0x7d2   :  { %10244 = vmatprep.mubr.msk.f32.mxu0 %vm4369_vm7, %v4325_v50  ;;  %10312 = vmatprep.mubr.msk.f32.mxu1 %vm2842_vm1, %v4200_v53  ;;  %v7856_v13 = vld [vmem:[%s15606_s14 + $0x150] sm:$0xff] }
 0x7d3   :  { %v4214_v50 = vld [vmem:[%s15605_s13 + $0x70] sm:$0xff] }
 0x7d4   :  { %10245 = vmatmul.mubr.msk.f32.gmra.mxu0 %vm4369_vm7, %v4326_v24  ;;  %10313 = vmatmul.mubr.msk.f32.vlgmr.msra.gmra.mxu1 %vm2842_vm1, %v4201_v34  ;;  %v4340_v24 = vld [vmem:[%s15604_s12 + $0x118] sm:$0xff] }
 0x7d5   :  { %10521 = vmatpush3.msra.mxu1 %v6345_v37  ;;  %8195 = vperm.xlu1 %10787, %v7877_v54   ;;  %v13272_v1 = vpop.permute.xlu1 %6296  ;;  %v13274_v45 = vpop.permute.xlu0 %7086  ;;  %v4212_v37 = vld [vmem:[%s15605_s13 + $0x60] sm:$0xff]  ;;  %v4215_v34 = vld [vmem:[%s15605_s13 + $0x78] sm:$0xff] }
 0x7d6   :  { %7880 = vperm.xlu0 %10786, %v7814_v4   ;;  %10247 = vmatprep.mubr.msk.f32.mxu0 %vm4369_vm7, %v4327_v9  ;;  %v7870_v4 = vld [vmem:[%s15606_s14 + $0x1c0] sm:$0xff] }
 0x7d7   :  { %10315 = vmatprep.mubr.msk.f32.mxu1 %vm2842_vm1, %v4202_v12  ;;  %v4341_v9 = vld [vmem:[%s15604_s12 + $0x120] sm:$0xff]  ;;  %v7855_v12 = vld [vmem:[%s15606_s14 + $0x148] sm:$0xff] }
 0x7d8   :  { %10248 = vmatmul.mubr.msk.f32.gmra.mxu0 %vm4369_vm7, %v4328_v35  ;;  %10316 = vmatmul.mubr.msk.f32.gmra.mxu1 %vm2842_vm1, %v4203_v48  ;;  %v4216_v35 = vld [vmem:[%s15605_s13 + $0x80] sm:$0xff] }
 0x7d9   :  { %8190 = vperm.xlu1 %10787, %v7876_v29   ;;  %10250 = vmatprep.mubr.msk.f32.mxu0 %vm4369_vm7, %v4329_v42  ;;  %v13299_v57 = vpop.permute.xlu1 %7060  ;;  %v13301_v52 = vpop.permute.xlu0 %6320  ;;  %v4342_v29 = vld [vmem:[%s15604_s12 + $0x128] sm:$0xff] }
 0x7da   :  { %8115 = vperm.xlu0 %10786, %v7861_v61   ;;  %10318 = vmatprep.mubr.msk.f32.mxu1 %vm2842_vm1, %v4204_v40  ;;  %v4217_v42 = vld [vmem:[%s15605_s13 + $0x88] sm:$0xff]  ;;  %v7869_v40 = vld [vmem:[%s15606_s14 + $0x1b8] sm:$0xff] }
 0x7dc   :  { %10251 = vmatmul.mubr.msk.f32.gmra.mxu0 %vm4369_vm7, %v4330_v55  ;;  %10319 = vmatmul.mubr.msk.f32.gmra.mxu1 %vm2842_vm1, %v4205_v36  ;;  %v4343_v55 = vld [vmem:[%s15604_s12 + $0x130] sm:$0xff] }
 0x7dd   :  { %8185 = vperm.xlu1 %10787, %v7875_v51   ;;  %10253 = vmatprep.mubr.msk.f32.mxu0 %vm4369_vm7, %v4331_v33  ;;  %v13325_v22 = vpop.permute.xlu1 %6294  ;;  %v13327_v26 = vpop.permute.xlu0 %7084  ;;  %v7854_v51 = vld [vmem:[%s15606_s14 + $0x140] sm:$0xff]  ;;  %v4218_v33 = vld [vmem:[%s15605_s13 + $0x90] sm:$0xff] }
 0x7de   :  { %8110 = vperm.xlu0 %10786, %v7860_v19   ;;  %10321 = vmatprep.mubr.msk.f32.mxu1 %vm2842_vm1, %v4206_v0  ;;  %v4344_v19 = vld [vmem:[%s15604_s12 + $0x138] sm:$0xff] }
 0x7df   :  { %v4219_v0 = vld [vmem:[%s15605_s13 + $0x98] sm:$0xff] }
 0x7e0   :  { %10254 = vmatmul.mubr.msk.f32.gmra.mxu0 %vm4369_vm7, %v4332_v44  ;;  %10322 = vmatmul.mubr.msk.f32.gmra.mxu1 %vm2842_vm1, %v4207_v60  ;;  %v7868_v44 = vld [vmem:[%s15606_s14 + $0x1b0] sm:$0xff]  ;;  %v4345_v60 = vld [vmem:[%s15604_s12 + $0x140] sm:$0xff] }
 0x7e1   :  { %8180 = vperm.xlu1 %10787, %v7874_v63   ;;  %10256 = vmatprep.mubr.msk.f32.mxu0 %vm4369_vm7, %v4333_v17  ;;  %v13351_v27 = vpop.permute.xlu1 %7058  ;;  %v13353_v43 = vpop.permute.xlu0 %6318  ;;  %v7853_v63 = vld [vmem:[%s15606_s14 + $0x138] sm:$0xff]  ;;  %v4220_v17 = vld [vmem:[%s15605_s13 + $0xa0] sm:$0xff] }
 0x7e2   :  { %8105 = vperm.xlu0 %10786, %v7859_v14   ;;  %10324 = vmatprep.mubr.msk.f32.mxu1 %vm2842_vm1, %v4208_v25  ;;  %v4346_v14 = vld [vmem:[%s15604_s12 + $0x148] sm:$0xff] }
 0x7e3   :  { %v4221_v25 = vld [vmem:[%s15605_s13 + $0xa8] sm:$0xff] }
 0x7e4   :  { %10257 = vmatmul.mubr.msk.f32.gmra.mxu0 %vm4369_vm7, %v4334_v23  ;;  %10325 = vmatmul.mubr.msk.f32.gmra.mxu1 %vm2842_vm1, %v4209_v10  ;;  %v6343_v23 = vsel %vm355_vm3, %v13191_v31, %v13221_v62  ;;  %v7867_v10 = vld [vmem:[%s15606_s14 + $0x1a8] sm:$0xff]  ;;  %v4222_v31 = vld [vmem:[%s15605_s13 + $0xb0] sm:$0xff]  ;;  %v6342_v62 = vsel %vm355_vm3, %v13219_v21, %v13248_v3  ;;  %v6341_v21 = vsel %vm355_vm3, %v13272_v1, %v13301_v52 }
 0x7e5   :  { %8175 = vperm.xlu1 %10787, %v7873_v2   ;;  %10259 = vmatprep.mubr.msk.f32.mxu0 %vm4369_vm7, %v4335_v59  ;;  %v13377_v11 = vpop.permute.xlu1 %6292  ;;  %v13379_v32 = vpop.permute.xlu0 %7082  ;;  %v7852_v2 = vld [vmem:[%s15606_s14 + $0x130] sm:$0xff]  ;;  %v7851_v3 = vld [vmem:[%s15606_s14 + $0x128] sm:$0xff]  ;;  %v6340_v1 = vsel %vm355_vm3, %v13325_v22, %v13353_v43  ;;  %v7865_v43 = vld [vmem:[%s15606_s14 + $0x198] sm:$0xff] }
 0x7e6   :  { %8100 = vperm.xlu0 %10786, %v7858_v15   ;;  %10327 = vmatprep.mubr.msk.f32.mxu1 %vm2842_vm1, %v4210_v20  ;;  %v4347_v59 = vld [vmem:[%s15604_s12 + $0x150] sm:$0xff]  ;;  %v4348_v15 = vld [vmem:[%s15604_s12 + $0x158] sm:$0xff]  ;;  %v8826_v52 = vld [vmem:[%s15604_s12 + $0x208] sm:$0xff] }
 0x7e7   :  { %v4223_v20 = vld [vmem:[%s15605_s13 + $0xb8] sm:$0xff] }
 0x7e8   :  { %10260 = vmatmul.mubr.msk.f32.gmra.mxu0 %vm4369_vm7, %v4336_v28  ;;  %10328 = vmatmul.mubr.msk.f32.gmra.mxu1 %vm2842_vm1, %v4211_v18  ;;  %v7866_v18 = vld [vmem:[%s15606_s14 + $0x1a0] sm:$0xff] }
 0x7e9   :  { %8170 = vperm.xlu1 %10787, %v7872_v38   ;;  %10262 = vmatprep.mubr.msk.f32.mxu0 %vm4369_vm7, %v4337_v46  ;;  %v13403_v56 = vpop.permute.xlu0 %6316  ;;  %v13418_v53 = vpop.permute.xlu1 %7056  ;;  %v4224_v46 = vld [vmem:[%s15605_s13 + $0xc0] sm:$0xff] }
 0x7ea   :  { %8095 = vperm.xlu0 %10786, %v7857_v16   ;;  %10330 = vmatprep.mubr.msk.f32.mxu1 %vm2842_vm1, %v4212_v37  ;;  %v8825_v16 = vld [vmem:[%s15604_s12 + $0x200] sm:$0xff]  ;;  %v4225_v37 = vld [vmem:[%s15605_s13 + $0xc8] sm:$0xff]  ;;  %v6339_v22 = vsel %vm355_vm3, %v13377_v11, %v13403_v56  ;;  %v4226_v11 = vld [vmem:[%s15605_s13 + $0xd0] sm:$0xff] }
 0x7ec   :  { %10263 = vmatmul.mubr.msk.f32.gmra.mxu0 %vm4369_vm7, %v4338_v39  ;;  %10331 = vmatmul.mubr.msk.f32.gmra.mxu1 %vm2842_vm1, %v4213_v47  ;;  %v7850_v47 = vld [vmem:[%s15606_s14 + $0x120] sm:$0xff] }
 0x7ed   :  { %8165 = vperm.xlu1 %10787, %v7871_v58   ;;  %10265 = vmatprep.mubr.msk.f32.mxu0 %vm4369_vm7, %v4339_v30  ;;  %v13429_v54 = vpop.permute.xlu0 %7080  ;;  %v6303_v48 = vpop.permute.xlu1 %6302 }
 0x7ee   :  { %8090 = vperm.xlu0 %10786, %v7856_v13   ;;  %10333 = vmatprep.mubr.msk.f32.mxu1 %vm2842_vm1, %v4214_v50  ;;  %v8827_v13 = vld [vmem:[%s15604_s12 + $0x210] sm:$0xff]  ;;  %v8828_v50 = vld [vmem:[%s15604_s12 + $0x218] sm:$0xff] }
 0x7f0   :  { %10266 = vmatmul.mubr.msk.f32.gmra.mxu0 %vm4369_vm7, %v4340_v24  ;;  %10334 = vmatmul.mubr.msk.f32.gmra.mxu1 %vm2842_vm1, %v4215_v34  ;;  %v7864_v24 = vld [vmem:[%s15606_s14 + $0x190] sm:$0xff]  ;;  %v7105_v34 = vsel %vm355_vm3, %v13246_v41, %v13274_v45  ;;  %v7104_v41 = vsel %vm355_vm3, %v13299_v57, %v13327_v26  ;;  %v4229_v45 = vld [vmem:[%s15605_s13 + $0xe8] sm:$0xff]  ;;  %v7103_v57 = vsel %vm355_vm3, %v13351_v27, %v13379_v32  ;;  %v4231_v32 = vld [vmem:[%s15605_s13 + $0xf8] sm:$0xff] }
 0x7f1   :  { %8160 = vperm.xlu1 %10787, %v7870_v4   ;;  %10268 = vmatprep.mubr.msk.f32.mxu0 %vm4369_vm7, %v4341_v9  ;;  %v6327_v61 = vpop.permute.xlu0 %6326  ;;  %v7065_v38 = vpop.permute.xlu1 %7064  ;;  %v7849_v4 = vld [vmem:[%s15606_s14 + $0x118] sm:$0xff]  ;;  %v4228_v9 = vld [vmem:[%s15605_s13 + $0xe0] sm:$0xff]  ;;  %v7848_v26 = vld [vmem:[%s15606_s14 + $0x110] sm:$0xff]  ;;  %v7102_v27 = vsel %vm355_vm3, %v13418_v53, %v13429_v54 }
 0x7f2   :  { %8085 = vperm.xlu0 %10786, %v7855_v12   ;;  %10336 = vmatprep.mubr.msk.f32.mxu1 %vm2842_vm1, %v4216_v35  ;;  %v6344_v36 = vsel %vm355_vm3, %v6303_v48, %v6327_v61  ;;  %v8829_v12 = vld [vmem:[%s15604_s12 + $0x220] sm:$0xff]  ;;  %v8830_v48 = vld [vmem:[%s15604_s12 + $0x228] sm:$0xff]  ;;  %v4230_v61 = vld [vmem:[%s15605_s13 + $0xf0] sm:$0xff] }
 0x7f3   :  { %10522 = vmatprep.subr.mxu1 %v6344_v36  ;;  %v7847_v54 = vld [vmem:[%s15606_s14 + $0x108] sm:$0xff] }
 0x7f4   :  { %10269 = vmatmul.mubr.msk.f32.gmra.mxu0 %vm4369_vm7, %v4342_v29  ;;  %10337 = vmatmul.mubr.msk.f32.gmra.mxu1 %vm2842_vm1, %v4217_v42  ;;  %v7863_v29 = vld [vmem:[%s15606_s14 + $0x188] sm:$0xff] }
 0x7f5   :  { %8155 = vperm.xlu1 %10787, %v7869_v40   ;;  %10271 = vmatprep.mubr.msk.f32.mxu0 %vm4369_vm7, %v4343_v55  ;;  %v7089_v28 = vpop.permute.xlu0 %7088  ;;  %v6291_v58 = vpop.permute.xlu1 %6290  ;;  %v8831_v40 = vld [vmem:[%s15604_s12 + $0x230] sm:$0xff]  ;;  %v8832_v55 = vld [vmem:[%s15604_s12 + $0x238] sm:$0xff] }
 0x7f6   :  { %8080 = vperm.xlu0 %10786, %v7854_v51   ;;  %10339 = vmatprep.mubr.msk.f32.mxu1 %vm2842_vm1, %v4218_v33  ;;  %v7106_v30 = vsel %vm355_vm3, %v7065_v38, %v7089_v28  ;;  %v4232_v33 = vld [vmem:[%s15605_s13 + $0x100] sm:$0xff]  ;;  %v8839_v28 = vld [vmem:[%s15604_s12 + $0x270] sm:$0xff] }
 0x7f7   :  { %10523 = vmatpush3.msra.mxu1 %v6344_v36  ;;  %v7862_v36 = vld [vmem:[%s15606_s14 + $0x180] sm:$0xff] }
 0x7f8   :  { %10272 = vmatmul.mubr.msk.f32.gmra.mxu0 %vm4369_vm7, %v4344_v19  ;;  %10340 = vmatmul.mubr.msk.f32.gmra.mxu1 %vm2842_vm1, %v4219_v0  ;;  %v8833_v0 = vld [vmem:[%s15604_s12 + $0x240] sm:$0xff] }
 0x7f9   :  { %8150 = vperm.xlu1 %10787, %v7868_v44   ;;  %10274 = vmatprep.mubr.msk.f32.mxu0 %vm4369_vm7, %v4345_v60  ;;  %v6315_v39 = vpop.permute.xlu0 %6314  ;;  %v7055_v42 = vpop.permute.xlu1 %7054  ;;  %v4233_v60 = vld [vmem:[%s15605_s13 + $0x108] sm:$0xff]  ;;  %v8841_v38 = vld [vmem:[%s15604_s12 + $0x280] sm:$0xff] }
 0x7fa   :  { %8075 = vperm.xlu0 %10786, %v7853_v63   ;;  %10342 = vmatprep.mubr.msk.f32.mxu1 %vm2842_vm1, %v4220_v17  ;;  %v6338_v56 = vsel %vm355_vm3, %v6291_v58, %v6315_v39  ;;  %v8834_v63 = vld [vmem:[%s15604_s12 + $0x248] sm:$0xff]  ;;  %v8263_v17 = vld [vmem:[#allocation2] sm:$0x1]  ;;  %v8844_v39 = vld [vmem:[%s15604_s12 + $0x298] sm:$0xff] }
 0x7fb   :  { %10524 = vmatprep.subr.mxu1 %v6343_v23  ;;  %v8846_v58 = vld [vmem:[%s15604_s12 + $0x2a8] sm:$0xff] }
 0x7fc   :  { %10275 = vmatmul.mubr.msk.f32.gmra.mxu0 %vm4369_vm7, %v4346_v14  ;;  %10343 = vmatmul.mubr.msk.f32.gmra.mxu1 %vm2842_vm1, %v4221_v25  ;;  %v7846_v14 = vld [vmem:[%s15606_s14 + $0x100] sm:$0xff]  ;;  %v4234_v25 = vld [vmem:[%s15605_s13 + $0x110] sm:$0xff] }
 0x7fd   :  { %10525 = vmatpush3.msra.mxu1 %v6343_v23  ;;  %8145 = vperm.xlu1 %10787, %v7867_v10   ;;  %v7079_v35 = vpop.permute.xlu0 %7078  ;;  %v7053_v19 = vpop.permute.xlu1 %7052  ;;  %v8835_v23 = vld [vmem:[%s15604_s12 + $0x250] sm:$0xff]  ;;  %v4235_v10 = vld [vmem:[%s15605_s13 + $0x118] sm:$0xff] }
 0x7fe   :  { %8070 = vperm.xlu0 %10786, %v7852_v2   ;;  %10526 = vmatprep.subr.mxu1 %v6342_v62  ;;  %v7101_v53 = vsel %vm355_vm3, %v7055_v42, %v7079_v35  ;;  %v8836_v2 = vld [vmem:[%s15604_s12 + $0x258] sm:$0xff]  ;;  %v8853_v35 = vld [vmem:[%s15604_s12 + $0x2e0] sm:$0xff] }
 0x7ff   :  { %10277 = vmatprep.mubr.msk.f32.mxu0 %vm4369_vm7, %v4347_v59  ;;  %10345 = vmatprep.mubr.msk.f32.mxu1 %vm2842_vm1, %v4222_v31  ;;  %v4236_v59 = vld [vmem:[%s15605_s13 + $0x120] sm:$0xff]  ;;  %v4255_v42 = vld [vmem:[%s15605_s13 + $0x1b8] sm:$0xff] }
 0x800   :  { %10527 = vmatpush3.msra.mxu1 %v6342_v62  ;;  %10278 = vmatmul.mubr.msk.f32.gmra.mxu0 %vm4369_vm7, %v4348_v15  ;;  %v8837_v31 = vld [vmem:[%s15604_s12 + $0x260] sm:$0xff]  ;;  %v4237_v62 = vld [vmem:[%s15605_s13 + $0x128] sm:$0xff] }
 0x801   :  { %10346 = vmatmul.mubr.msk.f32.gmra.mxu1 %vm2842_vm1, %v4223_v20  ;;  %10528 = vmatprep.subr.mxu1 %v6341_v21  ;;  %v7077_v51 = vpop.permute.xlu0 %7076  ;;  %v8838_v15 = vld [vmem:[%s15604_s12 + $0x268] sm:$0xff]  ;;  %v4238_v20 = vld [vmem:[%s15605_s13 + $0x130] sm:$0xff] }
 0x802   :  { %10529 = vmatpush3.msra.mxu1 %v6341_v21  ;;  %8140 = vperm.xlu1 %10787, %v7866_v18   ;;  %v7100_v44 = vsel %vm355_vm3, %v7053_v19, %v7077_v51  ;;  %v4239_v18 = vld [vmem:[%s15605_s13 + $0x138] sm:$0xff]  ;;  %v8859_v51 = vld [vmem:[%s15604_s12 + $0x310] sm:$0xff]  ;;  %v8861_v19 = vld [vmem:[%s15604_s12 + $0x320] sm:$0xff]  ;;  %vm8434_vm3 = vcmask 8192  }
 0x803   :  { %8065 = vperm.xlu0 %10786, %v7851_v3   ;;  %10530 = vmatprep.subr.mxu1 %v6340_v1  ;;  %v8840_v21 = vld [vmem:[%s15604_s12 + $0x278] sm:$0xff]  ;;  %v4240_v3 = vld [vmem:[%s15605_s13 + $0x140] sm:$0xff] }
 0x804   :  { %10348 = vmatprep.mubr.msk.f32.mxu1 %vm2842_vm1, %v4224_v46  ;;  %10424 = vmatprep.mubr.msk.f32.mxu0 %vm4369_vm7, %v8825_v16  ;;  %v4241_v46 = vld [vmem:[%s15605_s13 + $0x148] sm:$0xff] }
 0x805   :  { %10531 = vmatpush3.msra.mxu1 %v6340_v1  ;;  %10425 = vmatmul.mubr.msk.f32.vlgmr.msra.gmra.mxu0 %vm4369_vm7, %v8826_v52  ;;  %v8842_v16 = vld [vmem:[%s15604_s12 + $0x288] sm:$0xff]  ;;  %v4242_v1 = vld [vmem:[%s15605_s13 + $0x150] sm:$0xff] }
 0x806   :  { %10349 = vmatmul.mubr.msk.f32.gmra.mxu1 %vm2842_vm1, %v4225_v37  ;;  %10532 = vmatprep.subr.mxu1 %v6339_v22  ;;  %v8843_v52 = vld [vmem:[%s15604_s12 + $0x290] sm:$0xff]  ;;  %v4243_v37 = vld [vmem:[%s15605_s13 + $0x158] sm:$0xff] }
 0x807   :  { %10633 = vmatpush3.msra.mxu0 %v13211_v49  ;;  %10533 = vmatpush3.msra.mxu1 %v6339_v22  ;;  %v4227_v49 = vld [vmem:[%s15605_s13 + $0xd8] sm:$0xff]  ;;  %v4244_v22 = vld [vmem:[%s15605_s13 + $0x160] sm:$0xff] }
 0x808   :  { %10634 = vmatprep.subr.mxu0 %v7106_v30  ;;  %8135 = vperm.xlu1 %10787, %v7865_v43   ;;  %v8845_v43 = vld [vmem:[%s15604_s12 + $0x2a0] sm:$0xff] }
 0x809   :  { %8060 = vperm.xlu0 %10786, %v7850_v47   ;;  %10534 = vmatprep.subr.mxu1 %v6338_v56  ;;  %v4245_v47 = vld [vmem:[%s15605_s13 + $0x168] sm:$0xff] }
 0x80a   :  { %10635 = vmatpush3.msra.mxu0 %v7106_v30  ;;  %10351 = vmatprep.mubr.msk.f32.mxu1 %vm2842_vm1, %v4226_v11  ;;  %v4246_v30 = vld [vmem:[%s15605_s13 + $0x170] sm:$0xff] }
 0x80b   :  { %10427 = vmatprep.mubr.msk.f32.mxu0 %vm4369_vm7, %v8827_v13  ;;  %10535 = vmatpush3.msra.mxu1 %v6338_v56  ;;  %v8847_v11 = vld [vmem:[%s15604_s12 + $0x2b0] sm:$0xff]  ;;  %v4247_v56 = vld [vmem:[%s15605_s13 + $0x178] sm:$0xff] }
 0x80c   :  { %10636 = vmatprep.subr.mxu0 %v7105_v34  ;;  %10352 = vmatmul.mubr.msk.f32.gmra.mxu1 %vm2842_vm1, %v4227_v49  ;;  %v8848_v13 = vld [vmem:[%s15604_s12 + $0x2b8] sm:$0xff]  ;;  %v4248_v49 = vld [vmem:[%s15605_s13 + $0x180] sm:$0xff] }
 0x80d   :  { %10428 = vmatmul.mubr.msk.f32.gmra.mxu0 %vm4369_vm7, %v8828_v50  ;;  %8130 = vperm.xlu1 %10787, %v7864_v24   ;;  %v8849_v50 = vld [vmem:[%s15604_s12 + $0x2c0] sm:$0xff]  ;;  %v4249_v24 = vld [vmem:[%s15605_s13 + $0x188] sm:$0xff] }
 0x80e   :  { %10637 = vmatpush3.msra.mxu0 %v7105_v34  ;;  %8055 = vperm.xlu0 %10786, %v7849_v4   ;;  %v8850_v34 = vld [vmem:[%s15604_s12 + $0x2c8] sm:$0xff]  ;;  %v4250_v4 = vld [vmem:[%s15605_s13 + $0x190] sm:$0xff] }
 0x80f   :  { %10638 = vmatprep.subr.mxu0 %v7104_v41  ;;  %10354 = vmatprep.mubr.msk.f32.mxu1 %vm2842_vm1, %v4228_v9  ;;  %v8851_v9 = vld [vmem:[%s15604_s12 + $0x2d0] sm:$0xff] }
 0x810   :  { %10639 = vmatpush3.msra.mxu0 %v7104_v41  ;;  %10430 = vmatprep.mubr.msk.f32.mxu0 %vm4369_vm7, %v8829_v12  ;;  %v4251_v12 = vld [vmem:[%s15605_s13 + $0x198] sm:$0xff] }
 0x811   :  { %10640 = vmatprep.subr.mxu0 %v7103_v57  ;;  %10355 = vmatmul.mubr.msk.f32.gmra.mxu1 %vm2842_vm1, %v4229_v45  ;;  %v8852_v41 = vld [vmem:[%s15604_s12 + $0x2d8] sm:$0xff]  ;;  %v4252_v45 = vld [vmem:[%s15605_s13 + $0x1a0] sm:$0xff] }
 0x812   :  { %10431 = vmatmul.mubr.msk.f32.gmra.mxu0 %vm4369_vm7, %v8830_v48  ;;  %8125 = vperm.xlu1 %10787, %v7863_v29   ;;  %v4253_v48 = vld [vmem:[%s15605_s13 + $0x1a8] sm:$0xff] }
 0x813   :  { %10641 = vmatpush3.msra.mxu0 %v7103_v57  ;;  %8050 = vperm.xlu0 %10786, %v7848_v26   ;;  %v8854_v29 = vld [vmem:[%s15604_s12 + $0x2e8] sm:$0xff]  ;;  %v4254_v57 = vld [vmem:[%s15605_s13 + $0x1b0] sm:$0xff] }
 0x814   :  { %10642 = vmatprep.subr.mxu0 %v7102_v27  ;;  %10357 = vmatprep.mubr.msk.f32.mxu1 %vm2842_vm1, %v4230_v61  ;;  %v8855_v26 = vld [vmem:[%s15604_s12 + $0x2f0] sm:$0xff]  ;;  %v8856_v61 = vld [vmem:[%s15604_s12 + $0x2f8] sm:$0xff] }
 0x815   :  { %10643 = vmatpush3.msra.mxu0 %v7102_v27  ;;  %10433 = vmatprep.mubr.msk.f32.mxu0 %vm4369_vm7, %v8831_v40  ;;  %v4256_v40 = vld [vmem:[%s15605_s13 + $0x1c0] sm:$0xff] }
 0x816   :  { %10644 = vmatprep.subr.mxu0 %v7101_v53  ;;  %10358 = vmatmul.mubr.msk.f32.gmra.mxu1 %vm2842_vm1, %v4231_v32  ;;  %v8857_v27 = vld [vmem:[%s15604_s12 + $0x300] sm:$0xff]  ;;  %v4257_v32 = vld [vmem:[%s15605_s13 + $0x1c8] sm:$0xff] }
 0x817   :  { %10434 = vmatmul.mubr.msk.f32.gmra.mxu0 %vm4369_vm7, %v8832_v55  ;;  %8120 = vperm.xlu1 %10787, %v7862_v36   ;;  %v8858_v55 = vld [vmem:[%s15604_s12 + $0x308] sm:$0xff]  ;;  %v4258_v36 = vld [vmem:[%s15605_s13 + $0x1d0] sm:$0xff] }
 0x818   :  { %10645 = vmatpush3.msra.mxu0 %v7101_v53  ;;  %8045 = vperm.xlu0 %10786, %v7847_v54   ;;  %v4259_v53 = vld [vmem:[%s15605_s13 + $0x1d8] sm:$0xff] }
 0x819   :  { %10646 = vmatprep.subr.mxu0 %v7100_v44  ;;  %10360 = vmatprep.mubr.msk.f32.mxu1 %vm2842_vm1, %v4232_v33  ;;  %v8860_v54 = vld [vmem:[%s15604_s12 + $0x318] sm:$0xff]  ;;  %v4260_v33 = vld [vmem:[%s15605_s13 + $0x1e0] sm:$0xff] }
 0x81a   :  { %10647 = vmatpush3.msra.mxu0 %v7100_v44  ;;  %10436 = vmatprep.mubr.msk.f32.mxu0 %vm4369_vm7, %v8833_v0  ;;  %v4261_v0 = vld [vmem:[%s15605_s13 + $0x1e8] sm:$0xff] }
 0x81b   :  { %10361 = vmatmul.mubr.msk.f32.gmra.mxu1 %vm2842_vm1, %v4233_v60  ;;  %10437 = vmatmul.mubr.msk.f32.gmra.mxu0 %vm4369_vm7, %v8834_v63  ;;  %v8862_v44 = vld [vmem:[%s15604_s12 + $0x328] sm:$0xff]  ;;  %v4262_v60 = vld [vmem:[%s15605_s13 + $0x1f0] sm:$0xff] }
 0x81c   :  { %8266 = vperm.xlu1 %10787, %v8263_v17   ;;  %8040 = vperm.xlu0 %10786, %v7846_v14   ;;  %v8863_v63 = vld [vmem:[%s15604_s12 + $0x330] sm:$0xff]  ;;  %v4263_v17 = vld [vmem:[%s15605_s13 + $0x1f8] sm:$0xff] }
 0x81d   :  { %10363 = vmatprep.mubr.msk.f32.mxu1 %vm2842_vm1, %v4234_v25  ;;  %10439 = vmatprep.mubr.msk.f32.mxu0 %vm4369_vm7, %v8835_v23  ;;  %v8864_v14 = vld [vmem:[%s15604_s12 + $0x338] sm:$0xff]  ;;  %v8865_v25 = vld [vmem:[%s15604_s12 + $0x340] sm:$0xff] }
 0x81e   :  { %v8953_v23 = vld [vmem:[%s15604_s12 + $0x400] sm:$0xff] }
 0x81f   :  { %10364 = vmatmul.mubr.msk.f32.gmra.mxu1 %vm2842_vm1, %v4235_v10  ;;  %10440 = vmatmul.mubr.msk.f32.gmra.mxu0 %vm4369_vm7, %v8836_v2  ;;  %v8866_v10 = vld [vmem:[%s15604_s12 + $0x348] sm:$0xff] }
 0x820   :  { %10366 = vmatprep.mubr.msk.f32.mxu1 %vm2842_vm1, %v4236_v59  ;;  %10442 = vmatprep.mubr.msk.f32.mxu0 %vm4369_vm7, %v8837_v31  ;;  %v8954_v2 = vld [vmem:[%s15604_s12 + $0x408] sm:$0xff]  ;;  %v8867_v59 = vld [vmem:[%s15604_s12 + $0x350] sm:$0xff] }
 0x821   :  { %v8955_v31 = vld [vmem:[%s15604_s12 + $0x410] sm:$0xff] }
 0x823   :  { %10367 = vmatmul.mubr.msk.f32.gmra.mxu1 %vm2842_vm1, %v4237_v62  ;;  %10443 = vmatmul.mubr.msk.f32.gmra.mxu0 %vm4369_vm7, %v8838_v15  ;;  %v8868_v62 = vld [vmem:[%s15604_s12 + $0x358] sm:$0xff] }
 0x824   :  { %10369 = vmatprep.mubr.msk.f32.mxu1 %vm2842_vm1, %v4238_v20  ;;  %10445 = vmatprep.mubr.msk.f32.mxu0 %vm4369_vm7, %v8839_v28  ;;  %v8956_v15 = vld [vmem:[%s15604_s12 + $0x418] sm:$0xff]  ;;  %v8869_v20 = vld [vmem:[%s15604_s12 + $0x360] sm:$0xff] }
 0x825   :  { %v8957_v28 = vld [vmem:[%s15604_s12 + $0x420] sm:$0xff] }
 0x827   :  { %10370 = vmatmul.mubr.msk.f32.gmra.mxu1 %vm2842_vm1, %v4239_v18  ;;  %10446 = vmatmul.mubr.msk.f32.gmra.mxu0 %vm4369_vm7, %v8840_v21  ;;  %v8870_v18 = vld [vmem:[%s15604_s12 + $0x368] sm:$0xff] }
 0x828   :  { %10372 = vmatprep.mubr.msk.f32.mxu1 %vm2842_vm1, %v4240_v3  ;;  %10448 = vmatprep.mubr.msk.f32.mxu0 %vm4369_vm7, %v8841_v38  ;;  %v8958_v21 = vld [vmem:[%s15604_s12 + $0x428] sm:$0xff]  ;;  %v8871_v3 = vld [vmem:[%s15604_s12 + $0x370] sm:$0xff] }
 0x829   :  { %v8959_v38 = vld [vmem:[%s15604_s12 + $0x430] sm:$0xff] }
 0x82b   :  { %10373 = vmatmul.mubr.msk.f32.gmra.mxu1 %vm2842_vm1, %v4241_v46  ;;  %10449 = vmatmul.mubr.msk.f32.gmra.mxu0 %vm4369_vm7, %v8842_v16  ;;  %v8872_v46 = vld [vmem:[%s15604_s12 + $0x378] sm:$0xff] }
 0x82c   :  { %10375 = vmatprep.mubr.msk.f32.mxu1 %vm2842_vm1, %v4242_v1  ;;  %10451 = vmatprep.mubr.msk.f32.mxu0 %vm4369_vm7, %v8843_v52  ;;  %v8960_v16 = vld [vmem:[%s15604_s12 + $0x438] sm:$0xff]  ;;  %v8873_v1 = vld [vmem:[%s15604_s12 + $0x380] sm:$0xff] }
 0x82d   :  { %v8961_v52 = vld [vmem:[%s15604_s12 + $0x440] sm:$0xff] }
 0x82f   :  { %10376 = vmatmul.mubr.msk.f32.gmra.mxu1 %vm2842_vm1, %v4243_v37  ;;  %10452 = vmatmul.mubr.msk.f32.gmra.mxu0 %vm4369_vm7, %v8844_v39  ;;  %v8874_v37 = vld [vmem:[%s15604_s12 + $0x388] sm:$0xff] }
 0x830   :  { %10378 = vmatprep.mubr.msk.f32.mxu1 %vm2842_vm1, %v4244_v22  ;;  %10454 = vmatprep.mubr.msk.f32.mxu0 %vm4369_vm7, %v8845_v43  ;;  %v8962_v39 = vld [vmem:[%s15604_s12 + $0x448] sm:$0xff]  ;;  %v8875_v22 = vld [vmem:[%s15604_s12 + $0x390] sm:$0xff] }
 0x831   :  { %v8963_v43 = vld [vmem:[%s15604_s12 + $0x450] sm:$0xff] }
 0x833   :  { %10379 = vmatmul.mubr.msk.f32.gmra.mxu1 %vm2842_vm1, %v4245_v47  ;;  %10455 = vmatmul.mubr.msk.f32.gmra.mxu0 %vm4369_vm7, %v8846_v58 }
 0x834   :  { %10381 = vmatprep.mubr.msk.f32.mxu1 %vm2842_vm1, %v4246_v30  ;;  %10457 = vmatprep.mubr.msk.f32.mxu0 %vm4369_vm7, %v8847_v11  ;;  %v8876_v11 = vld [vmem:[%s15604_s12 + $0x398] sm:$0xff] }
 0x837   :  { %10382 = vmatmul.mubr.msk.f32.gmra.mxu1 %vm2842_vm1, %v4247_v56  ;;  %10458 = vmatmul.mubr.msk.f32.gmra.mxu0 %vm4369_vm7, %v8848_v13  ;;  %v8964_v56 = vld [vmem:[%s15604_s12 + $0x458] sm:$0xff] }
 0x838   :  { %10384 = vmatprep.mubr.msk.f32.mxu1 %vm2842_vm1, %v4248_v49  ;;  %10460 = vmatprep.mubr.msk.f32.mxu0 %vm4369_vm7, %v8849_v50  ;;  %v8877_v49 = vld [vmem:[%s15604_s12 + $0x3a0] sm:$0xff] }
 0x839   :  { %v8965_v50 = vld [vmem:[%s15604_s12 + $0x460] sm:$0xff] }
 0x83b   :  { %10385 = vmatmul.mubr.msk.f32.gmra.mxu1 %vm2842_vm1, %v4249_v24  ;;  %10461 = vmatmul.mubr.msk.f32.gmra.mxu0 %vm4369_vm7, %v8850_v34 }
 0x83c   :  { %10387 = vmatprep.mubr.msk.f32.mxu1 %vm2842_vm1, %v4250_v4  ;;  %10463 = vmatprep.mubr.msk.f32.mxu0 %vm4369_vm7, %v8851_v9  ;;  %v8878_v9 = vld [vmem:[%s15604_s12 + $0x3a8] sm:$0xff] }
 0x83f   :  { %10388 = vmatmul.mubr.msk.f32.gmra.mxu1 %vm2842_vm1, %v4251_v12  ;;  %10464 = vmatmul.mubr.msk.f32.gmra.mxu0 %vm4369_vm7, %v8852_v41  ;;  %v8966_v12 = vld [vmem:[%s15604_s12 + $0x468] sm:$0xff] }
 0x840   :  { %10390 = vmatprep.mubr.msk.f32.mxu1 %vm2842_vm1, %v4252_v45  ;;  %10466 = vmatprep.mubr.msk.f32.mxu0 %vm4369_vm7, %v8853_v35  ;;  %v8879_v45 = vld [vmem:[%s15604_s12 + $0x3b0] sm:$0xff] }
 0x841   :  { %v8967_v35 = vld [vmem:[%s15604_s12 + $0x470] sm:$0xff] }
 0x843   :  { %10391 = vmatmul.mubr.msk.f32.gmra.mxu1 %vm2842_vm1, %v4253_v48  ;;  %10467 = vmatmul.mubr.msk.f32.gmra.mxu0 %vm4369_vm7, %v8854_v29 }
 0x844   :  { %10393 = vmatprep.mubr.msk.f32.mxu1 %vm2842_vm1, %v4254_v57  ;;  %10469 = vmatprep.mubr.msk.f32.mxu0 %vm4369_vm7, %v8855_v26  ;;  %v8880_v26 = vld [vmem:[%s15604_s12 + $0x3b8] sm:$0xff] }
 0x847   :  { %10394 = vmatmul.mubr.msk.f32.gmra.mxu1 %vm2842_vm1, %v4255_v42  ;;  %10470 = vmatmul.mubr.msk.f32.gmra.mxu0 %vm4369_vm7, %v8856_v61  ;;  %v8968_v42 = vld [vmem:[%s15604_s12 + $0x478] sm:$0xff] }
 0x848   :  { %10396 = vmatprep.mubr.msk.f32.mxu1 %vm2842_vm1, %v4256_v40  ;;  %10472 = vmatprep.mubr.msk.f32.mxu0 %vm4369_vm7, %v8857_v27  ;;  %v8881_v40 = vld [vmem:[%s15604_s12 + $0x3c0] sm:$0xff] }
 0x849   :  { %v8969_v27 = vld [vmem:[%s15604_s12 + $0x480] sm:$0xff] }
 0x84b   :  { %10397 = vmatmul.mubr.msk.f32.gmra.mxu1 %vm2842_vm1, %v4257_v32  ;;  %10473 = vmatmul.mubr.msk.f32.gmra.mxu0 %vm4369_vm7, %v8858_v55 }
 0x84c   :  { %10399 = vmatprep.mubr.msk.f32.mxu1 %vm2842_vm1, %v4258_v36  ;;  %10475 = vmatprep.mubr.msk.f32.mxu0 %vm4369_vm7, %v8859_v51  ;;  %v8882_v51 = vld [vmem:[%s15604_s12 + $0x3c8] sm:$0xff] }
 0x84f   :  { %10400 = vmatmul.mubr.msk.f32.gmra.mxu1 %vm2842_vm1, %v4259_v53  ;;  %10476 = vmatmul.mubr.msk.f32.gmra.mxu0 %vm4369_vm7, %v8860_v54  ;;  %v8970_v53 = vld [vmem:[%s15604_s12 + $0x488] sm:$0xff] }
 0x850   :  { %10402 = vmatprep.mubr.msk.f32.mxu1 %vm2842_vm1, %v4260_v33  ;;  %10478 = vmatprep.mubr.msk.f32.mxu0 %vm4369_vm7, %v8861_v19  ;;  %v8883_v33 = vld [vmem:[%s15604_s12 + $0x3d0] sm:$0xff] }
 0x851   :  { %v8971_v19 = vld [vmem:[%s15604_s12 + $0x490] sm:$0xff] }
 0x853   :  { %10403 = vmatmul.mubr.msk.f32.gmra.mxu1 %vm2842_vm1, %v4261_v0  ;;  %10479 = vmatmul.mubr.msk.f32.gmra.mxu0 %vm4369_vm7, %v8862_v44 }
 0x854   :  { %10405 = vmatprep.mubr.msk.f32.mxu1 %vm2842_vm1, %v4262_v60  ;;  %10481 = vmatprep.mubr.msk.f32.mxu0 %vm4369_vm7, %v8863_v63  ;;  %v8884_v63 = vld [vmem:[%s15604_s12 + $0x3d8] sm:$0xff] }
 0x857   :  { %10406 = vmatmul.mubr.msk.f32.gmra.mxu1 %vm2842_vm1, %v4263_v17  ;;  %10482 = vmatmul.mubr.msk.f32.gmra.mxu0 %vm4369_vm7, %v8864_v14  ;;  %v8972_v17 = vld [vmem:[%s15604_s12 + $0x498] sm:$0xff] }
 0x858   :  { %10484 = vmatprep.mubr.msk.f32.mxu0 %vm4369_vm7, %v8865_v25  ;;  %10536 = vmatprep.mubr.msk.f32.mxu1 %vm4369_vm7, %v8953_v23  ;;  %v8885_v25 = vld [vmem:[%s15604_s12 + $0x3e0] sm:$0xff] }
 0x859   :  { %v8973_v23 = vld [vmem:[%s15604_s12 + $0x4a0] sm:$0xff] }
 0x85b   :  { %10485 = vmatmul.mubr.msk.f32.gmra.mxu0 %vm4369_vm7, %v8866_v10  ;;  %10537 = vmatmul.mubr.msk.f32.vlgmr.msra.gmra.mxu1 %vm4369_vm7, %v8954_v2 }
 0x85c   :  { %10487 = vmatprep.mubr.msk.f32.mxu0 %vm4369_vm7, %v8867_v59  ;;  %10539 = vmatprep.mubr.msk.f32.mxu1 %vm4369_vm7, %v8955_v31  ;;  %v8886_v31 = vld [vmem:[%s15604_s12 + $0x3e8] sm:$0xff] }
 0x85f   :  { %10488 = vmatmul.mubr.msk.f32.gmra.mxu0 %vm4369_vm7, %v8868_v62  ;;  %10540 = vmatmul.mubr.msk.f32.gmra.mxu1 %vm4369_vm7, %v8956_v15  ;;  %v8974_v62 = vld [vmem:[%s15604_s12 + $0x4a8] sm:$0xff] }
 0x860   :  { %10490 = vmatprep.mubr.msk.f32.mxu0 %vm4369_vm7, %v8869_v20  ;;  %10542 = vmatprep.mubr.msk.f32.mxu1 %vm4369_vm7, %v8957_v28  ;;  %v8887_v20 = vld [vmem:[%s15604_s12 + $0x3f0] sm:$0xff] }
 0x861   :  { %v8975_v28 = vld [vmem:[%s15604_s12 + $0x4b0] sm:$0xff] }
 0x863   :  { %10491 = vmatmul.mubr.msk.f32.gmra.mxu0 %vm4369_vm7, %v8870_v18  ;;  %10543 = vmatmul.mubr.msk.f32.gmra.mxu1 %vm4369_vm7, %v8958_v21 }
 0x864   :  { %10493 = vmatprep.mubr.msk.f32.mxu0 %vm4369_vm7, %v8871_v3  ;;  %10545 = vmatprep.mubr.msk.f32.mxu1 %vm4369_vm7, %v8959_v38  ;;  %v8888_v3 = vld [vmem:[%s15604_s12 + $0x3f8] sm:$0xff] }
 0x865   :  { %v8976_v38 = vld [vmem:[%s15604_s12 + $0x4b8] sm:$0xff] }
 0x867   :  { %10494 = vmatmul.mubr.msk.f32.gmra.mxu0 %vm4369_vm7, %v8872_v46  ;;  %10546 = vmatmul.mubr.msk.f32.gmra.mxu1 %vm4369_vm7, %v8960_v16  ;;  %v8977_v16 = vld [vmem:[%s15604_s12 + $0x4c0] sm:$0xff] }
 0x868   :  { %10496 = vmatprep.mubr.msk.f32.mxu0 %vm4369_vm7, %v8873_v1  ;;  %10548 = vmatprep.mubr.msk.f32.mxu1 %vm4369_vm7, %v8961_v52  ;;  %v9081_v1 = vld [vmem:[%s15604_s12 + $0x600] sm:$0xff] }
 0x869   :  { %v13992_v47 = vpop.f32.mrf.mxu0  ;;  %v13994_v58 = vpop.f32.mrf.mxu1 }
 0x86b   :  { %10497 = vmatmul.mubr.msk.f32.gmra.mxu0 %vm4369_vm7, %v8874_v37  ;;  %10549 = vmatmul.mubr.msk.f32.gmra.mxu1 %vm4369_vm7, %v8962_v39  ;;  %v13998_v30 = vpop.f32.mrf.mxu0  ;;  %v14008_v13 = vpop.f32.mrf.mxu1 }
 0x86c   :  { %10499 = vmatprep.mubr.msk.f32.mxu0 %vm4369_vm7, %v8875_v22  ;;  %10551 = vmatprep.mubr.msk.f32.mxu1 %vm4369_vm7, %v8963_v43  ;;  %v8978_v22 = vld [vmem:[%s15604_s12 + $0x4c8] sm:$0xff] }
 0x86d   :  { %v14016_v24 = vpop.f32.mrf.mxu0  ;;  %v14018_v34 = vpop.f32.mrf.mxu1  ;;  %v9082_v43 = vld [vmem:[%s15604_s12 + $0x608] sm:$0xff] }
 0x86f   :  { %10500 = vmatmul.mubr.msk.f32.gmra.mxu0 %vm4369_vm7, %v8876_v11  ;;  %10552 = vmatmul.mubr.msk.f32.gmra.mxu1 %vm4369_vm7, %v8964_v56  ;;  %v14022_v4 = vpop.f32.mrf.mxu0  ;;  %v14032_v41 = vpop.f32.mrf.mxu1  ;;  %v8979_v11 = vld [vmem:[%s15604_s12 + $0x4d0] sm:$0xff] }
 0x870   :  { %10502 = vmatprep.mubr.msk.f32.mxu0 %vm4369_vm7, %v8877_v49  ;;  %10554 = vmatprep.mubr.msk.f32.mxu1 %vm4369_vm7, %v8965_v50  ;;  %v9083_v56 = vld [vmem:[%s15604_s12 + $0x610] sm:$0xff] }
 0x871   :  { %v14040_v48 = vpop.f32.mrf.mxu0  ;;  %v14042_v29 = vpop.f32.mrf.mxu1 }
 0x873   :  { %10503 = vmatmul.mubr.msk.f32.gmra.mxu0 %vm4369_vm7, %v8878_v9  ;;  %10555 = vmatmul.mubr.msk.f32.gmra.mxu1 %vm4369_vm7, %v8966_v12  ;;  %v14046_v57 = vpop.f32.mrf.mxu0  ;;  %v14056_v61 = vpop.f32.mrf.mxu1  ;;  %v8980_v9 = vld [vmem:[%s15604_s12 + $0x4d8] sm:$0xff] }
 0x874   :  { %10505 = vmatprep.mubr.msk.f32.mxu0 %vm4369_vm7, %v8879_v45  ;;  %10557 = vmatprep.mubr.msk.f32.mxu1 %vm4369_vm7, %v8967_v35  ;;  %v9084_v12 = vld [vmem:[%s15604_s12 + $0x618] sm:$0xff] }
 0x875   :  { %v14064_v32 = vpop.f32.mrf.mxu0  ;;  %v14066_v55 = vpop.f32.mrf.mxu1 }
 0x876   :  { %15646 = vst [vmem:[#allocation9_spill] sm:$0xff] %v14066_v55 }
 0x877   :  { %10506 = vmatmul.mubr.msk.f32.gmra.mxu0 %vm4369_vm7, %v8880_v26  ;;  %10558 = vmatmul.mubr.msk.f32.gmra.mxu1 %vm4369_vm7, %v8968_v42  ;;  %v14070_v36 = vpop.f32.mrf.mxu0  ;;  %v14080_v54 = vpop.f32.mrf.mxu1  ;;  %v8981_v26 = vld [vmem:[%s15604_s12 + $0x4e0] sm:$0xff] }
 0x878   :  { %10508 = vmatprep.mubr.msk.f32.mxu0 %vm4369_vm7, %v8881_v40  ;;  %10560 = vmatprep.mubr.msk.f32.mxu1 %vm4369_vm7, %v8969_v27  ;;  %15647 = vst [vmem:[#allocation10_spill] sm:$0xff] %v14080_v54  ;;  %v9085_v42 = vld [vmem:[%s15604_s12 + $0x620] sm:$0xff]  ;;  %v9010_v54 = vld [vmem:[%s15604_s12 + $0x5c8] sm:$0xff] }
 0x879   :  { %v14088_v0 = vpop.f32.mrf.mxu0  ;;  %v14090_v44 = vpop.f32.mrf.mxu1 }
 0x87a   :  { %15648 = vst [vmem:[#allocation11_spill] sm:$0xff] %v14090_v44 }
 0x87b   :  { %10509 = vmatmul.mubr.msk.f32.gmra.mxu0 %vm4369_vm7, %v8882_v51  ;;  %10561 = vmatmul.mubr.msk.f32.gmra.mxu1 %vm4369_vm7, %v8970_v53  ;;  %v14094_v60 = vpop.f32.mrf.mxu0  ;;  %v14104_v14 = vpop.f32.mrf.mxu1  ;;  %v8982_v51 = vld [vmem:[%s15604_s12 + $0x4e8] sm:$0xff] }
 0x87c   :  { %10511 = vmatprep.mubr.msk.f32.mxu0 %vm4369_vm7, %v8883_v33  ;;  %10563 = vmatprep.mubr.msk.f32.mxu1 %vm4369_vm7, %v8971_v19  ;;  %15649 = vst [vmem:[#allocation12_spill] sm:$0xff] %v14104_v14  ;;  %v9086_v53 = vld [vmem:[%s15604_s12 + $0x628] sm:$0xff]  ;;  %v8983_v19 = vld [vmem:[%s15604_s12 + $0x4f0] sm:$0xff] }
 0x87d   :  { %v14112_v10 = vpop.f32.mrf.mxu0  ;;  %v14114_v2 = vpop.f32.mrf.mxu1 }
 0x87e   :  { %15650 = vst [vmem:[#allocation13_spill] sm:$0xff] %v14114_v2 }
 0x87f   :  { %10512 = vmatmul.mubr.msk.f32.gmra.mxu0 %vm4369_vm7, %v8884_v63  ;;  %10564 = vmatmul.mubr.msk.f32.gmra.mxu1 %vm4369_vm7, %v8972_v17  ;;  %v14118_v59 = vpop.f32.mrf.mxu0  ;;  %v14128_v15 = vpop.f32.mrf.mxu1  ;;  %v9087_v63 = vld [vmem:[%s15604_s12 + $0x630] sm:$0xff] }
 0x880   :  { %10514 = vmatprep.mubr.msk.f32.mxu0 %vm4369_vm7, %v8885_v25  ;;  %10566 = vmatprep.mubr.msk.f32.mxu1 %vm4369_vm7, %v8973_v23  ;;  %15651 = vst [vmem:[#allocation14_spill] sm:$0xff] %v14128_v15  ;;  %v9110_v15 = vld [vmem:[%s15604_s12 + $0x6e8] sm:$0xff] }
 0x882   :  { %v14136_v18 = vpop.f32.mrf.mxu0  ;;  %v14138_v21 = vpop.f32.mrf.mxu1 }
 0x883   :  { %15652 = vst [vmem:[#allocation15_spill] sm:$0xff] %v14138_v21  ;;  %10515 = vmatmul.mubr.msk.f32.gmra.mxu0 %vm4369_vm7, %v8886_v31  ;;  %10567 = vmatmul.mubr.msk.f32.gmra.mxu1 %vm4369_vm7, %v8974_v62  ;;  %v8984_v31 = vld [vmem:[%s15604_s12 + $0x4f8] sm:$0xff]  ;;  %v9006_v21 = vld [vmem:[%s15604_s12 + $0x5a8] sm:$0xff] }
 0x884   :  { %10517 = vmatprep.mubr.msk.f32.mxu0 %vm4369_vm7, %v8887_v20  ;;  %10569 = vmatprep.mubr.msk.f32.mxu1 %vm4369_vm7, %v8975_v28  ;;  %v14150_v46 = vpop.f32.mrf.mxu0  ;;  %v14158_v52 = vpop.f32.mrf.mxu1  ;;  %v9088_v62 = vld [vmem:[%s15604_s12 + $0x638] sm:$0xff]  ;;  %v8985_v28 = vld [vmem:[%s15604_s12 + $0x500] sm:$0xff] }
 0x885   :  { %15653 = vst [vmem:[#allocation16_spill] sm:$0xff] %v14158_v52 }
 0x887   :  { %10518 = vmatmul.mubr.msk.f32.gmra.mxu0 %vm4369_vm7, %v8888_v3  ;;  %10570 = vmatmul.mubr.msk.f32.gmra.mxu1 %vm4369_vm7, %v8976_v38  ;;  %v14162_v37 = vpop.f32.mrf.mxu0  ;;  %v14164_v39 = vpop.f32.mrf.mxu1  ;;  %v9089_v3 = vld [vmem:[%s15604_s12 + $0x640] sm:$0xff] }
 0x888   :  { %15654 = vst [vmem:[#allocation17_spill] sm:$0xff] %v14164_v39  ;;  %10572 = vmatprep.mubr.msk.f32.mxu1 %vm4369_vm7, %v8977_v16  ;;  %10648 = vmatprep.mubr.msk.f32.mxu0 %vm4369_vm7, %v9081_v1  ;;  %v9108_v39 = vld [vmem:[%s15604_s12 + $0x6d8] sm:$0xff] }
 0x889   :  { %v14180_v49 = vpop.f32.mrf.mxu0  ;;  %v14182_v50 = vpop.f32.mrf.mxu1 }
 0x88a   :  { %15655 = vst [vmem:[#allocation18_spill] sm:$0xff] %v14182_v50  ;;  %v9004_v50 = vld [vmem:[%s15604_s12 + $0x598] sm:$0xff] }
 0x88b   :  { %10573 = vmatmul.mubr.msk.f32.gmra.mxu1 %vm4369_vm7, %v8978_v22  ;;  %10649 = vmatmul.mubr.msk.f32.vlgmr.msra.gmra.mxu0 %vm4369_vm7, %v9082_v43  ;;  %v8986_v22 = vld [vmem:[%s15604_s12 + $0x508] sm:$0xff] }
 0x88c   :  { %10575 = vmatprep.mubr.msk.f32.mxu1 %vm4369_vm7, %v8979_v11  ;;  %10651 = vmatprep.mubr.msk.f32.mxu0 %vm4369_vm7, %v9083_v56  ;;  %v14194_v45 = vpop.f32.mrf.mxu0  ;;  %v14196_v35 = vpop.f32.mrf.mxu1  ;;  %v9090_v43 = vld [vmem:[%s15604_s12 + $0x648] sm:$0xff] }
 0x88d   :  { %15656 = vst [vmem:[#allocation19_spill] sm:$0xff] %v14196_v35 }
 0x88e   :  { %v14204_v40 = vpop.f32.mrf.mxu0  ;;  %v14208_v27 = vpop.f32.mrf.mxu1 }
 0x88f   :  { %10576 = vmatmul.mubr.msk.f32.gmra.mxu1 %vm4369_vm7, %v8980_v9  ;;  %10652 = vmatmul.mubr.msk.f32.gmra.mxu0 %vm4369_vm7, %v9084_v12  ;;  %15657 = vst [vmem:[#allocation20_spill] sm:$0xff] %v14208_v27  ;;  %v8987_v9 = vld [vmem:[%s15604_s12 + $0x510] sm:$0xff] }
 0x890   :  { %10578 = vmatprep.mubr.msk.f32.mxu1 %vm4369_vm7, %v8981_v26  ;;  %10654 = vmatprep.mubr.msk.f32.mxu0 %vm4369_vm7, %v9085_v42  ;;  %v14218_v33 = vpop.f32.mrf.mxu0  ;;  %v14226_v17 = vpop.f32.mrf.mxu1  ;;  %v9091_v12 = vld [vmem:[%s15604_s12 + $0x650] sm:$0xff] }
 0x891   :  { %15658 = vst [vmem:[#allocation21_spill] sm:$0xff] %v14226_v17 }
 0x892   :  { %v14228_v25 = vpop.f32.mrf.mxu0  ;;  %v14232_v23 = vpop.f32.mrf.mxu1 }
 0x893   :  { %10579 = vmatmul.mubr.msk.f32.gmra.mxu1 %vm4369_vm7, %v8982_v51  ;;  %10655 = vmatmul.mubr.msk.f32.gmra.mxu0 %vm4369_vm7, %v9086_v53  ;;  %15659 = vst [vmem:[#allocation22_spill] sm:$0xff] %v14232_v23  ;;  %v9092_v53 = vld [vmem:[%s15604_s12 + $0x658] sm:$0xff] }
 0x894   :  { %10581 = vmatprep.mubr.msk.f32.mxu1 %vm4369_vm7, %v8983_v19  ;;  %10657 = vmatprep.mubr.msk.f32.mxu0 %vm4369_vm7, %v9087_v63  ;;  %v14242_v20 = vpop.f32.mrf.mxu0  ;;  %v10314_v38 = vpop.f32.mrf.mxu1 }
 0x895   :  { %v14251_v16 = vadd.f32 %v10314_v38, %v13992_v47 }
 0x896   :  { %v14253_v1 = vpop.f32.mrf.mxu0  ;;  %v5209_v47 = vpop.f32.mrf.mxu1 }
 0x897   :  { %10582 = vmatmul.mubr.msk.f32.gmra.mxu1 %vm4369_vm7, %v8984_v31  ;;  %10658 = vmatmul.mubr.msk.f32.gmra.mxu0 %vm4369_vm7, %v9088_v62  ;;  %v14268_v56 = vadd.f32 %v5209_v47, %v13998_v30  ;;  %v8988_v30 = vld [vmem:[%s15604_s12 + $0x518] sm:$0xff]  ;;  %v9093_v62 = vld [vmem:[%s15604_s12 + $0x660] sm:$0xff] }
 0x898   :  { %10584 = vmatprep.mubr.msk.f32.mxu1 %vm4369_vm7, %v8985_v28  ;;  %10660 = vmatprep.mubr.msk.f32.mxu0 %vm4369_vm7, %v9089_v3  ;;  %v14265_v11 = vpop.f32.mrf.mxu0  ;;  %v10317_v26 = vpop.f32.mrf.mxu1 }
 0x899   :  { %v14281_v51 = vadd.f32 %v10317_v26, %v14016_v24  ;;  %v8989_v24 = vld [vmem:[%s15604_s12 + $0x520] sm:$0xff] }
 0x89a   :  { %v14276_v42 = vpop.f32.mrf.mxu0  ;;  %v5219_v19 = vpop.f32.mrf.mxu1 }
 0x89b   :  { %10585 = vmatmul.mubr.msk.f32.gmra.mxu1 %vm4369_vm7, %v8986_v22  ;;  %10661 = vmatmul.mubr.msk.f32.gmra.mxu0 %vm4369_vm7, %v9090_v43  ;;  %v14294_v31 = vadd.f32 %v5219_v19, %v14022_v4  ;;  %v8990_v4 = vld [vmem:[%s15604_s12 + $0x528] sm:$0xff]  ;;  %v9096_v19 = vld [vmem:[%s15604_s12 + $0x678] sm:$0xff] }
 0x89c   :  { %10587 = vmatprep.mubr.msk.f32.mxu1 %vm4369_vm7, %v8987_v9  ;;  %10663 = vmatprep.mubr.msk.f32.mxu0 %vm4369_vm7, %v9091_v12  ;;  %v14291_v63 = vpop.f32.mrf.mxu0  ;;  %v10320_v28 = vpop.f32.mrf.mxu1  ;;  %v9094_v22 = vld [vmem:[%s15604_s12 + $0x668] sm:$0xff]  ;;  %v9095_v12 = vld [vmem:[%s15604_s12 + $0x670] sm:$0xff] }
 0x89d   :  { %v14307_v38 = vadd.f32 %v10320_v28, %v14040_v48  ;;  %v8991_v48 = vld [vmem:[%s15604_s12 + $0x530] sm:$0xff] }
 0x89e   :  { %v14302_v3 = vpop.f32.mrf.mxu0  ;;  %v5229_v43 = vpop.f32.mrf.mxu1 }
 0x89f   :  { %10588 = vmatmul.mubr.msk.f32.gmra.mxu1 %vm4369_vm7, %v8988_v30  ;;  %10664 = vmatmul.mubr.msk.f32.gmra.mxu0 %vm4369_vm7, %v9092_v53  ;;  %v14320_v9 = vadd.f32 %v5229_v43, %v14046_v57  ;;  %v8992_v57 = vld [vmem:[%s15604_s12 + $0x538] sm:$0xff] }
 0x8a0   :  { %10590 = vmatprep.mubr.msk.f32.mxu1 %vm4369_vm7, %v8989_v24  ;;  %10666 = vmatprep.mubr.msk.f32.mxu0 %vm4369_vm7, %v9093_v62  ;;  %v14317_v47 = vpop.f32.mrf.mxu0  ;;  %v10323_v26 = vpop.f32.mrf.mxu1 }
 0x8a1   :  { %v14333_v53 = vadd.f32 %v10323_v26, %v14064_v32  ;;  %v8993_v32 = vld [vmem:[%s15604_s12 + $0x540] sm:$0xff] }
 0x8a2   :  { %v14328_v30 = vpop.f32.mrf.mxu0  ;;  %v5239_v24 = vpop.f32.mrf.mxu1 }
 0x8a3   :  { %10591 = vmatmul.mubr.msk.f32.gmra.mxu1 %vm4369_vm7, %v8990_v4  ;;  %10667 = vmatmul.mubr.msk.f32.gmra.mxu0 %vm4369_vm7, %v9094_v22  ;;  %v14346_v28 = vadd.f32 %v5239_v24, %v14070_v36  ;;  %v9097_v4 = vld [vmem:[%s15604_s12 + $0x680] sm:$0xff]  ;;  %v8994_v36 = vld [vmem:[%s15604_s12 + $0x548] sm:$0xff] }
 0x8a4   :  { %10593 = vmatprep.mubr.msk.f32.mxu1 %vm4369_vm7, %v8991_v48  ;;  %10669 = vmatprep.mubr.msk.f32.mxu0 %vm4369_vm7, %v9095_v12  ;;  %v14343_v62 = vpop.f32.mrf.mxu0  ;;  %v10326_v22 = vpop.f32.mrf.mxu1  ;;  %v9098_v12 = vld [vmem:[%s15604_s12 + $0x688] sm:$0xff] }
 0x8a5   :  { %v14359_v48 = vadd.f32 %v10326_v22, %v14088_v0  ;;  %v8995_v0 = vld [vmem:[%s15604_s12 + $0x550] sm:$0xff] }
 0x8a6   :  { %v14354_v43 = vpop.f32.mrf.mxu0  ;;  %v5249_v26 = vpop.f32.mrf.mxu1 }
 0x8a7   :  { %10594 = vmatmul.mubr.msk.f32.gmra.mxu1 %vm4369_vm7, %v8992_v57  ;;  %10670 = vmatmul.mubr.msk.f32.gmra.mxu0 %vm4369_vm7, %v9096_v19  ;;  %v14372_v57 = vadd.f32 %v5249_v26, %v14094_v60  ;;  %v9099_v19 = vld [vmem:[%s15604_s12 + $0x690] sm:$0xff]  ;;  %v8996_v60 = vld [vmem:[%s15604_s12 + $0x558] sm:$0xff] }
 0x8a8   :  { %10596 = vmatprep.mubr.msk.f32.mxu1 %vm4369_vm7, %v8993_v32  ;;  %10672 = vmatprep.mubr.msk.f32.mxu0 %vm4369_vm7, %v9097_v4  ;;  %v14369_v24 = vpop.f32.mrf.mxu0  ;;  %v10329_v32 = vpop.f32.mrf.mxu1  ;;  %v9100_v26 = vld [vmem:[%s15604_s12 + $0x698] sm:$0xff] }
 0x8a9   :  { %v14385_v22 = vadd.f32 %v10329_v32, %v14112_v10  ;;  %v8997_v10 = vld [vmem:[%s15604_s12 + $0x560] sm:$0xff] }
 0x8aa   :  { %v14380_v4 = vpop.f32.mrf.mxu0  ;;  %v5259_v6 = vpop.f32.mrf.mxu1 }
 0x8ab   :  { %10597 = vmatmul.mubr.msk.f32.gmra.mxu1 %vm4369_vm7, %v8994_v36  ;;  %10673 = vmatmul.mubr.msk.f32.gmra.mxu0 %vm4369_vm7, %v9098_v12  ;;  %v14398_v36 = vadd.f32 %v5259_v6, %v14118_v59  ;;  %v9101_v12 = vld [vmem:[%s15604_s12 + $0x6a0] sm:$0xff]  ;;  %v8998_v6 = vld [vmem:[%s15604_s12 + $0x568] sm:$0xff] }
 0x8ac   :  { %10599 = vmatprep.mubr.msk.f32.mxu1 %vm4369_vm7, %v8995_v0  ;;  %10675 = vmatprep.mubr.msk.f32.mxu0 %vm4369_vm7, %v9099_v19  ;;  %v14395_v7 = vpop.f32.mrf.mxu0  ;;  %v10332_v0 = vpop.f32.mrf.mxu1  ;;  %v9102_v59 = vld [vmem:[%s15604_s12 + $0x6a8] sm:$0xff] }
 0x8ad   :  { %v14411_v32 = vadd.f32 %v10332_v0, %v14136_v18  ;;  %v8999_v18 = vld [vmem:[%s15604_s12 + $0x570] sm:$0xff] }
 0x8ae   :  { %v14406_v19 = vpop.f32.mrf.mxu0  ;;  %v5269_v5 = vpop.f32.mrf.mxu1 }
 0x8af   :  { %10600 = vmatmul.mubr.msk.f32.gmra.mxu1 %vm4369_vm7, %v8996_v60  ;;  %10676 = vmatmul.mubr.msk.f32.gmra.mxu0 %vm4369_vm7, %v9100_v26  ;;  %v14424_v60 = vadd.f32 %v5269_v5, %v14150_v46  ;;  %v9103_v26 = vld [vmem:[%s15604_s12 + $0x6b0] sm:$0xff]  ;;  %v9000_v5 = vld [vmem:[%s15604_s12 + $0x578] sm:$0xff] }
 0x8b0   :  { %10602 = vmatprep.mubr.msk.f32.mxu1 %vm4369_vm7, %v8997_v10  ;;  %10678 = vmatprep.mubr.msk.f32.mxu0 %vm4369_vm7, %v9101_v12  ;;  %v14421_v23 = vpop.f32.mrf.mxu0  ;;  %v10335_v10 = vpop.f32.mrf.mxu1  ;;  %v9104_v46 = vld [vmem:[%s15604_s12 + $0x6b8] sm:$0xff] }
 0x8b1   :  { %v14437_v0 = vadd.f32 %v10335_v10, %v14162_v37  ;;  %v9001_v37 = vld [vmem:[%s15604_s12 + $0x580] sm:$0xff] }
 0x8b2   :  { %v14432_v12 = vpop.f32.mrf.mxu0  ;;  %v5279_v17 = vpop.f32.mrf.mxu1 }
 0x8b3   :  { %10603 = vmatmul.mubr.msk.f32.gmra.mxu1 %vm4369_vm7, %v8998_v6  ;;  %10679 = vmatmul.mubr.msk.f32.gmra.mxu0 %vm4369_vm7, %v9102_v59  ;;  %v14450_v6 = vadd.f32 %v5279_v17, %v14180_v49  ;;  %v9105_v59 = vld [vmem:[%s15604_s12 + $0x6c0] sm:$0xff]  ;;  %v9002_v49 = vld [vmem:[%s15604_s12 + $0x588] sm:$0xff] }
 0x8b4   :  { %10605 = vmatprep.mubr.msk.f32.mxu1 %vm4369_vm7, %v8999_v18  ;;  %10681 = vmatprep.mubr.msk.f32.mxu0 %vm4369_vm7, %v9103_v26  ;;  %v14447_v27 = vpop.f32.mrf.mxu0  ;;  %v10338_v18 = vpop.f32.mrf.mxu1  ;;  %v9106_v17 = vld [vmem:[%s15604_s12 + $0x6c8] sm:$0xff] }
 0x8b5   :  { %v14463_v10 = vadd.f32 %v10338_v18, %v14194_v45  ;;  %v9003_v45 = vld [vmem:[%s15604_s12 + $0x590] sm:$0xff] }
 0x8b6   :  { %v14458_v26 = vpop.f32.mrf.mxu0  ;;  %v14473_v35 = vpop.f32.mrf.mxu1 }
 0x8b7   :  { %10606 = vmatmul.mubr.msk.f32.gmra.mxu1 %vm4369_vm7, %v9000_v5  ;;  %10682 = vmatmul.mubr.msk.f32.gmra.mxu0 %vm4369_vm7, %v9104_v46  ;;  %v9107_v46 = vld [vmem:[%s15604_s12 + $0x6d0] sm:$0xff] }
 0x8b8   :  { %10608 = vmatprep.mubr.msk.f32.mxu1 %vm4369_vm7, %v9001_v37  ;;  %10684 = vmatprep.mubr.msk.f32.mxu0 %vm4369_vm7, %v9105_v59  ;;  %v14475_v5 = vpop.f32.mrf.mxu0  ;;  %v10341_v37 = vpop.f32.mrf.mxu1 }
 0x8b9   :  { %v14488_v18 = vadd.f32 %v10341_v37, %v14218_v33  ;;  %v9005_v33 = vld [vmem:[%s15604_s12 + $0x5a0] sm:$0xff] }
 0x8ba   :  { %v14483_v59 = vpop.f32.mrf.mxu0  ;;  %v14498_v52 = vpop.f32.mrf.mxu1 }
 0x8bb   :  { %10609 = vmatmul.mubr.msk.f32.gmra.mxu1 %vm4369_vm7, %v9002_v49  ;;  %10685 = vmatmul.mubr.msk.f32.gmra.mxu0 %vm4369_vm7, %v9106_v17  ;;  %v9109_v17 = vld [vmem:[%s15604_s12 + $0x6e0] sm:$0xff] }
 0x8bc   :  { %10611 = vmatprep.mubr.msk.f32.mxu1 %vm4369_vm7, %v9003_v45  ;;  %10687 = vmatprep.mubr.msk.f32.mxu0 %vm4369_vm7, %v9107_v46  ;;  %v14500_v49 = vpop.f32.mrf.mxu0  ;;  %v10344_v45 = vpop.f32.mrf.mxu1 }
 0x8bd   :  { %v14513_v37 = vadd.f32 %v10344_v45, %v14242_v20  ;;  %v9111_v20 = vld [vmem:[%s15604_s12 + $0x6f0] sm:$0xff] }
 0x8be   :  { %v14508_v46 = vpop.f32.mrf.mxu0  ;;  %v5309_v2 = vpop.f32.mrf.mxu1 }
 0x8bf   :  { %10612 = vmatmul.mubr.msk.f32.gmra.mxu1 %vm4369_vm7, %v9004_v50  ;;  %10688 = vmatmul.mubr.msk.f32.gmra.mxu0 %vm4369_vm7, %v9108_v39  ;;  %v14526_v39 = vadd.f32 %v5309_v2, %v14253_v1  ;;  %v9007_v50 = vld [vmem:[%s15604_s12 + $0x5b0] sm:$0xff]  ;;  %v9008_v2 = vld [vmem:[%s15604_s12 + $0x5b8] sm:$0xff] }
 0x8c0   :  { %10614 = vmatprep.mubr.msk.f32.mxu1 %vm4369_vm7, %v9005_v33  ;;  %10690 = vmatprep.mubr.msk.f32.mxu0 %vm4369_vm7, %v9109_v17  ;;  %v14523_v14 = vpop.f32.mrf.mxu0  ;;  %v9112_v1 = vld [vmem:[%s15604_s12 + $0x6f8] sm:$0xff] }
 0x8c1   :  { %v10347_v33 = vpop.f32.mrf.mxu1 }
 0x8c2   :  { %v14534_v17 = vpop.f32.mrf.mxu0  ;;  %v14539_v45 = vadd.f32 %v10347_v33, %v14265_v11  ;;  %v9113_v11 = vld [vmem:[%s15604_s12 + $0x700] sm:$0xff] }
 0x8c3   :  { %10615 = vmatmul.mubr.msk.f32.gmra.mxu1 %vm4369_vm7, %v9006_v21  ;;  %10691 = vmatmul.mubr.msk.f32.gmra.mxu0 %vm4369_vm7, %v9110_v15  ;;  %v5319_v44 = vpop.f32.mrf.mxu1  ;;  %v9009_v15 = vld [vmem:[%s15604_s12 + $0x5c0] sm:$0xff] }
 0x8c4   :  { %10617 = vmatprep.mubr.msk.f32.mxu1 %vm4369_vm7, %v9007_v50  ;;  %10693 = vmatprep.mubr.msk.f32.mxu0 %vm4369_vm7, %v9111_v20  ;;  %v14550_v21 = vadd.f32 %v5319_v44, %v14276_v42 }
 0x8c5   :  { %v10426_v50 = vpop.f32.mrf.mxu0 }
 0x8c6   :  { %v10350_v20 = vpop.f32.mrf.mxu1  ;;  %v14559_v33 = vadd.f32 %v10426_v50, %v14251_v16  ;;  %v9114_v16 = vld [vmem:[%s15604_s12 + $0x708] sm:$0xff] }
 0x8c7   :  { %10618 = vmatmul.mubr.msk.f32.gmra.mxu1 %vm4369_vm7, %v9008_v2  ;;  %10694 = vmatmul.mubr.msk.f32.gmra.mxu0 %vm4369_vm7, %v9112_v1  ;;  %v14564_v44 = vadd.f32 %v10350_v20, %v14291_v63  ;;  %v5907_v42 = vpop.f32.mrf.mxu0  ;;  %v9011_v1 = vld [vmem:[%s15604_s12 + $0x5d0] sm:$0xff] }
 0x8c8   :  { %10620 = vmatprep.mubr.msk.f32.mxu1 %vm4369_vm7, %v9009_v15  ;;  %10696 = vmatprep.mubr.msk.f32.mxu0 %vm4369_vm7, %v9113_v11  ;;  %v5329_v50 = vpop.f32.mrf.mxu1  ;;  %v14575_v2 = vadd.f32 %v5907_v42, %v14268_v56  ;;  %v9115_v15 = vld [vmem:[%s15604_s12 + $0x710] sm:$0xff]  ;;  %v9116_v11 = vld [vmem:[%s15604_s12 + $0x718] sm:$0xff] }
 0x8c9   :  { %v14578_v63 = vadd.f32 %v5329_v50, %v14302_v3  ;;  %v9012_v3 = vld [vmem:[%s15604_s12 + $0x5d8] sm:$0xff] }
 0x8cb   :  { %10621 = vmatmul.mubr.msk.f32.gmra.mxu1 %vm4369_vm7, %v9010_v54  ;;  %10697 = vmatmul.mubr.msk.f32.gmra.mxu0 %vm4369_vm7, %v9114_v16  ;;  %v9013_v54 = vld [vmem:[%s15604_s12 + $0x5e0] sm:$0xff] }
 0x8cc   :  { %10623 = vmatprep.mubr.msk.f32.mxu1 %vm4369_vm7, %v9011_v1  ;;  %10699 = vmatprep.mubr.msk.f32.mxu0 %vm4369_vm7, %v9115_v15  ;;  %v10353_v56 = vpop.f32.mrf.mxu1  ;;  %v9117_v16 = vld [vmem:[%s15604_s12 + $0x720] sm:$0xff] }
 0x8cd   :  { %v14597_v20 = vadd.f32 %v10353_v56, %v14317_v47  ;;  %v10429_v42 = vpop.f32.mrf.mxu0 }
 0x8ce   :  { %v14606_v50 = vadd.f32 %v10429_v42, %v14281_v51  ;;  %v5339_v1 = vpop.f32.mrf.mxu1  ;;  %v9014_v51 = vld [vmem:[%s15604_s12 + $0x5e8] sm:$0xff] }
 0x8cf   :  { %10624 = vmatmul.mubr.msk.f32.gmra.mxu1 %vm4369_vm7, %v9012_v3  ;;  %10700 = vmatmul.mubr.msk.f32.gmra.mxu0 %vm4369_vm7, %v9116_v11  ;;  %v14611_v47 = vadd.f32 %v5339_v1, %v14328_v30  ;;  %v5917_v15 = vpop.f32.mrf.mxu0  ;;  %v9118_v3 = vld [vmem:[%s15604_s12 + $0x728] sm:$0xff]  ;;  %v9015_v30 = vld [vmem:[%s15604_s12 + $0x5f0] sm:$0xff] }
 0x8d0   :  { %v14614_v56 = vadd.f32 %v5917_v15, %v14294_v31  ;;  %10626 = vmatprep.mubr.msk.f32.mxu1 %vm4369_vm7, %v9013_v54  ;;  %10702 = vmatprep.mubr.msk.f32.mxu0 %vm4369_vm7, %v9117_v16  ;;  %v9119_v31 = vld [vmem:[%s15604_s12 + $0x730] sm:$0xff] }
 0x8d1   :  { %v10356_v11 = vpop.f32.mrf.mxu1 }
 0x8d2   :  { %v14631_v42 = vadd.f32 %v10356_v11, %v14343_v62  ;;  %v10432_v54 = vpop.f32.mrf.mxu0  ;;  %v9016_v62 = vld [vmem:[%s15604_s12 + $0x5f8] sm:$0xff] }
 0x8d3   :  { %v14634_v16 = vadd.f32 %v10432_v54, %v14307_v38  ;;  %10627 = vmatmul.mubr.msk.f32.gmra.mxu1 %vm4369_vm7, %v9014_v51  ;;  %10703 = vmatmul.mubr.msk.f32.gmra.mxu0 %vm4369_vm7, %v9118_v3  ;;  %v5349_v1 = vpop.f32.mrf.mxu1  ;;  %v9120_v38 = vld [vmem:[%s15604_s12 + $0x738] sm:$0xff] }
 0x8d4   :  { %v14639_v15 = vadd.f32 %v5349_v1, %v14354_v43  ;;  %v5927_v55 = vpop.f32.mrf.mxu0  ;;  %10629 = vmatprep.mubr.msk.f32.mxu1 %vm4369_vm7, %v9015_v30  ;;  %10705 = vmatprep.mubr.msk.f32.mxu0 %vm4369_vm7, %v9119_v31  ;;  %v9121_v43 = vld [vmem:[%s15604_s12 + $0x740] sm:$0xff]  ;;  %v9123_v1 = vld [vmem:[%s15604_s12 + $0x750] sm:$0xff] }
 0x8d5   :  { %v14650_v51 = vadd.f32 %v5927_v55, %v14320_v9  ;;  %v9122_v55 = vld [vmem:[%s15604_s12 + $0x748] sm:$0xff] }
 0x8d6   :  { %v10359_v3 = vpop.f32.mrf.mxu1 }
 0x8d7   :  { %v14656_v11 = vadd.f32 %v10359_v3, %v14369_v24  ;;  %v10435_v30 = vpop.f32.mrf.mxu0  ;;  %10630 = vmatmul.mubr.msk.f32.gmra.mxu1 %vm4369_vm7, %v9016_v62  ;;  %10706 = vmatmul.mubr.msk.f32.gmra.mxu0 %vm4369_vm7, %v9120_v38 }
 0x8d8   :  { %v14661_v31 = vadd.f32 %v10435_v30, %v14333_v53  ;;  %v5359_v54 = vpop.f32.mrf.mxu1  ;;  %10708 = vmatprep.mubr.msk.f32.mxu0 %vm4369_vm7, %v9121_v43 }
 0x8d9   :  { %v14668_v9 = vadd.f32 %v5359_v54, %v14380_v4  ;;  %v5937_v24 = vpop.f32.mrf.mxu0  ;;  %v9124_v4 = vld [vmem:[%s15604_s12 + $0x758] sm:$0xff] }
 0x8da   :  { %v14674_v62 = vadd.f32 %v5937_v24, %v14346_v28  ;;  %v9125_v28 = vld [vmem:[%s15604_s12 + $0x760] sm:$0xff] }
 0x8db   :  { %v10362_v53 = vpop.f32.mrf.mxu1  ;;  %v10438_v38 = vpop.f32.mrf.mxu0  ;;  %10709 = vmatmul.mubr.msk.f32.gmra.mxu0 %vm4369_vm7, %v9122_v55 }
 0x8dc   :  { %v14678_v43 = vadd.f32 %v10362_v53, %v14395_v7  ;;  %v14681_v3 = vadd.f32 %v10438_v38, %v14359_v48  ;;  %10711 = vmatprep.mubr.msk.f32.mxu0 %vm4369_vm7, %v9123_v1 }
 0x8dd   :  { %v5369_v30 = vpop.f32.mrf.mxu1  ;;  %v5947_v54 = vpop.f32.mrf.mxu0 }
 0x8de   :  { %15660 = vst [vmem:[#allocation23_spill] sm:$0xff] %v14681_v3  ;;  %v14691_v55 = vadd.f32 %v5369_v30, %v14406_v19  ;;  %v14694_v7 = vadd.f32 %v5947_v54, %v14372_v57  ;;  %v9126_v19 = vld [vmem:[%s15604_s12 + $0x768] sm:$0xff]  ;;  %v9127_v57 = vld [vmem:[%s15604_s12 + $0x770] sm:$0xff] }
 0x8df   :  { %v10365_v48 = vpop.f32.mrf.mxu1  ;;  %v10441_v24 = vpop.f32.mrf.mxu0  ;;  %10712 = vmatmul.mubr.msk.f32.gmra.mxu0 %vm4369_vm7, %v9124_v4 }
 0x8e0   :  { %15661 = vst [vmem:[#allocation24_spill] sm:$0xff] %v14694_v7  ;;  %v14698_v1 = vadd.f32 %v10365_v48, %v14421_v23  ;;  %v14701_v53 = vadd.f32 %v10441_v24, %v14385_v22  ;;  %10714 = vmatprep.mubr.msk.f32.mxu0 %vm4369_vm7, %v9125_v28 }
 0x8e1   :  { %v5379_v38 = vpop.f32.mrf.mxu1  ;;  %v5957_v30 = vpop.f32.mrf.mxu0 }
 0x8e2   :  { %15662 = vst [vmem:[#allocation25_spill] sm:$0xff] %v14701_v53  ;;  %v14711_v4 = vadd.f32 %v5379_v38, %v14432_v12  ;;  %v14714_v23 = vadd.f32 %v5957_v30, %v14398_v36  ;;  %v9128_v12 = vld [vmem:[%s15604_s12 + $0x778] sm:$0xff]  ;;  %v9129_v36 = vld [vmem:[%s15604_s12 + $0x780] sm:$0xff] }
 0x8e3   :  { %v10368_v22 = vpop.f32.mrf.mxu1  ;;  %v10444_v54 = vpop.f32.mrf.mxu0  ;;  %10715 = vmatmul.mubr.msk.f32.gmra.mxu0 %vm4369_vm7, %v9126_v19 }
 0x8e4   :  { %15663 = vst [vmem:[#allocation26_spill] sm:$0xff] %v14714_v23  ;;  %v14718_v28 = vadd.f32 %v10368_v22, %v14447_v27  ;;  %v14721_v48 = vadd.f32 %v10444_v54, %v14411_v32  ;;  %10717 = vmatprep.mubr.msk.f32.mxu0 %vm4369_vm7, %v9127_v57 }
 0x8e5   :  { %v5389_v24 = vpop.f32.mrf.mxu1  ;;  %v5967_v38 = vpop.f32.mrf.mxu0 }
 0x8e6   :  { %15664 = vst [vmem:[#allocation27_spill] sm:$0xff] %v14721_v48  ;;  %v14731_v19 = vadd.f32 %v5389_v24, %v14458_v26  ;;  %v14734_v27 = vadd.f32 %v5967_v38, %v14424_v60  ;;  %v9130_v26 = vld [vmem:[%s15604_s12 + $0x788] sm:$0xff]  ;;  %v9131_v60 = vld [vmem:[%s15604_s12 + $0x790] sm:$0xff] }
 0x8e7   :  { %v10371_v32 = vpop.f32.mrf.mxu1  ;;  %v10447_v30 = vpop.f32.mrf.mxu0  ;;  %10718 = vmatmul.mubr.msk.f32.gmra.mxu0 %vm4369_vm7, %v9128_v12 }
 0x8e8   :  { %15665 = vst [vmem:[#allocation28_spill] sm:$0xff] %v14734_v27  ;;  %v14738_v57 = vadd.f32 %v10371_v32, %v14475_v5  ;;  %v14741_v22 = vadd.f32 %v10447_v30, %v14437_v0  ;;  %10720 = vmatprep.mubr.msk.f32.mxu0 %vm4369_vm7, %v9129_v36  ;;  %v5290_v36 = vadd.f32 %v14473_v35, %v14204_v40 }
 0x8e9   :  { %v5399_v54 = vpop.f32.mrf.mxu1  ;;  %v5977_v24 = vpop.f32.mrf.mxu0 }
 0x8ea   :  { %v14751_v12 = vadd.f32 %v5399_v54, %v14483_v59  ;;  %v14754_v5 = vadd.f32 %v5977_v24, %v14450_v6  ;;  %v9132_v6 = vld [vmem:[%s15604_s12 + $0x798] sm:$0xff]  ;;  %v5300_v24 = vadd.f32 %v14498_v52, %v14228_v25 }
 0x8eb   :  { %v10374_v0 = vpop.f32.mrf.mxu1  ;;  %v10450_v38 = vpop.f32.mrf.mxu0  ;;  %10721 = vmatmul.mubr.msk.f32.gmra.mxu0 %vm4369_vm7, %v9130_v26  ;;  %v9133_v26 = vld [vmem:[%s15604_s12 + $0x7a0] sm:$0xff] }
 0x8ec   :  { %v14760_v32 = vadd.f32 %v10374_v0, %v14500_v49  ;;  %v14763_v30 = vadd.f32 %v10450_v38, %v14463_v10  ;;  %10723 = vmatprep.mubr.msk.f32.mxu0 %vm4369_vm7, %v9131_v60 }
 0x8ed   :  { %v5409_v59 = vpop.f32.mrf.mxu1  ;;  %v5987_v54 = vpop.f32.mrf.mxu0 }
 0x8ee   :  { %15666 = vst [vmem:[#allocation29_spill] sm:$0xff] %v14763_v30  ;;  %v14773_v35 = vadd.f32 %v5409_v59, %v14508_v46  ;;  %v14775_v40 = vadd.f32 %v5987_v54, %v5290_v36  ;;  %v9134_v46 = vld [vmem:[%s15604_s12 + $0x7a8] sm:$0xff]  ;;  %v9136_v54 = vld [vmem:[%s15604_s12 + $0x7b8] sm:$0xff] }
 0x8ef   :  { %v10377_v49 = vpop.f32.mrf.mxu1  ;;  %v10453_v10 = vpop.f32.mrf.mxu0  ;;  %10724 = vmatmul.mubr.msk.f32.gmra.mxu0 %vm4369_vm7, %v9132_v6  ;;  %v9135_v6 = vld [vmem:[%s15604_s12 + $0x7b0] sm:$0xff] }
 0x8f0   :  { %15667 = vst [vmem:[#allocation30_spill] sm:$0xff] %v14775_v40  ;;  %v14781_v60 = vadd.f32 %v10377_v49, %v14523_v14  ;;  %v14784_v0 = vadd.f32 %v10453_v10, %v14488_v18  ;;  %10726 = vmatprep.mubr.msk.f32.mxu0 %vm4369_vm7, %v9133_v26  ;;  %v9137_v49 = vld [vmem:[%s15604_s12 + $0x7c0] sm:$0xff] }
 0x8f1   :  { %v5419_v38 = vpop.f32.mrf.mxu1  ;;  %v5997_v36 = vpop.f32.mrf.mxu0 }
 0x8f2   :  { %15668 = vst [vmem:[#allocation31_spill] sm:$0xff] %v14784_v0  ;;  %v14794_v52 = vadd.f32 %v5419_v38, %v14534_v17  ;;  %v14796_v14 = vadd.f32 %v5997_v36, %v5300_v24  ;;  %v9138_v38 = vld [vmem:[%s15604_s12 + $0x7c8] sm:$0xff] }
 0x8f3   :  { %v14798_v25 = vpop.f32.mrf.mxu1  ;;  %v10456_v18 = vpop.f32.mrf.mxu0  ;;  %10727 = vmatmul.mubr.msk.f32.gmra.mxu0 %vm4369_vm7, %v9134_v46 }
 0x8f4   :  { %15669 = vst [vmem:[#allocation32_spill] sm:$0xff] %v14796_v14  ;;  %v14802_v59 = vadd.f32 %v10456_v18, %v14513_v37  ;;  %10729 = vmatprep.mubr.msk.f32.mxu0 %vm4369_vm7, %v9135_v6 }
 0x8f5   :  { %v14808_v26 = vpop.f32.mrf.mxu1  ;;  %v6007_v17 = vpop.f32.mrf.mxu0 }
 0x8f6   :  { %15670 = vst [vmem:[#allocation33_spill] sm:$0xff] %v14802_v59  ;;  %v14814_v10 = vadd.f32 %v6007_v17, %v14526_v39  ;;  %v9139_v39 = vld [vmem:[%s15604_s12 + $0x7d0] sm:$0xff] }
 0x8f7   :  { %v14816_v24 = vpop.f32.mrf.mxu1  ;;  %v10459_v37 = vpop.f32.mrf.mxu0  ;;  %10730 = vmatmul.mubr.msk.f32.gmra.mxu0 %vm4369_vm7, %v9136_v54 }
 0x8f8   :  { %15671 = vst [vmem:[#allocation34_spill] sm:$0xff] %v14814_v10  ;;  %v14820_v46 = vadd.f32 %v10459_v37, %v14539_v45  ;;  %10732 = vmatprep.mubr.msk.f32.mxu0 %vm4369_vm7, %v9137_v49  ;;  %v9140_v49 = vld [vmem:[%s15604_s12 + $0x7d8] sm:$0xff] }
 0x8f9   :  { %v14826_v36 = vpop.f32.mrf.mxu1  ;;  %v6017_v6 = vpop.f32.mrf.mxu0 }
 0x8fa   :  { %15672 = vst [vmem:[#allocation35_spill] sm:$0xff] %v14820_v46  ;;  %v14832_v18 = vadd.f32 %v6017_v6, %v14550_v21  ;;  %v9141_v21 = vld [vmem:[%s15604_s12 + $0x7e0] sm:$0xff] }
 0x8fb   :  { %v14834_v54 = vpop.f32.mrf.mxu1  ;;  %v10462_v45 = vpop.f32.mrf.mxu0  ;;  %10733 = vmatmul.mubr.msk.f32.gmra.mxu0 %vm4369_vm7, %v9138_v38 }
 0x8fc   :  { %15673 = vst [vmem:[#allocation36_spill] sm:$0xff] %v14832_v18  ;;  %v14838_v17 = vadd.f32 %v10462_v45, %v14564_v44  ;;  %10735 = vmatprep.mubr.msk.f32.mxu0 %vm4369_vm7, %v9139_v39  ;;  %v9142_v45 = vld [vmem:[%s15604_s12 + $0x7e8] sm:$0xff] }
 0x8fd   :  { %v14844_v37 = vpop.f32.mrf.mxu1  ;;  %v6027_v40 = vpop.f32.mrf.mxu0 }
 0x8fe   :  { %15674 = vst [vmem:[#allocation37_spill] sm:$0xff] %v14838_v17  ;;  %v14850_v6 = vadd.f32 %v6027_v40, %v14578_v63  ;;  %v9143_v63 = vld [vmem:[%s15604_s12 + $0x7f0] sm:$0xff] }
 0x8ff   :  { %v14852_v38 = vpop.f32.mrf.mxu1  ;;  %v10465_v44 = vpop.f32.mrf.mxu0  ;;  %10736 = vmatmul.mubr.msk.f32.gmra.mxu0 %vm4369_vm7, %v9140_v49 }
 0x900   :  { %15675 = vst [vmem:[#allocation38_spill] sm:$0xff] %v14850_v6  ;;  %v14856_v39 = vadd.f32 %v10465_v44, %v14597_v20  ;;  %10738 = vmatprep.mubr.msk.f32.mxu0 %vm4369_vm7, %v9141_v21  ;;  %v9144_v44 = vld [vmem:[%s15604_s12 + $0x7f8] sm:$0xff] }
 0x901   :  { %v14862_v30 = vpop.f32.mrf.mxu1  ;;  %v6037_v14 = vpop.f32.mrf.mxu0 }
 0x902   :  { %15676 = vst [vmem:[#allocation39_spill] sm:$0xff] %v14856_v39  ;;  %v14868_v40 = vadd.f32 %v6037_v14, %v14611_v47 }
 0x903   :  { %v14870_v49 = vpop.f32.mrf.mxu1  ;;  %v10468_v20 = vpop.f32.mrf.mxu0  ;;  %10739 = vmatmul.mubr.msk.f32.gmra.mxu0 %vm4369_vm7, %v9142_v45 }
 0x904   :  { %15677 = vst [vmem:[#allocation40_spill] sm:$0xff] %v14868_v40  ;;  %v14874_v21 = vadd.f32 %v10468_v20, %v14631_v42  ;;  %10741 = vmatprep.mubr.msk.f32.mxu0 %vm4369_vm7, %v9143_v63 }
 0x905   :  { %v14880_v0 = vpop.f32.mrf.mxu1  ;;  %v6047_v10 = vpop.f32.mrf.mxu0 }
 0x906   :  { %v14883_v47 = vadd.f32 %v6047_v10, %v14639_v15 }
 0x907   :  { %v14885_v14 = vpop.f32.mrf.mxu1  ;;  %v10471_v59 = vpop.f32.mrf.mxu0  ;;  %10742 = vmatmul.mubr.msk.f32.gmra.mxu0 %vm4369_vm7, %v9144_v44 }
 0x908   :  { %15678 = vst [vmem:[#allocation41_spill] sm:$0xff] %v14883_v47  ;;  %v14889_v42 = vadd.f32 %v10471_v59, %v14656_v11 }
 0x909   :  { %v14891_v45 = vpop.f32.mrf.mxu1  ;;  %v6057_v63 = vpop.f32.mrf.mxu0 }
 0x90a   :  { %v14894_v20 = vadd.f32 %v6057_v63, %v14668_v9 }
 0x90b   :  { %v14896_v18 = vpop.f32.mrf.mxu1  ;;  %v10474_v46 = vpop.f32.mrf.mxu0 }
 0x90c   :  { %v14899_v15 = vadd.f32 %v10474_v46, %v14678_v43 }
 0x90d   :  { %v14901_v10 = vpop.f32.mrf.mxu1  ;;  %v6067_v7 = vpop.f32.mrf.mxu0 }
 0x90e   :  { %v14904_v44 = vadd.f32 %v6067_v7, %v14691_v55 }
 0x90f   :  { %v14906_v11 = vpop.f32.mrf.mxu1  ;;  %v10477_v59 = vpop.f32.mrf.mxu0 }
 0x910   :  { %v14909_v6 = vadd.f32 %v10477_v59, %v14698_v1 }
 0x911   :  { %v14911_v9 = vpop.f32.mrf.mxu1  ;;  %v6077_v63 = vpop.f32.mrf.mxu0 }
 0x912   :  { %v14914_v3 = vadd.f32 %v6077_v63, %v14711_v4 }
 0x913   :  { %v14916_v43 = vpop.f32.mrf.mxu1  ;;  %v10480_v46 = vpop.f32.mrf.mxu0 }
 0x914   :  { %v14919_v17 = vadd.f32 %v10480_v46, %v14718_v28 }
 0x915   :  { %v14921_v55 = vpop.f32.mrf.mxu1  ;;  %v6087_v7 = vpop.f32.mrf.mxu0 }
 0x916   :  { %v14924_v23 = vadd.f32 %v6087_v7, %v14731_v19 }
 0x917   :  { %v14926_v1 = vpop.f32.mrf.mxu1  ;;  %v10483_v59 = vpop.f32.mrf.mxu0 }
 0x918   :  { %v14929_v40 = vadd.f32 %v10483_v59, %v14738_v57 }
 0x919   :  { %v14931_v4 = vpop.f32.mrf.mxu1  ;;  %v6097_v63 = vpop.f32.mrf.mxu0 }
 0x91a   :  { %v14934_v53 = vadd.f32 %v6097_v63, %v14751_v12 }
 0x91b   :  { %v10486_v28 = vpop.f32.mrf.mxu0  ;;  %v10538_v46 = vpop.f32.mrf.mxu1 }
 0x91c   :  { %v14937_v39 = vadd.f32 %v10486_v28, %v14760_v32  ;;  %v14940_v19 = vadd.f32 %v10538_v46, %v14559_v33  ;;  %v5435_v33 = vadd.f32 %v14798_v25, %v13994_v58  ;;  %v5445_v58 = vadd.f32 %v14816_v24, %v14018_v34  ;;  %v14986_v34 = vld [vmem:[%s15607_s15] sm:$0xf]  ;;  %s10925_s15 = smov [#allocation3]  }
 0x91d   :  { %v6107_v7 = vpop.f32.mrf.mxu0  ;;  %v6669_v27 = vpop.f32.mrf.mxu1  ;;  %15686 = vst [vmem:[#allocation49_spill] sm:$0xff] %v14986_v34  ;;  %s8442_s21 = sshll.u32 %s10925_s15, 4  ;;  %s8443_s21 = int_to_ptr.vmem [resolvable:$true] %s8442_s21 }
 0x91e   :  { %15679 = vst [vmem:[#allocation42_spill] sm:$0xff] %v14937_v39  ;;  %v14943_v47 = vadd.f32 %v6107_v7, %v14773_v35  ;;  %v14946_v57 = vadd.f32 %v6669_v27, %v14575_v2  ;;  %s10878_s23 = scalar_lea.vmem %s8443_s21, 16  ;;  %s10882_s3 = scalar_lea.vmem %s8443_s21, 32 }
 0x91f   :  { %v10489_v59 = vpop.f32.mrf.mxu0  ;;  %v10541_v48 = vpop.f32.mrf.mxu1  ;;  %p10879_p0 = scmp.ne.s32.totalorder %s8443_s21, %s10878_s23  ;;  %p10883_p1 = scmp.lt.s32.totalorder %s8443_s21, %s8443_s21 }
 0x920   :  { %15680 = vst [vmem:[#allocation43_spill] sm:$0xff] %v14943_v47  ;;  %v14949_v12 = vadd.f32 %v10489_v59, %v14781_v60  ;;  %v14952_v63 = vadd.f32 %v10541_v48, %v14606_v50  ;;  %v5430_v60 = vadd.f32 %v14808_v26, %v14008_v13  ;;  %v5440_v13 = vadd.f32 %v14826_v36, %v14032_v41  ;;  %p10884_p2 = scmp.lt.s32.totalorder %s10882_s3, %s10878_s23 }
 0x921   :  { %v6117_v32 = vpop.f32.mrf.mxu0  ;;  %v6679_v28 = vpop.f32.mrf.mxu1  ;;  %v8281_v41 = vrot.slane %v14986_v34, %v11035_v8 }
 0x922   :  { %15681 = vst [vmem:[#allocation44_spill] sm:$0xff] %v14949_v12  ;;  %v14957_v46 = vadd.f32 %v6117_v32, %v14794_v52  ;;  %v14960_v35 = vadd.f32 %v6679_v28, %v14614_v56  ;;  %p10885_p3 = por %p10884_p2, %p10883_p1 }
 0x923   :  { %v10492_v2 = vpop.f32.mrf.mxu0  ;;  %v10544_v27 = vpop.f32.mrf.mxu1  ;;  %8358 = vmatprep.mubr.f32.mxu1 %v8281_v41  ;;  %v15693_v41 = vld [vmem:[#allocation11_spill] sm:$0xff] }
 0x924   :  { %15682 = vst [vmem:[#allocation45_spill] sm:$0xff] %v14957_v46  ;;  %v14964_v7 = vadd.f32 %v10492_v2, %v5435_v33  ;;  %v14967_v50 = vadd.f32 %v10544_v27, %v14634_v16  ;;  %v14999_v27 = vpop.permute.xlu1 %8035  ;;  %p10886_p4 = pnand %p10885_p3, %p10879_p0 }
 0x925   :  { %v6127_v48 = vpop.f32.mrf.mxu0  ;;  %v6689_v59 = vpop.f32.mrf.mxu1 }
 0x926   :  { %15683 = vst [vmem:[#allocation46_spill] sm:$0xff] %v14964_v7  ;;  %v14971_v52 = vadd.f32 %v6127_v48, %v5430_v60  ;;  %v14974_v56 = vadd.f32 %v6689_v59, %v14650_v51  ;;  %v5455_v51 = vadd.f32 %v14834_v54, %v14042_v29  ;;  %v5450_v60 = vadd.f32 %v14844_v37, %v14056_v61  ;;  %v15007_v59 = vpop.permute.xlu0 %7955 }
 0x927   :  { %v10495_v25 = vpop.f32.mrf.mxu0  ;;  %v10547_v32 = vpop.f32.mrf.mxu1 }
 0x928   :  { %15684 = vst [vmem:[#allocation47_spill] sm:$0xff] %v14971_v52  ;;  %v14978_v26 = vadd.f32 %v10495_v25, %v5445_v58  ;;  %v14981_v16 = vadd.f32 %v10547_v32, %v14661_v31 }
 0x929   :  { %v6137_v28 = vpop.f32.mrf.mxu0  ;;  %v6699_v33 = vpop.f32.mrf.mxu1 }
 0x92a   :  { %15685 = vst [vmem:[#allocation48_spill] sm:$0xff] %v14978_v26  ;;  %v14990_v24 = vadd.f32 %v6137_v28, %v5440_v13  ;;  %v14993_v2 = vadd.f32 %v6699_v33, %v14674_v62  ;;  %v15689_v62 = vld [vmem:[#allocation9_spill] sm:$0xff]  ;;  %v15691_v13 = vld [vmem:[#allocation10_spill] sm:$0xff] }
 0x92b   :  { %v10498_v31 = vpop.f32.mrf.mxu0  ;;  %v14997_v36 = vpop.f32.mrf.mxu1  ;;  %v5465_v58 = vadd.f32 %v14852_v38, %v15689_v62  ;;  %v5460_v28 = vadd.f32 %v14862_v30, %v15691_v13  ;;  %v15695_v62 = vld [vmem:[#allocation12_spill] sm:$0xff] }
 0x92c   :  { %15687 = vst [vmem:[#allocation50_spill] sm:$0xff] %v14990_v24  ;;  %v15003_v48 = vadd.f32 %v10498_v31, %v5455_v51  ;;  %v15021_v51 = vpop.permute.xlu1 %8030  ;;  %v5475_v31 = vadd.f32 %v14870_v49, %v15693_v41  ;;  %v5470_v30 = vadd.f32 %v14880_v0, %v15695_v62  ;;  %v15699_v41 = vld [vmem:[#allocation14_spill] sm:$0xff]  ;;  %v15701_v62 = vld [vmem:[#allocation15_spill] sm:$0xff] }
 0x92d   :  { %v6147_v29 = vpop.f32.mrf.mxu0  ;;  %v15005_v54 = vpop.f32.mrf.mxu1 }
 0x92e   :  { %15688 = vst [vmem:[#allocation51_spill] sm:$0xff] %v15003_v48  ;;  %v15011_v8 = vadd.f32 %v6147_v29, %v5450_v60  ;;  %v15029_v29 = vpop.permute.xlu0 %7950 }
 0x92f   :  { %v10501_v25 = vpop.f32.mrf.mxu0  ;;  %v15013_v32 = vpop.f32.mrf.mxu1 }
 0x930   :  { %15690 = vst [vmem:[#allocation9_spill] sm:$0xff] %v15011_v8  ;;  %v15017_v61 = vadd.f32 %v10501_v25, %v5465_v58  ;;  %v15697_v8 = vld [vmem:[#allocation13_spill] sm:$0xff] }
 0x931   :  { %v6157_v37 = vpop.f32.mrf.mxu0  ;;  %v15019_v33 = vpop.f32.mrf.mxu1 }
 0x932   :  { %15692 = vst [vmem:[#allocation10_spill] sm:$0xff] %v15017_v61  ;;  %v15025_v48 = vadd.f32 %v6157_v37, %v5460_v28  ;;  %v5485_v61 = vadd.f32 %v14885_v14, %v15697_v8  ;;  %v15043_v37 = vpop.permute.xlu1 %8025  ;;  %v5495_v14 = vadd.f32 %v14896_v18, %v15701_v62  ;;  %v15710_v62 = vld [vmem:[#allocation18_spill] sm:$0xff] }
 0x933   :  { %v10504_v38 = vpop.f32.mrf.mxu0  ;;  %v15027_v60 = vpop.f32.mrf.mxu1 }
 0x934   :  { %15694 = vst [vmem:[#allocation11_spill] sm:$0xff] %v15025_v48  ;;  %v15033_v58 = vadd.f32 %v10504_v38, %v5475_v31  ;;  %v5480_v48 = vadd.f32 %v14891_v45, %v15699_v41  ;;  %v15051_v38 = vpop.permute.xlu0 %7945  ;;  %v15707_v41 = vld [vmem:[#allocation17_spill] sm:$0xff] }
 0x935   :  { %v6167_v25 = vpop.f32.mrf.mxu0  ;;  %v15035_v13 = vpop.f32.mrf.mxu1 }
 0x936   :  { %15696 = vst [vmem:[#allocation12_spill] sm:$0xff] %v15033_v58  ;;  %v15039_v47 = vadd.f32 %v6167_v25, %v5470_v30 }
 0x937   :  { %v10507_v49 = vpop.f32.mrf.mxu0  ;;  %v15041_v28 = vpop.f32.mrf.mxu1 }
 0x938   :  { %15698 = vst [vmem:[#allocation13_spill] sm:$0xff] %v15039_v47  ;;  %v15047_v39 = vadd.f32 %v10507_v49, %v5485_v61  ;;  %v15704_v47 = vld [vmem:[#allocation16_spill] sm:$0xff]  ;;  %v15065_v49 = vpop.permute.xlu1 %8020 }
 0x939   :  { %v6177_v0 = vpop.f32.mrf.mxu0  ;;  %v15049_v31 = vpop.f32.mrf.mxu1  ;;  %v5490_v58 = vadd.f32 %v14901_v10, %v15704_v47  ;;  %v5500_v47 = vadd.f32 %v14911_v9, %v15710_v62  ;;  %v15719_v62 = vld [vmem:[#allocation21_spill] sm:$0xff] }
 0x93a   :  { %15700 = vst [vmem:[#allocation14_spill] sm:$0xff] %v15047_v39  ;;  %v15055_v8 = vadd.f32 %v6177_v0, %v5480_v48  ;;  %v5505_v39 = vadd.f32 %v14906_v11, %v15707_v41  ;;  %v15073_v0 = vpop.permute.xlu0 %7940  ;;  %v15716_v41 = vld [vmem:[#allocation20_spill] sm:$0xff] }
 0x93b   :  { %v10510_v30 = vpop.f32.mrf.mxu0  ;;  %v15057_v25 = vpop.f32.mrf.mxu1 }
 0x93c   :  { %15702 = vst [vmem:[#allocation15_spill] sm:$0xff] %v15055_v8  ;;  %15703 = vst [vmem:[#allocation52_spill] sm:$0xff] %v15057_v25  ;;  %v15061_v46 = vadd.f32 %v10510_v30, %v5495_v14  ;;  %v15713_v8 = vld [vmem:[#allocation19_spill] sm:$0xff] }
 0x93d   :  { %v6187_v45 = vpop.f32.mrf.mxu0  ;;  %v15063_v61 = vpop.f32.mrf.mxu1 }
 0x93e   :  { %15705 = vst [vmem:[#allocation16_spill] sm:$0xff] %v15061_v46  ;;  %15706 = vst [vmem:[#allocation53_spill] sm:$0xff] %v15063_v61  ;;  %v15069_v12 = vadd.f32 %v6187_v45, %v5490_v58  ;;  %v5515_v46 = vadd.f32 %v14916_v43, %v15713_v8  ;;  %v15087_v45 = vpop.permute.xlu1 %8015  ;;  %v5525_v43 = vadd.f32 %v14926_v1, %v15719_v62 }
 0x93f   :  { %v10513_v18 = vpop.f32.mrf.mxu0  ;;  %v15071_v48 = vpop.f32.mrf.mxu1 }
 0x940   :  { %15708 = vst [vmem:[#allocation17_spill] sm:$0xff] %v15069_v12  ;;  %15709 = vst [vmem:[#allocation54_spill] sm:$0xff] %v15071_v48  ;;  %v15077_v10 = vadd.f32 %v10513_v18, %v5505_v39  ;;  %v5510_v12 = vadd.f32 %v14921_v55, %v15716_v41  ;;  %v15095_v18 = vpop.permute.xlu0 %7935 }
 0x941   :  { %v6197_v14 = vpop.f32.mrf.mxu0  ;;  %v15079_v30 = vpop.f32.mrf.mxu1 }
 0x942   :  { %15711 = vst [vmem:[#allocation18_spill] sm:$0xff] %v15077_v10  ;;  %15712 = vst [vmem:[#allocation55_spill] sm:$0xff] %v15079_v30  ;;  %v15083_v52 = vadd.f32 %v6197_v14, %v5500_v47 }
 0x943   :  { %v10516_v11 = vpop.f32.mrf.mxu0  ;;  %v15085_v58 = vpop.f32.mrf.mxu1 }
 0x944   :  { %15714 = vst [vmem:[#allocation19_spill] sm:$0xff] %v15083_v52  ;;  %15715 = vst [vmem:[#allocation56_spill] sm:$0xff] %v15085_v58  ;;  %v15091_v7 = vadd.f32 %v10516_v11, %v5515_v46  ;;  %v15721_v52 = vld [vmem:[#allocation22_spill] sm:$0xff]  ;;  %v15109_v11 = vpop.permute.xlu1 %8010 }
 0x945   :  { %v6207_v39 = vpop.f32.mrf.mxu0  ;;  %v15093_v9 = vpop.f32.mrf.mxu1  ;;  %v5520_v10 = vadd.f32 %v14931_v4, %v15721_v52 }
 0x946   :  { %15717 = vst [vmem:[#allocation20_spill] sm:$0xff] %v15091_v7  ;;  %15718 = vst [vmem:[#allocation57_spill] sm:$0xff] %v15093_v9  ;;  %v15099_v8 = vadd.f32 %v6207_v39, %v5510_v12  ;;  %v15115_v12 = vpop.permute.xlu0 %7930 }
 0x947   :  { %v10519_v47 = vpop.f32.mrf.mxu0  ;;  %v15101_v14 = vpop.f32.mrf.mxu1 }
 0x948   :  { %15720 = vst [vmem:[#allocation21_spill] sm:$0xff] %v15099_v8  ;;  %v15105_v24 = vadd.f32 %v10519_v47, %v5525_v43  ;;  %v15127_v8 = vpop.permute.xlu1 %8005 }
 0x949   :  { %v6217_v55 = vpop.f32.mrf.mxu0  ;;  %v15107_v46 = vpop.f32.mrf.mxu1  ;;  %15727 = vst [vmem:[#allocation62_spill] sm:$0xff] %v15127_v8 }
 0x94a   :  { %15722 = vst [vmem:[#allocation22_spill] sm:$0xff] %v15105_v24  ;;  %15723 = vst [vmem:[#allocation58_spill] sm:$0xff] %v15107_v46  ;;  %v15111_v41 = vadd.f32 %v6217_v55, %v5520_v10  ;;  %v15134_v24 = vpop.permute.xlu0 %7925 }
 0x94b   :  { %v15113_v7 = vpop.f32.mrf.mxu1  ;;  %v10650_v1 = vpop.f32.mrf.mxu0  ;;  %15729 = vst [vmem:[#allocation64_spill] sm:$0xff] %v15134_v24 }
 0x94c   :  { %15724 = vst [vmem:[#allocation59_spill] sm:$0xff] %v15111_v41  ;;  %v15118_v39 = vadd.f32 %v10650_v1, %v14940_v19  ;;  %v15146_v34 = vpop.permute.xlu1 %8000 }
 0x94d   :  { %v15120_v62 = vpop.f32.mrf.mxu1  ;;  %v7431_v4 = vpop.f32.mrf.mxu0  ;;  %15732 = vst [vmem:[#allocation67_spill] sm:$0xff] %v15146_v34 }
 0x94e   :  { %15725 = vst [vmem:[#allocation60_spill] sm:$0xff] %v15118_v39  ;;  %v15123_v52 = vadd.f32 %v7431_v4, %v14946_v57 }
 0x94f   :  { %v15125_v43 = vpop.f32.mrf.mxu1  ;;  %v10653_v47 = vpop.f32.mrf.mxu0 }
 0x950   :  { %15726 = vst [vmem:[#allocation61_spill] sm:$0xff] %v15123_v52  ;;  %v15130_v10 = vadd.f32 %v10653_v47, %v14952_v63  ;;  %v15165_v25 = vpop.permute.xlu1 %7995 }
 0x951   :  { %v15132_v55 = vpop.f32.mrf.mxu1  ;;  %v7441_v41 = vpop.f32.mrf.mxu0  ;;  %15737 = vst [vmem:[#allocation72_spill] sm:$0xff] %v15165_v25 }
 0x952   :  { %15728 = vst [vmem:[#allocation63_spill] sm:$0xff] %v15130_v10  ;;  %v15137_v19 = vadd.f32 %v7441_v41, %v14960_v35  ;;  %v15153_v10 = vpop.permute.xlu0 %7920 }
 0x953   :  { %v15139_v1 = vpop.f32.mrf.mxu1  ;;  %v10656_v57 = vpop.f32.mrf.mxu0  ;;  %15734 = vst [vmem:[#allocation69_spill] sm:$0xff] %v15153_v10 }
 0x954   :  { %15730 = vst [vmem:[#allocation65_spill] sm:$0xff] %v15137_v19  ;;  %v15142_v4 = vadd.f32 %v10656_v57, %v14967_v50  ;;  %v15184_v48 = vpop.permute.xlu1 %7990 }
 0x955   :  { %v15144_v26 = vpop.f32.mrf.mxu1  ;;  %v7451_v52 = vpop.f32.mrf.mxu0  ;;  %15739 = vst [vmem:[#allocation74_spill] sm:$0xff] %v15184_v48 }
 0x956   :  { %15731 = vst [vmem:[#allocation66_spill] sm:$0xff] %v15142_v4  ;;  %v15149_v63 = vadd.f32 %v7451_v52, %v14974_v56  ;;  %v15172_v4 = vpop.permute.xlu0 %7915 }
 0x957   :  { %v15151_v47 = vpop.f32.mrf.mxu1  ;;  %v10659_v39 = vpop.f32.mrf.mxu0  ;;  %15738 = vst [vmem:[#allocation73_spill] sm:$0xff] %v15172_v4 }
 0x958   :  { %15733 = vst [vmem:[#allocation68_spill] sm:$0xff] %v15149_v63  ;;  %v15156_v35 = vadd.f32 %v10659_v39, %v14981_v16  ;;  %v15201_v48 = vpop.permute.xlu1 %7985 }
 0x959   :  { %v15158_v41 = vpop.f32.mrf.mxu1  ;;  %v7461_v50 = vpop.f32.mrf.mxu0  ;;  %15742 = vst [vmem:[#allocation77_spill] sm:$0xff] %v15201_v48 }
 0x95a   :  { %15735 = vst [vmem:[#allocation70_spill] sm:$0xff] %v15156_v35  ;;  %v15161_v57 = vadd.f32 %v7461_v50, %v14993_v2  ;;  %v15191_v4 = vpop.permute.xlu0 %7910 }
 0x95b   :  { %v10586_v19 = vpop.f32.mrf.mxu1  ;;  %v15163_v61 = vpop.f32.mrf.mxu0  ;;  %15740 = vst [vmem:[#allocation75_spill] sm:$0xff] %v15191_v4 }
 0x95c   :  { %15736 = vst [vmem:[#allocation71_spill] sm:$0xff] %v15161_v57  ;;  %v15168_v56 = vadd.f32 %v10586_v19, %v14899_v15  ;;  %v15219_v58 = vpop.permute.xlu1 %7980 }
 0x95d   :  { %v6829_v52 = vpop.f32.mrf.mxu1  ;;  %v15170_v63 = vpop.f32.mrf.mxu0  ;;  %15750 = vst [vmem:[#allocation85_spill] sm:$0xff] %v15219_v58 }
 0x95e   :  { %v15175_v16 = vadd.f32 %v6829_v52, %v14904_v44  ;;  %v15206_v34 = vpop.permute.xlu0 %7905 }
 0x95f   :  { %v10589_v39 = vpop.f32.mrf.mxu1  ;;  %v15177_v30 = vpop.f32.mrf.mxu0  ;;  %15744 = vst [vmem:[#allocation79_spill] sm:$0xff] %v15206_v34 }
 0x960   :  { %v15180_v2 = vadd.f32 %v10589_v39, %v14909_v6 }
 0x961   :  { %v6839_v50 = vpop.f32.mrf.mxu1  ;;  %v15182_v57 = vpop.f32.mrf.mxu0 }
 0x962   :  { %v15187_v15 = vadd.f32 %v6839_v50, %v14914_v3 }
 0x963   :  { %v10592_v19 = vpop.f32.mrf.mxu1  ;;  %v15189_v35 = vpop.f32.mrf.mxu0 }
 0x964   :  { %v15194_v44 = vadd.f32 %v10592_v19, %v14919_v17 }
 0x965   :  { %v6849_v52 = vpop.f32.mrf.mxu1  ;;  %v15196_v25 = vpop.f32.mrf.mxu0 }
 0x966   :  { %v15199_v6 = vadd.f32 %v6849_v52, %v14924_v23 }
 0x967   :  { %v10595_v39 = vpop.f32.mrf.mxu1  ;;  %v10671_v9 = vpop.f32.mrf.mxu0 }
 0x968   :  { %15741 = vst [vmem:[#allocation76_spill] sm:$0xff] %v15199_v6  ;;  %v15204_v3 = vadd.f32 %v10595_v39, %v14929_v40  ;;  %v15223_v40 = vpop.permute.xlu0 %7900 }
 0x969   :  { %v6859_v50 = vpop.f32.mrf.mxu1  ;;  %v7501_v10 = vpop.f32.mrf.mxu0  ;;  %15752 = vst [vmem:[#allocation87_spill] sm:$0xff] %v15223_v40 }
 0x96a   :  { %15743 = vst [vmem:[#allocation78_spill] sm:$0xff] %v15204_v3  ;;  %v15209_v17 = vadd.f32 %v6859_v50, %v14934_v53  ;;  %v15231_v50 = vpop.permute.xlu1 %7975 }
 0x96b   :  { %v15211_v19 = vpop.f32.mrf.mxu1  ;;  %v15213_v4 = vpop.f32.mrf.mxu0  ;;  %15756 = vst [vmem:[#allocation91_spill] sm:$0xff] %v15231_v50 }
 0x96c   :  { %15745 = vst [vmem:[#allocation80_spill] sm:$0xff] %v15209_v17  ;;  %15746 = vst [vmem:[#allocation81_spill] sm:$0xff] %v15211_v19 }
 0x96d   :  { %15747 = vst [vmem:[#allocation82_spill] sm:$0xff] %v15213_v4  ;;  %v15215_v23 = vpop.f32.mrf.mxu1  ;;  %v15217_v52 = vpop.f32.mrf.mxu0 }
 0x96e   :  { %15748 = vst [vmem:[#allocation83_spill] sm:$0xff] %v15215_v23  ;;  %15749 = vst [vmem:[#allocation84_spill] sm:$0xff] %v15217_v52  ;;  %v15237_v23 = vpop.permute.xlu0 %7895  ;;  %v15245_v40 = vpop.permute.xlu1 %7970 }
 0x96f   :  { %v15221_v48 = vpop.f32.mrf.mxu0  ;;  %v15225_v39 = vpop.f32.mrf.mxu1  ;;  %15759 = vst [vmem:[#allocation94_spill] sm:$0xff] %v15237_v23  ;;  %15763 = vst [vmem:[#allocation98_spill] sm:$0xff] %v15245_v40  ;;  %v7003_v40 = vadd.f32 %v15041_v28, %v14741_v22  ;;  %v7018_v22 = vadd.f32 %v15158_v41, %v14894_v20 }
 0x970   :  { %15751 = vst [vmem:[#allocation86_spill] sm:$0xff] %v15221_v48  ;;  %15753 = vst [vmem:[#allocation88_spill] sm:$0xff] %v15225_v39 }
 0x971   :  { %v15227_v34 = vpop.f32.mrf.mxu0  ;;  %v15233_v19 = vpop.f32.mrf.mxu1  ;;  %v7765_v6 = vadd.f32 %v10671_v9, %v7003_v40 }
 0x972   :  { %15754 = vst [vmem:[#allocation89_spill] sm:$0xff] %v15227_v34  ;;  %15757 = vst [vmem:[#allocation92_spill] sm:$0xff] %v15233_v19  ;;  %v15249_v34 = vpop.permute.xlu0 %7890 }
 0x973   :  { %v15229_v53 = vpop.f32.mrf.mxu0  ;;  %v15241_v58 = vpop.f32.mrf.mxu1  ;;  %15764 = vst [vmem:[#allocation99_spill] sm:$0xff] %v15249_v34 }
 0x974   :  { %15755 = vst [vmem:[#allocation90_spill] sm:$0xff] %v15229_v53  ;;  %15761 = vst [vmem:[#allocation96_spill] sm:$0xff] %v15241_v58 }
 0x975   :  { %v15235_v4 = vpop.f32.mrf.mxu0  ;;  %v15251_v17 = vpop.f32.mrf.mxu1 }
 0x976   :  { %15758 = vst [vmem:[#allocation93_spill] sm:$0xff] %v15235_v4  ;;  %15765 = vst [vmem:[#allocation100_spill] sm:$0xff] %v15251_v17  ;;  %v15255_v4 = vpop.permute.xlu1 %7965  ;;  %v15259_v3 = vpop.permute.xlu0 %7885  ;;  %v7019_v17 = vadd.f32 %v15151_v47, %v14889_v42  ;;  %v15774_v47 = vld [vmem:[#allocation41_spill] sm:$0xff] }
 0x977   :  { %v15239_v52 = vpop.f32.mrf.mxu0  ;;  %15766 = vst [vmem:[#allocation101_spill] sm:$0xff] %v15255_v4  ;;  %v15257_v23 = vpop.f32.mrf.mxu1  ;;  %15768 = vst [vmem:[#allocation103_spill] sm:$0xff] %v15259_v3  ;;  %v7002_v4 = vadd.f32 %v15049_v31, %v14754_v5  ;;  %v7017_v3 = vadd.f32 %v15139_v1, %v14874_v21  ;;  %v7016_v5 = vadd.f32 %v15144_v26, %v15774_v47 }
 0x978   :  { %15760 = vst [vmem:[#allocation95_spill] sm:$0xff] %v15239_v52  ;;  %15767 = vst [vmem:[#allocation102_spill] sm:$0xff] %v15257_v23  ;;  %v8213_v1 = vadd.f32 %v15007_v59, %v7765_v6 }
 0x979   :  { %v15243_v48 = vpop.f32.mrf.mxu0  ;;  %v7764_v52 = vadd.f32 %v7501_v10, %v7002_v4 }
 0x97a   :  { %15762 = vst [vmem:[#allocation97_spill] sm:$0xff] %v15243_v48  ;;  %v15263_v48 = vpop.f32.mrf.mxu1  ;;  %v15265_v34 = vpop.permute.xlu1 %7960 }
 0x97b   :  { %v15247_v39 = vpop.f32.mrf.mxu0  ;;  %15769 = vst [vmem:[#allocation104_spill] sm:$0xff] %v15263_v48  ;;  %15770 = vst [vmem:[#allocation105_spill] sm:$0xff] %v15265_v34  ;;  %v15271_v8 = vpop.permute.xlu0 %7880  ;;  %v15772_v48 = vld [vmem:[#allocation27_spill] sm:$0xff]  ;;  %v8212_v59 = vadd.f32 %v15029_v29, %v7764_v52  ;;  %v15783_v52 = vld [vmem:[#allocation37_spill] sm:$0xff] }
 0x97c   :  { %15771 = vst [vmem:[#allocation106_spill] sm:$0xff] %v15271_v8  ;;  %v7001_v34 = vadd.f32 %v15027_v60, %v15772_v48  ;;  %v15279_v46 = vpop.f32.mrf.mxu1  ;;  %v15775_v8 = vld [vmem:[#allocation28_spill] sm:$0xff]  ;;  %v15776_v48 = vld [vmem:[#allocation39_spill] sm:$0xff] }
 0x97d   :  { %v15253_v50 = vpop.f32.mrf.mxu0  ;;  %15773 = vst [vmem:[#allocation27_spill] sm:$0xff] %v15279_v46  ;;  %v7000_v21 = vadd.f32 %v15035_v13, %v15775_v8  ;;  %v7015_v10 = vadd.f32 %v15125_v43, %v15776_v48 }
 0x97e   :  { %v7763_v20 = vadd.f32 %v15189_v35, %v7001_v34  ;;  %v15288_v60 = vpop.permute.xlu1 %8195  ;;  %v15300_v8 = vpop.f32.mrf.mxu1 }
 0x97f   :  { %v10689_v19 = vpop.f32.mrf.mxu0  ;;  %v7762_v34 = vadd.f32 %v15196_v25, %v7000_v21  ;;  %15779 = vst [vmem:[#allocation28_spill] sm:$0xff] %v15300_v8  ;;  %v15302_v6 = vpop.permute.xlu0 %8115 }
 0x980   :  { %v7777_v43 = vadd.f32 %v10689_v19, %v7015_v10 }
 0x981   :  { %v7561_v53 = vpop.f32.mrf.mxu0 }
 0x982   :  { %v15326_v47 = vpop.permute.xlu1 %8190 }
 0x983   :  { %v10692_v58 = vpop.f32.mrf.mxu0 }
 0x984   :  { %v7779_v31 = vadd.f32 %v10692_v58, %v7017_v3 }
 0x985   :  { %v7571_v24 = vpop.f32.mrf.mxu0 }
 0x986   :  { %v7778_v4 = vadd.f32 %v7571_v24, %v7016_v5  ;;  %v15780_v24 = vld [vmem:[#allocation40_spill] sm:$0xff] }
 0x987   :  { %v10695_v23 = vpop.f32.mrf.mxu0 }
 0x988   :  { %v7781_v28 = vadd.f32 %v10695_v23, %v7019_v17  ;;  %v8211_v17 = vadd.f32 %v15051_v38, %v7763_v20  ;;  %v8226_v19 = vadd.f32 %v15065_v49, %v7778_v4  ;;  %v15324_v38 = vpop.f32.mrf.mxu1 }
 0x989   :  { %v7581_v42 = vpop.f32.mrf.mxu0  ;;  %15786 = vst [vmem:[#allocation40_spill] sm:$0xff] %v15324_v38 }
 0x98a   :  { %v8229_v9 = vadd.f32 %v14999_v27, %v7781_v28  ;;  %v7780_v40 = vadd.f32 %v7581_v42, %v7018_v22  ;;  %v15778_v27 = vld [vmem:[#allocation25_spill] sm:$0xff]  ;;  %v7013_v22 = vadd.f32 %v15113_v7, %v15783_v52  ;;  %v15787_v7 = vld [vmem:[#allocation38_spill] sm:$0xff] }
 0x98b   :  { %v10698_v41 = vpop.f32.mrf.mxu0  ;;  %v6999_v13 = vadd.f32 %v15013_v32, %v15778_v27  ;;  %v15782_v32 = vld [vmem:[#allocation26_spill] sm:$0xff]  ;;  %v7012_v49 = vadd.f32 %v15120_v62, %v15787_v7  ;;  %v15790_v62 = vld [vmem:[#allocation35_spill] sm:$0xff] }
 0x98c   :  { %v8228_v26 = vadd.f32 %v15021_v51, %v7780_v40  ;;  %v15294_v58 = vadd.f32 %v10698_v41, %v15168_v56  ;;  %9820 = vmatprep.subr.mxu1 %v8229_v9  ;;  %v7014_v51 = vadd.f32 %v15132_v55, %v15780_v24  ;;  %v8227_v56 = vadd.f32 %v15043_v37, %v7779_v31  ;;  %v15339_v40 = vpop.permute.xlu0 %8110  ;;  %v15794_v41 = vld [vmem:[#allocation58_spill] sm:$0xff] }
 0x98d   :  { %v7591_v35 = vpop.f32.mrf.mxu0  ;;  %9821 = vmatpush3.msra.mxu1 %v8213_v1  ;;  %v6998_v25 = vadd.f32 %v15019_v33, %v15782_v32  ;;  %v7761_v29 = vadd.f32 %v15177_v30, %v6999_v13  ;;  %v8210_v30 = vadd.f32 %v15073_v0, %v7762_v34  ;;  %v15793_v1 = vld [vmem:[#allocation36_spill] sm:$0xff]  ;;  %v15800_v13 = vld [vmem:[#allocation33_spill] sm:$0xff] }
 0x98e   :  { %15777 = vst [vmem:[#allocation41_spill] sm:$0xff] %v15294_v58  ;;  %v15308_v3 = vadd.f32 %v7591_v35, %v15175_v16  ;;  %9822 = vmatprep.subr.mxu1 %v8228_v26  ;;  %v7776_v55 = vadd.f32 %v7561_v53, %v7014_v51  ;;  %v15785_v16 = vld [vmem:[#allocation23_spill] sm:$0xff]  ;;  %v8225_v53 = vadd.f32 %v15087_v45, %v7777_v43  ;;  %v15801_v34 = vld [vmem:[#allocation56_spill] sm:$0xff]  ;;  %v15802_v35 = vld [vmem:[#allocation97_spill] sm:$0xff] }
 0x98f   :  { %v10701_v23 = vpop.f32.mrf.mxu0  ;;  %9823 = vmatpush3.msra.mxu1 %v8212_v59  ;;  %v6997_v28 = vadd.f32 %v14997_v36, %v15785_v16  ;;  %v7760_v33 = vadd.f32 %v15182_v57, %v6998_v25  ;;  %v15789_v36 = vld [vmem:[#allocation24_spill] sm:$0xff]  ;;  %v8209_v31 = vadd.f32 %v15095_v18, %v7761_v29  ;;  %v7774_v45 = vadd.f32 %v15253_v50, %v7012_v49  ;;  %v15350_v18 = vpop.f32.mrf.mxu1  ;;  %v15796_v50 = vld [vmem:[#allocation62_spill] sm:$0xff]  ;;  %v15803_v51 = vld [vmem:[#allocation67_spill] sm:$0xff] }
 0x990   :  { %15781 = vst [vmem:[#allocation39_spill] sm:$0xff] %v15308_v3  ;;  %v15318_v37 = vadd.f32 %v10701_v23, %v15180_v2  ;;  %9824 = vmatprep.subr.mxu1 %v8227_v56  ;;  %v7775_v2 = vadd.f32 %v15247_v39, %v7013_v22  ;;  %v6996_v0 = vadd.f32 %v15005_v54, %v15789_v36  ;;  %15792 = vst [vmem:[#allocation23_spill] sm:$0xff] %v15350_v18  ;;  %v15804_v56 = vld [vmem:[#allocation78_spill] sm:$0xff]  ;;  %v15806_v25 = vld [vmem:[#allocation69_spill] sm:$0xff]  ;;  %v15372_v52 = vpop.permute.xlu0 %8105 }
 0x991   :  { %v7601_v42 = vpop.f32.mrf.mxu0  ;;  %9825 = vmatpush3.msra.mxu1 %v8211_v17  ;;  %v7759_v57 = vadd.f32 %v15163_v61, %v6997_v28  ;;  %v7011_v39 = vadd.f32 %v15101_v14, %v15790_v62  ;;  %v8208_v61 = vadd.f32 %v15115_v12, %v7760_v33  ;;  %v7010_v48 = vadd.f32 %v15794_v41, %v15793_v1  ;;  %v15795_v14 = vld [vmem:[#allocation95_spill] sm:$0xff]  ;;  %v15360_v12 = vpop.permute.xlu1 %8185  ;;  %v15807_v22 = vld [vmem:[#allocation34_spill] sm:$0xff]  ;;  %v15810_v33 = vld [vmem:[#allocation72_spill] sm:$0xff] }
 0x992   :  { %15784 = vst [vmem:[#allocation25_spill] sm:$0xff] %v15318_v37  ;;  %v15333_v5 = vadd.f32 %v7601_v42, %v15187_v15  ;;  %9826 = vmatprep.subr.mxu1 %v8226_v19  ;;  %v8224_v15 = vadd.f32 %v15109_v11, %v7776_v55  ;;  %v7758_v54 = vadd.f32 %v15170_v63, %v6996_v0  ;;  %v15797_v11 = vld [vmem:[#allocation76_spill] sm:$0xff]  ;;  %v15370_v17 = vpop.f32.mrf.mxu1  ;;  %v15808_v55 = vld [vmem:[#allocation57_spill] sm:$0xff]  ;;  %v15809_v16 = vld [vmem:[#allocation90_spill] sm:$0xff] }
 0x993   :  { %v10704_v9 = vpop.f32.mrf.mxu0  ;;  %9827 = vmatpush3.msra.mxu1 %v8210_v30  ;;  %v7773_v10 = vadd.f32 %v15795_v14, %v7011_v39  ;;  %v8223_v4 = vadd.f32 %v15796_v50, %v7775_v2  ;;  %v7009_v59 = vadd.f32 %v15801_v34, %v15800_v13  ;;  %v7772_v24 = vadd.f32 %v15802_v35, %v7010_v48  ;;  %v15811_v42 = vld [vmem:[#allocation80_spill] sm:$0xff]  ;;  %v15813_v49 = vld [vmem:[#allocation70_spill] sm:$0xff]  ;;  %v15814_v2 = vld [vmem:[#allocation73_spill] sm:$0xff] }
 0x994   :  { %15788 = vst [vmem:[#allocation26_spill] sm:$0xff] %v15333_v5  ;;  %v15346_v21 = vadd.f32 %v10704_v9, %v15194_v44  ;;  %9828 = vmatprep.subr.mxu1 %v8225_v53  ;;  %v15799_v44 = vld [vmem:[#allocation64_spill] sm:$0xff]  ;;  %v8222_v43 = vadd.f32 %v15803_v51, %v7774_v45  ;;  %v8206_v29 = vadd.f32 %v15806_v25, %v7758_v54  ;;  %v15815_v0 = vld [vmem:[#allocation31_spill] sm:$0xff]  ;;  %v15817_v9 = vld [vmem:[#allocation93_spill] sm:$0xff] }
 0x995   :  { %v7611_v20 = vpop.f32.mrf.mxu0  ;;  %9829 = vmatpush3.msra.mxu1 %v8209_v31  ;;  %v8207_v27 = vadd.f32 %v15799_v44, %v7759_v57  ;;  %v7008_v19 = vadd.f32 %v15808_v55, %v15807_v22  ;;  %v7771_v28 = vadd.f32 %v15809_v16, %v7009_v59  ;;  %v8221_v30 = vadd.f32 %v15810_v33, %v7773_v10  ;;  %v15816_v57 = vld [vmem:[#allocation54_spill] sm:$0xff]  ;;  %v15820_v54 = vld [vmem:[#allocation75_spill] sm:$0xff]  ;;  %v15395_v41 = vpop.permute.xlu1 %8180  ;;  %v15822_v48 = vld [vmem:[#allocation32_spill] sm:$0xff] }
 0x996   :  { %15791 = vst [vmem:[#allocation37_spill] sm:$0xff] %v15346_v21  ;;  %v15357_v26 = vadd.f32 %v7611_v20, %v15797_v11  ;;  %9830 = vmatprep.subr.mxu1 %v8224_v15  ;;  %v8205_v53 = vadd.f32 %v15814_v2, %v15813_v49  ;;  %v7007_v31 = vadd.f32 %v15816_v57, %v15815_v0  ;;  %v15818_v39 = vld [vmem:[#allocation74_spill] sm:$0xff]  ;;  %v15819_v15 = vld [vmem:[#allocation71_spill] sm:$0xff]  ;;  %v15391_v20 = vpop.f32.mrf.mxu1  ;;  %v15825_v11 = vld [vmem:[#allocation77_spill] sm:$0xff]  ;;  %v15405_v59 = vpop.permute.xlu0 %8100 }
 0x997   :  { %v10707_v63 = vpop.f32.mrf.mxu0  ;;  %9831 = vmatpush3.msra.mxu1 %v8208_v61  ;;  %v7770_v62 = vadd.f32 %v15817_v9, %v7008_v19  ;;  %v8220_v45 = vadd.f32 %v15818_v39, %v7772_v24  ;;  %v8204_v61 = vadd.f32 %v15820_v54, %v15819_v15  ;;  %15821 = vst [vmem:[#allocation36_spill] sm:$0xff] %v15391_v20  ;;  %v15823_v14 = vld [vmem:[#allocation55_spill] sm:$0xff]  ;;  %v15824_v50 = vld [vmem:[#allocation86_spill] sm:$0xff]  ;;  %v15828_v35 = vld [vmem:[#allocation29_spill] sm:$0xff] }
 0x998   :  { %15798 = vst [vmem:[#allocation38_spill] sm:$0xff] %v15357_v26  ;;  %v15367_v32 = vadd.f32 %v10707_v63, %v15804_v56  ;;  %9832 = vmatprep.subr.mxu1 %v8223_v4  ;;  %v7006_v10 = vadd.f32 %v15823_v14, %v15822_v48  ;;  %v7769_v4 = vadd.f32 %v15824_v50, %v7007_v31  ;;  %v15827_v63 = vld [vmem:[#allocation79_spill] sm:$0xff]  ;;  %v15829_v24 = vld [vmem:[#allocation52_spill] sm:$0xff]  ;;  %v15831_v25 = vld [vmem:[#allocation85_spill] sm:$0xff]  ;;  %v15413_v19 = vpop.f32.mrf.mxu1 }
 0x999   :  { %v7621_v23 = vpop.f32.mrf.mxu0  ;;  %9833 = vmatpush3.msra.mxu1 %v8207_v27  ;;  %v8219_v44 = vadd.f32 %v15825_v11, %v7771_v28  ;;  %v15826_v27 = vld [vmem:[#allocation66_spill] sm:$0xff]  ;;  %v7005_v51 = vadd.f32 %v15829_v24, %v15828_v35  ;;  %v15833_v22 = vld [vmem:[#allocation87_spill] sm:$0xff]  ;;  %v15835_v33 = vld [vmem:[#allocation53_spill] sm:$0xff] }
 0x99a   :  { %15805 = vst [vmem:[#allocation24_spill] sm:$0xff] %v15367_v32  ;;  %v15379_v7 = vadd.f32 %v7621_v23, %v15811_v42  ;;  %9834 = vmatprep.subr.mxu1 %v8222_v43  ;;  %v8203_v13 = vadd.f32 %v15827_v63, %v15826_v27  ;;  %v15830_v43 = vld [vmem:[#allocation89_spill] sm:$0xff]  ;;  %v15832_v23 = vld [vmem:[#allocation68_spill] sm:$0xff]  ;;  %v15834_v28 = vld [vmem:[#allocation30_spill] sm:$0xff] }
 0x99b   :  { %v15383_v36 = vpop.f32.mrf.mxu0  ;;  %9835 = vmatpush3.msra.mxu1 %v8206_v29  ;;  %v7768_v56 = vadd.f32 %v15830_v43, %v7006_v10  ;;  %v8218_v29 = vadd.f32 %v15831_v25, %v7770_v62  ;;  %v8202_v55 = vadd.f32 %v15833_v22, %v15832_v23  ;;  %v15836_v42 = vld [vmem:[#allocation82_spill] sm:$0xff]  ;;  %v15837_v2 = vld [vmem:[#allocation91_spill] sm:$0xff]  ;;  %v15425_v62 = vpop.permute.xlu1 %8175  ;;  %v15840_v39 = vld [vmem:[#allocation84_spill] sm:$0xff] }
 0x99c   :  { %15812 = vst [vmem:[#allocation35_spill] sm:$0xff] %v15379_v7  ;;  %9836 = vmatprep.subr.mxu1 %v8221_v30  ;;  %v7004_v30 = vadd.f32 %v15835_v33, %v15834_v28  ;;  %v7767_v49 = vadd.f32 %v15836_v42, %v7005_v51  ;;  %v15838_v0 = vld [vmem:[#allocation63_spill] sm:$0xff]  ;;  %v15839_v57 = vld [vmem:[#allocation94_spill] sm:$0xff]  ;;  %v15431_v10 = vpop.f32.mrf.mxu1  ;;  %v15844_v11 = vld [vmem:[#allocation101_spill] sm:$0xff] }
 0x99d   :  { %v15393_v1 = vpop.f32.mrf.mxu0  ;;  %9837 = vmatpush3.msra.mxu1 %v8205_v53  ;;  %v8217_v53 = vadd.f32 %v15837_v2, %v7769_v4  ;;  %v8201_v31 = vadd.f32 %v15839_v57, %v15838_v0  ;;  %v15841_v15 = vld [vmem:[#allocation98_spill] sm:$0xff]  ;;  %v15843_v48 = vld [vmem:[#allocation99_spill] sm:$0xff]  ;;  %v15435_v4 = vpop.permute.xlu0 %8095  ;;  %v15845_v27 = vld [vmem:[#allocation60_spill] sm:$0xff] }
 0x99e   :  { %9838 = vmatprep.subr.mxu1 %v8220_v45  ;;  %v7766_v45 = vadd.f32 %v15840_v39, %v7004_v30  ;;  %v8216_v54 = vadd.f32 %v15841_v15, %v7768_v56  ;;  %v15846_v63 = vld [vmem:[#allocation103_spill] sm:$0xff]  ;;  %v15847_v24 = vld [vmem:[#allocation105_spill] sm:$0xff]  ;;  %v15848_v43 = vld [vmem:[#allocation6_spill] sm:$0xff] }
 0x99f   :  { %v15403_v34 = vpop.f32.mrf.mxu0  ;;  %9839 = vmatpush3.msra.mxu1 %v8204_v61  ;;  %v15842_v61 = vld [vmem:[#allocation65_spill] sm:$0xff]  ;;  %v15851_v23 = vld [vmem:[#allocation106_spill] sm:$0xff]  ;;  %v15852_v33 = vld [vmem:[#allocation8_spill] sm:$0xff]  ;;  %v15449_v42 = vpop.permute.xlu1 %8170 }
 0x9a0   :  { %9840 = vmatprep.subr.mxu1 %v8219_v44  ;;  %v8200_v14 = vadd.f32 %v15843_v48, %v15842_v61  ;;  %v8215_v44 = vadd.f32 %v15844_v11, %v7767_v49  ;;  %v8214_v51 = vadd.f32 %v15847_v24, %v7766_v45  ;;  %v15849_v56 = vld [vmem:[#allocation49_spill] sm:$0xff]  ;;  %v15864_v58 = vld [vmem:[#allocation102_spill] sm:$0xff]  ;;  %v15868_v18 = vld [vmem:[#allocation20_spill] sm:$0xff] }
 0x9a1   :  { %v15415_v16 = vpop.f32.mrf.mxu0  ;;  %9841 = vmatpush3.msra.mxu1 %v8203_v13  ;;  %v8199_v13 = vadd.f32 %v15846_v63, %v15845_v27  ;;  %v8277_v25 = vrot.slane %v15849_v56, %v15848_v43  ;;  %v8289_v30 = vrot.slane %v15849_v56, %v15852_v33  ;;  %v15453_v2 = vpop.permute.xlu0 %8090  ;;  %v15863_v56 = vld [vmem:[#allocation48_spill] sm:$0xff]  ;;  %v15866_v26 = vld [vmem:[#allocation50_spill] sm:$0xff] }
 0x9a2   :  { %9842 = vmatprep.subr.mxu1 %v8218_v29  ;;  %v15850_v29 = vld [vmem:[#allocation61_spill] sm:$0xff]  ;;  %v7035_v5 = vadd.f32 %v15864_v58, %v15863_v56  ;;  %v15871_v32 = vld [vmem:[#allocation96_spill] sm:$0xff] }
 0x9a3   :  { %v15423_v9 = vpop.f32.mrf.mxu0  ;;  %9843 = vmatpush3.msra.mxu1 %v8202_v55  ;;  %v8198_v22 = vadd.f32 %v15851_v23, %v15850_v29  ;;  %v15445_v55 = vpop.f32.mrf.mxu1 }
 0x9a4   :  { %9844 = vmatprep.subr.mxu1 %v8217_v53 }
 0x9a5   :  { %v15433_v50 = vpop.f32.mrf.mxu0  ;;  %9845 = vmatpush3.msra.mxu1 %v8201_v31  ;;  %v15455_v53 = vpop.f32.mrf.mxu1 }
 0x9a6   :  { %9846 = vmatprep.subr.mxu1 %v8216_v54  ;;  %v15461_v31 = vpop.permute.xlu1 %8165  ;;  %v15465_v15 = vpop.permute.xlu0 %8085 }
 0x9a7   :  { %v10719_v35 = vpop.f32.mrf.mxu0  ;;  %9847 = vmatpush3.msra.mxu1 %v8200_v14  ;;  %v10625_v39 = vpop.f32.mrf.mxu1 }
 0x9a8   :  { %9848 = vmatprep.subr.mxu1 %v8215_v44  ;;  %v7797_v21 = vadd.f32 %v10719_v35, %v7035_v5  ;;  %v15873_v35 = vld [vmem:[#allocation47_spill] sm:$0xff] }
 0x9a9   :  { %v7661_v28 = vpop.f32.mrf.mxu0  ;;  %9849 = vmatpush3.msra.mxu1 %v8199_v13  ;;  %v6959_v61 = vpop.f32.mrf.mxu1 }
 0x9aa   :  { %9850 = vmatprep.subr.mxu1 %v8214_v51  ;;  %v15471_v14 = vpop.permute.xlu1 %8160  ;;  %v15475_v44 = vpop.permute.xlu0 %8080 }
 0x9ab   :  { %v15451_v49 = vpop.f32.mrf.mxu0  ;;  %9851 = vmatpush3.msra.mxu1 %v8198_v22  ;;  %v10628_v27 = vpop.f32.mrf.mxu1 }
 0x9ac   :  { %15853 = vst [vmem:[#allocation58_spill] sm:$0xff] %v15451_v49  ;;  %8359 = vmatmul.mubr.f32.vlgmr.msra.gmra.mxu1 %v8277_v25  ;;  %v15865_v49 = vld [vmem:[#allocation22_spill] sm:$0xff]  ;;  %v7049_v7 = vadd.f32 %v10628_v27, %v15868_v18  ;;  %v15874_v18 = vld [vmem:[#allocation100_spill] sm:$0xff] }
 0x9ad   :  { %v15457_v0 = vpop.f32.mrf.mxu0  ;;  %8428 = vmatprep.mubr.f32.mxu1 %v8289_v30  ;;  %v6969_v51 = vpop.f32.mrf.mxu1 }
 0x9ae   :  { %15854 = vst [vmem:[#allocation95_spill] sm:$0xff] %v15457_v0  ;;  %v15479_v24 = vpop.permute.xlu1 %8155  ;;  %v15483_v29 = vpop.permute.xlu0 %8075 }
 0x9af   :  { %v15459_v57 = vpop.f32.mrf.mxu0  ;;  %15859 = vst [vmem:[#allocation56_spill] sm:$0xff] %v15479_v24  ;;  %15860 = vst [vmem:[#allocation97_spill] sm:$0xff] %v15483_v29  ;;  %v10631_v22 = vpop.f32.mrf.mxu1 }
 0x9b0   :  { %15855 = vst [vmem:[#allocation62_spill] sm:$0xff] %v15459_v57  ;;  %v7051_v8 = vadd.f32 %v10631_v22, %v15865_v49  ;;  %v15872_v49 = vld [vmem:[#allocation21_spill] sm:$0xff] }
 0x9b1   :  { %v15463_v45 = vpop.f32.mrf.mxu0  ;;  %v6979_v0 = vpop.f32.mrf.mxu1  ;;  %v7048_v22 = vadd.f32 %v6969_v51, %v15872_v49 }
 0x9b2   :  { %15856 = vst [vmem:[#allocation76_spill] sm:$0xff] %v15463_v45  ;;  %v15485_v30 = vpop.permute.xlu1 %8150  ;;  %v15487_v3 = vpop.permute.xlu0 %8070  ;;  %v15867_v45 = vld [vmem:[#allocation104_spill] sm:$0xff] }
 0x9b3   :  { %v15467_v54 = vpop.f32.mrf.mxu0  ;;  %15861 = vst [vmem:[#allocation67_spill] sm:$0xff] %v15485_v30  ;;  %15862 = vst [vmem:[#allocation78_spill] sm:$0xff] %v15487_v3  ;;  %v7034_v46 = vadd.f32 %v15867_v45, %v15866_v26  ;;  %v15870_v3 = vld [vmem:[#allocation46_spill] sm:$0xff]  ;;  %v7032_v45 = vadd.f32 %v15874_v18, %v15873_v35 }
 0x9b4   :  { %15857 = vst [vmem:[#allocation64_spill] sm:$0xff] %v15467_v54  ;;  %v7033_v24 = vadd.f32 %v15871_v32, %v15870_v3  ;;  %v15876_v32 = vld [vmem:[#allocation44_spill] sm:$0xff]  ;;  %v15887_v18 = vld [vmem:[#allocation14_spill] sm:$0xff] }
 0x9b5   :  { %v15469_v48 = vpop.f32.mrf.mxu0  ;;  %v7796_v58 = vadd.f32 %v7661_v28, %v7034_v46  ;;  %v15877_v28 = vld [vmem:[#allocation88_spill] sm:$0xff] }
 0x9b6   :  { %15858 = vst [vmem:[#allocation33_spill] sm:$0xff] %v15469_v48  ;;  %v15869_v48 = vld [vmem:[#allocation59_spill] sm:$0xff]  ;;  %v15496_v29 = vpop.permute.xlu1 %8145  ;;  %v15500_v54 = vpop.permute.xlu0 %8065  ;;  %v7031_v27 = vadd.f32 %v15877_v28, %v15876_v32  ;;  %v15893_v32 = vld [vmem:[#allocation56_spill] sm:$0xff] }
 0x9b7   :  { %v15473_v11 = vpop.f32.mrf.mxu0  ;;  %v7050_v38 = vadd.f32 %v6979_v0, %v15869_v48  ;;  %v8245_v0 = vadd.f32 %v15302_v6, %v7797_v21  ;;  %v15880_v21 = vld [vmem:[#allocation92_spill] sm:$0xff] }
 0x9b9   :  { %v15477_v63 = vpop.f32.mrf.mxu0 }
 0x9ba   :  { %v15516_v6 = vpop.permute.xlu1 %8140 }
 0x9bb   :  { %v10734_v13 = vpop.f32.mrf.mxu0 }
 0x9bd   :  { %v15481_v25 = vpop.f32.mrf.mxu0 }
 0x9bf   :  { %v10737_v23 = vpop.f32.mrf.mxu0 }
 0x9c1   :  { %v7721_v33 = vpop.f32.mrf.mxu0 }
 0x9c3   :  { %v10740_v43 = vpop.f32.mrf.mxu0 }
 0x9c4   :  { %v7811_v20 = vadd.f32 %v10740_v43, %v7049_v7  ;;  %v7794_v7 = vadd.f32 %v15433_v50, %v7032_v45  ;;  %v15522_v50 = vpop.permute.xlu0 %8060 }
 0x9c5   :  { %v7731_v37 = vpop.f32.mrf.mxu0 }
 0x9c6   :  { %v7810_v3 = vadd.f32 %v7731_v37, %v7048_v22  ;;  %v15879_v37 = vld [vmem:[#allocation45_spill] sm:$0xff]  ;;  %v8242_v49 = vadd.f32 %v15405_v59, %v7794_v7 }
 0x9c7   :  { %v10743_v57 = vpop.f32.mrf.mxu0  ;;  %v15895_v7 = vld [vmem:[#allocation97_spill] sm:$0xff] }
 0x9c8   :  { %v7813_v30 = vadd.f32 %v10743_v57, %v7051_v8  ;;  %v7795_v8 = vadd.f32 %v15423_v9, %v7033_v24  ;;  %v15875_v57 = vld [vmem:[#allocation18_spill] sm:$0xff]  ;;  %v8259_v9 = vadd.f32 %v15360_v12, %v7811_v20  ;;  %v15883_v20 = vld [vmem:[#allocation81_spill] sm:$0xff] }
 0x9c9   :  { %v7741_v56 = vpop.f32.mrf.mxu0  ;;  %v7047_v48 = vadd.f32 %v10625_v39, %v15875_v57  ;;  %v7793_v39 = vadd.f32 %v15403_v34, %v7031_v27  ;;  %v15882_v12 = vld [vmem:[#allocation42_spill] sm:$0xff]  ;;  %v15884_v34 = vld [vmem:[#allocation17_spill] sm:$0xff]  ;;  %v15894_v27 = vld [vmem:[#allocation24_spill] sm:$0xff] }
 0x9ca   :  { %v8261_v5 = vadd.f32 %v15288_v60, %v7813_v30  ;;  %v7812_v26 = vadd.f32 %v7741_v56, %v7050_v38  ;;  %v8244_v60 = vadd.f32 %v15339_v40, %v7796_v58  ;;  %v15878_v38 = vld [vmem:[#allocation19_spill] sm:$0xff]  ;;  %v8243_v24 = vadd.f32 %v15372_v52, %v7795_v8  ;;  %v15881_v40 = vld [vmem:[#allocation16_spill] sm:$0xff]  ;;  %v8056_v8 = vpop.permute.xlu0 %8055 }
 0x9cb   :  { %v7046_v43 = vadd.f32 %v6959_v61, %v15878_v38  ;;  %v7809_v51 = vadd.f32 %v10737_v23, %v7047_v48  ;;  %v7045_v30 = vadd.f32 %v15445_v55, %v15881_v40  ;;  %v8258_v23 = vadd.f32 %v15395_v41, %v7810_v3  ;;  %v15885_v55 = vld [vmem:[#allocation43_spill] sm:$0xff]  ;;  %v15891_v3 = vld [vmem:[#allocation36_spill] sm:$0xff] }
 0x9cc   :  { %v8260_v46 = vadd.f32 %v15326_v47, %v7812_v26  ;;  %9855 = vmatprep.subr.mxu1 %v8261_v5  ;;  %v7030_v47 = vadd.f32 %v15880_v21, %v15879_v37  ;;  %v7029_v58 = vadd.f32 %v15883_v20, %v15882_v12  ;;  %v7044_v52 = vadd.f32 %v15455_v53, %v15884_v34  ;;  %v8136_v53 = vpop.permute.xlu1 %8135  ;;  %v15900_v37 = vld [vmem:[#allocation35_spill] sm:$0xff]  ;;  %v15901_v21 = vld [vmem:[#allocation78_spill] sm:$0xff]  ;;  %v15905_v12 = vld [vmem:[#allocation37_spill] sm:$0xff] }
 0x9cd   :  { %9856 = vmatpush3.msra.mxu1 %v8245_v0  ;;  %v7808_v61 = vadd.f32 %v7721_v33, %v7046_v43  ;;  %v7807_v22 = vadd.f32 %v10734_v13, %v7045_v30  ;;  %v8257_v5 = vadd.f32 %v15425_v62, %v7809_v51  ;;  %v15886_v33 = vld [vmem:[#allocation83_spill] sm:$0xff]  ;;  %v8241_v35 = vadd.f32 %v15435_v4, %v7793_v39  ;;  %v15898_v43 = vld [vmem:[#allocation33_spill] sm:$0xff]  ;;  %v15904_v30 = vld [vmem:[#allocation62_spill] sm:$0xff] }
 0x9ce   :  { %9857 = vmatprep.subr.mxu1 %v8260_v46  ;;  %v7792_v56 = vadd.f32 %v15415_v16, %v7030_v47  ;;  %v7028_v26 = vadd.f32 %v15886_v33, %v15885_v55  ;;  %v7791_v41 = vadd.f32 %v15383_v36, %v7029_v58  ;;  %v7043_v16 = vadd.f32 %v15413_v19, %v15887_v18  ;;  %v15888_v0 = vld [vmem:[#allocation15_spill] sm:$0xff]  ;;  %v15892_v46 = vld [vmem:[#allocation64_spill] sm:$0xff]  ;;  %v15909_v55 = vld [vmem:[#allocation38_spill] sm:$0xff] }
 0x9cf   :  { %9858 = vmatpush3.msra.mxu1 %v8244_v60  ;;  %v7806_v59 = vadd.f32 %v15481_v25, %v7044_v52  ;;  %v8256_v45 = vadd.f32 %v15449_v42, %v7808_v61  ;;  %v7042_v36 = vadd.f32 %v15431_v10, %v15888_v0  ;;  %v8255_v57 = vadd.f32 %v15461_v31, %v7807_v22  ;;  %v15889_v42 = vld [vmem:[#allocation12_spill] sm:$0xff]  ;;  %v15890_v10 = vld [vmem:[#allocation13_spill] sm:$0xff]  ;;  %v15896_v60 = vld [vmem:[#allocation10_spill] sm:$0xff] }
 0x9d0   :  { %9859 = vmatprep.subr.mxu1 %v8259_v9  ;;  %v7790_v62 = vadd.f32 %v15393_v1, %v7028_v26  ;;  %v8240_v13 = vadd.f32 %v15453_v2, %v7792_v56  ;;  %v7805_v4 = vadd.f32 %v15473_v11, %v7043_v16  ;;  %v8239_v19 = vadd.f32 %v15465_v15, %v7791_v41  ;;  %v8131_v15 = vpop.permute.xlu1 %8130  ;;  %v15899_v51 = vld [vmem:[#allocation67_spill] sm:$0xff]  ;;  %v15908_v34 = vld [vmem:[#allocation76_spill] sm:$0xff]  ;;  %v15912_v18 = vld [vmem:[#allocation58_spill] sm:$0xff] }
 0x9d1   :  { %9860 = vmatpush3.msra.mxu1 %v8243_v24  ;;  %v7041_v25 = vadd.f32 %v15370_v17, %v15889_v42  ;;  %v7804_v1 = vadd.f32 %v15477_v63, %v7042_v36  ;;  %v8254_v2 = vadd.f32 %v15471_v14, %v7806_v59  ;;  %v7040_v11 = vadd.f32 %v15891_v3, %v15890_v10  ;;  %v8051_v63 = vpop.permute.xlu0 %8050  ;;  %v15897_v14 = vld [vmem:[#allocation40_spill] sm:$0xff]  ;;  %v15902_v39 = vld [vmem:[#allocation11_spill] sm:$0xff]  ;;  %v15913_v59 = vld [vmem:[#allocation25_spill] sm:$0xff] }
 0x9d2   :  { %9861 = vmatprep.subr.mxu1 %v8258_v23  ;;  %v8238_v48 = vadd.f32 %v15475_v44, %v7790_v62  ;;  %v8253_v28 = vadd.f32 %v15893_v32, %v7805_v4  ;;  %v8237_v17 = vadd.f32 %v15895_v7, %v15894_v27  ;;  %v7039_v38 = vadd.f32 %v15897_v14, %v15896_v60  ;;  %v15903_v24 = vld [vmem:[#allocation23_spill] sm:$0xff]  ;;  %v15911_v41 = vld [vmem:[#allocation28_spill] sm:$0xff]  ;;  %v15915_v0 = vld [vmem:[#allocation26_spill] sm:$0xff] }
 0x9d3   :  { %9862 = vmatpush3.msra.mxu1 %v8242_v49  ;;  %v7803_v31 = vadd.f32 %v15892_v46, %v7041_v25  ;;  %v7802_v44 = vadd.f32 %v15898_v43, %v7040_v11  ;;  %v8252_v9 = vadd.f32 %v15899_v51, %v7804_v1  ;;  %v8236_v47 = vadd.f32 %v15901_v21, %v15900_v37  ;;  %v15906_v58 = vld [vmem:[#allocation51_spill] sm:$0xff]  ;;  %v15918_v1 = vld [vmem:[#allocation49_spill] sm:$0xff]  ;;  %v15920_v32 = vld [vmem:[#allocation6_spill] sm:$0xff] }
 0x9d4   :  { %9863 = vmatprep.subr.mxu1 %v8257_v5  ;;  %v7038_v40 = vadd.f32 %v15903_v24, %v15902_v39  ;;  %v7801_v61 = vadd.f32 %v15904_v30, %v7039_v38  ;;  %v8235_v20 = vadd.f32 %v15500_v54, %v15905_v12  ;;  %v15907_v56 = vld [vmem:[#allocation27_spill] sm:$0xff]  ;;  %v8126_v5 = vpop.permute.xlu1 %8125  ;;  %v8234_v33 = vadd.f32 %v15522_v50, %v15909_v55 }
 0x9d5   :  { %9864 = vmatpush3.msra.mxu1 %v8241_v35  ;;  %v8251_v23 = vadd.f32 %v15496_v29, %v7803_v31  ;;  %v7037_v49 = vadd.f32 %v15907_v56, %v15906_v58  ;;  %v8250_v22 = vadd.f32 %v15516_v6, %v7802_v44  ;;  %v8046_v26 = vpop.permute.xlu0 %8045  ;;  %v15910_v29 = vld [vmem:[#allocation9_spill] sm:$0xff]  ;;  %v15914_v62 = vld [vmem:[#allocation95_spill] sm:$0xff]  ;;  %v8232_v36 = vadd.f32 %v8051_v63, %v15915_v0 }
 0x9d6   :  { %9865 = vmatprep.subr.mxu1 %v8256_v45  ;;  %v7800_v52 = vadd.f32 %v15908_v34, %v7038_v40  ;;  %v7036_v35 = vadd.f32 %v15911_v41, %v15910_v29  ;;  %v8249_v16 = vadd.f32 %v8136_v53, %v7801_v61  ;;  %v8233_v45 = vadd.f32 %v8056_v8, %v15913_v59  ;;  %v15917_v53 = vld [vmem:[#allocation7_spill] sm:$0xff] }
 0x9d7   :  { %9866 = vmatpush3.msra.mxu1 %v8240_v13  ;;  %v7799_v54 = vadd.f32 %v15912_v18, %v7037_v49  ;;  %v8285_v8 = vrot.slane %v15918_v1, %v15917_v53 }
 0x9d8   :  { %9867 = vmatprep.subr.mxu1 %v8255_v57  ;;  %v7798_v13 = vadd.f32 %v15914_v62, %v7036_v35  ;;  %v8248_v6 = vadd.f32 %v8131_v15, %v7800_v52  ;;  %v8121_v4 = vpop.permute.xlu1 %8120  ;;  %v15916_v57 = vld [vmem:[#allocation41_spill] sm:$0xff] }
 0x9d9   :  { %9868 = vmatpush3.msra.mxu1 %v8239_v19  ;;  %v8247_v50 = vadd.f32 %v8126_v5, %v7799_v54  ;;  %v8231_v19 = vadd.f32 %v8046_v26, %v15916_v57  ;;  %v8041_v42 = vpop.permute.xlu0 %8040 }
 0x9da   :  { %9869 = vmatprep.subr.mxu1 %v8254_v2  ;;  %v8246_v25 = vadd.f32 %v8121_v4, %v7798_v13  ;;  %v15919_v2 = vld [vmem:[#allocation39_spill] sm:$0xff] }
 0x9db   :  { %9870 = vmatpush3.msra.mxu1 %v8238_v48  ;;  %v8230_v48 = vadd.f32 %v8041_v42, %v15919_v2 }
 0x9dc   :  { %9871 = vmatprep.subr.mxu1 %v8253_v28  ;;  %v8267_v11 = vpop.permute.xlu1 %8266 }
 0x9dd   :  { %9872 = vmatpush3.msra.mxu1 %v8237_v17  ;;  %v8272_v28 = vrot.slane %v8267_v11, %v15920_v32 }
 0x9de   :  { %9873 = vmatprep.subr.mxu1 %v8252_v9 }
 0x9df   :  { %9874 = vmatpush3.msra.mxu1 %v8236_v47 }
 0x9e0   :  { %9875 = vmatprep.subr.mxu1 %v8251_v23 }
 0x9e1   :  { %9876 = vmatpush3.msra.mxu1 %v8235_v20 }
 0x9e2   :  { %9877 = vmatprep.subr.mxu1 %v8250_v22 }
 0x9e3   :  { %9878 = vmatpush3.msra.mxu1 %v8234_v33 }
 0x9e4   :  { %9879 = vmatprep.subr.mxu1 %v8249_v16 }
 0x9e5   :  { %9880 = vmatpush3.msra.mxu1 %v8233_v45 }
 0x9e6   :  { %9881 = vmatprep.subr.mxu1 %v8248_v6 }
 0x9e7   :  { %9882 = vmatpush3.msra.mxu1 %v8232_v36 }
 0x9e8   :  { %9883 = vmatprep.subr.mxu1 %v8247_v50 }
 0x9e9   :  { %9884 = vmatpush3.msra.mxu1 %v8231_v19 }
 0x9ea   :  { %9885 = vmatprep.subr.mxu1 %v8246_v25 }
 0x9eb   :  { %9886 = vmatpush3.msra.mxu1 %v8230_v48 }
 0x9ec   :  { %8429 = vmatmul.mubr.f32.vlgmr.msra.gmra.mxu1 %v8285_v8 }
 0xa6c   :  { %v9852_v10 = vpop.f32.mrf.mxu1 }
 0xa6e   :  { %v9853_v3 = vpop.f32.mrf.mxu1 }
 0xa6f   :  { %v9854_v46 = vadd.f32 %v9853_v3, %v9852_v10 }
 0xa71   :  { %v8361_v27 = vadd.f32 %v9854_v46, %v8272_v28 }
 0xaac   :  { %v9887_v31 = vpop.f32.mrf.mxu1 }
 0xaae   :  { %v9888_v15 = vpop.f32.mrf.mxu1 }
 0xaaf   :  { %v9889_v7 = vadd.f32 %v9888_v15, %v9887_v31 }
 0xab1   :  { %v8431_v17 = vadd.f32 %v9889_v7, %v8361_v27 }
 0xab3   :  { %8435 = vst.msk [vmem:[#allocation3] sm:$0x1] %vm8434_vm3, %v8431_v17 }
 0xab4   :  { %10889 = shalt.err (!%p10886_p4)
}
 0xab5   :  { %8445 = dma.vmem_to_hbm [thread:$0]  %s8443_s21, 16, %s15610_s18, [#allocation4]  }
 0xab6   :  { %10898 = dma.done.wait [#allocation4], 16  }
 0xab7   :  { %10899 = vsyncadd [#allocation4], 4294967280 }
 0xab8   :  { %8449 = vsyncpa [#allocation4], 1 }

</bundles_post_ra>
